<compile_context>
chip_gen: v7x
topology: tpu7x:2x2x1
jax: 0.10.0
libtpu: 0.0.40
codegen_flags: <defaults>
</compile_context>

<pallas_src>
import jax
import jax.numpy as jnp
from jax.experimental import pallas as pl
from jax.experimental.pallas import tpu as pltpu


# ----------------------------------------------------------------------------
# GRU cell gate math (PyTorch semantics).  gx = x W_i + b_i, gh = h W_h + b_h,
# both laid out [r | z | n] along the last (3H) axis; slices are 128-aligned.
#   r = sigmoid(gx_r + gh_r)
#   z = sigmoid(gx_z + gh_z)
#   n = tanh(gx_n + r * gh_n)          (gh_n already contains b_hn)
#   h' = (1 - z) * n + z * h
# ----------------------------------------------------------------------------
def _gru_cell(gx, gh, h, H):
    r = jax.nn.sigmoid(gx[:, 0:H] + gh[:, 0:H])
    z = jax.nn.sigmoid(gx[:, H:2 * H] + gh[:, H:2 * H])
    n = jnp.tanh(gx[:, 2 * H:3 * H] + r * gh[:, 2 * H:3 * H])
    return (1.0 - z) * n + z * h


def _bf16(a):
    return a.astype(jnp.bfloat16)


def _gru2_steps(x_ref, h0i_ref, h1i_ref,
                wi0_ref, wh0_ref, bi0_ref, bh0_ref,
                wi1_ref, wh1_ref, bi1_ref, bh1_ref,
                out1_ref, gx_s, h0_s, h1_s):
    """Fused 2-layer GRU over all timesteps.  Hidden states live in VMEM scratch."""
    T, B, Din = x_ref.shape
    H = h0_s.shape[-1]

    # Hoisted layer-0 input projection: one batched matmul over all timesteps.
    x_all = _bf16(x_ref[...].reshape(T * B, Din))
    gx = jnp.dot(x_all, wi0_ref[...], preferred_element_type=jnp.float32) + bi0_ref[...]
    gx_s[...] = gx.reshape(T, B, 3 * H)

    h0_s[...] = h0i_ref[...]
    h1_s[...] = h1i_ref[...]

    def step(t, carry):
        h0 = h0_s[...]
        h1 = h1_s[...]

        # Layer 0: only the hidden-side matmul remains on the serial path.
        gh0 = (jnp.dot(_bf16(h0), wh0_ref[...],
                       preferred_element_type=jnp.float32) + bh0_ref[...])
        h0n = _gru_cell(gx_s[t], gh0, h0, H)

        # Layer 1: consumes layer-0's new hidden state directly (no HBM trip).
        gi1 = (jnp.dot(_bf16(h0n), wi1_ref[...],
                       preferred_element_type=jnp.float32) + bi1_ref[...])
        gh1 = (jnp.dot(_bf16(h1), wh1_ref[...],
                       preferred_element_type=jnp.float32) + bh1_ref[...])
        h1n = _gru_cell(gi1, gh1, h1, H)

        h0_s[...] = h0n
        h1_s[...] = h1n
        if out1_ref is not None:
            out1_ref[t] = h1n
        return carry

    jax.lax.fori_loop(0, T, step, 0, unroll=True)


# ----------------------------------------------------------------------------
# Encoder kernel: fused 2-layer GRU, outputs only the final hidden states.
# ----------------------------------------------------------------------------
def encoder_gru2_kernel(x_ref, h0i_ref, h1i_ref,
                        wi0_ref, wh0_ref, bi0_ref, bh0_ref,
                        wi1_ref, wh1_ref, bi1_ref, bh1_ref,
                        h0T_ref, h1T_ref,
                        gx_s, h0_s, h1_s):
    _gru2_steps(x_ref, h0i_ref, h1i_ref,
                wi0_ref, wh0_ref, bi0_ref, bh0_ref,
                wi1_ref, wh1_ref, bi1_ref, bh1_ref,
                None, gx_s, h0_s, h1_s)
    h0T_ref[...] = h0_s[...]
    h1T_ref[...] = h1_s[...]


def encoder_gru2(x, h0, h1, p0, p1):
    """x: (T, B, Din) f32 -> (hT_layer0 (B,H), hT_layer1 (B,H))."""
    T, B, _ = x.shape
    H = h0.shape[-1]
    vmem = pl.BlockSpec(memory_space=pltpu.MemorySpace.VMEM)
    return pl.pallas_call(
        encoder_gru2_kernel,
        out_shape=(jax.ShapeDtypeStruct((B, H), jnp.float32),
                   jax.ShapeDtypeStruct((B, H), jnp.float32)),
        in_specs=[vmem] * 11,
        out_specs=(vmem, vmem),
        scratch_shapes=[pltpu.VMEM((T, B, 3 * H), jnp.float32),
                        pltpu.VMEM((B, H), jnp.float32),
                        pltpu.VMEM((B, H), jnp.float32)],
    )(x, h0, h1,
      p0["wi"], p0["wh"], p0["bi"], p0["bh"],
      p1["wi"], p1["wh"], p1["bi"], p1["bh"])


# ----------------------------------------------------------------------------
# Decoder kernel: fused 2-layer GRU + output Linear (vocab padded to 128 lanes).
# ----------------------------------------------------------------------------
def decoder_gru2_kernel(x_ref, h0i_ref, h1i_ref,
                        wi0_ref, wh0_ref, bi0_ref, bh0_ref,
                        wi1_ref, wh1_ref, bi1_ref, bh1_ref,
                        lw_ref, lb_ref,
                        logits_ref, h0T_ref, h1T_ref,
                        gx_s, out1_s, h0_s, h1_s):
    _gru2_steps(x_ref, h0i_ref, h1i_ref,
                wi0_ref, wh0_ref, bi0_ref, bh0_ref,
                wi1_ref, wh1_ref, bi1_ref, bh1_ref,
                out1_s, gx_s, h0_s, h1_s)
    T, B, H = out1_s.shape
    Vp = lw_ref.shape[-1]
    o = _bf16(out1_s[...].reshape(T * B, H))
    logits = jnp.dot(o, lw_ref[...], preferred_element_type=jnp.float32) + lb_ref[...]
    logits_ref[...] = logits.reshape(T, B, Vp)
    h0T_ref[...] = h0_s[...]
    h1T_ref[...] = h1_s[...]


def decoder_gru2(x, h0, h1, p0, p1, lin_w, lin_b):
    """x: (T, B, Et+H) f32 -> (logits_padded (T,B,Vp), hT0 (B,H), hT1 (B,H))."""
    T, B, _ = x.shape
    H = h0.shape[-1]
    Vp = lin_w.shape[-1]
    vmem = pl.BlockSpec(memory_space=pltpu.MemorySpace.VMEM)
    return pl.pallas_call(
        decoder_gru2_kernel,
        out_shape=(jax.ShapeDtypeStruct((T, B, Vp), jnp.float32),
                   jax.ShapeDtypeStruct((B, H), jnp.float32),
                   jax.ShapeDtypeStruct((B, H), jnp.float32)),
        in_specs=[vmem] * 13,
        out_specs=(vmem, vmem, vmem),
        scratch_shapes=[pltpu.VMEM((T, B, 3 * H), jnp.float32),
                        pltpu.VMEM((T, B, H), jnp.float32),
                        pltpu.VMEM((B, H), jnp.float32),
                        pltpu.VMEM((B, H), jnp.float32)],
    )(x, h0, h1,
      p0["wi"], p0["wh"], p0["bi"], p0["bh"],
      p1["wi"], p1["wh"], p1["bi"], p1["bh"],
      lin_w, lin_b)


# ----------------------------------------------------------------------------
# Parameter initialization (fused [r|z|n] layouts; weights in bf16 for the MXU,
# biases and embeddings in f32).
# ----------------------------------------------------------------------------
def init_gru_layer(key, din, h):
    k = 1.0 / (h ** 0.5)
    k1, k2, k3, k4 = jax.random.split(key, 4)
    return {
        "wi": jax.random.uniform(k1, (din, 3 * h), jnp.float32, -k, k).astype(jnp.bfloat16),
        "wh": jax.random.uniform(k2, (h, 3 * h), jnp.float32, -k, k).astype(jnp.bfloat16),
        "bi": jax.random.uniform(k3, (1, 3 * h), jnp.float32, -k, k),
        "bh": jax.random.uniform(k4, (1, 3 * h), jnp.float32, -k, k),
    }


def init_embedding(key, vocab, dim, padding_idx=3):
    e = jax.random.normal(key, (vocab, dim), jnp.float32)
    return e.at[padding_idx].set(0.0)   # nn.Embedding(padding_idx=3)


def init_linear(key, h, v, v_pad):
    k = 1.0 / (h ** 0.5)
    kw, kb = jax.random.split(key)
    w = jax.random.uniform(kw, (h, v), jnp.float32, -k, k)
    b = jax.random.uniform(kb, (1, v), jnp.float32, -k, k)
    w_pad = jnp.zeros((h, v_pad), jnp.float32).at[:, :v].set(w).astype(jnp.bfloat16)
    b_pad = jnp.zeros((1, v_pad), jnp.float32).at[:, :v].set(b)
    return w_pad, b_pad


def init_params(key, src_vocab, tgt_vocab, hidden, v_pad):
    ks = jax.random.split(key, 7)
    lin_w, lin_b = init_linear(ks[6], hidden, tgt_vocab, v_pad)
    return {
        "enc_emb": init_embedding(ks[0], src_vocab, src_vocab),
        "dec_emb": init_embedding(ks[1], tgt_vocab, tgt_vocab),
        # encoder GRU: layer0 in = src_vocab (ebd_size), layer1 in = hidden
        "enc_gru0": init_gru_layer(ks[2], src_vocab, hidden),
        "enc_gru1": init_gru_layer(ks[3], hidden, hidden),
        # decoder GRU: layer0 in = tgt_vocab + hidden, layer1 in = hidden
        "dec_gru0": init_gru_layer(ks[4], tgt_vocab + hidden, hidden),
        "dec_gru1": init_gru_layer(ks[5], hidden, hidden),
        "lin_w": lin_w,
        "lin_b": lin_b,
    }


# ----------------------------------------------------------------------------
# Seq2Seq forward (matches the PyTorch module semantics).
# ----------------------------------------------------------------------------
def seq2seq_forward(params, encoder_inputs, decoder_inputs):
    B = encoder_inputs.shape[0]
    H = params["enc_gru0"]["wh"].shape[0]          # static shape -> no tracer issue
    V_tgt = params["dec_emb"].shape[0]

    # ---- Encoder ----
    enc_emb = jnp.take(params["enc_emb"], encoder_inputs, axis=0)   # (B, Ts, Es)
    x = jnp.transpose(enc_emb, (1, 0, 2))                           # (Ts, B, Es)
    h_zero = jnp.zeros((B, H), jnp.float32)
    he0, he1 = encoder_gru2(x, h_zero, h_zero,
                            params["enc_gru0"], params["enc_gru1"])

    # ---- Decoder ----
    dec_emb = jnp.take(params["dec_emb"], decoder_inputs, axis=0)   # (B, Tt, Et)
    d = jnp.transpose(dec_emb, (1, 0, 2))                           # (Tt, B, Et)
    Tt = d.shape[0]
    content = jnp.broadcast_to(he1[None], (Tt, B, H))               # repeat last state
    dx = jnp.concatenate([d, content], axis=-1)                     # (Tt, B, Et+H)

    logits_pad, hd0, hd1 = decoder_gru2(dx, he0, he1,
                                        params["dec_gru0"], params["dec_gru1"],
                                        params["lin_w"], params["lin_b"])
    logits = logits_pad[..., :V_tgt]                                # (Tt, B, V_tgt)
    hidden = jnp.stack([hd0, hd1], axis=0)                          # (2, B, H)
    return logits, hidden


if __name__ == "__main__":
    # Small synthetic shapes consistent with the module's forward.
    B, T_SRC, T_TGT = 2, 8, 8
    SRC_VOCAB, TGT_VOCAB = 11, 13
    HIDDEN = 128         # lane-dense hidden size (one full 128-lane vreg row)
    V_PAD = 128          # output-projection vocab dim padded to a full lane width

    key = jax.random.PRNGKey(0)
    kp, ke, kd = jax.random.split(key, 3)

    params = init_params(kp, SRC_VOCAB, TGT_VOCAB, HIDDEN, V_PAD)
    encoder_inputs = jax.random.randint(ke, (B, T_SRC), 0, SRC_VOCAB, jnp.int32)
    decoder_inputs = jax.random.randint(kd, (B, T_TGT), 0, TGT_VOCAB, jnp.int32)

    logits, hidden = jax.jit(seq2seq_forward)(params, encoder_inputs, decoder_inputs)
    jax.block_until_ready((logits, hidden))

    assert logits.shape == (T_TGT, B, TGT_VOCAB)
    assert hidden.shape == (2, B, HIDDEN)
    print("KERNEL_OK")
</pallas_src>

<mosaic_0001>
module attributes {stable_mosaic.version = 11 : i64} {
  func.func @encoder_gru2_kernel(%arg0: memref<8x2x11xf32, #tpu.memory_space<vmem>>, %arg1: memref<2x128xf32, #tpu.memory_space<vmem>>, %arg2: memref<2x128xf32, #tpu.memory_space<vmem>>, %arg3: memref<11x384xbf16, #tpu.memory_space<vmem>>, %arg4: memref<128x384xbf16, #tpu.memory_space<vmem>>, %arg5: memref<1x384xf32, #tpu.memory_space<vmem>>, %arg6: memref<1x384xf32, #tpu.memory_space<vmem>>, %arg7: memref<128x384xbf16, #tpu.memory_space<vmem>>, %arg8: memref<128x384xbf16, #tpu.memory_space<vmem>>, %arg9: memref<1x384xf32, #tpu.memory_space<vmem>>, %arg10: memref<1x384xf32, #tpu.memory_space<vmem>>, %arg11: memref<2x128xf32, #tpu.memory_space<vmem>>, %arg12: memref<2x128xf32, #tpu.memory_space<vmem>>, %arg13: memref<8x2x384xf32, #tpu.memory_space<vmem>>, %arg14: memref<2x128xf32, #tpu.memory_space<vmem>>, %arg15: memref<2x128xf32, #tpu.memory_space<vmem>>) attributes {dimension_semantics = [], scalar_prefetch = 0 : i64, scratch_operands = 3 : i64, tpu.core_type = #tpu.core_type<tc>} {
    %c0 = arith.constant 0 : index
    %c0_0 = arith.constant 0 : index
    %c0_1 = arith.constant 0 : index
    %0 = vector.load %arg0[%c0, %c0_0, %c0_1] : memref<8x2x11xf32, #tpu.memory_space<vmem>>, vector<8x2x11xf32>
    %1 = vector.shape_cast %0 : vector<8x2x11xf32> to vector<16x11xf32>
    %2 = arith.truncf %1 : vector<16x11xf32> to vector<16x11xbf16>
    %c0_2 = arith.constant 0 : index
    %c0_3 = arith.constant 0 : index
    %3 = vector.load %arg3[%c0_2, %c0_3] : memref<11x384xbf16, #tpu.memory_space<vmem>>, vector<11x384xbf16>
    %cst = arith.constant dense<0.000000e+00> : vector<16x384xf32>
    %4 = tpu.matmul %2, %3, %cst {dimension_numbers = #tpu.dot_dimension_numbers<[1], [0], [0], [1], [0, 0, 1, 1], [], []>} : vector<16x11xbf16>, vector<11x384xbf16>, vector<16x384xf32> -> vector<16x384xf32>
    %c0_4 = arith.constant 0 : index
    %c0_5 = arith.constant 0 : index
    %5 = vector.load %arg5[%c0_4, %c0_5] : memref<1x384xf32, #tpu.memory_space<vmem>>, vector<1x384xf32>
    %6 = vector.broadcast %5 : vector<1x384xf32> to vector<16x384xf32>
    %7 = arith.addf %4, %6 : vector<16x384xf32>
    %8 = vector.shape_cast %7 : vector<16x384xf32> to vector<8x2x384xf32>
    %c0_6 = arith.constant 0 : index
    %c0_7 = arith.constant 0 : index
    %c0_8 = arith.constant 0 : index
    %9 = vector.load %arg13[%c0_6, %c0_7, %c0_8] : memref<8x2x384xf32, #tpu.memory_space<vmem>>, vector<8x2x384xf32>
    tpu.vector_store %arg13[%c0_6, %c0_7, %c0_8], %8 {strides = array<i32>} : memref<8x2x384xf32, #tpu.memory_space<vmem>>, vector<8x2x384xf32>,
    %c0_9 = arith.constant 0 : index
    %c0_10 = arith.constant 0 : index
    %10 = vector.load %arg1[%c0_9, %c0_10] : memref<2x128xf32, #tpu.memory_space<vmem>>, vector<2x128xf32>
    %c0_11 = arith.constant 0 : index
    %c0_12 = arith.constant 0 : index
    %11 = vector.load %arg14[%c0_11, %c0_12] : memref<2x128xf32, #tpu.memory_space<vmem>>, vector<2x128xf32>
    tpu.vector_store %arg14[%c0_11, %c0_12], %10 {strides = array<i32>} : memref<2x128xf32, #tpu.memory_space<vmem>>, vector<2x128xf32>,
    %c0_13 = arith.constant 0 : index
    %c0_14 = arith.constant 0 : index
    %12 = vector.load %arg2[%c0_13, %c0_14] : memref<2x128xf32, #tpu.memory_space<vmem>>, vector<2x128xf32>
    %c0_15 = arith.constant 0 : index
    %c0_16 = arith.constant 0 : index
    %13 = vector.load %arg15[%c0_15, %c0_16] : memref<2x128xf32, #tpu.memory_space<vmem>>, vector<2x128xf32>
    tpu.vector_store %arg15[%c0_15, %c0_16], %12 {strides = array<i32>} : memref<2x128xf32, #tpu.memory_space<vmem>>, vector<2x128xf32>,
    %c0_i32 = arith.constant 0 : i32
    %c0_17 = arith.constant 0 : index
    %c0_18 = arith.constant 0 : index
    %14 = vector.load %arg14[%c0_17, %c0_18] : memref<2x128xf32, #tpu.memory_space<vmem>>, vector<2x128xf32>
    %c0_19 = arith.constant 0 : index
    %c0_20 = arith.constant 0 : index
    %15 = vector.load %arg15[%c0_19, %c0_20] : memref<2x128xf32, #tpu.memory_space<vmem>>, vector<2x128xf32>
    %16 = arith.truncf %14 : vector<2x128xf32> to vector<2x128xbf16>
    %c0_21 = arith.constant 0 : index
    %c0_22 = arith.constant 0 : index
    %17 = vector.load %arg4[%c0_21, %c0_22] : memref<128x384xbf16, #tpu.memory_space<vmem>>, vector<128x384xbf16>
    %cst_23 = arith.constant dense<0.000000e+00> : vector<2x384xf32>
    %18 = tpu.matmul %16, %17, %cst_23 {dimension_numbers = #tpu.dot_dimension_numbers<[1], [0], [0], [1], [0, 0, 1, 1], [], []>} : vector<2x128xbf16>, vector<128x384xbf16>, vector<2x384xf32> -> vector<2x384xf32>
    %c0_24 = arith.constant 0 : index
    %c0_25 = arith.constant 0 : index
    %19 = vector.load %arg6[%c0_24, %c0_25] : memref<1x384xf32, #tpu.memory_space<vmem>>, vector<1x384xf32>
    %20 = vector.broadcast %19 : vector<1x384xf32> to vector<2x384xf32>
    %21 = arith.addf %18, %20 : vector<2x384xf32>
    %22 = arith.index_cast %c0_i32 : i32 to index
    %c0_26 = arith.constant 0 : index
    %c0_27 = arith.constant 0 : index
    %23 = vector.load %arg13[%22, %c0_26, %c0_27] : memref<8x2x384xf32, #tpu.memory_space<vmem>>, vector<1x2x384xf32>
    %24 = vector.shape_cast %23 : vector<1x2x384xf32> to vector<2x384xf32>
    %25 = vector.extract_strided_slice %24 {offsets = [0, 0], sizes = [2, 128], strides = [1, 1]} : vector<2x384xf32> to vector<2x128xf32>
    %26 = vector.extract_strided_slice %21 {offsets = [0, 0], sizes = [2, 128], strides = [1, 1]} : vector<2x384xf32> to vector<2x128xf32>
    %27 = arith.addf %25, %26 : vector<2x128xf32>
    %28 = arith.negf %27 : vector<2x128xf32>
    %29 = math.exp %28 : vector<2x128xf32>
    %cst_28 = arith.constant 1.000000e+00 : f32
    %30 = vector.broadcast %cst_28 : f32 to vector<2x128xf32>
    %31 = arith.addf %30, %29 : vector<2x128xf32>
    %32 = arith.divf %30, %31 : vector<2x128xf32>
    %33 = vector.extract_strided_slice %24 {offsets = [0, 128], sizes = [2, 128], strides = [1, 1]} : vector<2x384xf32> to vector<2x128xf32>
    %34 = vector.extract_strided_slice %21 {offsets = [0, 128], sizes = [2, 128], strides = [1, 1]} : vector<2x384xf32> to vector<2x128xf32>
    %35 = arith.addf %33, %34 : vector<2x128xf32>
    %36 = arith.negf %35 : vector<2x128xf32>
    %37 = math.exp %36 : vector<2x128xf32>
    %cst_29 = arith.constant 1.000000e+00 : f32
    %38 = vector.broadcast %cst_29 : f32 to vector<2x128xf32>
    %39 = arith.addf %38, %37 : vector<2x128xf32>
    %40 = arith.divf %38, %39 : vector<2x128xf32>
    %41 = vector.extract_strided_slice %24 {offsets = [0, 256], sizes = [2, 128], strides = [1, 1]} : vector<2x384xf32> to vector<2x128xf32>
    %42 = vector.extract_strided_slice %21 {offsets = [0, 256], sizes = [2, 128], strides = [1, 1]} : vector<2x384xf32> to vector<2x128xf32>
    %43 = arith.mulf %32, %42 : vector<2x128xf32>
    %44 = arith.addf %41, %43 : vector<2x128xf32>
    %45 = math.tanh %44 : vector<2x128xf32>
    %cst_30 = arith.constant 1.000000e+00 : f32
    %46 = vector.broadcast %cst_30 : f32 to vector<2x128xf32>
    %47 = arith.subf %46, %40 : vector<2x128xf32>
    %48 = arith.mulf %47, %45 : vector<2x128xf32>
    %49 = arith.mulf %40, %14 : vector<2x128xf32>
    %50 = arith.addf %48, %49 : vector<2x128xf32>
    %51 = arith.truncf %50 : vector<2x128xf32> to vector<2x128xbf16>
    %c0_31 = arith.constant 0 : index
    %c0_32 = arith.constant 0 : index
    %52 = vector.load %arg7[%c0_31, %c0_32] : memref<128x384xbf16, #tpu.memory_space<vmem>>, vector<128x384xbf16>
    %cst_33 = arith.constant dense<0.000000e+00> : vector<2x384xf32>
    %53 = tpu.matmul %51, %52, %cst_33 {dimension_numbers = #tpu.dot_dimension_numbers<[1], [0], [0], [1], [0, 0, 1, 1], [], []>} : vector<2x128xbf16>, vector<128x384xbf16>, vector<2x384xf32> -> vector<2x384xf32>
    %c0_34 = arith.constant 0 : index
    %c0_35 = arith.constant 0 : index
    %54 = vector.load %arg9[%c0_34, %c0_35] : memref<1x384xf32, #tpu.memory_space<vmem>>, vector<1x384xf32>
    %55 = vector.broadcast %54 : vector<1x384xf32> to vector<2x384xf32>
    %56 = arith.addf %53, %55 : vector<2x384xf32>
    %57 = arith.truncf %15 : vector<2x128xf32> to vector<2x128xbf16>
    %c0_36 = arith.constant 0 : index
    %c0_37 = arith.constant 0 : index
    %58 = vector.load %arg8[%c0_36, %c0_37] : memref<128x384xbf16, #tpu.memory_space<vmem>>, vector<128x384xbf16>
    %cst_38 = arith.constant dense<0.000000e+00> : vector<2x384xf32>
    %59 = tpu.matmul %57, %58, %cst_38 {dimension_numbers = #tpu.dot_dimension_numbers<[1], [0], [0], [1], [0, 0, 1, 1], [], []>} : vector<2x128xbf16>, vector<128x384xbf16>, vector<2x384xf32> -> vector<2x384xf32>
    %c0_39 = arith.constant 0 : index
    %c0_40 = arith.constant 0 : index
    %60 = vector.load %arg10[%c0_39, %c0_40] : memref<1x384xf32, #tpu.memory_space<vmem>>, vector<1x384xf32>
    %61 = vector.broadcast %60 : vector<1x384xf32> to vector<2x384xf32>
    %62 = arith.addf %59, %61 : vector<2x384xf32>
    %63 = vector.extract_strided_slice %56 {offsets = [0, 0], sizes = [2, 128], strides = [1, 1]} : vector<2x384xf32> to vector<2x128xf32>
    %64 = vector.extract_strided_slice %62 {offsets = [0, 0], sizes = [2, 128], strides = [1, 1]} : vector<2x384xf32> to vector<2x128xf32>
    %65 = arith.addf %63, %64 : vector<2x128xf32>
    %66 = arith.negf %65 : vector<2x128xf32>
    %67 = math.exp %66 : vector<2x128xf32>
    %cst_41 = arith.constant 1.000000e+00 : f32
    %68 = vector.broadcast %cst_41 : f32 to vector<2x128xf32>
    %69 = arith.addf %68, %67 : vector<2x128xf32>
    %70 = arith.divf %68, %69 : vector<2x128xf32>
    %71 = vector.extract_strided_slice %56 {offsets = [0, 128], sizes = [2, 128], strides = [1, 1]} : vector<2x384xf32> to vector<2x128xf32>
    %72 = vector.extract_strided_slice %62 {offsets = [0, 128], sizes = [2, 128], strides = [1, 1]} : vector<2x384xf32> to vector<2x128xf32>
    %73 = arith.addf %71, %72 : vector<2x128xf32>
    %74 = arith.negf %73 : vector<2x128xf32>
    %75 = math.exp %74 : vector<2x128xf32>
    %cst_42 = arith.constant 1.000000e+00 : f32
    %76 = vector.broadcast %cst_42 : f32 to vector<2x128xf32>
    %77 = arith.addf %76, %75 : vector<2x128xf32>
    %78 = arith.divf %76, %77 : vector<2x128xf32>
    %79 = vector.extract_strided_slice %56 {offsets = [0, 256], sizes = [2, 128], strides = [1, 1]} : vector<2x384xf32> to vector<2x128xf32>
    %80 = vector.extract_strided_slice %62 {offsets = [0, 256], sizes = [2, 128], strides = [1, 1]} : vector<2x384xf32> to vector<2x128xf32>
    %81 = arith.mulf %70, %80 : vector<2x128xf32>
    %82 = arith.addf %79, %81 : vector<2x128xf32>
    %83 = math.tanh %82 : vector<2x128xf32>
    %cst_43 = arith.constant 1.000000e+00 : f32
    %84 = vector.broadcast %cst_43 : f32 to vector<2x128xf32>
    %85 = arith.subf %84, %78 : vector<2x128xf32>
    %86 = arith.mulf %85, %83 : vector<2x128xf32>
    %87 = arith.mulf %78, %15 : vector<2x128xf32>
    %88 = arith.addf %86, %87 : vector<2x128xf32>
    %c0_44 = arith.constant 0 : index
    %c0_45 = arith.constant 0 : index
    %89 = vector.load %arg14[%c0_44, %c0_45] : memref<2x128xf32, #tpu.memory_space<vmem>>, vector<2x128xf32>
    tpu.vector_store %arg14[%c0_44, %c0_45], %50 {strides = array<i32>} : memref<2x128xf32, #tpu.memory_space<vmem>>, vector<2x128xf32>,
    %c0_46 = arith.constant 0 : index
    %c0_47 = arith.constant 0 : index
    %90 = vector.load %arg15[%c0_46, %c0_47] : memref<2x128xf32, #tpu.memory_space<vmem>>, vector<2x128xf32>
    tpu.vector_store %arg15[%c0_46, %c0_47], %88 {strides = array<i32>} : memref<2x128xf32, #tpu.memory_space<vmem>>, vector<2x128xf32>,
    %c1_i32 = arith.constant 1 : i32
    %c0_48 = arith.constant 0 : index
    %c0_49 = arith.constant 0 : index
    %91 = vector.load %arg14[%c0_48, %c0_49] : memref<2x128xf32, #tpu.memory_space<vmem>>, vector<2x128xf32>
    %c0_50 = arith.constant 0 : index
    %c0_51 = arith.constant 0 : index
    %92 = vector.load %arg15[%c0_50, %c0_51] : memref<2x128xf32, #tpu.memory_space<vmem>>, vector<2x128xf32>
    %93 = arith.truncf %91 : vector<2x128xf32> to vector<2x128xbf16>
    %c0_52 = arith.constant 0 : index
    %c0_53 = arith.constant 0 : index
    %94 = vector.load %arg4[%c0_52, %c0_53] : memref<128x384xbf16, #tpu.memory_space<vmem>>, vector<128x384xbf16>
    %cst_54 = arith.constant dense<0.000000e+00> : vector<2x384xf32>
    %95 = tpu.matmul %93, %94, %cst_54 {dimension_numbers = #tpu.dot_dimension_numbers<[1], [0], [0], [1], [0, 0, 1, 1], [], []>} : vector<2x128xbf16>, vector<128x384xbf16>, vector<2x384xf32> -> vector<2x384xf32>
    %c0_55 = arith.constant 0 : index
    %c0_56 = arith.constant 0 : index
    %96 = vector.load %arg6[%c0_55, %c0_56] : memref<1x384xf32, #tpu.memory_space<vmem>>, vector<1x384xf32>
    %97 = vector.broadcast %96 : vector<1x384xf32> to vector<2x384xf32>
    %98 = arith.addf %95, %97 : vector<2x384xf32>
    %99 = arith.index_cast %c1_i32 : i32 to index
    %c0_57 = arith.constant 0 : index
    %c0_58 = arith.constant 0 : index
    %100 = vector.load %arg13[%99, %c0_57, %c0_58] : memref<8x2x384xf32, #tpu.memory_space<vmem>>, vector<1x2x384xf32>
    %101 = vector.shape_cast %100 : vector<1x2x384xf32> to vector<2x384xf32>
    %102 = vector.extract_strided_slice %101 {offsets = [0, 0], sizes = [2, 128], strides = [1, 1]} : vector<2x384xf32> to vector<2x128xf32>
    %103 = vector.extract_strided_slice %98 {offsets = [0, 0], sizes = [2, 128], strides = [1, 1]} : vector<2x384xf32> to vector<2x128xf32>
    %104 = arith.addf %102, %103 : vector<2x128xf32>
    %105 = arith.negf %104 : vector<2x128xf32>
    %106 = math.exp %105 : vector<2x128xf32>
    %cst_59 = arith.constant 1.000000e+00 : f32
    %107 = vector.broadcast %cst_59 : f32 to vector<2x128xf32>
    %108 = arith.addf %107, %106 : vector<2x128xf32>
    %109 = arith.divf %107, %108 : vector<2x128xf32>
    %110 = vector.extract_strided_slice %101 {offsets = [0, 128], sizes = [2, 128], strides = [1, 1]} : vector<2x384xf32> to vector<2x128xf32>
    %111 = vector.extract_strided_slice %98 {offsets = [0, 128], sizes = [2, 128], strides = [1, 1]} : vector<2x384xf32> to vector<2x128xf32>
    %112 = arith.addf %110, %111 : vector<2x128xf32>
    %113 = arith.negf %112 : vector<2x128xf32>
    %114 = math.exp %113 : vector<2x128xf32>
    %cst_60 = arith.constant 1.000000e+00 : f32
    %115 = vector.broadcast %cst_60 : f32 to vector<2x128xf32>
    %116 = arith.addf %115, %114 : vector<2x128xf32>
    %117 = arith.divf %115, %116 : vector<2x128xf32>
    %118 = vector.extract_strided_slice %101 {offsets = [0, 256], sizes = [2, 128], strides = [1, 1]} : vector<2x384xf32> to vector<2x128xf32>
    %119 = vector.extract_strided_slice %98 {offsets = [0, 256], sizes = [2, 128], strides = [1, 1]} : vector<2x384xf32> to vector<2x128xf32>
    %120 = arith.mulf %109, %119 : vector<2x128xf32>
    %121 = arith.addf %118, %120 : vector<2x128xf32>
    %122 = math.tanh %121 : vector<2x128xf32>
    %cst_61 = arith.constant 1.000000e+00 : f32
    %123 = vector.broadcast %cst_61 : f32 to vector<2x128xf32>
    %124 = arith.subf %123, %117 : vector<2x128xf32>
    %125 = arith.mulf %124, %122 : vector<2x128xf32>
    %126 = arith.mulf %117, %91 : vector<2x128xf32>
    %127 = arith.addf %125, %126 : vector<2x128xf32>
    %128 = arith.truncf %127 : vector<2x128xf32> to vector<2x128xbf16>
    %c0_62 = arith.constant 0 : index
    %c0_63 = arith.constant 0 : index
    %129 = vector.load %arg7[%c0_62, %c0_63] : memref<128x384xbf16, #tpu.memory_space<vmem>>, vector<128x384xbf16>
    %cst_64 = arith.constant dense<0.000000e+00> : vector<2x384xf32>
    %130 = tpu.matmul %128, %129, %cst_64 {dimension_numbers = #tpu.dot_dimension_numbers<[1], [0], [0], [1], [0, 0, 1, 1], [], []>} : vector<2x128xbf16>, vector<128x384xbf16>, vector<2x384xf32> -> vector<2x384xf32>
    %c0_65 = arith.constant 0 : index
    %c0_66 = arith.constant 0 : index
    %131 = vector.load %arg9[%c0_65, %c0_66] : memref<1x384xf32, #tpu.memory_space<vmem>>, vector<1x384xf32>
    %132 = vector.broadcast %131 : vector<1x384xf32> to vector<2x384xf32>
    %133 = arith.addf %130, %132 : vector<2x384xf32>
    %134 = arith.truncf %92 : vector<2x128xf32> to vector<2x128xbf16>
    %c0_67 = arith.constant 0 : index
    %c0_68 = arith.constant 0 : index
    %135 = vector.load %arg8[%c0_67, %c0_68] : memref<128x384xbf16, #tpu.memory_space<vmem>>, vector<128x384xbf16>
    %cst_69 = arith.constant dense<0.000000e+00> : vector<2x384xf32>
    %136 = tpu.matmul %134, %135, %cst_69 {dimension_numbers = #tpu.dot_dimension_numbers<[1], [0], [0], [1], [0, 0, 1, 1], [], []>} : vector<2x128xbf16>, vector<128x384xbf16>, vector<2x384xf32> -> vector<2x384xf32>
    %c0_70 = arith.constant 0 : index
    %c0_71 = arith.constant 0 : index
    %137 = vector.load %arg10[%c0_70, %c0_71] : memref<1x384xf32, #tpu.memory_space<vmem>>, vector<1x384xf32>
    %138 = vector.broadcast %137 : vector<1x384xf32> to vector<2x384xf32>
    %139 = arith.addf %136, %138 : vector<2x384xf32>
    %140 = vector.extract_strided_slice %133 {offsets = [0, 0], sizes = [2, 128], strides = [1, 1]} : vector<2x384xf32> to vector<2x128xf32>
    %141 = vector.extract_strided_slice %139 {offsets = [0, 0], sizes = [2, 128], strides = [1, 1]} : vector<2x384xf32> to vector<2x128xf32>
    %142 = arith.addf %140, %141 : vector<2x128xf32>
    %143 = arith.negf %142 : vector<2x128xf32>
    %144 = math.exp %143 : vector<2x128xf32>
    %cst_72 = arith.constant 1.000000e+00 : f32
    %145 = vector.broadcast %cst_72 : f32 to vector<2x128xf32>
    %146 = arith.addf %145, %144 : vector<2x128xf32>
    %147 = arith.divf %145, %146 : vector<2x128xf32>
    %148 = vector.extract_strided_slice %133 {offsets = [0, 128], sizes = [2, 128], strides = [1, 1]} : vector<2x384xf32> to vector<2x128xf32>
    %149 = vector.extract_strided_slice %139 {offsets = [0, 128], sizes = [2, 128], strides = [1, 1]} : vector<2x384xf32> to vector<2x128xf32>
    %150 = arith.addf %148, %149 : vector<2x128xf32>
    %151 = arith.negf %150 : vector<2x128xf32>
    %152 = math.exp %151 : vector<2x128xf32>
    %cst_73 = arith.constant 1.000000e+00 : f32
    %153 = vector.broadcast %cst_73 : f32 to vector<2x128xf32>
    %154 = arith.addf %153, %152 : vector<2x128xf32>
    %155 = arith.divf %153, %154 : vector<2x128xf32>
    %156 = vector.extract_strided_slice %133 {offsets = [0, 256], sizes = [2, 128], strides = [1, 1]} : vector<2x384xf32> to vector<2x128xf32>
    %157 = vector.extract_strided_slice %139 {offsets = [0, 256], sizes = [2, 128], strides = [1, 1]} : vector<2x384xf32> to vector<2x128xf32>
    %158 = arith.mulf %147, %157 : vector<2x128xf32>
    %159 = arith.addf %156, %158 : vector<2x128xf32>
    %160 = math.tanh %159 : vector<2x128xf32>
    %cst_74 = arith.constant 1.000000e+00 : f32
    %161 = vector.broadcast %cst_74 : f32 to vector<2x128xf32>
    %162 = arith.subf %161, %155 : vector<2x128xf32>
    %163 = arith.mulf %162, %160 : vector<2x128xf32>
    %164 = arith.mulf %155, %92 : vector<2x128xf32>
    %165 = arith.addf %163, %164 : vector<2x128xf32>
    %c0_75 = arith.constant 0 : index
    %c0_76 = arith.constant 0 : index
    %166 = vector.load %arg14[%c0_75, %c0_76] : memref<2x128xf32, #tpu.memory_space<vmem>>, vector<2x128xf32>
    tpu.vector_store %arg14[%c0_75, %c0_76], %127 {strides = array<i32>} : memref<2x128xf32, #tpu.memory_space<vmem>>, vector<2x128xf32>,
    %c0_77 = arith.constant 0 : index
    %c0_78 = arith.constant 0 : index
    %167 = vector.load %arg15[%c0_77, %c0_78] : memref<2x128xf32, #tpu.memory_space<vmem>>, vector<2x128xf32>
    tpu.vector_store %arg15[%c0_77, %c0_78], %165 {strides = array<i32>} : memref<2x128xf32, #tpu.memory_space<vmem>>, vector<2x128xf32>,
    %c2_i32 = arith.constant 2 : i32
    %c0_79 = arith.constant 0 : index
    %c0_80 = arith.constant 0 : index
    %168 = vector.load %arg14[%c0_79, %c0_80] : memref<2x128xf32, #tpu.memory_space<vmem>>, vector<2x128xf32>
    %c0_81 = arith.constant 0 : index
    %c0_82 = arith.constant 0 : index
    %169 = vector.load %arg15[%c0_81, %c0_82] : memref<2x128xf32, #tpu.memory_space<vmem>>, vector<2x128xf32>
    %170 = arith.truncf %168 : vector<2x128xf32> to vector<2x128xbf16>
    %c0_83 = arith.constant 0 : index
    %c0_84 = arith.constant 0 : index
    %171 = vector.load %arg4[%c0_83, %c0_84] : memref<128x384xbf16, #tpu.memory_space<vmem>>, vector<128x384xbf16>
    %cst_85 = arith.constant dense<0.000000e+00> : vector<2x384xf32>
    %172 = tpu.matmul %170, %171, %cst_85 {dimension_numbers = #tpu.dot_dimension_numbers<[1], [0], [0], [1], [0, 0, 1, 1], [], []>} : vector<2x128xbf16>, vector<128x384xbf16>, vector<2x384xf32> -> vector<2x384xf32>
    %c0_86 = arith.constant 0 : index
    %c0_87 = arith.constant 0 : index
    %173 = vector.load %arg6[%c0_86, %c0_87] : memref<1x384xf32, #tpu.memory_space<vmem>>, vector<1x384xf32>
    %174 = vector.broadcast %173 : vector<1x384xf32> to vector<2x384xf32>
    %175 = arith.addf %172, %174 : vector<2x384xf32>
    %176 = arith.index_cast %c2_i32 : i32 to index
    %c0_88 = arith.constant 0 : index
    %c0_89 = arith.constant 0 : index
    %177 = vector.load %arg13[%176, %c0_88, %c0_89] : memref<8x2x384xf32, #tpu.memory_space<vmem>>, vector<1x2x384xf32>
    %178 = vector.shape_cast %177 : vector<1x2x384xf32> to vector<2x384xf32>
    %179 = vector.extract_strided_slice %178 {offsets = [0, 0], sizes = [2, 128], strides = [1, 1]} : vector<2x384xf32> to vector<2x128xf32>
    %180 = vector.extract_strided_slice %175 {offsets = [0, 0], sizes = [2, 128], strides = [1, 1]} : vector<2x384xf32> to vector<2x128xf32>
    %181 = arith.addf %179, %180 : vector<2x128xf32>
    %182 = arith.negf %181 : vector<2x128xf32>
    %183 = math.exp %182 : vector<2x128xf32>
    %cst_90 = arith.constant 1.000000e+00 : f32
    %184 = vector.broadcast %cst_90 : f32 to vector<2x128xf32>
    %185 = arith.addf %184, %183 : vector<2x128xf32>
    %186 = arith.divf %184, %185 : vector<2x128xf32>
    %187 = vector.extract_strided_slice %178 {offsets = [0, 128], sizes = [2, 128], strides = [1, 1]} : vector<2x384xf32> to vector<2x128xf32>
    %188 = vector.extract_strided_slice %175 {offsets = [0, 128], sizes = [2, 128], strides = [1, 1]} : vector<2x384xf32> to vector<2x128xf32>
    %189 = arith.addf %187, %188 : vector<2x128xf32>
    %190 = arith.negf %189 : vector<2x128xf32>
    %191 = math.exp %190 : vector<2x128xf32>
    %cst_91 = arith.constant 1.000000e+00 : f32
    %192 = vector.broadcast %cst_91 : f32 to vector<2x128xf32>
    %193 = arith.addf %192, %191 : vector<2x128xf32>
    %194 = arith.divf %192, %193 : vector<2x128xf32>
    %195 = vector.extract_strided_slice %178 {offsets = [0, 256], sizes = [2, 128], strides = [1, 1]} : vector<2x384xf32> to vector<2x128xf32>
    %196 = vector.extract_strided_slice %175 {offsets = [0, 256], sizes = [2, 128], strides = [1, 1]} : vector<2x384xf32> to vector<2x128xf32>
    %197 = arith.mulf %186, %196 : vector<2x128xf32>
    %198 = arith.addf %195, %197 : vector<2x128xf32>
    %199 = math.tanh %198 : vector<2x128xf32>
    %cst_92 = arith.constant 1.000000e+00 : f32
    %200 = vector.broadcast %cst_92 : f32 to vector<2x128xf32>
    %201 = arith.subf %200, %194 : vector<2x128xf32>
    %202 = arith.mulf %201, %199 : vector<2x128xf32>
    %203 = arith.mulf %194, %168 : vector<2x128xf32>
    %204 = arith.addf %202, %203 : vector<2x128xf32>
    %205 = arith.truncf %204 : vector<2x128xf32> to vector<2x128xbf16>
    %c0_93 = arith.constant 0 : index
    %c0_94 = arith.constant 0 : index
    %206 = vector.load %arg7[%c0_93, %c0_94] : memref<128x384xbf16, #tpu.memory_space<vmem>>, vector<128x384xbf16>
    %cst_95 = arith.constant dense<0.000000e+00> : vector<2x384xf32>
    %207 = tpu.matmul %205, %206, %cst_95 {dimension_numbers = #tpu.dot_dimension_numbers<[1], [0], [0], [1], [0, 0, 1, 1], [], []>} : vector<2x128xbf16>, vector<128x384xbf16>, vector<2x384xf32> -> vector<2x384xf32>
    %c0_96 = arith.constant 0 : index
    %c0_97 = arith.constant 0 : index
    %208 = vector.load %arg9[%c0_96, %c0_97] : memref<1x384xf32, #tpu.memory_space<vmem>>, vector<1x384xf32>
    %209 = vector.broadcast %208 : vector<1x384xf32> to vector<2x384xf32>
    %210 = arith.addf %207, %209 : vector<2x384xf32>
    %211 = arith.truncf %169 : vector<2x128xf32> to vector<2x128xbf16>
    %c0_98 = arith.constant 0 : index
    %c0_99 = arith.constant 0 : index
    %212 = vector.load %arg8[%c0_98, %c0_99] : memref<128x384xbf16, #tpu.memory_space<vmem>>, vector<128x384xbf16>
    %cst_100 = arith.constant dense<0.000000e+00> : vector<2x384xf32>
    %213 = tpu.matmul %211, %212, %cst_100 {dimension_numbers = #tpu.dot_dimension_numbers<[1], [0], [0], [1], [0, 0, 1, 1], [], []>} : vector<2x128xbf16>, vector<128x384xbf16>, vector<2x384xf32> -> vector<2x384xf32>
    %c0_101 = arith.constant 0 : index
    %c0_102 = arith.constant 0 : index
    %214 = vector.load %arg10[%c0_101, %c0_102] : memref<1x384xf32, #tpu.memory_space<vmem>>, vector<1x384xf32>
    %215 = vector.broadcast %214 : vector<1x384xf32> to vector<2x384xf32>
    %216 = arith.addf %213, %215 : vector<2x384xf32>
    %217 = vector.extract_strided_slice %210 {offsets = [0, 0], sizes = [2, 128], strides = [1, 1]} : vector<2x384xf32> to vector<2x128xf32>
    %218 = vector.extract_strided_slice %216 {offsets = [0, 0], sizes = [2, 128], strides = [1, 1]} : vector<2x384xf32> to vector<2x128xf32>
    %219 = arith.addf %217, %218 : vector<2x128xf32>
    %220 = arith.negf %219 : vector<2x128xf32>
    %221 = math.exp %220 : vector<2x128xf32>
    %cst_103 = arith.constant 1.000000e+00 : f32
    %222 = vector.broadcast %cst_103 : f32 to vector<2x128xf32>
    %223 = arith.addf %222, %221 : vector<2x128xf32>
    %224 = arith.divf %222, %223 : vector<2x128xf32>
    %225 = vector.extract_strided_slice %210 {offsets = [0, 128], sizes = [2, 128], strides = [1, 1]} : vector<2x384xf32> to vector<2x128xf32>
    %226 = vector.extract_strided_slice %216 {offsets = [0, 128], sizes = [2, 128], strides = [1, 1]} : vector<2x384xf32> to vector<2x128xf32>
    %227 = arith.addf %225, %226 : vector<2x128xf32>
    %228 = arith.negf %227 : vector<2x128xf32>
    %229 = math.exp %228 : vector<2x128xf32>
    %cst_104 = arith.constant 1.000000e+00 : f32
    %230 = vector.broadcast %cst_104 : f32 to vector<2x128xf32>
    %231 = arith.addf %230, %229 : vector<2x128xf32>
    %232 = arith.divf %230, %231 : vector<2x128xf32>
    %233 = vector.extract_strided_slice %210 {offsets = [0, 256], sizes = [2, 128], strides = [1, 1]} : vector<2x384xf32> to vector<2x128xf32>
    %234 = vector.extract_strided_slice %216 {offsets = [0, 256], sizes = [2, 128], strides = [1, 1]} : vector<2x384xf32> to vector<2x128xf32>
    %235 = arith.mulf %224, %234 : vector<2x128xf32>
    %236 = arith.addf %233, %235 : vector<2x128xf32>
    %237 = math.tanh %236 : vector<2x128xf32>
    %cst_105 = arith.constant 1.000000e+00 : f32
    %238 = vector.broadcast %cst_105 : f32 to vector<2x128xf32>
    %239 = arith.subf %238, %232 : vector<2x128xf32>
    %240 = arith.mulf %239, %237 : vector<2x128xf32>
    %241 = arith.mulf %232, %169 : vector<2x128xf32>
    %242 = arith.addf %240, %241 : vector<2x128xf32>
    %c0_106 = arith.constant 0 : index
    %c0_107 = arith.constant 0 : index
    %243 = vector.load %arg14[%c0_106, %c0_107] : memref<2x128xf32, #tpu.memory_space<vmem>>, vector<2x128xf32>
    tpu.vector_store %arg14[%c0_106, %c0_107], %204 {strides = array<i32>} : memref<2x128xf32, #tpu.memory_space<vmem>>, vector<2x128xf32>,
    %c0_108 = arith.constant 0 : index
    %c0_109 = arith.constant 0 : index
    %244 = vector.load %arg15[%c0_108, %c0_109] : memref<2x128xf32, #tpu.memory_space<vmem>>, vector<2x128xf32>
    tpu.vector_store %arg15[%c0_108, %c0_109], %242 {strides = array<i32>} : memref<2x128xf32, #tpu.memory_space<vmem>>, vector<2x128xf32>,
    %c3_i32 = arith.constant 3 : i32
    %c0_110 = arith.constant 0 : index
    %c0_111 = arith.constant 0 : index
    %245 = vector.load %arg14[%c0_110, %c0_111] : memref<2x128xf32, #tpu.memory_space<vmem>>, vector<2x128xf32>
    %c0_112 = arith.constant 0 : index
    %c0_113 = arith.constant 0 : index
    %246 = vector.load %arg15[%c0_112, %c0_113] : memref<2x128xf32, #tpu.memory_space<vmem>>, vector<2x128xf32>
    %247 = arith.truncf %245 : vector<2x128xf32> to vector<2x128xbf16>
    %c0_114 = arith.constant 0 : index
    %c0_115 = arith.constant 0 : index
    %248 = vector.load %arg4[%c0_114, %c0_115] : memref<128x384xbf16, #tpu.memory_space<vmem>>, vector<128x384xbf16>
    %cst_116 = arith.constant dense<0.000000e+00> : vector<2x384xf32>
    %249 = tpu.matmul %247, %248, %cst_116 {dimension_numbers = #tpu.dot_dimension_numbers<[1], [0], [0], [1], [0, 0, 1, 1], [], []>} : vector<2x128xbf16>, vector<128x384xbf16>, vector<2x384xf32> -> vector<2x384xf32>
    %c0_117 = arith.constant 0 : index
    %c0_118 = arith.constant 0 : index
    %250 = vector.load %arg6[%c0_117, %c0_118] : memref<1x384xf32, #tpu.memory_space<vmem>>, vector<1x384xf32>
    %251 = vector.broadcast %250 : vector<1x384xf32> to vector<2x384xf32>
    %252 = arith.addf %249, %251 : vector<2x384xf32>
    %253 = arith.index_cast %c3_i32 : i32 to index
    %c0_119 = arith.constant 0 : index
    %c0_120 = arith.constant 0 : index
    %254 = vector.load %arg13[%253, %c0_119, %c0_120] : memref<8x2x384xf32, #tpu.memory_space<vmem>>, vector<1x2x384xf32>
    %255 = vector.shape_cast %254 : vector<1x2x384xf32> to vector<2x384xf32>
    %256 = vector.extract_strided_slice %255 {offsets = [0, 0], sizes = [2, 128], strides = [1, 1]} : vector<2x384xf32> to vector<2x128xf32>
    %257 = vector.extract_strided_slice %252 {offsets = [0, 0], sizes = [2, 128], strides = [1, 1]} : vector<2x384xf32> to vector<2x128xf32>
    %258 = arith.addf %256, %257 : vector<2x128xf32>
    %259 = arith.negf %258 : vector<2x128xf32>
    %260 = math.exp %259 : vector<2x128xf32>
    %cst_121 = arith.constant 1.000000e+00 : f32
    %261 = vector.broadcast %cst_121 : f32 to vector<2x128xf32>
    %262 = arith.addf %261, %260 : vector<2x128xf32>
    %263 = arith.divf %261, %262 : vector<2x128xf32>
    %264 = vector.extract_strided_slice %255 {offsets = [0, 128], sizes = [2, 128], strides = [1, 1]} : vector<2x384xf32> to vector<2x128xf32>
    %265 = vector.extract_strided_slice %252 {offsets = [0, 128], sizes = [2, 128], strides = [1, 1]} : vector<2x384xf32> to vector<2x128xf32>
    %266 = arith.addf %264, %265 : vector<2x128xf32>
    %267 = arith.negf %266 : vector<2x128xf32>
    %268 = math.exp %267 : vector<2x128xf32>
    %cst_122 = arith.constant 1.000000e+00 : f32
    %269 = vector.broadcast %cst_122 : f32 to vector<2x128xf32>
    %270 = arith.addf %269, %268 : vector<2x128xf32>
    %271 = arith.divf %269, %270 : vector<2x128xf32>
    %272 = vector.extract_strided_slice %255 {offsets = [0, 256], sizes = [2, 128], strides = [1, 1]} : vector<2x384xf32> to vector<2x128xf32>
    %273 = vector.extract_strided_slice %252 {offsets = [0, 256], sizes = [2, 128], strides = [1, 1]} : vector<2x384xf32> to vector<2x128xf32>
    %274 = arith.mulf %263, %273 : vector<2x128xf32>
    %275 = arith.addf %272, %274 : vector<2x128xf32>
    %276 = math.tanh %275 : vector<2x128xf32>
    %cst_123 = arith.constant 1.000000e+00 : f32
    %277 = vector.broadcast %cst_123 : f32 to vector<2x128xf32>
    %278 = arith.subf %277, %271 : vector<2x128xf32>
    %279 = arith.mulf %278, %276 : vector<2x128xf32>
    %280 = arith.mulf %271, %245 : vector<2x128xf32>
    %281 = arith.addf %279, %280 : vector<2x128xf32>
    %282 = arith.truncf %281 : vector<2x128xf32> to vector<2x128xbf16>
    %c0_124 = arith.constant 0 : index
    %c0_125 = arith.constant 0 : index
    %283 = vector.load %arg7[%c0_124, %c0_125] : memref<128x384xbf16, #tpu.memory_space<vmem>>, vector<128x384xbf16>
    %cst_126 = arith.constant dense<0.000000e+00> : vector<2x384xf32>
    %284 = tpu.matmul %282, %283, %cst_126 {dimension_numbers = #tpu.dot_dimension_numbers<[1], [0], [0], [1], [0, 0, 1, 1], [], []>} : vector<2x128xbf16>, vector<128x384xbf16>, vector<2x384xf32> -> vector<2x384xf32>
    %c0_127 = arith.constant 0 : index
    %c0_128 = arith.constant 0 : index
    %285 = vector.load %arg9[%c0_127, %c0_128] : memref<1x384xf32, #tpu.memory_space<vmem>>, vector<1x384xf32>
    %286 = vector.broadcast %285 : vector<1x384xf32> to vector<2x384xf32>
    %287 = arith.addf %284, %286 : vector<2x384xf32>
    %288 = arith.truncf %246 : vector<2x128xf32> to vector<2x128xbf16>
    %c0_129 = arith.constant 0 : index
    %c0_130 = arith.constant 0 : index
    %289 = vector.load %arg8[%c0_129, %c0_130] : memref<128x384xbf16, #tpu.memory_space<vmem>>, vector<128x384xbf16>
    %cst_131 = arith.constant dense<0.000000e+00> : vector<2x384xf32>
    %290 = tpu.matmul %288, %289, %cst_131 {dimension_numbers = #tpu.dot_dimension_numbers<[1], [0], [0], [1], [0, 0, 1, 1], [], []>} : vector<2x128xbf16>, vector<128x384xbf16>, vector<2x384xf32> -> vector<2x384xf32>
    %c0_132 = arith.constant 0 : index
    %c0_133 = arith.constant 0 : index
    %291 = vector.load %arg10[%c0_132, %c0_133] : memref<1x384xf32, #tpu.memory_space<vmem>>, vector<1x384xf32>
    %292 = vector.broadcast %291 : vector<1x384xf32> to vector<2x384xf32>
    %293 = arith.addf %290, %292 : vector<2x384xf32>
    %294 = vector.extract_strided_slice %287 {offsets = [0, 0], sizes = [2, 128], strides = [1, 1]} : vector<2x384xf32> to vector<2x128xf32>
    %295 = vector.extract_strided_slice %293 {offsets = [0, 0], sizes = [2, 128], strides = [1, 1]} : vector<2x384xf32> to vector<2x128xf32>
    %296 = arith.addf %294, %295 : vector<2x128xf32>
    %297 = arith.negf %296 : vector<2x128xf32>
    %298 = math.exp %297 : vector<2x128xf32>
    %cst_134 = arith.constant 1.000000e+00 : f32
    %299 = vector.broadcast %cst_134 : f32 to vector<2x128xf32>
    %300 = arith.addf %299, %298 : vector<2x128xf32>
    %301 = arith.divf %299, %300 : vector<2x128xf32>
    %302 = vector.extract_strided_slice %287 {offsets = [0, 128], sizes = [2, 128], strides = [1, 1]} : vector<2x384xf32> to vector<2x128xf32>
    %303 = vector.extract_strided_slice %293 {offsets = [0, 128], sizes = [2, 128], strides = [1, 1]} : vector<2x384xf32> to vector<2x128xf32>
    %304 = arith.addf %302, %303 : vector<2x128xf32>
    %305 = arith.negf %304 : vector<2x128xf32>
    %306 = math.exp %305 : vector<2x128xf32>
    %cst_135 = arith.constant 1.000000e+00 : f32
    %307 = vector.broadcast %cst_135 : f32 to vector<2x128xf32>
    %308 = arith.addf %307, %306 : vector<2x128xf32>
    %309 = arith.divf %307, %308 : vector<2x128xf32>
    %310 = vector.extract_strided_slice %287 {offsets = [0, 256], sizes = [2, 128], strides = [1, 1]} : vector<2x384xf32> to vector<2x128xf32>
    %311 = vector.extract_strided_slice %293 {offsets = [0, 256], sizes = [2, 128], strides = [1, 1]} : vector<2x384xf32> to vector<2x128xf32>
    %312 = arith.mulf %301, %311 : vector<2x128xf32>
    %313 = arith.addf %310, %312 : vector<2x128xf32>
    %314 = math.tanh %313 : vector<2x128xf32>
    %cst_136 = arith.constant 1.000000e+00 : f32
    %315 = vector.broadcast %cst_136 : f32 to vector<2x128xf32>
    %316 = arith.subf %315, %309 : vector<2x128xf32>
    %317 = arith.mulf %316, %314 : vector<2x128xf32>
    %318 = arith.mulf %309, %246 : vector<2x128xf32>
    %319 = arith.addf %317, %318 : vector<2x128xf32>
    %c0_137 = arith.constant 0 : index
    %c0_138 = arith.constant 0 : index
    %320 = vector.load %arg14[%c0_137, %c0_138] : memref<2x128xf32, #tpu.memory_space<vmem>>, vector<2x128xf32>
    tpu.vector_store %arg14[%c0_137, %c0_138], %281 {strides = array<i32>} : memref<2x128xf32, #tpu.memory_space<vmem>>, vector<2x128xf32>,
    %c0_139 = arith.constant 0 : index
    %c0_140 = arith.constant 0 : index
    %321 = vector.load %arg15[%c0_139, %c0_140] : memref<2x128xf32, #tpu.memory_space<vmem>>, vector<2x128xf32>
    tpu.vector_store %arg15[%c0_139, %c0_140], %319 {strides = array<i32>} : memref<2x128xf32, #tpu.memory_space<vmem>>, vector<2x128xf32>,
    %c4_i32 = arith.constant 4 : i32
    %c0_141 = arith.constant 0 : index
    %c0_142 = arith.constant 0 : index
    %322 = vector.load %arg14[%c0_141, %c0_142] : memref<2x128xf32, #tpu.memory_space<vmem>>, vector<2x128xf32>
    %c0_143 = arith.constant 0 : index
    %c0_144 = arith.constant 0 : index
    %323 = vector.load %arg15[%c0_143, %c0_144] : memref<2x128xf32, #tpu.memory_space<vmem>>, vector<2x128xf32>
    %324 = arith.truncf %322 : vector<2x128xf32> to vector<2x128xbf16>
    %c0_145 = arith.constant 0 : index
    %c0_146 = arith.constant 0 : index
    %325 = vector.load %arg4[%c0_145, %c0_146] : memref<128x384xbf16, #tpu.memory_space<vmem>>, vector<128x384xbf16>
    %cst_147 = arith.constant dense<0.000000e+00> : vector<2x384xf32>
    %326 = tpu.matmul %324, %325, %cst_147 {dimension_numbers = #tpu.dot_dimension_numbers<[1], [0], [0], [1], [0, 0, 1, 1], [], []>} : vector<2x128xbf16>, vector<128x384xbf16>, vector<2x384xf32> -> vector<2x384xf32>
    %c0_148 = arith.constant 0 : index
    %c0_149 = arith.constant 0 : index
    %327 = vector.load %arg6[%c0_148, %c0_149] : memref<1x384xf32, #tpu.memory_space<vmem>>, vector<1x384xf32>
    %328 = vector.broadcast %327 : vector<1x384xf32> to vector<2x384xf32>
    %329 = arith.addf %326, %328 : vector<2x384xf32>
    %330 = arith.index_cast %c4_i32 : i32 to index
    %c0_150 = arith.constant 0 : index
    %c0_151 = arith.constant 0 : index
    %331 = vector.load %arg13[%330, %c0_150, %c0_151] : memref<8x2x384xf32, #tpu.memory_space<vmem>>, vector<1x2x384xf32>
    %332 = vector.shape_cast %331 : vector<1x2x384xf32> to vector<2x384xf32>
    %333 = vector.extract_strided_slice %332 {offsets = [0, 0], sizes = [2, 128], strides = [1, 1]} : vector<2x384xf32> to vector<2x128xf32>
    %334 = vector.extract_strided_slice %329 {offsets = [0, 0], sizes = [2, 128], strides = [1, 1]} : vector<2x384xf32> to vector<2x128xf32>
    %335 = arith.addf %333, %334 : vector<2x128xf32>
    %336 = arith.negf %335 : vector<2x128xf32>
    %337 = math.exp %336 : vector<2x128xf32>
    %cst_152 = arith.constant 1.000000e+00 : f32
    %338 = vector.broadcast %cst_152 : f32 to vector<2x128xf32>
    %339 = arith.addf %338, %337 : vector<2x128xf32>
    %340 = arith.divf %338, %339 : vector<2x128xf32>
    %341 = vector.extract_strided_slice %332 {offsets = [0, 128], sizes = [2, 128], strides = [1, 1]} : vector<2x384xf32> to vector<2x128xf32>
    %342 = vector.extract_strided_slice %329 {offsets = [0, 128], sizes = [2, 128], strides = [1, 1]} : vector<2x384xf32> to vector<2x128xf32>
    %343 = arith.addf %341, %342 : vector<2x128xf32>
    %344 = arith.negf %343 : vector<2x128xf32>
    %345 = math.exp %344 : vector<2x128xf32>
    %cst_153 = arith.constant 1.000000e+00 : f32
    %346 = vector.broadcast %cst_153 : f32 to vector<2x128xf32>
    %347 = arith.addf %346, %345 : vector<2x128xf32>
    %348 = arith.divf %346, %347 : vector<2x128xf32>
    %349 = vector.extract_strided_slice %332 {offsets = [0, 256], sizes = [2, 128], strides = [1, 1]} : vector<2x384xf32> to vector<2x128xf32>
    %350 = vector.extract_strided_slice %329 {offsets = [0, 256], sizes = [2, 128], strides = [1, 1]} : vector<2x384xf32> to vector<2x128xf32>
    %351 = arith.mulf %340, %350 : vector<2x128xf32>
    %352 = arith.addf %349, %351 : vector<2x128xf32>
    %353 = math.tanh %352 : vector<2x128xf32>
    %cst_154 = arith.constant 1.000000e+00 : f32
    %354 = vector.broadcast %cst_154 : f32 to vector<2x128xf32>
    %355 = arith.subf %354, %348 : vector<2x128xf32>
    %356 = arith.mulf %355, %353 : vector<2x128xf32>
    %357 = arith.mulf %348, %322 : vector<2x128xf32>
    %358 = arith.addf %356, %357 : vector<2x128xf32>
    %359 = arith.truncf %358 : vector<2x128xf32> to vector<2x128xbf16>
    %c0_155 = arith.constant 0 : index
    %c0_156 = arith.constant 0 : index
    %360 = vector.load %arg7[%c0_155, %c0_156] : memref<128x384xbf16, #tpu.memory_space<vmem>>, vector<128x384xbf16>
    %cst_157 = arith.constant dense<0.000000e+00> : vector<2x384xf32>
    %361 = tpu.matmul %359, %360, %cst_157 {dimension_numbers = #tpu.dot_dimension_numbers<[1], [0], [0], [1], [0, 0, 1, 1], [], []>} : vector<2x128xbf16>, vector<128x384xbf16>, vector<2x384xf32> -> vector<2x384xf32>
    %c0_158 = arith.constant 0 : index
    %c0_159 = arith.constant 0 : index
    %362 = vector.load %arg9[%c0_158, %c0_159] : memref<1x384xf32, #tpu.memory_space<vmem>>, vector<1x384xf32>
    %363 = vector.broadcast %362 : vector<1x384xf32> to vector<2x384xf32>
    %364 = arith.addf %361, %363 : vector<2x384xf32>
    %365 = arith.truncf %323 : vector<2x128xf32> to vector<2x128xbf16>
    %c0_160 = arith.constant 0 : index
    %c0_161 = arith.constant 0 : index
    %366 = vector.load %arg8[%c0_160, %c0_161] : memref<128x384xbf16, #tpu.memory_space<vmem>>, vector<128x384xbf16>
    %cst_162 = arith.constant dense<0.000000e+00> : vector<2x384xf32>
    %367 = tpu.matmul %365, %366, %cst_162 {dimension_numbers = #tpu.dot_dimension_numbers<[1], [0], [0], [1], [0, 0, 1, 1], [], []>} : vector<2x128xbf16>, vector<128x384xbf16>, vector<2x384xf32> -> vector<2x384xf32>
    %c0_163 = arith.constant 0 : index
    %c0_164 = arith.constant 0 : index
    %368 = vector.load %arg10[%c0_163, %c0_164] : memref<1x384xf32, #tpu.memory_space<vmem>>, vector<1x384xf32>
    %369 = vector.broadcast %368 : vector<1x384xf32> to vector<2x384xf32>
    %370 = arith.addf %367, %369 : vector<2x384xf32>
    %371 = vector.extract_strided_slice %364 {offsets = [0, 0], sizes = [2, 128], strides = [1, 1]} : vector<2x384xf32> to vector<2x128xf32>
    %372 = vector.extract_strided_slice %370 {offsets = [0, 0], sizes = [2, 128], strides = [1, 1]} : vector<2x384xf32> to vector<2x128xf32>
    %373 = arith.addf %371, %372 : vector<2x128xf32>
    %374 = arith.negf %373 : vector<2x128xf32>
    %375 = math.exp %374 : vector<2x128xf32>
    %cst_165 = arith.constant 1.000000e+00 : f32
    %376 = vector.broadcast %cst_165 : f32 to vector<2x128xf32>
    %377 = arith.addf %376, %375 : vector<2x128xf32>
    %378 = arith.divf %376, %377 : vector<2x128xf32>
    %379 = vector.extract_strided_slice %364 {offsets = [0, 128], sizes = [2, 128], strides = [1, 1]} : vector<2x384xf32> to vector<2x128xf32>
    %380 = vector.extract_strided_slice %370 {offsets = [0, 128], sizes = [2, 128], strides = [1, 1]} : vector<2x384xf32> to vector<2x128xf32>
    %381 = arith.addf %379, %380 : vector<2x128xf32>
    %382 = arith.negf %381 : vector<2x128xf32>
    %383 = math.exp %382 : vector<2x128xf32>
    %cst_166 = arith.constant 1.000000e+00 : f32
    %384 = vector.broadcast %cst_166 : f32 to vector<2x128xf32>
    %385 = arith.addf %384, %383 : vector<2x128xf32>
    %386 = arith.divf %384, %385 : vector<2x128xf32>
    %387 = vector.extract_strided_slice %364 {offsets = [0, 256], sizes = [2, 128], strides = [1, 1]} : vector<2x384xf32> to vector<2x128xf32>
    %388 = vector.extract_strided_slice %370 {offsets = [0, 256], sizes = [2, 128], strides = [1, 1]} : vector<2x384xf32> to vector<2x128xf32>
    %389 = arith.mulf %378, %388 : vector<2x128xf32>
    %390 = arith.addf %387, %389 : vector<2x128xf32>
    %391 = math.tanh %390 : vector<2x128xf32>
    %cst_167 = arith.constant 1.000000e+00 : f32
    %392 = vector.broadcast %cst_167 : f32 to vector<2x128xf32>
    %393 = arith.subf %392, %386 : vector<2x128xf32>
    %394 = arith.mulf %393, %391 : vector<2x128xf32>
    %395 = arith.mulf %386, %323 : vector<2x128xf32>
    %396 = arith.addf %394, %395 : vector<2x128xf32>
    %c0_168 = arith.constant 0 : index
    %c0_169 = arith.constant 0 : index
    %397 = vector.load %arg14[%c0_168, %c0_169] : memref<2x128xf32, #tpu.memory_space<vmem>>, vector<2x128xf32>
    tpu.vector_store %arg14[%c0_168, %c0_169], %358 {strides = array<i32>} : memref<2x128xf32, #tpu.memory_space<vmem>>, vector<2x128xf32>,
    %c0_170 = arith.constant 0 : index
    %c0_171 = arith.constant 0 : index
    %398 = vector.load %arg15[%c0_170, %c0_171] : memref<2x128xf32, #tpu.memory_space<vmem>>, vector<2x128xf32>
    tpu.vector_store %arg15[%c0_170, %c0_171], %396 {strides = array<i32>} : memref<2x128xf32, #tpu.memory_space<vmem>>, vector<2x128xf32>,
    %c5_i32 = arith.constant 5 : i32
    %c0_172 = arith.constant 0 : index
    %c0_173 = arith.constant 0 : index
    %399 = vector.load %arg14[%c0_172, %c0_173] : memref<2x128xf32, #tpu.memory_space<vmem>>, vector<2x128xf32>
    %c0_174 = arith.constant 0 : index
    %c0_175 = arith.constant 0 : index
    %400 = vector.load %arg15[%c0_174, %c0_175] : memref<2x128xf32, #tpu.memory_space<vmem>>, vector<2x128xf32>
    %401 = arith.truncf %399 : vector<2x128xf32> to vector<2x128xbf16>
    %c0_176 = arith.constant 0 : index
    %c0_177 = arith.constant 0 : index
    %402 = vector.load %arg4[%c0_176, %c0_177] : memref<128x384xbf16, #tpu.memory_space<vmem>>, vector<128x384xbf16>
    %cst_178 = arith.constant dense<0.000000e+00> : vector<2x384xf32>
    %403 = tpu.matmul %401, %402, %cst_178 {dimension_numbers = #tpu.dot_dimension_numbers<[1], [0], [0], [1], [0, 0, 1, 1], [], []>} : vector<2x128xbf16>, vector<128x384xbf16>, vector<2x384xf32> -> vector<2x384xf32>
    %c0_179 = arith.constant 0 : index
    %c0_180 = arith.constant 0 : index
    %404 = vector.load %arg6[%c0_179, %c0_180] : memref<1x384xf32, #tpu.memory_space<vmem>>, vector<1x384xf32>
    %405 = vector.broadcast %404 : vector<1x384xf32> to vector<2x384xf32>
    %406 = arith.addf %403, %405 : vector<2x384xf32>
    %407 = arith.index_cast %c5_i32 : i32 to index
    %c0_181 = arith.constant 0 : index
    %c0_182 = arith.constant 0 : index
    %408 = vector.load %arg13[%407, %c0_181, %c0_182] : memref<8x2x384xf32, #tpu.memory_space<vmem>>, vector<1x2x384xf32>
    %409 = vector.shape_cast %408 : vector<1x2x384xf32> to vector<2x384xf32>
    %410 = vector.extract_strided_slice %409 {offsets = [0, 0], sizes = [2, 128], strides = [1, 1]} : vector<2x384xf32> to vector<2x128xf32>
    %411 = vector.extract_strided_slice %406 {offsets = [0, 0], sizes = [2, 128], strides = [1, 1]} : vector<2x384xf32> to vector<2x128xf32>
    %412 = arith.addf %410, %411 : vector<2x128xf32>
    %413 = arith.negf %412 : vector<2x128xf32>
    %414 = math.exp %413 : vector<2x128xf32>
    %cst_183 = arith.constant 1.000000e+00 : f32
    %415 = vector.broadcast %cst_183 : f32 to vector<2x128xf32>
    %416 = arith.addf %415, %414 : vector<2x128xf32>
    %417 = arith.divf %415, %416 : vector<2x128xf32>
    %418 = vector.extract_strided_slice %409 {offsets = [0, 128], sizes = [2, 128], strides = [1, 1]} : vector<2x384xf32> to vector<2x128xf32>
    %419 = vector.extract_strided_slice %406 {offsets = [0, 128], sizes = [2, 128], strides = [1, 1]} : vector<2x384xf32> to vector<2x128xf32>
    %420 = arith.addf %418, %419 : vector<2x128xf32>
    %421 = arith.negf %420 : vector<2x128xf32>
    %422 = math.exp %421 : vector<2x128xf32>
    %cst_184 = arith.constant 1.000000e+00 : f32
    %423 = vector.broadcast %cst_184 : f32 to vector<2x128xf32>
    %424 = arith.addf %423, %422 : vector<2x128xf32>
    %425 = arith.divf %423, %424 : vector<2x128xf32>
    %426 = vector.extract_strided_slice %409 {offsets = [0, 256], sizes = [2, 128], strides = [1, 1]} : vector<2x384xf32> to vector<2x128xf32>
    %427 = vector.extract_strided_slice %406 {offsets = [0, 256], sizes = [2, 128], strides = [1, 1]} : vector<2x384xf32> to vector<2x128xf32>
    %428 = arith.mulf %417, %427 : vector<2x128xf32>
    %429 = arith.addf %426, %428 : vector<2x128xf32>
    %430 = math.tanh %429 : vector<2x128xf32>
    %cst_185 = arith.constant 1.000000e+00 : f32
    %431 = vector.broadcast %cst_185 : f32 to vector<2x128xf32>
    %432 = arith.subf %431, %425 : vector<2x128xf32>
    %433 = arith.mulf %432, %430 : vector<2x128xf32>
    %434 = arith.mulf %425, %399 : vector<2x128xf32>
    %435 = arith.addf %433, %434 : vector<2x128xf32>
    %436 = arith.truncf %435 : vector<2x128xf32> to vector<2x128xbf16>
    %c0_186 = arith.constant 0 : index
    %c0_187 = arith.constant 0 : index
    %437 = vector.load %arg7[%c0_186, %c0_187] : memref<128x384xbf16, #tpu.memory_space<vmem>>, vector<128x384xbf16>
    %cst_188 = arith.constant dense<0.000000e+00> : vector<2x384xf32>
    %438 = tpu.matmul %436, %437, %cst_188 {dimension_numbers = #tpu.dot_dimension_numbers<[1], [0], [0], [1], [0, 0, 1, 1], [], []>} : vector<2x128xbf16>, vector<128x384xbf16>, vector<2x384xf32> -> vector<2x384xf32>
    %c0_189 = arith.constant 0 : index
    %c0_190 = arith.constant 0 : index
    %439 = vector.load %arg9[%c0_189, %c0_190] : memref<1x384xf32, #tpu.memory_space<vmem>>, vector<1x384xf32>
    %440 = vector.broadcast %439 : vector<1x384xf32> to vector<2x384xf32>
    %441 = arith.addf %438, %440 : vector<2x384xf32>
    %442 = arith.truncf %400 : vector<2x128xf32> to vector<2x128xbf16>
    %c0_191 = arith.constant 0 : index
    %c0_192 = arith.constant 0 : index
    %443 = vector.load %arg8[%c0_191, %c0_192] : memref<128x384xbf16, #tpu.memory_space<vmem>>, vector<128x384xbf16>
    %cst_193 = arith.constant dense<0.000000e+00> : vector<2x384xf32>
    %444 = tpu.matmul %442, %443, %cst_193 {dimension_numbers = #tpu.dot_dimension_numbers<[1], [0], [0], [1], [0, 0, 1, 1], [], []>} : vector<2x128xbf16>, vector<128x384xbf16>, vector<2x384xf32> -> vector<2x384xf32>
    %c0_194 = arith.constant 0 : index
    %c0_195 = arith.constant 0 : index
    %445 = vector.load %arg10[%c0_194, %c0_195] : memref<1x384xf32, #tpu.memory_space<vmem>>, vector<1x384xf32>
    %446 = vector.broadcast %445 : vector<1x384xf32> to vector<2x384xf32>
    %447 = arith.addf %444, %446 : vector<2x384xf32>
    %448 = vector.extract_strided_slice %441 {offsets = [0, 0], sizes = [2, 128], strides = [1, 1]} : vector<2x384xf32> to vector<2x128xf32>
    %449 = vector.extract_strided_slice %447 {offsets = [0, 0], sizes = [2, 128], strides = [1, 1]} : vector<2x384xf32> to vector<2x128xf32>
    %450 = arith.addf %448, %449 : vector<2x128xf32>
    %451 = arith.negf %450 : vector<2x128xf32>
    %452 = math.exp %451 : vector<2x128xf32>
    %cst_196 = arith.constant 1.000000e+00 : f32
    %453 = vector.broadcast %cst_196 : f32 to vector<2x128xf32>
    %454 = arith.addf %453, %452 : vector<2x128xf32>
    %455 = arith.divf %453, %454 : vector<2x128xf32>
    %456 = vector.extract_strided_slice %441 {offsets = [0, 128], sizes = [2, 128], strides = [1, 1]} : vector<2x384xf32> to vector<2x128xf32>
    %457 = vector.extract_strided_slice %447 {offsets = [0, 128], sizes = [2, 128], strides = [1, 1]} : vector<2x384xf32> to vector<2x128xf32>
    %458 = arith.addf %456, %457 : vector<2x128xf32>
    %459 = arith.negf %458 : vector<2x128xf32>
    %460 = math.exp %459 : vector<2x128xf32>
    %cst_197 = arith.constant 1.000000e+00 : f32
    %461 = vector.broadcast %cst_197 : f32 to vector<2x128xf32>
    %462 = arith.addf %461, %460 : vector<2x128xf32>
    %463 = arith.divf %461, %462 : vector<2x128xf32>
    %464 = vector.extract_strided_slice %441 {offsets = [0, 256], sizes = [2, 128], strides = [1, 1]} : vector<2x384xf32> to vector<2x128xf32>
    %465 = vector.extract_strided_slice %447 {offsets = [0, 256], sizes = [2, 128], strides = [1, 1]} : vector<2x384xf32> to vector<2x128xf32>
    %466 = arith.mulf %455, %465 : vector<2x128xf32>
    %467 = arith.addf %464, %466 : vector<2x128xf32>
    %468 = math.tanh %467 : vector<2x128xf32>
    %cst_198 = arith.constant 1.000000e+00 : f32
    %469 = vector.broadcast %cst_198 : f32 to vector<2x128xf32>
    %470 = arith.subf %469, %463 : vector<2x128xf32>
    %471 = arith.mulf %470, %468 : vector<2x128xf32>
    %472 = arith.mulf %463, %400 : vector<2x128xf32>
    %473 = arith.addf %471, %472 : vector<2x128xf32>
    %c0_199 = arith.constant 0 : index
    %c0_200 = arith.constant 0 : index
    %474 = vector.load %arg14[%c0_199, %c0_200] : memref<2x128xf32, #tpu.memory_space<vmem>>, vector<2x128xf32>
    tpu.vector_store %arg14[%c0_199, %c0_200], %435 {strides = array<i32>} : memref<2x128xf32, #tpu.memory_space<vmem>>, vector<2x128xf32>,
    %c0_201 = arith.constant 0 : index
    %c0_202 = arith.constant 0 : index
    %475 = vector.load %arg15[%c0_201, %c0_202] : memref<2x128xf32, #tpu.memory_space<vmem>>, vector<2x128xf32>
    tpu.vector_store %arg15[%c0_201, %c0_202], %473 {strides = array<i32>} : memref<2x128xf32, #tpu.memory_space<vmem>>, vector<2x128xf32>,
    %c6_i32 = arith.constant 6 : i32
    %c0_203 = arith.constant 0 : index
    %c0_204 = arith.constant 0 : index
    %476 = vector.load %arg14[%c0_203, %c0_204] : memref<2x128xf32, #tpu.memory_space<vmem>>, vector<2x128xf32>
    %c0_205 = arith.constant 0 : index
    %c0_206 = arith.constant 0 : index
    %477 = vector.load %arg15[%c0_205, %c0_206] : memref<2x128xf32, #tpu.memory_space<vmem>>, vector<2x128xf32>
    %478 = arith.truncf %476 : vector<2x128xf32> to vector<2x128xbf16>
    %c0_207 = arith.constant 0 : index
    %c0_208 = arith.constant 0 : index
    %479 = vector.load %arg4[%c0_207, %c0_208] : memref<128x384xbf16, #tpu.memory_space<vmem>>, vector<128x384xbf16>
    %cst_209 = arith.constant dense<0.000000e+00> : vector<2x384xf32>
    %480 = tpu.matmul %478, %479, %cst_209 {dimension_numbers = #tpu.dot_dimension_numbers<[1], [0], [0], [1], [0, 0, 1, 1], [], []>} : vector<2x128xbf16>, vector<128x384xbf16>, vector<2x384xf32> -> vector<2x384xf32>
    %c0_210 = arith.constant 0 : index
    %c0_211 = arith.constant 0 : index
    %481 = vector.load %arg6[%c0_210, %c0_211] : memref<1x384xf32, #tpu.memory_space<vmem>>, vector<1x384xf32>
    %482 = vector.broadcast %481 : vector<1x384xf32> to vector<2x384xf32>
    %483 = arith.addf %480, %482 : vector<2x384xf32>
    %484 = arith.index_cast %c6_i32 : i32 to index
    %c0_212 = arith.constant 0 : index
    %c0_213 = arith.constant 0 : index
    %485 = vector.load %arg13[%484, %c0_212, %c0_213] : memref<8x2x384xf32, #tpu.memory_space<vmem>>, vector<1x2x384xf32>
    %486 = vector.shape_cast %485 : vector<1x2x384xf32> to vector<2x384xf32>
    %487 = vector.extract_strided_slice %486 {offsets = [0, 0], sizes = [2, 128], strides = [1, 1]} : vector<2x384xf32> to vector<2x128xf32>
    %488 = vector.extract_strided_slice %483 {offsets = [0, 0], sizes = [2, 128], strides = [1, 1]} : vector<2x384xf32> to vector<2x128xf32>
    %489 = arith.addf %487, %488 : vector<2x128xf32>
    %490 = arith.negf %489 : vector<2x128xf32>
    %491 = math.exp %490 : vector<2x128xf32>
    %cst_214 = arith.constant 1.000000e+00 : f32
    %492 = vector.broadcast %cst_214 : f32 to vector<2x128xf32>
    %493 = arith.addf %492, %491 : vector<2x128xf32>
    %494 = arith.divf %492, %493 : vector<2x128xf32>
    %495 = vector.extract_strided_slice %486 {offsets = [0, 128], sizes = [2, 128], strides = [1, 1]} : vector<2x384xf32> to vector<2x128xf32>
    %496 = vector.extract_strided_slice %483 {offsets = [0, 128], sizes = [2, 128], strides = [1, 1]} : vector<2x384xf32> to vector<2x128xf32>
    %497 = arith.addf %495, %496 : vector<2x128xf32>
    %498 = arith.negf %497 : vector<2x128xf32>
    %499 = math.exp %498 : vector<2x128xf32>
    %cst_215 = arith.constant 1.000000e+00 : f32
    %500 = vector.broadcast %cst_215 : f32 to vector<2x128xf32>
    %501 = arith.addf %500, %499 : vector<2x128xf32>
    %502 = arith.divf %500, %501 : vector<2x128xf32>
    %503 = vector.extract_strided_slice %486 {offsets = [0, 256], sizes = [2, 128], strides = [1, 1]} : vector<2x384xf32> to vector<2x128xf32>
    %504 = vector.extract_strided_slice %483 {offsets = [0, 256], sizes = [2, 128], strides = [1, 1]} : vector<2x384xf32> to vector<2x128xf32>
    %505 = arith.mulf %494, %504 : vector<2x128xf32>
    %506 = arith.addf %503, %505 : vector<2x128xf32>
    %507 = math.tanh %506 : vector<2x128xf32>
    %cst_216 = arith.constant 1.000000e+00 : f32
    %508 = vector.broadcast %cst_216 : f32 to vector<2x128xf32>
    %509 = arith.subf %508, %502 : vector<2x128xf32>
    %510 = arith.mulf %509, %507 : vector<2x128xf32>
    %511 = arith.mulf %502, %476 : vector<2x128xf32>
    %512 = arith.addf %510, %511 : vector<2x128xf32>
    %513 = arith.truncf %512 : vector<2x128xf32> to vector<2x128xbf16>
    %c0_217 = arith.constant 0 : index
    %c0_218 = arith.constant 0 : index
    %514 = vector.load %arg7[%c0_217, %c0_218] : memref<128x384xbf16, #tpu.memory_space<vmem>>, vector<128x384xbf16>
    %cst_219 = arith.constant dense<0.000000e+00> : vector<2x384xf32>
    %515 = tpu.matmul %513, %514, %cst_219 {dimension_numbers = #tpu.dot_dimension_numbers<[1], [0], [0], [1], [0, 0, 1, 1], [], []>} : vector<2x128xbf16>, vector<128x384xbf16>, vector<2x384xf32> -> vector<2x384xf32>
    %c0_220 = arith.constant 0 : index
    %c0_221 = arith.constant 0 : index
    %516 = vector.load %arg9[%c0_220, %c0_221] : memref<1x384xf32, #tpu.memory_space<vmem>>, vector<1x384xf32>
    %517 = vector.broadcast %516 : vector<1x384xf32> to vector<2x384xf32>
    %518 = arith.addf %515, %517 : vector<2x384xf32>
    %519 = arith.truncf %477 : vector<2x128xf32> to vector<2x128xbf16>
    %c0_222 = arith.constant 0 : index
    %c0_223 = arith.constant 0 : index
    %520 = vector.load %arg8[%c0_222, %c0_223] : memref<128x384xbf16, #tpu.memory_space<vmem>>, vector<128x384xbf16>
    %cst_224 = arith.constant dense<0.000000e+00> : vector<2x384xf32>
    %521 = tpu.matmul %519, %520, %cst_224 {dimension_numbers = #tpu.dot_dimension_numbers<[1], [0], [0], [1], [0, 0, 1, 1], [], []>} : vector<2x128xbf16>, vector<128x384xbf16>, vector<2x384xf32> -> vector<2x384xf32>
    %c0_225 = arith.constant 0 : index
    %c0_226 = arith.constant 0 : index
    %522 = vector.load %arg10[%c0_225, %c0_226] : memref<1x384xf32, #tpu.memory_space<vmem>>, vector<1x384xf32>
    %523 = vector.broadcast %522 : vector<1x384xf32> to vector<2x384xf32>
    %524 = arith.addf %521, %523 : vector<2x384xf32>
    %525 = vector.extract_strided_slice %518 {offsets = [0, 0], sizes = [2, 128], strides = [1, 1]} : vector<2x384xf32> to vector<2x128xf32>
    %526 = vector.extract_strided_slice %524 {offsets = [0, 0], sizes = [2, 128], strides = [1, 1]} : vector<2x384xf32> to vector<2x128xf32>
    %527 = arith.addf %525, %526 : vector<2x128xf32>
    %528 = arith.negf %527 : vector<2x128xf32>
    %529 = math.exp %528 : vector<2x128xf32>
    %cst_227 = arith.constant 1.000000e+00 : f32
    %530 = vector.broadcast %cst_227 : f32 to vector<2x128xf32>
    %531 = arith.addf %530, %529 : vector<2x128xf32>
    %532 = arith.divf %530, %531 : vector<2x128xf32>
    %533 = vector.extract_strided_slice %518 {offsets = [0, 128], sizes = [2, 128], strides = [1, 1]} : vector<2x384xf32> to vector<2x128xf32>
    %534 = vector.extract_strided_slice %524 {offsets = [0, 128], sizes = [2, 128], strides = [1, 1]} : vector<2x384xf32> to vector<2x128xf32>
    %535 = arith.addf %533, %534 : vector<2x128xf32>
    %536 = arith.negf %535 : vector<2x128xf32>
    %537 = math.exp %536 : vector<2x128xf32>
    %cst_228 = arith.constant 1.000000e+00 : f32
    %538 = vector.broadcast %cst_228 : f32 to vector<2x128xf32>
    %539 = arith.addf %538, %537 : vector<2x128xf32>
    %540 = arith.divf %538, %539 : vector<2x128xf32>
    %541 = vector.extract_strided_slice %518 {offsets = [0, 256], sizes = [2, 128], strides = [1, 1]} : vector<2x384xf32> to vector<2x128xf32>
    %542 = vector.extract_strided_slice %524 {offsets = [0, 256], sizes = [2, 128], strides = [1, 1]} : vector<2x384xf32> to vector<2x128xf32>
    %543 = arith.mulf %532, %542 : vector<2x128xf32>
    %544 = arith.addf %541, %543 : vector<2x128xf32>
    %545 = math.tanh %544 : vector<2x128xf32>
    %cst_229 = arith.constant 1.000000e+00 : f32
    %546 = vector.broadcast %cst_229 : f32 to vector<2x128xf32>
    %547 = arith.subf %546, %540 : vector<2x128xf32>
    %548 = arith.mulf %547, %545 : vector<2x128xf32>
    %549 = arith.mulf %540, %477 : vector<2x128xf32>
    %550 = arith.addf %548, %549 : vector<2x128xf32>
    %c0_230 = arith.constant 0 : index
    %c0_231 = arith.constant 0 : index
    %551 = vector.load %arg14[%c0_230, %c0_231] : memref<2x128xf32, #tpu.memory_space<vmem>>, vector<2x128xf32>
    tpu.vector_store %arg14[%c0_230, %c0_231], %512 {strides = array<i32>} : memref<2x128xf32, #tpu.memory_space<vmem>>, vector<2x128xf32>,
    %c0_232 = arith.constant 0 : index
    %c0_233 = arith.constant 0 : index
    %552 = vector.load %arg15[%c0_232, %c0_233] : memref<2x128xf32, #tpu.memory_space<vmem>>, vector<2x128xf32>
    tpu.vector_store %arg15[%c0_232, %c0_233], %550 {strides = array<i32>} : memref<2x128xf32, #tpu.memory_space<vmem>>, vector<2x128xf32>,
    %c7_i32 = arith.constant 7 : i32
    %c0_234 = arith.constant 0 : index
    %c0_235 = arith.constant 0 : index
    %553 = vector.load %arg14[%c0_234, %c0_235] : memref<2x128xf32, #tpu.memory_space<vmem>>, vector<2x128xf32>
    %c0_236 = arith.constant 0 : index
    %c0_237 = arith.constant 0 : index
    %554 = vector.load %arg15[%c0_236, %c0_237] : memref<2x128xf32, #tpu.memory_space<vmem>>, vector<2x128xf32>
    %555 = arith.truncf %553 : vector<2x128xf32> to vector<2x128xbf16>
    %c0_238 = arith.constant 0 : index
    %c0_239 = arith.constant 0 : index
    %556 = vector.load %arg4[%c0_238, %c0_239] : memref<128x384xbf16, #tpu.memory_space<vmem>>, vector<128x384xbf16>
    %cst_240 = arith.constant dense<0.000000e+00> : vector<2x384xf32>
    %557 = tpu.matmul %555, %556, %cst_240 {dimension_numbers = #tpu.dot_dimension_numbers<[1], [0], [0], [1], [0, 0, 1, 1], [], []>} : vector<2x128xbf16>, vector<128x384xbf16>, vector<2x384xf32> -> vector<2x384xf32>
    %c0_241 = arith.constant 0 : index
    %c0_242 = arith.constant 0 : index
    %558 = vector.load %arg6[%c0_241, %c0_242] : memref<1x384xf32, #tpu.memory_space<vmem>>, vector<1x384xf32>
    %559 = vector.broadcast %558 : vector<1x384xf32> to vector<2x384xf32>
    %560 = arith.addf %557, %559 : vector<2x384xf32>
    %561 = arith.index_cast %c7_i32 : i32 to index
    %c0_243 = arith.constant 0 : index
    %c0_244 = arith.constant 0 : index
    %562 = vector.load %arg13[%561, %c0_243, %c0_244] : memref<8x2x384xf32, #tpu.memory_space<vmem>>, vector<1x2x384xf32>
    %563 = vector.shape_cast %562 : vector<1x2x384xf32> to vector<2x384xf32>
    %564 = vector.extract_strided_slice %563 {offsets = [0, 0], sizes = [2, 128], strides = [1, 1]} : vector<2x384xf32> to vector<2x128xf32>
    %565 = vector.extract_strided_slice %560 {offsets = [0, 0], sizes = [2, 128], strides = [1, 1]} : vector<2x384xf32> to vector<2x128xf32>
    %566 = arith.addf %564, %565 : vector<2x128xf32>
    %567 = arith.negf %566 : vector<2x128xf32>
    %568 = math.exp %567 : vector<2x128xf32>
    %cst_245 = arith.constant 1.000000e+00 : f32
    %569 = vector.broadcast %cst_245 : f32 to vector<2x128xf32>
    %570 = arith.addf %569, %568 : vector<2x128xf32>
    %571 = arith.divf %569, %570 : vector<2x128xf32>
    %572 = vector.extract_strided_slice %563 {offsets = [0, 128], sizes = [2, 128], strides = [1, 1]} : vector<2x384xf32> to vector<2x128xf32>
    %573 = vector.extract_strided_slice %560 {offsets = [0, 128], sizes = [2, 128], strides = [1, 1]} : vector<2x384xf32> to vector<2x128xf32>
    %574 = arith.addf %572, %573 : vector<2x128xf32>
    %575 = arith.negf %574 : vector<2x128xf32>
    %576 = math.exp %575 : vector<2x128xf32>
    %cst_246 = arith.constant 1.000000e+00 : f32
    %577 = vector.broadcast %cst_246 : f32 to vector<2x128xf32>
    %578 = arith.addf %577, %576 : vector<2x128xf32>
    %579 = arith.divf %577, %578 : vector<2x128xf32>
    %580 = vector.extract_strided_slice %563 {offsets = [0, 256], sizes = [2, 128], strides = [1, 1]} : vector<2x384xf32> to vector<2x128xf32>
    %581 = vector.extract_strided_slice %560 {offsets = [0, 256], sizes = [2, 128], strides = [1, 1]} : vector<2x384xf32> to vector<2x128xf32>
    %582 = arith.mulf %571, %581 : vector<2x128xf32>
    %583 = arith.addf %580, %582 : vector<2x128xf32>
    %584 = math.tanh %583 : vector<2x128xf32>
    %cst_247 = arith.constant 1.000000e+00 : f32
    %585 = vector.broadcast %cst_247 : f32 to vector<2x128xf32>
    %586 = arith.subf %585, %579 : vector<2x128xf32>
    %587 = arith.mulf %586, %584 : vector<2x128xf32>
    %588 = arith.mulf %579, %553 : vector<2x128xf32>
    %589 = arith.addf %587, %588 : vector<2x128xf32>
    %590 = arith.truncf %589 : vector<2x128xf32> to vector<2x128xbf16>
    %c0_248 = arith.constant 0 : index
    %c0_249 = arith.constant 0 : index
    %591 = vector.load %arg7[%c0_248, %c0_249] : memref<128x384xbf16, #tpu.memory_space<vmem>>, vector<128x384xbf16>
    %cst_250 = arith.constant dense<0.000000e+00> : vector<2x384xf32>
    %592 = tpu.matmul %590, %591, %cst_250 {dimension_numbers = #tpu.dot_dimension_numbers<[1], [0], [0], [1], [0, 0, 1, 1], [], []>} : vector<2x128xbf16>, vector<128x384xbf16>, vector<2x384xf32> -> vector<2x384xf32>
    %c0_251 = arith.constant 0 : index
    %c0_252 = arith.constant 0 : index
    %593 = vector.load %arg9[%c0_251, %c0_252] : memref<1x384xf32, #tpu.memory_space<vmem>>, vector<1x384xf32>
    %594 = vector.broadcast %593 : vector<1x384xf32> to vector<2x384xf32>
    %595 = arith.addf %592, %594 : vector<2x384xf32>
    %596 = arith.truncf %554 : vector<2x128xf32> to vector<2x128xbf16>
    %c0_253 = arith.constant 0 : index
    %c0_254 = arith.constant 0 : index
    %597 = vector.load %arg8[%c0_253, %c0_254] : memref<128x384xbf16, #tpu.memory_space<vmem>>, vector<128x384xbf16>
    %cst_255 = arith.constant dense<0.000000e+00> : vector<2x384xf32>
    %598 = tpu.matmul %596, %597, %cst_255 {dimension_numbers = #tpu.dot_dimension_numbers<[1], [0], [0], [1], [0, 0, 1, 1], [], []>} : vector<2x128xbf16>, vector<128x384xbf16>, vector<2x384xf32> -> vector<2x384xf32>
    %c0_256 = arith.constant 0 : index
    %c0_257 = arith.constant 0 : index
    %599 = vector.load %arg10[%c0_256, %c0_257] : memref<1x384xf32, #tpu.memory_space<vmem>>, vector<1x384xf32>
    %600 = vector.broadcast %599 : vector<1x384xf32> to vector<2x384xf32>
    %601 = arith.addf %598, %600 : vector<2x384xf32>
    %602 = vector.extract_strided_slice %595 {offsets = [0, 0], sizes = [2, 128], strides = [1, 1]} : vector<2x384xf32> to vector<2x128xf32>
    %603 = vector.extract_strided_slice %601 {offsets = [0, 0], sizes = [2, 128], strides = [1, 1]} : vector<2x384xf32> to vector<2x128xf32>
    %604 = arith.addf %602, %603 : vector<2x128xf32>
    %605 = arith.negf %604 : vector<2x128xf32>
    %606 = math.exp %605 : vector<2x128xf32>
    %cst_258 = arith.constant 1.000000e+00 : f32
    %607 = vector.broadcast %cst_258 : f32 to vector<2x128xf32>
    %608 = arith.addf %607, %606 : vector<2x128xf32>
    %609 = arith.divf %607, %608 : vector<2x128xf32>
    %610 = vector.extract_strided_slice %595 {offsets = [0, 128], sizes = [2, 128], strides = [1, 1]} : vector<2x384xf32> to vector<2x128xf32>
    %611 = vector.extract_strided_slice %601 {offsets = [0, 128], sizes = [2, 128], strides = [1, 1]} : vector<2x384xf32> to vector<2x128xf32>
    %612 = arith.addf %610, %611 : vector<2x128xf32>
    %613 = arith.negf %612 : vector<2x128xf32>
    %614 = math.exp %613 : vector<2x128xf32>
    %cst_259 = arith.constant 1.000000e+00 : f32
    %615 = vector.broadcast %cst_259 : f32 to vector<2x128xf32>
    %616 = arith.addf %615, %614 : vector<2x128xf32>
    %617 = arith.divf %615, %616 : vector<2x128xf32>
    %618 = vector.extract_strided_slice %595 {offsets = [0, 256], sizes = [2, 128], strides = [1, 1]} : vector<2x384xf32> to vector<2x128xf32>
    %619 = vector.extract_strided_slice %601 {offsets = [0, 256], sizes = [2, 128], strides = [1, 1]} : vector<2x384xf32> to vector<2x128xf32>
    %620 = arith.mulf %609, %619 : vector<2x128xf32>
    %621 = arith.addf %618, %620 : vector<2x128xf32>
    %622 = math.tanh %621 : vector<2x128xf32>
    %cst_260 = arith.constant 1.000000e+00 : f32
    %623 = vector.broadcast %cst_260 : f32 to vector<2x128xf32>
    %624 = arith.subf %623, %617 : vector<2x128xf32>
    %625 = arith.mulf %624, %622 : vector<2x128xf32>
    %626 = arith.mulf %617, %554 : vector<2x128xf32>
    %627 = arith.addf %625, %626 : vector<2x128xf32>
    %c0_261 = arith.constant 0 : index
    %c0_262 = arith.constant 0 : index
    %628 = vector.load %arg14[%c0_261, %c0_262] : memref<2x128xf32, #tpu.memory_space<vmem>>, vector<2x128xf32>
    tpu.vector_store %arg14[%c0_261, %c0_262], %589 {strides = array<i32>} : memref<2x128xf32, #tpu.memory_space<vmem>>, vector<2x128xf32>,
    %c0_263 = arith.constant 0 : index
    %c0_264 = arith.constant 0 : index
    %629 = vector.load %arg15[%c0_263, %c0_264] : memref<2x128xf32, #tpu.memory_space<vmem>>, vector<2x128xf32>
    tpu.vector_store %arg15[%c0_263, %c0_264], %627 {strides = array<i32>} : memref<2x128xf32, #tpu.memory_space<vmem>>, vector<2x128xf32>,
    %c8_i32 = arith.constant 8 : i32
    %c0_265 = arith.constant 0 : index
    %c0_266 = arith.constant 0 : index
    %630 = vector.load %arg14[%c0_265, %c0_266] : memref<2x128xf32, #tpu.memory_space<vmem>>, vector<2x128xf32>
    %c0_267 = arith.constant 0 : index
    %c0_268 = arith.constant 0 : index
    %631 = vector.load %arg11[%c0_267, %c0_268] : memref<2x128xf32, #tpu.memory_space<vmem>>, vector<2x128xf32>
    tpu.vector_store %arg11[%c0_267, %c0_268], %630 {strides = array<i32>} : memref<2x128xf32, #tpu.memory_space<vmem>>, vector<2x128xf32>,
    %c0_269 = arith.constant 0 : index
    %c0_270 = arith.constant 0 : index
    %632 = vector.load %arg15[%c0_269, %c0_270] : memref<2x128xf32, #tpu.memory_space<vmem>>, vector<2x128xf32>
    %c0_271 = arith.constant 0 : index
    %c0_272 = arith.constant 0 : index
    %633 = vector.load %arg12[%c0_271, %c0_272] : memref<2x128xf32, #tpu.memory_space<vmem>>, vector<2x128xf32>
    tpu.vector_store %arg12[%c0_271, %c0_272], %632 {strides = array<i32>} : memref<2x128xf32, #tpu.memory_space<vmem>>, vector<2x128xf32>,
    return
  }
}

module attributes {stable_mosaic.version = 11 : i64} {
  func.func @decoder_gru2_kernel(%arg0: memref<8x2x141xf32, #tpu.memory_space<vmem>>, %arg1: memref<2x128xf32, #tpu.memory_space<vmem>>, %arg2: memref<2x128xf32, #tpu.memory_space<vmem>>, %arg3: memref<141x384xbf16, #tpu.memory_space<vmem>>, %arg4: memref<128x384xbf16, #tpu.memory_space<vmem>>, %arg5: memref<1x384xf32, #tpu.memory_space<vmem>>, %arg6: memref<1x384xf32, #tpu.memory_space<vmem>>, %arg7: memref<128x384xbf16, #tpu.memory_space<vmem>>, %arg8: memref<128x384xbf16, #tpu.memory_space<vmem>>, %arg9: memref<1x384xf32, #tpu.memory_space<vmem>>, %arg10: memref<1x384xf32, #tpu.memory_space<vmem>>, %arg11: memref<128x128xbf16, #tpu.memory_space<vmem>>, %arg12: memref<1x128xf32, #tpu.memory_space<vmem>>, %arg13: memref<8x2x128xf32, #tpu.memory_space<vmem>>, %arg14: memref<2x128xf32, #tpu.memory_space<vmem>>, %arg15: memref<2x128xf32, #tpu.memory_space<vmem>>, %arg16: memref<8x2x384xf32, #tpu.memory_space<vmem>>, %arg17: memref<8x2x128xf32, #tpu.memory_space<vmem>>, %arg18: memref<2x128xf32, #tpu.memory_space<vmem>>, %arg19: memref<2x128xf32, #tpu.memory_space<vmem>>) attributes {dimension_semantics = [], scalar_prefetch = 0 : i64, scratch_operands = 4 : i64, tpu.core_type = #tpu.core_type<tc>} {
    %c0 = arith.constant 0 : index
    %c0_0 = arith.constant 0 : index
    %c0_1 = arith.constant 0 : index
    %0 = vector.load %arg0[%c0, %c0_0, %c0_1] : memref<8x2x141xf32, #tpu.memory_space<vmem>>, vector<8x2x141xf32>
    %1 = vector.shape_cast %0 : vector<8x2x141xf32> to vector<16x141xf32>
    %2 = arith.truncf %1 : vector<16x141xf32> to vector<16x141xbf16>
    %c0_2 = arith.constant 0 : index
    %c0_3 = arith.constant 0 : index
    %3 = vector.load %arg3[%c0_2, %c0_3] : memref<141x384xbf16, #tpu.memory_space<vmem>>, vector<141x384xbf16>
    %cst = arith.constant dense<0.000000e+00> : vector<16x384xf32>
    %4 = tpu.matmul %2, %3, %cst {dimension_numbers = #tpu.dot_dimension_numbers<[1], [0], [0], [1], [0, 0, 1, 1], [], []>} : vector<16x141xbf16>, vector<141x384xbf16>, vector<16x384xf32> -> vector<16x384xf32>
    %c0_4 = arith.constant 0 : index
    %c0_5 = arith.constant 0 : index
    %5 = vector.load %arg5[%c0_4, %c0_5] : memref<1x384xf32, #tpu.memory_space<vmem>>, vector<1x384xf32>
    %6 = vector.broadcast %5 : vector<1x384xf32> to vector<16x384xf32>
    %7 = arith.addf %4, %6 : vector<16x384xf32>
    %8 = vector.shape_cast %7 : vector<16x384xf32> to vector<8x2x384xf32>
    %c0_6 = arith.constant 0 : index
    %c0_7 = arith.constant 0 : index
    %c0_8 = arith.constant 0 : index
    %9 = vector.load %arg16[%c0_6, %c0_7, %c0_8] : memref<8x2x384xf32, #tpu.memory_space<vmem>>, vector<8x2x384xf32>
    tpu.vector_store %arg16[%c0_6, %c0_7, %c0_8], %8 {strides = array<i32>} : memref<8x2x384xf32, #tpu.memory_space<vmem>>, vector<8x2x384xf32>,
    %c0_9 = arith.constant 0 : index
    %c0_10 = arith.constant 0 : index
    %10 = vector.load %arg1[%c0_9, %c0_10] : memref<2x128xf32, #tpu.memory_space<vmem>>, vector<2x128xf32>
    %c0_11 = arith.constant 0 : index
    %c0_12 = arith.constant 0 : index
    %11 = vector.load %arg18[%c0_11, %c0_12] : memref<2x128xf32, #tpu.memory_space<vmem>>, vector<2x128xf32>
    tpu.vector_store %arg18[%c0_11, %c0_12], %10 {strides = array<i32>} : memref<2x128xf32, #tpu.memory_space<vmem>>, vector<2x128xf32>,
    %c0_13 = arith.constant 0 : index
    %c0_14 = arith.constant 0 : index
    %12 = vector.load %arg2[%c0_13, %c0_14] : memref<2x128xf32, #tpu.memory_space<vmem>>, vector<2x128xf32>
    %c0_15 = arith.constant 0 : index
    %c0_16 = arith.constant 0 : index
    %13 = vector.load %arg19[%c0_15, %c0_16] : memref<2x128xf32, #tpu.memory_space<vmem>>, vector<2x128xf32>
    tpu.vector_store %arg19[%c0_15, %c0_16], %12 {strides = array<i32>} : memref<2x128xf32, #tpu.memory_space<vmem>>, vector<2x128xf32>,
    %c0_i32 = arith.constant 0 : i32
    %c0_17 = arith.constant 0 : index
    %c0_18 = arith.constant 0 : index
    %14 = vector.load %arg18[%c0_17, %c0_18] : memref<2x128xf32, #tpu.memory_space<vmem>>, vector<2x128xf32>
    %c0_19 = arith.constant 0 : index
    %c0_20 = arith.constant 0 : index
    %15 = vector.load %arg19[%c0_19, %c0_20] : memref<2x128xf32, #tpu.memory_space<vmem>>, vector<2x128xf32>
    %16 = arith.truncf %14 : vector<2x128xf32> to vector<2x128xbf16>
    %c0_21 = arith.constant 0 : index
    %c0_22 = arith.constant 0 : index
    %17 = vector.load %arg4[%c0_21, %c0_22] : memref<128x384xbf16, #tpu.memory_space<vmem>>, vector<128x384xbf16>
    %cst_23 = arith.constant dense<0.000000e+00> : vector<2x384xf32>
    %18 = tpu.matmul %16, %17, %cst_23 {dimension_numbers = #tpu.dot_dimension_numbers<[1], [0], [0], [1], [0, 0, 1, 1], [], []>} : vector<2x128xbf16>, vector<128x384xbf16>, vector<2x384xf32> -> vector<2x384xf32>
    %c0_24 = arith.constant 0 : index
    %c0_25 = arith.constant 0 : index
    %19 = vector.load %arg6[%c0_24, %c0_25] : memref<1x384xf32, #tpu.memory_space<vmem>>, vector<1x384xf32>
    %20 = vector.broadcast %19 : vector<1x384xf32> to vector<2x384xf32>
    %21 = arith.addf %18, %20 : vector<2x384xf32>
    %22 = arith.index_cast %c0_i32 : i32 to index
    %c0_26 = arith.constant 0 : index
    %c0_27 = arith.constant 0 : index
    %23 = vector.load %arg16[%22, %c0_26, %c0_27] : memref<8x2x384xf32, #tpu.memory_space<vmem>>, vector<1x2x384xf32>
    %24 = vector.shape_cast %23 : vector<1x2x384xf32> to vector<2x384xf32>
    %25 = vector.extract_strided_slice %24 {offsets = [0, 0], sizes = [2, 128], strides = [1, 1]} : vector<2x384xf32> to vector<2x128xf32>
    %26 = vector.extract_strided_slice %21 {offsets = [0, 0], sizes = [2, 128], strides = [1, 1]} : vector<2x384xf32> to vector<2x128xf32>
    %27 = arith.addf %25, %26 : vector<2x128xf32>
    %28 = arith.negf %27 : vector<2x128xf32>
    %29 = math.exp %28 : vector<2x128xf32>
    %cst_28 = arith.constant 1.000000e+00 : f32
    %30 = vector.broadcast %cst_28 : f32 to vector<2x128xf32>
    %31 = arith.addf %30, %29 : vector<2x128xf32>
    %32 = arith.divf %30, %31 : vector<2x128xf32>
    %33 = vector.extract_strided_slice %24 {offsets = [0, 128], sizes = [2, 128], strides = [1, 1]} : vector<2x384xf32> to vector<2x128xf32>
    %34 = vector.extract_strided_slice %21 {offsets = [0, 128], sizes = [2, 128], strides = [1, 1]} : vector<2x384xf32> to vector<2x128xf32>
    %35 = arith.addf %33, %34 : vector<2x128xf32>
    %36 = arith.negf %35 : vector<2x128xf32>
    %37 = math.exp %36 : vector<2x128xf32>
    %cst_29 = arith.constant 1.000000e+00 : f32
    %38 = vector.broadcast %cst_29 : f32 to vector<2x128xf32>
    %39 = arith.addf %38, %37 : vector<2x128xf32>
    %40 = arith.divf %38, %39 : vector<2x128xf32>
    %41 = vector.extract_strided_slice %24 {offsets = [0, 256], sizes = [2, 128], strides = [1, 1]} : vector<2x384xf32> to vector<2x128xf32>
    %42 = vector.extract_strided_slice %21 {offsets = [0, 256], sizes = [2, 128], strides = [1, 1]} : vector<2x384xf32> to vector<2x128xf32>
    %43 = arith.mulf %32, %42 : vector<2x128xf32>
    %44 = arith.addf %41, %43 : vector<2x128xf32>
    %45 = math.tanh %44 : vector<2x128xf32>
    %cst_30 = arith.constant 1.000000e+00 : f32
    %46 = vector.broadcast %cst_30 : f32 to vector<2x128xf32>
    %47 = arith.subf %46, %40 : vector<2x128xf32>
    %48 = arith.mulf %47, %45 : vector<2x128xf32>
    %49 = arith.mulf %40, %14 : vector<2x128xf32>
    %50 = arith.addf %48, %49 : vector<2x128xf32>
    %51 = arith.truncf %50 : vector<2x128xf32> to vector<2x128xbf16>
    %c0_31 = arith.constant 0 : index
    %c0_32 = arith.constant 0 : index
    %52 = vector.load %arg7[%c0_31, %c0_32] : memref<128x384xbf16, #tpu.memory_space<vmem>>, vector<128x384xbf16>
    %cst_33 = arith.constant dense<0.000000e+00> : vector<2x384xf32>
    %53 = tpu.matmul %51, %52, %cst_33 {dimension_numbers = #tpu.dot_dimension_numbers<[1], [0], [0], [1], [0, 0, 1, 1], [], []>} : vector<2x128xbf16>, vector<128x384xbf16>, vector<2x384xf32> -> vector<2x384xf32>
    %c0_34 = arith.constant 0 : index
    %c0_35 = arith.constant 0 : index
    %54 = vector.load %arg9[%c0_34, %c0_35] : memref<1x384xf32, #tpu.memory_space<vmem>>, vector<1x384xf32>
    %55 = vector.broadcast %54 : vector<1x384xf32> to vector<2x384xf32>
    %56 = arith.addf %53, %55 : vector<2x384xf32>
    %57 = arith.truncf %15 : vector<2x128xf32> to vector<2x128xbf16>
    %c0_36 = arith.constant 0 : index
    %c0_37 = arith.constant 0 : index
    %58 = vector.load %arg8[%c0_36, %c0_37] : memref<128x384xbf16, #tpu.memory_space<vmem>>, vector<128x384xbf16>
    %cst_38 = arith.constant dense<0.000000e+00> : vector<2x384xf32>
    %59 = tpu.matmul %57, %58, %cst_38 {dimension_numbers = #tpu.dot_dimension_numbers<[1], [0], [0], [1], [0, 0, 1, 1], [], []>} : vector<2x128xbf16>, vector<128x384xbf16>, vector<2x384xf32> -> vector<2x384xf32>
    %c0_39 = arith.constant 0 : index
    %c0_40 = arith.constant 0 : index
    %60 = vector.load %arg10[%c0_39, %c0_40] : memref<1x384xf32, #tpu.memory_space<vmem>>, vector<1x384xf32>
    %61 = vector.broadcast %60 : vector<1x384xf32> to vector<2x384xf32>
    %62 = arith.addf %59, %61 : vector<2x384xf32>
    %63 = vector.extract_strided_slice %56 {offsets = [0, 0], sizes = [2, 128], strides = [1, 1]} : vector<2x384xf32> to vector<2x128xf32>
    %64 = vector.extract_strided_slice %62 {offsets = [0, 0], sizes = [2, 128], strides = [1, 1]} : vector<2x384xf32> to vector<2x128xf32>
    %65 = arith.addf %63, %64 : vector<2x128xf32>
    %66 = arith.negf %65 : vector<2x128xf32>
    %67 = math.exp %66 : vector<2x128xf32>
    %cst_41 = arith.constant 1.000000e+00 : f32
    %68 = vector.broadcast %cst_41 : f32 to vector<2x128xf32>
    %69 = arith.addf %68, %67 : vector<2x128xf32>
    %70 = arith.divf %68, %69 : vector<2x128xf32>
    %71 = vector.extract_strided_slice %56 {offsets = [0, 128], sizes = [2, 128], strides = [1, 1]} : vector<2x384xf32> to vector<2x128xf32>
    %72 = vector.extract_strided_slice %62 {offsets = [0, 128], sizes = [2, 128], strides = [1, 1]} : vector<2x384xf32> to vector<2x128xf32>
    %73 = arith.addf %71, %72 : vector<2x128xf32>
    %74 = arith.negf %73 : vector<2x128xf32>
    %75 = math.exp %74 : vector<2x128xf32>
    %cst_42 = arith.constant 1.000000e+00 : f32
    %76 = vector.broadcast %cst_42 : f32 to vector<2x128xf32>
    %77 = arith.addf %76, %75 : vector<2x128xf32>
    %78 = arith.divf %76, %77 : vector<2x128xf32>
    %79 = vector.extract_strided_slice %56 {offsets = [0, 256], sizes = [2, 128], strides = [1, 1]} : vector<2x384xf32> to vector<2x128xf32>
    %80 = vector.extract_strided_slice %62 {offsets = [0, 256], sizes = [2, 128], strides = [1, 1]} : vector<2x384xf32> to vector<2x128xf32>
    %81 = arith.mulf %70, %80 : vector<2x128xf32>
    %82 = arith.addf %79, %81 : vector<2x128xf32>
    %83 = math.tanh %82 : vector<2x128xf32>
    %cst_43 = arith.constant 1.000000e+00 : f32
    %84 = vector.broadcast %cst_43 : f32 to vector<2x128xf32>
    %85 = arith.subf %84, %78 : vector<2x128xf32>
    %86 = arith.mulf %85, %83 : vector<2x128xf32>
    %87 = arith.mulf %78, %15 : vector<2x128xf32>
    %88 = arith.addf %86, %87 : vector<2x128xf32>
    %c0_44 = arith.constant 0 : index
    %c0_45 = arith.constant 0 : index
    %89 = vector.load %arg18[%c0_44, %c0_45] : memref<2x128xf32, #tpu.memory_space<vmem>>, vector<2x128xf32>
    tpu.vector_store %arg18[%c0_44, %c0_45], %50 {strides = array<i32>} : memref<2x128xf32, #tpu.memory_space<vmem>>, vector<2x128xf32>,
    %c0_46 = arith.constant 0 : index
    %c0_47 = arith.constant 0 : index
    %90 = vector.load %arg19[%c0_46, %c0_47] : memref<2x128xf32, #tpu.memory_space<vmem>>, vector<2x128xf32>
    tpu.vector_store %arg19[%c0_46, %c0_47], %88 {strides = array<i32>} : memref<2x128xf32, #tpu.memory_space<vmem>>, vector<2x128xf32>,
    %91 = arith.index_cast %c0_i32 : i32 to index
    %c0_48 = arith.constant 0 : index
    %c0_49 = arith.constant 0 : index
    %92 = vector.load %arg17[%91, %c0_48, %c0_49] : memref<8x2x128xf32, #tpu.memory_space<vmem>>, vector<1x2x128xf32>
    %93 = vector.shape_cast %92 : vector<1x2x128xf32> to vector<2x128xf32>
    %94 = vector.shape_cast %88 : vector<2x128xf32> to vector<1x2x128xf32>
    tpu.vector_store %arg17[%91, %c0_48, %c0_49], %94 {strides = array<i32>} : memref<8x2x128xf32, #tpu.memory_space<vmem>>, vector<1x2x128xf32>,
    %c1_i32 = arith.constant 1 : i32
    %c0_50 = arith.constant 0 : index
    %c0_51 = arith.constant 0 : index
    %95 = vector.load %arg18[%c0_50, %c0_51] : memref<2x128xf32, #tpu.memory_space<vmem>>, vector<2x128xf32>
    %c0_52 = arith.constant 0 : index
    %c0_53 = arith.constant 0 : index
    %96 = vector.load %arg19[%c0_52, %c0_53] : memref<2x128xf32, #tpu.memory_space<vmem>>, vector<2x128xf32>
    %97 = arith.truncf %95 : vector<2x128xf32> to vector<2x128xbf16>
    %c0_54 = arith.constant 0 : index
    %c0_55 = arith.constant 0 : index
    %98 = vector.load %arg4[%c0_54, %c0_55] : memref<128x384xbf16, #tpu.memory_space<vmem>>, vector<128x384xbf16>
    %cst_56 = arith.constant dense<0.000000e+00> : vector<2x384xf32>
    %99 = tpu.matmul %97, %98, %cst_56 {dimension_numbers = #tpu.dot_dimension_numbers<[1], [0], [0], [1], [0, 0, 1, 1], [], []>} : vector<2x128xbf16>, vector<128x384xbf16>, vector<2x384xf32> -> vector<2x384xf32>
    %c0_57 = arith.constant 0 : index
    %c0_58 = arith.constant 0 : index
    %100 = vector.load %arg6[%c0_57, %c0_58] : memref<1x384xf32, #tpu.memory_space<vmem>>, vector<1x384xf32>
    %101 = vector.broadcast %100 : vector<1x384xf32> to vector<2x384xf32>
    %102 = arith.addf %99, %101 : vector<2x384xf32>
    %103 = arith.index_cast %c1_i32 : i32 to index
    %c0_59 = arith.constant 0 : index
    %c0_60 = arith.constant 0 : index
    %104 = vector.load %arg16[%103, %c0_59, %c0_60] : memref<8x2x384xf32, #tpu.memory_space<vmem>>, vector<1x2x384xf32>
    %105 = vector.shape_cast %104 : vector<1x2x384xf32> to vector<2x384xf32>
    %106 = vector.extract_strided_slice %105 {offsets = [0, 0], sizes = [2, 128], strides = [1, 1]} : vector<2x384xf32> to vector<2x128xf32>
    %107 = vector.extract_strided_slice %102 {offsets = [0, 0], sizes = [2, 128], strides = [1, 1]} : vector<2x384xf32> to vector<2x128xf32>
    %108 = arith.addf %106, %107 : vector<2x128xf32>
    %109 = arith.negf %108 : vector<2x128xf32>
    %110 = math.exp %109 : vector<2x128xf32>
    %cst_61 = arith.constant 1.000000e+00 : f32
    %111 = vector.broadcast %cst_61 : f32 to vector<2x128xf32>
    %112 = arith.addf %111, %110 : vector<2x128xf32>
    %113 = arith.divf %111, %112 : vector<2x128xf32>
    %114 = vector.extract_strided_slice %105 {offsets = [0, 128], sizes = [2, 128], strides = [1, 1]} : vector<2x384xf32> to vector<2x128xf32>
    %115 = vector.extract_strided_slice %102 {offsets = [0, 128], sizes = [2, 128], strides = [1, 1]} : vector<2x384xf32> to vector<2x128xf32>
    %116 = arith.addf %114, %115 : vector<2x128xf32>
    %117 = arith.negf %116 : vector<2x128xf32>
    %118 = math.exp %117 : vector<2x128xf32>
    %cst_62 = arith.constant 1.000000e+00 : f32
    %119 = vector.broadcast %cst_62 : f32 to vector<2x128xf32>
    %120 = arith.addf %119, %118 : vector<2x128xf32>
    %121 = arith.divf %119, %120 : vector<2x128xf32>
    %122 = vector.extract_strided_slice %105 {offsets = [0, 256], sizes = [2, 128], strides = [1, 1]} : vector<2x384xf32> to vector<2x128xf32>
    %123 = vector.extract_strided_slice %102 {offsets = [0, 256], sizes = [2, 128], strides = [1, 1]} : vector<2x384xf32> to vector<2x128xf32>
    %124 = arith.mulf %113, %123 : vector<2x128xf32>
    %125 = arith.addf %122, %124 : vector<2x128xf32>
    %126 = math.tanh %125 : vector<2x128xf32>
    %cst_63 = arith.constant 1.000000e+00 : f32
    %127 = vector.broadcast %cst_63 : f32 to vector<2x128xf32>
    %128 = arith.subf %127, %121 : vector<2x128xf32>
    %129 = arith.mulf %128, %126 : vector<2x128xf32>
    %130 = arith.mulf %121, %95 : vector<2x128xf32>
    %131 = arith.addf %129, %130 : vector<2x128xf32>
    %132 = arith.truncf %131 : vector<2x128xf32> to vector<2x128xbf16>
    %c0_64 = arith.constant 0 : index
    %c0_65 = arith.constant 0 : index
    %133 = vector.load %arg7[%c0_64, %c0_65] : memref<128x384xbf16, #tpu.memory_space<vmem>>, vector<128x384xbf16>
    %cst_66 = arith.constant dense<0.000000e+00> : vector<2x384xf32>
    %134 = tpu.matmul %132, %133, %cst_66 {dimension_numbers = #tpu.dot_dimension_numbers<[1], [0], [0], [1], [0, 0, 1, 1], [], []>} : vector<2x128xbf16>, vector<128x384xbf16>, vector<2x384xf32> -> vector<2x384xf32>
    %c0_67 = arith.constant 0 : index
    %c0_68 = arith.constant 0 : index
    %135 = vector.load %arg9[%c0_67, %c0_68] : memref<1x384xf32, #tpu.memory_space<vmem>>, vector<1x384xf32>
    %136 = vector.broadcast %135 : vector<1x384xf32> to vector<2x384xf32>
    %137 = arith.addf %134, %136 : vector<2x384xf32>
    %138 = arith.truncf %96 : vector<2x128xf32> to vector<2x128xbf16>
    %c0_69 = arith.constant 0 : index
    %c0_70 = arith.constant 0 : index
    %139 = vector.load %arg8[%c0_69, %c0_70] : memref<128x384xbf16, #tpu.memory_space<vmem>>, vector<128x384xbf16>
    %cst_71 = arith.constant dense<0.000000e+00> : vector<2x384xf32>
    %140 = tpu.matmul %138, %139, %cst_71 {dimension_numbers = #tpu.dot_dimension_numbers<[1], [0], [0], [1], [0, 0, 1, 1], [], []>} : vector<2x128xbf16>, vector<128x384xbf16>, vector<2x384xf32> -> vector<2x384xf32>
    %c0_72 = arith.constant 0 : index
    %c0_73 = arith.constant 0 : index
    %141 = vector.load %arg10[%c0_72, %c0_73] : memref<1x384xf32, #tpu.memory_space<vmem>>, vector<1x384xf32>
    %142 = vector.broadcast %141 : vector<1x384xf32> to vector<2x384xf32>
    %143 = arith.addf %140, %142 : vector<2x384xf32>
    %144 = vector.extract_strided_slice %137 {offsets = [0, 0], sizes = [2, 128], strides = [1, 1]} : vector<2x384xf32> to vector<2x128xf32>
    %145 = vector.extract_strided_slice %143 {offsets = [0, 0], sizes = [2, 128], strides = [1, 1]} : vector<2x384xf32> to vector<2x128xf32>
    %146 = arith.addf %144, %145 : vector<2x128xf32>
    %147 = arith.negf %146 : vector<2x128xf32>
    %148 = math.exp %147 : vector<2x128xf32>
    %cst_74 = arith.constant 1.000000e+00 : f32
    %149 = vector.broadcast %cst_74 : f32 to vector<2x128xf32>
    %150 = arith.addf %149, %148 : vector<2x128xf32>
    %151 = arith.divf %149, %150 : vector<2x128xf32>
    %152 = vector.extract_strided_slice %137 {offsets = [0, 128], sizes = [2, 128], strides = [1, 1]} : vector<2x384xf32> to vector<2x128xf32>
    %153 = vector.extract_strided_slice %143 {offsets = [0, 128], sizes = [2, 128], strides = [1, 1]} : vector<2x384xf32> to vector<2x128xf32>
    %154 = arith.addf %152, %153 : vector<2x128xf32>
    %155 = arith.negf %154 : vector<2x128xf32>
    %156 = math.exp %155 : vector<2x128xf32>
    %cst_75 = arith.constant 1.000000e+00 : f32
    %157 = vector.broadcast %cst_75 : f32 to vector<2x128xf32>
    %158 = arith.addf %157, %156 : vector<2x128xf32>
    %159 = arith.divf %157, %158 : vector<2x128xf32>
    %160 = vector.extract_strided_slice %137 {offsets = [0, 256], sizes = [2, 128], strides = [1, 1]} : vector<2x384xf32> to vector<2x128xf32>
    %161 = vector.extract_strided_slice %143 {offsets = [0, 256], sizes = [2, 128], strides = [1, 1]} : vector<2x384xf32> to vector<2x128xf32>
    %162 = arith.mulf %151, %161 : vector<2x128xf32>
    %163 = arith.addf %160, %162 : vector<2x128xf32>
    %164 = math.tanh %163 : vector<2x128xf32>
    %cst_76 = arith.constant 1.000000e+00 : f32
    %165 = vector.broadcast %cst_76 : f32 to vector<2x128xf32>
    %166 = arith.subf %165, %159 : vector<2x128xf32>
    %167 = arith.mulf %166, %164 : vector<2x128xf32>
    %168 = arith.mulf %159, %96 : vector<2x128xf32>
    %169 = arith.addf %167, %168 : vector<2x128xf32>
    %c0_77 = arith.constant 0 : index
    %c0_78 = arith.constant 0 : index
    %170 = vector.load %arg18[%c0_77, %c0_78] : memref<2x128xf32, #tpu.memory_space<vmem>>, vector<2x128xf32>
    tpu.vector_store %arg18[%c0_77, %c0_78], %131 {strides = array<i32>} : memref<2x128xf32, #tpu.memory_space<vmem>>, vector<2x128xf32>,
    %c0_79 = arith.constant 0 : index
    %c0_80 = arith.constant 0 : index
    %171 = vector.load %arg19[%c0_79, %c0_80] : memref<2x128xf32, #tpu.memory_space<vmem>>, vector<2x128xf32>
    tpu.vector_store %arg19[%c0_79, %c0_80], %169 {strides = array<i32>} : memref<2x128xf32, #tpu.memory_space<vmem>>, vector<2x128xf32>,
    %172 = arith.index_cast %c1_i32 : i32 to index
    %c0_81 = arith.constant 0 : index
    %c0_82 = arith.constant 0 : index
    %173 = vector.load %arg17[%172, %c0_81, %c0_82] : memref<8x2x128xf32, #tpu.memory_space<vmem>>, vector<1x2x128xf32>
    %174 = vector.shape_cast %173 : vector<1x2x128xf32> to vector<2x128xf32>
    %175 = vector.shape_cast %169 : vector<2x128xf32> to vector<1x2x128xf32>
    tpu.vector_store %arg17[%172, %c0_81, %c0_82], %175 {strides = array<i32>} : memref<8x2x128xf32, #tpu.memory_space<vmem>>, vector<1x2x128xf32>,
    %c2_i32 = arith.constant 2 : i32
    %c0_83 = arith.constant 0 : index
    %c0_84 = arith.constant 0 : index
    %176 = vector.load %arg18[%c0_83, %c0_84] : memref<2x128xf32, #tpu.memory_space<vmem>>, vector<2x128xf32>
    %c0_85 = arith.constant 0 : index
    %c0_86 = arith.constant 0 : index
    %177 = vector.load %arg19[%c0_85, %c0_86] : memref<2x128xf32, #tpu.memory_space<vmem>>, vector<2x128xf32>
    %178 = arith.truncf %176 : vector<2x128xf32> to vector<2x128xbf16>
    %c0_87 = arith.constant 0 : index
    %c0_88 = arith.constant 0 : index
    %179 = vector.load %arg4[%c0_87, %c0_88] : memref<128x384xbf16, #tpu.memory_space<vmem>>, vector<128x384xbf16>
    %cst_89 = arith.constant dense<0.000000e+00> : vector<2x384xf32>
    %180 = tpu.matmul %178, %179, %cst_89 {dimension_numbers = #tpu.dot_dimension_numbers<[1], [0], [0], [1], [0, 0, 1, 1], [], []>} : vector<2x128xbf16>, vector<128x384xbf16>, vector<2x384xf32> -> vector<2x384xf32>
    %c0_90 = arith.constant 0 : index
    %c0_91 = arith.constant 0 : index
    %181 = vector.load %arg6[%c0_90, %c0_91] : memref<1x384xf32, #tpu.memory_space<vmem>>, vector<1x384xf32>
    %182 = vector.broadcast %181 : vector<1x384xf32> to vector<2x384xf32>
    %183 = arith.addf %180, %182 : vector<2x384xf32>
    %184 = arith.index_cast %c2_i32 : i32 to index
    %c0_92 = arith.constant 0 : index
    %c0_93 = arith.constant 0 : index
    %185 = vector.load %arg16[%184, %c0_92, %c0_93] : memref<8x2x384xf32, #tpu.memory_space<vmem>>, vector<1x2x384xf32>
    %186 = vector.shape_cast %185 : vector<1x2x384xf32> to vector<2x384xf32>
    %187 = vector.extract_strided_slice %186 {offsets = [0, 0], sizes = [2, 128], strides = [1, 1]} : vector<2x384xf32> to vector<2x128xf32>
    %188 = vector.extract_strided_slice %183 {offsets = [0, 0], sizes = [2, 128], strides = [1, 1]} : vector<2x384xf32> to vector<2x128xf32>
    %189 = arith.addf %187, %188 : vector<2x128xf32>
    %190 = arith.negf %189 : vector<2x128xf32>
    %191 = math.exp %190 : vector<2x128xf32>
    %cst_94 = arith.constant 1.000000e+00 : f32
    %192 = vector.broadcast %cst_94 : f32 to vector<2x128xf32>
    %193 = arith.addf %192, %191 : vector<2x128xf32>
    %194 = arith.divf %192, %193 : vector<2x128xf32>
    %195 = vector.extract_strided_slice %186 {offsets = [0, 128], sizes = [2, 128], strides = [1, 1]} : vector<2x384xf32> to vector<2x128xf32>
    %196 = vector.extract_strided_slice %183 {offsets = [0, 128], sizes = [2, 128], strides = [1, 1]} : vector<2x384xf32> to vector<2x128xf32>
    %197 = arith.addf %195, %196 : vector<2x128xf32>
    %198 = arith.negf %197 : vector<2x128xf32>
    %199 = math.exp %198 : vector<2x128xf32>
    %cst_95 = arith.constant 1.000000e+00 : f32
    %200 = vector.broadcast %cst_95 : f32 to vector<2x128xf32>
    %201 = arith.addf %200, %199 : vector<2x128xf32>
    %202 = arith.divf %200, %201 : vector<2x128xf32>
    %203 = vector.extract_strided_slice %186 {offsets = [0, 256], sizes = [2, 128], strides = [1, 1]} : vector<2x384xf32> to vector<2x128xf32>
    %204 = vector.extract_strided_slice %183 {offsets = [0, 256], sizes = [2, 128], strides = [1, 1]} : vector<2x384xf32> to vector<2x128xf32>
    %205 = arith.mulf %194, %204 : vector<2x128xf32>
    %206 = arith.addf %203, %205 : vector<2x128xf32>
    %207 = math.tanh %206 : vector<2x128xf32>
    %cst_96 = arith.constant 1.000000e+00 : f32
    %208 = vector.broadcast %cst_96 : f32 to vector<2x128xf32>
    %209 = arith.subf %208, %202 : vector<2x128xf32>
    %210 = arith.mulf %209, %207 : vector<2x128xf32>
    %211 = arith.mulf %202, %176 : vector<2x128xf32>
    %212 = arith.addf %210, %211 : vector<2x128xf32>
    %213 = arith.truncf %212 : vector<2x128xf32> to vector<2x128xbf16>
    %c0_97 = arith.constant 0 : index
    %c0_98 = arith.constant 0 : index
    %214 = vector.load %arg7[%c0_97, %c0_98] : memref<128x384xbf16, #tpu.memory_space<vmem>>, vector<128x384xbf16>
    %cst_99 = arith.constant dense<0.000000e+00> : vector<2x384xf32>
    %215 = tpu.matmul %213, %214, %cst_99 {dimension_numbers = #tpu.dot_dimension_numbers<[1], [0], [0], [1], [0, 0, 1, 1], [], []>} : vector<2x128xbf16>, vector<128x384xbf16>, vector<2x384xf32> -> vector<2x384xf32>
    %c0_100 = arith.constant 0 : index
    %c0_101 = arith.constant 0 : index
    %216 = vector.load %arg9[%c0_100, %c0_101] : memref<1x384xf32, #tpu.memory_space<vmem>>, vector<1x384xf32>
    %217 = vector.broadcast %216 : vector<1x384xf32> to vector<2x384xf32>
    %218 = arith.addf %215, %217 : vector<2x384xf32>
    %219 = arith.truncf %177 : vector<2x128xf32> to vector<2x128xbf16>
    %c0_102 = arith.constant 0 : index
    %c0_103 = arith.constant 0 : index
    %220 = vector.load %arg8[%c0_102, %c0_103] : memref<128x384xbf16, #tpu.memory_space<vmem>>, vector<128x384xbf16>
    %cst_104 = arith.constant dense<0.000000e+00> : vector<2x384xf32>
    %221 = tpu.matmul %219, %220, %cst_104 {dimension_numbers = #tpu.dot_dimension_numbers<[1], [0], [0], [1], [0, 0, 1, 1], [], []>} : vector<2x128xbf16>, vector<128x384xbf16>, vector<2x384xf32> -> vector<2x384xf32>
    %c0_105 = arith.constant 0 : index
    %c0_106 = arith.constant 0 : index
    %222 = vector.load %arg10[%c0_105, %c0_106] : memref<1x384xf32, #tpu.memory_space<vmem>>, vector<1x384xf32>
    %223 = vector.broadcast %222 : vector<1x384xf32> to vector<2x384xf32>
    %224 = arith.addf %221, %223 : vector<2x384xf32>
    %225 = vector.extract_strided_slice %218 {offsets = [0, 0], sizes = [2, 128], strides = [1, 1]} : vector<2x384xf32> to vector<2x128xf32>
    %226 = vector.extract_strided_slice %224 {offsets = [0, 0], sizes = [2, 128], strides = [1, 1]} : vector<2x384xf32> to vector<2x128xf32>
    %227 = arith.addf %225, %226 : vector<2x128xf32>
    %228 = arith.negf %227 : vector<2x128xf32>
    %229 = math.exp %228 : vector<2x128xf32>
    %cst_107 = arith.constant 1.000000e+00 : f32
    %230 = vector.broadcast %cst_107 : f32 to vector<2x128xf32>
    %231 = arith.addf %230, %229 : vector<2x128xf32>
    %232 = arith.divf %230, %231 : vector<2x128xf32>
    %233 = vector.extract_strided_slice %218 {offsets = [0, 128], sizes = [2, 128], strides = [1, 1]} : vector<2x384xf32> to vector<2x128xf32>
    %234 = vector.extract_strided_slice %224 {offsets = [0, 128], sizes = [2, 128], strides = [1, 1]} : vector<2x384xf32> to vector<2x128xf32>
    %235 = arith.addf %233, %234 : vector<2x128xf32>
    %236 = arith.negf %235 : vector<2x128xf32>
    %237 = math.exp %236 : vector<2x128xf32>
    %cst_108 = arith.constant 1.000000e+00 : f32
    %238 = vector.broadcast %cst_108 : f32 to vector<2x128xf32>
    %239 = arith.addf %238, %237 : vector<2x128xf32>
    %240 = arith.divf %238, %239 : vector<2x128xf32>
    %241 = vector.extract_strided_slice %218 {offsets = [0, 256], sizes = [2, 128], strides = [1, 1]} : vector<2x384xf32> to vector<2x128xf32>
    %242 = vector.extract_strided_slice %224 {offsets = [0, 256], sizes = [2, 128], strides = [1, 1]} : vector<2x384xf32> to vector<2x128xf32>
    %243 = arith.mulf %232, %242 : vector<2x128xf32>
    %244 = arith.addf %241, %243 : vector<2x128xf32>
    %245 = math.tanh %244 : vector<2x128xf32>
    %cst_109 = arith.constant 1.000000e+00 : f32
    %246 = vector.broadcast %cst_109 : f32 to vector<2x128xf32>
    %247 = arith.subf %246, %240 : vector<2x128xf32>
    %248 = arith.mulf %247, %245 : vector<2x128xf32>
    %249 = arith.mulf %240, %177 : vector<2x128xf32>
    %250 = arith.addf %248, %249 : vector<2x128xf32>
    %c0_110 = arith.constant 0 : index
    %c0_111 = arith.constant 0 : index
    %251 = vector.load %arg18[%c0_110, %c0_111] : memref<2x128xf32, #tpu.memory_space<vmem>>, vector<2x128xf32>
    tpu.vector_store %arg18[%c0_110, %c0_111], %212 {strides = array<i32>} : memref<2x128xf32, #tpu.memory_space<vmem>>, vector<2x128xf32>,
    %c0_112 = arith.constant 0 : index
    %c0_113 = arith.constant 0 : index
    %252 = vector.load %arg19[%c0_112, %c0_113] : memref<2x128xf32, #tpu.memory_space<vmem>>, vector<2x128xf32>
    tpu.vector_store %arg19[%c0_112, %c0_113], %250 {strides = array<i32>} : memref<2x128xf32, #tpu.memory_space<vmem>>, vector<2x128xf32>,
    %253 = arith.index_cast %c2_i32 : i32 to index
    %c0_114 = arith.constant 0 : index
    %c0_115 = arith.constant 0 : index
    %254 = vector.load %arg17[%253, %c0_114, %c0_115] : memref<8x2x128xf32, #tpu.memory_space<vmem>>, vector<1x2x128xf32>
    %255 = vector.shape_cast %254 : vector<1x2x128xf32> to vector<2x128xf32>
    %256 = vector.shape_cast %250 : vector<2x128xf32> to vector<1x2x128xf32>
    tpu.vector_store %arg17[%253, %c0_114, %c0_115], %256 {strides = array<i32>} : memref<8x2x128xf32, #tpu.memory_space<vmem>>, vector<1x2x128xf32>,
    %c3_i32 = arith.constant 3 : i32
    %c0_116 = arith.constant 0 : index
    %c0_117 = arith.constant 0 : index
    %257 = vector.load %arg18[%c0_116, %c0_117] : memref<2x128xf32, #tpu.memory_space<vmem>>, vector<2x128xf32>
    %c0_118 = arith.constant 0 : index
    %c0_119 = arith.constant 0 : index
    %258 = vector.load %arg19[%c0_118, %c0_119] : memref<2x128xf32, #tpu.memory_space<vmem>>, vector<2x128xf32>
    %259 = arith.truncf %257 : vector<2x128xf32> to vector<2x128xbf16>
    %c0_120 = arith.constant 0 : index
    %c0_121 = arith.constant 0 : index
    %260 = vector.load %arg4[%c0_120, %c0_121] : memref<128x384xbf16, #tpu.memory_space<vmem>>, vector<128x384xbf16>
    %cst_122 = arith.constant dense<0.000000e+00> : vector<2x384xf32>
    %261 = tpu.matmul %259, %260, %cst_122 {dimension_numbers = #tpu.dot_dimension_numbers<[1], [0], [0], [1], [0, 0, 1, 1], [], []>} : vector<2x128xbf16>, vector<128x384xbf16>, vector<2x384xf32> -> vector<2x384xf32>
    %c0_123 = arith.constant 0 : index
    %c0_124 = arith.constant 0 : index
    %262 = vector.load %arg6[%c0_123, %c0_124] : memref<1x384xf32, #tpu.memory_space<vmem>>, vector<1x384xf32>
    %263 = vector.broadcast %262 : vector<1x384xf32> to vector<2x384xf32>
    %264 = arith.addf %261, %263 : vector<2x384xf32>
    %265 = arith.index_cast %c3_i32 : i32 to index
    %c0_125 = arith.constant 0 : index
    %c0_126 = arith.constant 0 : index
    %266 = vector.load %arg16[%265, %c0_125, %c0_126] : memref<8x2x384xf32, #tpu.memory_space<vmem>>, vector<1x2x384xf32>
    %267 = vector.shape_cast %266 : vector<1x2x384xf32> to vector<2x384xf32>
    %268 = vector.extract_strided_slice %267 {offsets = [0, 0], sizes = [2, 128], strides = [1, 1]} : vector<2x384xf32> to vector<2x128xf32>
    %269 = vector.extract_strided_slice %264 {offsets = [0, 0], sizes = [2, 128], strides = [1, 1]} : vector<2x384xf32> to vector<2x128xf32>
    %270 = arith.addf %268, %269 : vector<2x128xf32>
    %271 = arith.negf %270 : vector<2x128xf32>
    %272 = math.exp %271 : vector<2x128xf32>
    %cst_127 = arith.constant 1.000000e+00 : f32
    %273 = vector.broadcast %cst_127 : f32 to vector<2x128xf32>
    %274 = arith.addf %273, %272 : vector<2x128xf32>
    %275 = arith.divf %273, %274 : vector<2x128xf32>
    %276 = vector.extract_strided_slice %267 {offsets = [0, 128], sizes = [2, 128], strides = [1, 1]} : vector<2x384xf32> to vector<2x128xf32>
    %277 = vector.extract_strided_slice %264 {offsets = [0, 128], sizes = [2, 128], strides = [1, 1]} : vector<2x384xf32> to vector<2x128xf32>
    %278 = arith.addf %276, %277 : vector<2x128xf32>
    %279 = arith.negf %278 : vector<2x128xf32>
    %280 = math.exp %279 : vector<2x128xf32>
    %cst_128 = arith.constant 1.000000e+00 : f32
    %281 = vector.broadcast %cst_128 : f32 to vector<2x128xf32>
    %282 = arith.addf %281, %280 : vector<2x128xf32>
    %283 = arith.divf %281, %282 : vector<2x128xf32>
    %284 = vector.extract_strided_slice %267 {offsets = [0, 256], sizes = [2, 128], strides = [1, 1]} : vector<2x384xf32> to vector<2x128xf32>
    %285 = vector.extract_strided_slice %264 {offsets = [0, 256], sizes = [2, 128], strides = [1, 1]} : vector<2x384xf32> to vector<2x128xf32>
    %286 = arith.mulf %275, %285 : vector<2x128xf32>
    %287 = arith.addf %284, %286 : vector<2x128xf32>
    %288 = math.tanh %287 : vector<2x128xf32>
    %cst_129 = arith.constant 1.000000e+00 : f32
    %289 = vector.broadcast %cst_129 : f32 to vector<2x128xf32>
    %290 = arith.subf %289, %283 : vector<2x128xf32>
    %291 = arith.mulf %290, %288 : vector<2x128xf32>
    %292 = arith.mulf %283, %257 : vector<2x128xf32>
    %293 = arith.addf %291, %292 : vector<2x128xf32>
    %294 = arith.truncf %293 : vector<2x128xf32> to vector<2x128xbf16>
    %c0_130 = arith.constant 0 : index
    %c0_131 = arith.constant 0 : index
    %295 = vector.load %arg7[%c0_130, %c0_131] : memref<128x384xbf16, #tpu.memory_space<vmem>>, vector<128x384xbf16>
    %cst_132 = arith.constant dense<0.000000e+00> : vector<2x384xf32>
    %296 = tpu.matmul %294, %295, %cst_132 {dimension_numbers = #tpu.dot_dimension_numbers<[1], [0], [0], [1], [0, 0, 1, 1], [], []>} : vector<2x128xbf16>, vector<128x384xbf16>, vector<2x384xf32> -> vector<2x384xf32>
    %c0_133 = arith.constant 0 : index
    %c0_134 = arith.constant 0 : index
    %297 = vector.load %arg9[%c0_133, %c0_134] : memref<1x384xf32, #tpu.memory_space<vmem>>, vector<1x384xf32>
    %298 = vector.broadcast %297 : vector<1x384xf32> to vector<2x384xf32>
    %299 = arith.addf %296, %298 : vector<2x384xf32>
    %300 = arith.truncf %258 : vector<2x128xf32> to vector<2x128xbf16>
    %c0_135 = arith.constant 0 : index
    %c0_136 = arith.constant 0 : index
    %301 = vector.load %arg8[%c0_135, %c0_136] : memref<128x384xbf16, #tpu.memory_space<vmem>>, vector<128x384xbf16>
    %cst_137 = arith.constant dense<0.000000e+00> : vector<2x384xf32>
    %302 = tpu.matmul %300, %301, %cst_137 {dimension_numbers = #tpu.dot_dimension_numbers<[1], [0], [0], [1], [0, 0, 1, 1], [], []>} : vector<2x128xbf16>, vector<128x384xbf16>, vector<2x384xf32> -> vector<2x384xf32>
    %c0_138 = arith.constant 0 : index
    %c0_139 = arith.constant 0 : index
    %303 = vector.load %arg10[%c0_138, %c0_139] : memref<1x384xf32, #tpu.memory_space<vmem>>, vector<1x384xf32>
    %304 = vector.broadcast %303 : vector<1x384xf32> to vector<2x384xf32>
    %305 = arith.addf %302, %304 : vector<2x384xf32>
    %306 = vector.extract_strided_slice %299 {offsets = [0, 0], sizes = [2, 128], strides = [1, 1]} : vector<2x384xf32> to vector<2x128xf32>
    %307 = vector.extract_strided_slice %305 {offsets = [0, 0], sizes = [2, 128], strides = [1, 1]} : vector<2x384xf32> to vector<2x128xf32>
    %308 = arith.addf %306, %307 : vector<2x128xf32>
    %309 = arith.negf %308 : vector<2x128xf32>
    %310 = math.exp %309 : vector<2x128xf32>
    %cst_140 = arith.constant 1.000000e+00 : f32
    %311 = vector.broadcast %cst_140 : f32 to vector<2x128xf32>
    %312 = arith.addf %311, %310 : vector<2x128xf32>
    %313 = arith.divf %311, %312 : vector<2x128xf32>
    %314 = vector.extract_strided_slice %299 {offsets = [0, 128], sizes = [2, 128], strides = [1, 1]} : vector<2x384xf32> to vector<2x128xf32>
    %315 = vector.extract_strided_slice %305 {offsets = [0, 128], sizes = [2, 128], strides = [1, 1]} : vector<2x384xf32> to vector<2x128xf32>
    %316 = arith.addf %314, %315 : vector<2x128xf32>
    %317 = arith.negf %316 : vector<2x128xf32>
    %318 = math.exp %317 : vector<2x128xf32>
    %cst_141 = arith.constant 1.000000e+00 : f32
    %319 = vector.broadcast %cst_141 : f32 to vector<2x128xf32>
    %320 = arith.addf %319, %318 : vector<2x128xf32>
    %321 = arith.divf %319, %320 : vector<2x128xf32>
    %322 = vector.extract_strided_slice %299 {offsets = [0, 256], sizes = [2, 128], strides = [1, 1]} : vector<2x384xf32> to vector<2x128xf32>
    %323 = vector.extract_strided_slice %305 {offsets = [0, 256], sizes = [2, 128], strides = [1, 1]} : vector<2x384xf32> to vector<2x128xf32>
    %324 = arith.mulf %313, %323 : vector<2x128xf32>
    %325 = arith.addf %322, %324 : vector<2x128xf32>
    %326 = math.tanh %325 : vector<2x128xf32>
    %cst_142 = arith.constant 1.000000e+00 : f32
    %327 = vector.broadcast %cst_142 : f32 to vector<2x128xf32>
    %328 = arith.subf %327, %321 : vector<2x128xf32>
    %329 = arith.mulf %328, %326 : vector<2x128xf32>
    %330 = arith.mulf %321, %258 : vector<2x128xf32>
    %331 = arith.addf %329, %330 : vector<2x128xf32>
    %c0_143 = arith.constant 0 : index
    %c0_144 = arith.constant 0 : index
    %332 = vector.load %arg18[%c0_143, %c0_144] : memref<2x128xf32, #tpu.memory_space<vmem>>, vector<2x128xf32>
    tpu.vector_store %arg18[%c0_143, %c0_144], %293 {strides = array<i32>} : memref<2x128xf32, #tpu.memory_space<vmem>>, vector<2x128xf32>,
    %c0_145 = arith.constant 0 : index
    %c0_146 = arith.constant 0 : index
    %333 = vector.load %arg19[%c0_145, %c0_146] : memref<2x128xf32, #tpu.memory_space<vmem>>, vector<2x128xf32>
    tpu.vector_store %arg19[%c0_145, %c0_146], %331 {strides = array<i32>} : memref<2x128xf32, #tpu.memory_space<vmem>>, vector<2x128xf32>,
    %334 = arith.index_cast %c3_i32 : i32 to index
    %c0_147 = arith.constant 0 : index
    %c0_148 = arith.constant 0 : index
    %335 = vector.load %arg17[%334, %c0_147, %c0_148] : memref<8x2x128xf32, #tpu.memory_space<vmem>>, vector<1x2x128xf32>
    %336 = vector.shape_cast %335 : vector<1x2x128xf32> to vector<2x128xf32>
    %337 = vector.shape_cast %331 : vector<2x128xf32> to vector<1x2x128xf32>
    tpu.vector_store %arg17[%334, %c0_147, %c0_148], %337 {strides = array<i32>} : memref<8x2x128xf32, #tpu.memory_space<vmem>>, vector<1x2x128xf32>,
    %c4_i32 = arith.constant 4 : i32
    %c0_149 = arith.constant 0 : index
    %c0_150 = arith.constant 0 : index
    %338 = vector.load %arg18[%c0_149, %c0_150] : memref<2x128xf32, #tpu.memory_space<vmem>>, vector<2x128xf32>
    %c0_151 = arith.constant 0 : index
    %c0_152 = arith.constant 0 : index
    %339 = vector.load %arg19[%c0_151, %c0_152] : memref<2x128xf32, #tpu.memory_space<vmem>>, vector<2x128xf32>
    %340 = arith.truncf %338 : vector<2x128xf32> to vector<2x128xbf16>
    %c0_153 = arith.constant 0 : index
    %c0_154 = arith.constant 0 : index
    %341 = vector.load %arg4[%c0_153, %c0_154] : memref<128x384xbf16, #tpu.memory_space<vmem>>, vector<128x384xbf16>
    %cst_155 = arith.constant dense<0.000000e+00> : vector<2x384xf32>
    %342 = tpu.matmul %340, %341, %cst_155 {dimension_numbers = #tpu.dot_dimension_numbers<[1], [0], [0], [1], [0, 0, 1, 1], [], []>} : vector<2x128xbf16>, vector<128x384xbf16>, vector<2x384xf32> -> vector<2x384xf32>
    %c0_156 = arith.constant 0 : index
    %c0_157 = arith.constant 0 : index
    %343 = vector.load %arg6[%c0_156, %c0_157] : memref<1x384xf32, #tpu.memory_space<vmem>>, vector<1x384xf32>
    %344 = vector.broadcast %343 : vector<1x384xf32> to vector<2x384xf32>
    %345 = arith.addf %342, %344 : vector<2x384xf32>
    %346 = arith.index_cast %c4_i32 : i32 to index
    %c0_158 = arith.constant 0 : index
    %c0_159 = arith.constant 0 : index
    %347 = vector.load %arg16[%346, %c0_158, %c0_159] : memref<8x2x384xf32, #tpu.memory_space<vmem>>, vector<1x2x384xf32>
    %348 = vector.shape_cast %347 : vector<1x2x384xf32> to vector<2x384xf32>
    %349 = vector.extract_strided_slice %348 {offsets = [0, 0], sizes = [2, 128], strides = [1, 1]} : vector<2x384xf32> to vector<2x128xf32>
    %350 = vector.extract_strided_slice %345 {offsets = [0, 0], sizes = [2, 128], strides = [1, 1]} : vector<2x384xf32> to vector<2x128xf32>
    %351 = arith.addf %349, %350 : vector<2x128xf32>
    %352 = arith.negf %351 : vector<2x128xf32>
    %353 = math.exp %352 : vector<2x128xf32>
    %cst_160 = arith.constant 1.000000e+00 : f32
    %354 = vector.broadcast %cst_160 : f32 to vector<2x128xf32>
    %355 = arith.addf %354, %353 : vector<2x128xf32>
    %356 = arith.divf %354, %355 : vector<2x128xf32>
    %357 = vector.extract_strided_slice %348 {offsets = [0, 128], sizes = [2, 128], strides = [1, 1]} : vector<2x384xf32> to vector<2x128xf32>
    %358 = vector.extract_strided_slice %345 {offsets = [0, 128], sizes = [2, 128], strides = [1, 1]} : vector<2x384xf32> to vector<2x128xf32>
    %359 = arith.addf %357, %358 : vector<2x128xf32>
    %360 = arith.negf %359 : vector<2x128xf32>
    %361 = math.exp %360 : vector<2x128xf32>
    %cst_161 = arith.constant 1.000000e+00 : f32
    %362 = vector.broadcast %cst_161 : f32 to vector<2x128xf32>
    %363 = arith.addf %362, %361 : vector<2x128xf32>
    %364 = arith.divf %362, %363 : vector<2x128xf32>
    %365 = vector.extract_strided_slice %348 {offsets = [0, 256], sizes = [2, 128], strides = [1, 1]} : vector<2x384xf32> to vector<2x128xf32>
    %366 = vector.extract_strided_slice %345 {offsets = [0, 256], sizes = [2, 128], strides = [1, 1]} : vector<2x384xf32> to vector<2x128xf32>
    %367 = arith.mulf %356, %366 : vector<2x128xf32>
    %368 = arith.addf %365, %367 : vector<2x128xf32>
    %369 = math.tanh %368 : vector<2x128xf32>
    %cst_162 = arith.constant 1.000000e+00 : f32
    %370 = vector.broadcast %cst_162 : f32 to vector<2x128xf32>
    %371 = arith.subf %370, %364 : vector<2x128xf32>
    %372 = arith.mulf %371, %369 : vector<2x128xf32>
    %373 = arith.mulf %364, %338 : vector<2x128xf32>
    %374 = arith.addf %372, %373 : vector<2x128xf32>
    %375 = arith.truncf %374 : vector<2x128xf32> to vector<2x128xbf16>
    %c0_163 = arith.constant 0 : index
    %c0_164 = arith.constant 0 : index
    %376 = vector.load %arg7[%c0_163, %c0_164] : memref<128x384xbf16, #tpu.memory_space<vmem>>, vector<128x384xbf16>
    %cst_165 = arith.constant dense<0.000000e+00> : vector<2x384xf32>
    %377 = tpu.matmul %375, %376, %cst_165 {dimension_numbers = #tpu.dot_dimension_numbers<[1], [0], [0], [1], [0, 0, 1, 1], [], []>} : vector<2x128xbf16>, vector<128x384xbf16>, vector<2x384xf32> -> vector<2x384xf32>
    %c0_166 = arith.constant 0 : index
    %c0_167 = arith.constant 0 : index
    %378 = vector.load %arg9[%c0_166, %c0_167] : memref<1x384xf32, #tpu.memory_space<vmem>>, vector<1x384xf32>
    %379 = vector.broadcast %378 : vector<1x384xf32> to vector<2x384xf32>
    %380 = arith.addf %377, %379 : vector<2x384xf32>
    %381 = arith.truncf %339 : vector<2x128xf32> to vector<2x128xbf16>
    %c0_168 = arith.constant 0 : index
    %c0_169 = arith.constant 0 : index
    %382 = vector.load %arg8[%c0_168, %c0_169] : memref<128x384xbf16, #tpu.memory_space<vmem>>, vector<128x384xbf16>
    %cst_170 = arith.constant dense<0.000000e+00> : vector<2x384xf32>
    %383 = tpu.matmul %381, %382, %cst_170 {dimension_numbers = #tpu.dot_dimension_numbers<[1], [0], [0], [1], [0, 0, 1, 1], [], []>} : vector<2x128xbf16>, vector<128x384xbf16>, vector<2x384xf32> -> vector<2x384xf32>
    %c0_171 = arith.constant 0 : index
    %c0_172 = arith.constant 0 : index
    %384 = vector.load %arg10[%c0_171, %c0_172] : memref<1x384xf32, #tpu.memory_space<vmem>>, vector<1x384xf32>
    %385 = vector.broadcast %384 : vector<1x384xf32> to vector<2x384xf32>
    %386 = arith.addf %383, %385 : vector<2x384xf32>
    %387 = vector.extract_strided_slice %380 {offsets = [0, 0], sizes = [2, 128], strides = [1, 1]} : vector<2x384xf32> to vector<2x128xf32>
    %388 = vector.extract_strided_slice %386 {offsets = [0, 0], sizes = [2, 128], strides = [1, 1]} : vector<2x384xf32> to vector<2x128xf32>
    %389 = arith.addf %387, %388 : vector<2x128xf32>
    %390 = arith.negf %389 : vector<2x128xf32>
    %391 = math.exp %390 : vector<2x128xf32>
    %cst_173 = arith.constant 1.000000e+00 : f32
    %392 = vector.broadcast %cst_173 : f32 to vector<2x128xf32>
    %393 = arith.addf %392, %391 : vector<2x128xf32>
    %394 = arith.divf %392, %393 : vector<2x128xf32>
    %395 = vector.extract_strided_slice %380 {offsets = [0, 128], sizes = [2, 128], strides = [1, 1]} : vector<2x384xf32> to vector<2x128xf32>
    %396 = vector.extract_strided_slice %386 {offsets = [0, 128], sizes = [2, 128], strides = [1, 1]} : vector<2x384xf32> to vector<2x128xf32>
    %397 = arith.addf %395, %396 : vector<2x128xf32>
    %398 = arith.negf %397 : vector<2x128xf32>
    %399 = math.exp %398 : vector<2x128xf32>
    %cst_174 = arith.constant 1.000000e+00 : f32
    %400 = vector.broadcast %cst_174 : f32 to vector<2x128xf32>
    %401 = arith.addf %400, %399 : vector<2x128xf32>
    %402 = arith.divf %400, %401 : vector<2x128xf32>
    %403 = vector.extract_strided_slice %380 {offsets = [0, 256], sizes = [2, 128], strides = [1, 1]} : vector<2x384xf32> to vector<2x128xf32>
    %404 = vector.extract_strided_slice %386 {offsets = [0, 256], sizes = [2, 128], strides = [1, 1]} : vector<2x384xf32> to vector<2x128xf32>
    %405 = arith.mulf %394, %404 : vector<2x128xf32>
    %406 = arith.addf %403, %405 : vector<2x128xf32>
    %407 = math.tanh %406 : vector<2x128xf32>
    %cst_175 = arith.constant 1.000000e+00 : f32
    %408 = vector.broadcast %cst_175 : f32 to vector<2x128xf32>
    %409 = arith.subf %408, %402 : vector<2x128xf32>
    %410 = arith.mulf %409, %407 : vector<2x128xf32>
    %411 = arith.mulf %402, %339 : vector<2x128xf32>
    %412 = arith.addf %410, %411 : vector<2x128xf32>
    %c0_176 = arith.constant 0 : index
    %c0_177 = arith.constant 0 : index
    %413 = vector.load %arg18[%c0_176, %c0_177] : memref<2x128xf32, #tpu.memory_space<vmem>>, vector<2x128xf32>
    tpu.vector_store %arg18[%c0_176, %c0_177], %374 {strides = array<i32>} : memref<2x128xf32, #tpu.memory_space<vmem>>, vector<2x128xf32>,
    %c0_178 = arith.constant 0 : index
    %c0_179 = arith.constant 0 : index
    %414 = vector.load %arg19[%c0_178, %c0_179] : memref<2x128xf32, #tpu.memory_space<vmem>>, vector<2x128xf32>
    tpu.vector_store %arg19[%c0_178, %c0_179], %412 {strides = array<i32>} : memref<2x128xf32, #tpu.memory_space<vmem>>, vector<2x128xf32>,
    %415 = arith.index_cast %c4_i32 : i32 to index
    %c0_180 = arith.constant 0 : index
    %c0_181 = arith.constant 0 : index
    %416 = vector.load %arg17[%415, %c0_180, %c0_181] : memref<8x2x128xf32, #tpu.memory_space<vmem>>, vector<1x2x128xf32>
    %417 = vector.shape_cast %416 : vector<1x2x128xf32> to vector<2x128xf32>
    %418 = vector.shape_cast %412 : vector<2x128xf32> to vector<1x2x128xf32>
    tpu.vector_store %arg17[%415, %c0_180, %c0_181], %418 {strides = array<i32>} : memref<8x2x128xf32, #tpu.memory_space<vmem>>, vector<1x2x128xf32>,
    %c5_i32 = arith.constant 5 : i32
    %c0_182 = arith.constant 0 : index
    %c0_183 = arith.constant 0 : index
    %419 = vector.load %arg18[%c0_182, %c0_183] : memref<2x128xf32, #tpu.memory_space<vmem>>, vector<2x128xf32>
    %c0_184 = arith.constant 0 : index
    %c0_185 = arith.constant 0 : index
    %420 = vector.load %arg19[%c0_184, %c0_185] : memref<2x128xf32, #tpu.memory_space<vmem>>, vector<2x128xf32>
    %421 = arith.truncf %419 : vector<2x128xf32> to vector<2x128xbf16>
    %c0_186 = arith.constant 0 : index
    %c0_187 = arith.constant 0 : index
    %422 = vector.load %arg4[%c0_186, %c0_187] : memref<128x384xbf16, #tpu.memory_space<vmem>>, vector<128x384xbf16>
    %cst_188 = arith.constant dense<0.000000e+00> : vector<2x384xf32>
    %423 = tpu.matmul %421, %422, %cst_188 {dimension_numbers = #tpu.dot_dimension_numbers<[1], [0], [0], [1], [0, 0, 1, 1], [], []>} : vector<2x128xbf16>, vector<128x384xbf16>, vector<2x384xf32> -> vector<2x384xf32>
    %c0_189 = arith.constant 0 : index
    %c0_190 = arith.constant 0 : index
    %424 = vector.load %arg6[%c0_189, %c0_190] : memref<1x384xf32, #tpu.memory_space<vmem>>, vector<1x384xf32>
    %425 = vector.broadcast %424 : vector<1x384xf32> to vector<2x384xf32>
    %426 = arith.addf %423, %425 : vector<2x384xf32>
    %427 = arith.index_cast %c5_i32 : i32 to index
    %c0_191 = arith.constant 0 : index
    %c0_192 = arith.constant 0 : index
    %428 = vector.load %arg16[%427, %c0_191, %c0_192] : memref<8x2x384xf32, #tpu.memory_space<vmem>>, vector<1x2x384xf32>
    %429 = vector.shape_cast %428 : vector<1x2x384xf32> to vector<2x384xf32>
    %430 = vector.extract_strided_slice %429 {offsets = [0, 0], sizes = [2, 128], strides = [1, 1]} : vector<2x384xf32> to vector<2x128xf32>
    %431 = vector.extract_strided_slice %426 {offsets = [0, 0], sizes = [2, 128], strides = [1, 1]} : vector<2x384xf32> to vector<2x128xf32>
    %432 = arith.addf %430, %431 : vector<2x128xf32>
    %433 = arith.negf %432 : vector<2x128xf32>
    %434 = math.exp %433 : vector<2x128xf32>
    %cst_193 = arith.constant 1.000000e+00 : f32
    %435 = vector.broadcast %cst_193 : f32 to vector<2x128xf32>
    %436 = arith.addf %435, %434 : vector<2x128xf32>
    %437 = arith.divf %435, %436 : vector<2x128xf32>
    %438 = vector.extract_strided_slice %429 {offsets = [0, 128], sizes = [2, 128], strides = [1, 1]} : vector<2x384xf32> to vector<2x128xf32>
    %439 = vector.extract_strided_slice %426 {offsets = [0, 128], sizes = [2, 128], strides = [1, 1]} : vector<2x384xf32> to vector<2x128xf32>
    %440 = arith.addf %438, %439 : vector<2x128xf32>
    %441 = arith.negf %440 : vector<2x128xf32>
    %442 = math.exp %441 : vector<2x128xf32>
    %cst_194 = arith.constant 1.000000e+00 : f32
    %443 = vector.broadcast %cst_194 : f32 to vector<2x128xf32>
    %444 = arith.addf %443, %442 : vector<2x128xf32>
    %445 = arith.divf %443, %444 : vector<2x128xf32>
    %446 = vector.extract_strided_slice %429 {offsets = [0, 256], sizes = [2, 128], strides = [1, 1]} : vector<2x384xf32> to vector<2x128xf32>
    %447 = vector.extract_strided_slice %426 {offsets = [0, 256], sizes = [2, 128], strides = [1, 1]} : vector<2x384xf32> to vector<2x128xf32>
    %448 = arith.mulf %437, %447 : vector<2x128xf32>
    %449 = arith.addf %446, %448 : vector<2x128xf32>
    %450 = math.tanh %449 : vector<2x128xf32>
    %cst_195 = arith.constant 1.000000e+00 : f32
    %451 = vector.broadcast %cst_195 : f32 to vector<2x128xf32>
    %452 = arith.subf %451, %445 : vector<2x128xf32>
    %453 = arith.mulf %452, %450 : vector<2x128xf32>
    %454 = arith.mulf %445, %419 : vector<2x128xf32>
    %455 = arith.addf %453, %454 : vector<2x128xf32>
    %456 = arith.truncf %455 : vector<2x128xf32> to vector<2x128xbf16>
    %c0_196 = arith.constant 0 : index
    %c0_197 = arith.constant 0 : index
    %457 = vector.load %arg7[%c0_196, %c0_197] : memref<128x384xbf16, #tpu.memory_space<vmem>>, vector<128x384xbf16>
    %cst_198 = arith.constant dense<0.000000e+00> : vector<2x384xf32>
    %458 = tpu.matmul %456, %457, %cst_198 {dimension_numbers = #tpu.dot_dimension_numbers<[1], [0], [0], [1], [0, 0, 1, 1], [], []>} : vector<2x128xbf16>, vector<128x384xbf16>, vector<2x384xf32> -> vector<2x384xf32>
    %c0_199 = arith.constant 0 : index
    %c0_200 = arith.constant 0 : index
    %459 = vector.load %arg9[%c0_199, %c0_200] : memref<1x384xf32, #tpu.memory_space<vmem>>, vector<1x384xf32>
    %460 = vector.broadcast %459 : vector<1x384xf32> to vector<2x384xf32>
    %461 = arith.addf %458, %460 : vector<2x384xf32>
    %462 = arith.truncf %420 : vector<2x128xf32> to vector<2x128xbf16>
    %c0_201 = arith.constant 0 : index
    %c0_202 = arith.constant 0 : index
    %463 = vector.load %arg8[%c0_201, %c0_202] : memref<128x384xbf16, #tpu.memory_space<vmem>>, vector<128x384xbf16>
    %cst_203 = arith.constant dense<0.000000e+00> : vector<2x384xf32>
    %464 = tpu.matmul %462, %463, %cst_203 {dimension_numbers = #tpu.dot_dimension_numbers<[1], [0], [0], [1], [0, 0, 1, 1], [], []>} : vector<2x128xbf16>, vector<128x384xbf16>, vector<2x384xf32> -> vector<2x384xf32>
    %c0_204 = arith.constant 0 : index
    %c0_205 = arith.constant 0 : index
    %465 = vector.load %arg10[%c0_204, %c0_205] : memref<1x384xf32, #tpu.memory_space<vmem>>, vector<1x384xf32>
    %466 = vector.broadcast %465 : vector<1x384xf32> to vector<2x384xf32>
    %467 = arith.addf %464, %466 : vector<2x384xf32>
    %468 = vector.extract_strided_slice %461 {offsets = [0, 0], sizes = [2, 128], strides = [1, 1]} : vector<2x384xf32> to vector<2x128xf32>
    %469 = vector.extract_strided_slice %467 {offsets = [0, 0], sizes = [2, 128], strides = [1, 1]} : vector<2x384xf32> to vector<2x128xf32>
    %470 = arith.addf %468, %469 : vector<2x128xf32>
    %471 = arith.negf %470 : vector<2x128xf32>
    %472 = math.exp %471 : vector<2x128xf32>
    %cst_206 = arith.constant 1.000000e+00 : f32
    %473 = vector.broadcast %cst_206 : f32 to vector<2x128xf32>
    %474 = arith.addf %473, %472 : vector<2x128xf32>
    %475 = arith.divf %473, %474 : vector<2x128xf32>
    %476 = vector.extract_strided_slice %461 {offsets = [0, 128], sizes = [2, 128], strides = [1, 1]} : vector<2x384xf32> to vector<2x128xf32>
    %477 = vector.extract_strided_slice %467 {offsets = [0, 128], sizes = [2, 128], strides = [1, 1]} : vector<2x384xf32> to vector<2x128xf32>
    %478 = arith.addf %476, %477 : vector<2x128xf32>
    %479 = arith.negf %478 : vector<2x128xf32>
    %480 = math.exp %479 : vector<2x128xf32>
    %cst_207 = arith.constant 1.000000e+00 : f32
    %481 = vector.broadcast %cst_207 : f32 to vector<2x128xf32>
    %482 = arith.addf %481, %480 : vector<2x128xf32>
    %483 = arith.divf %481, %482 : vector<2x128xf32>
    %484 = vector.extract_strided_slice %461 {offsets = [0, 256], sizes = [2, 128], strides = [1, 1]} : vector<2x384xf32> to vector<2x128xf32>
    %485 = vector.extract_strided_slice %467 {offsets = [0, 256], sizes = [2, 128], strides = [1, 1]} : vector<2x384xf32> to vector<2x128xf32>
    %486 = arith.mulf %475, %485 : vector<2x128xf32>
    %487 = arith.addf %484, %486 : vector<2x128xf32>
    %488 = math.tanh %487 : vector<2x128xf32>
    %cst_208 = arith.constant 1.000000e+00 : f32
    %489 = vector.broadcast %cst_208 : f32 to vector<2x128xf32>
    %490 = arith.subf %489, %483 : vector<2x128xf32>
    %491 = arith.mulf %490, %488 : vector<2x128xf32>
    %492 = arith.mulf %483, %420 : vector<2x128xf32>
    %493 = arith.addf %491, %492 : vector<2x128xf32>
    %c0_209 = arith.constant 0 : index
    %c0_210 = arith.constant 0 : index
    %494 = vector.load %arg18[%c0_209, %c0_210] : memref<2x128xf32, #tpu.memory_space<vmem>>, vector<2x128xf32>
    tpu.vector_store %arg18[%c0_209, %c0_210], %455 {strides = array<i32>} : memref<2x128xf32, #tpu.memory_space<vmem>>, vector<2x128xf32>,
    %c0_211 = arith.constant 0 : index
    %c0_212 = arith.constant 0 : index
    %495 = vector.load %arg19[%c0_211, %c0_212] : memref<2x128xf32, #tpu.memory_space<vmem>>, vector<2x128xf32>
    tpu.vector_store %arg19[%c0_211, %c0_212], %493 {strides = array<i32>} : memref<2x128xf32, #tpu.memory_space<vmem>>, vector<2x128xf32>,
    %496 = arith.index_cast %c5_i32 : i32 to index
    %c0_213 = arith.constant 0 : index
    %c0_214 = arith.constant 0 : index
    %497 = vector.load %arg17[%496, %c0_213, %c0_214] : memref<8x2x128xf32, #tpu.memory_space<vmem>>, vector<1x2x128xf32>
    %498 = vector.shape_cast %497 : vector<1x2x128xf32> to vector<2x128xf32>
    %499 = vector.shape_cast %493 : vector<2x128xf32> to vector<1x2x128xf32>
    tpu.vector_store %arg17[%496, %c0_213, %c0_214], %499 {strides = array<i32>} : memref<8x2x128xf32, #tpu.memory_space<vmem>>, vector<1x2x128xf32>,
    %c6_i32 = arith.constant 6 : i32
    %c0_215 = arith.constant 0 : index
    %c0_216 = arith.constant 0 : index
    %500 = vector.load %arg18[%c0_215, %c0_216] : memref<2x128xf32, #tpu.memory_space<vmem>>, vector<2x128xf32>
    %c0_217 = arith.constant 0 : index
    %c0_218 = arith.constant 0 : index
    %501 = vector.load %arg19[%c0_217, %c0_218] : memref<2x128xf32, #tpu.memory_space<vmem>>, vector<2x128xf32>
    %502 = arith.truncf %500 : vector<2x128xf32> to vector<2x128xbf16>
    %c0_219 = arith.constant 0 : index
    %c0_220 = arith.constant 0 : index
    %503 = vector.load %arg4[%c0_219, %c0_220] : memref<128x384xbf16, #tpu.memory_space<vmem>>, vector<128x384xbf16>
    %cst_221 = arith.constant dense<0.000000e+00> : vector<2x384xf32>
    %504 = tpu.matmul %502, %503, %cst_221 {dimension_numbers = #tpu.dot_dimension_numbers<[1], [0], [0], [1], [0, 0, 1, 1], [], []>} : vector<2x128xbf16>, vector<128x384xbf16>, vector<2x384xf32> -> vector<2x384xf32>
    %c0_222 = arith.constant 0 : index
    %c0_223 = arith.constant 0 : index
    %505 = vector.load %arg6[%c0_222, %c0_223] : memref<1x384xf32, #tpu.memory_space<vmem>>, vector<1x384xf32>
    %506 = vector.broadcast %505 : vector<1x384xf32> to vector<2x384xf32>
    %507 = arith.addf %504, %506 : vector<2x384xf32>
    %508 = arith.index_cast %c6_i32 : i32 to index
    %c0_224 = arith.constant 0 : index
    %c0_225 = arith.constant 0 : index
    %509 = vector.load %arg16[%508, %c0_224, %c0_225] : memref<8x2x384xf32, #tpu.memory_space<vmem>>, vector<1x2x384xf32>
    %510 = vector.shape_cast %509 : vector<1x2x384xf32> to vector<2x384xf32>
    %511 = vector.extract_strided_slice %510 {offsets = [0, 0], sizes = [2, 128], strides = [1, 1]} : vector<2x384xf32> to vector<2x128xf32>
    %512 = vector.extract_strided_slice %507 {offsets = [0, 0], sizes = [2, 128], strides = [1, 1]} : vector<2x384xf32> to vector<2x128xf32>
    %513 = arith.addf %511, %512 : vector<2x128xf32>
    %514 = arith.negf %513 : vector<2x128xf32>
    %515 = math.exp %514 : vector<2x128xf32>
    %cst_226 = arith.constant 1.000000e+00 : f32
    %516 = vector.broadcast %cst_226 : f32 to vector<2x128xf32>
    %517 = arith.addf %516, %515 : vector<2x128xf32>
    %518 = arith.divf %516, %517 : vector<2x128xf32>
    %519 = vector.extract_strided_slice %510 {offsets = [0, 128], sizes = [2, 128], strides = [1, 1]} : vector<2x384xf32> to vector<2x128xf32>
    %520 = vector.extract_strided_slice %507 {offsets = [0, 128], sizes = [2, 128], strides = [1, 1]} : vector<2x384xf32> to vector<2x128xf32>
    %521 = arith.addf %519, %520 : vector<2x128xf32>
    %522 = arith.negf %521 : vector<2x128xf32>
    %523 = math.exp %522 : vector<2x128xf32>
    %cst_227 = arith.constant 1.000000e+00 : f32
    %524 = vector.broadcast %cst_227 : f32 to vector<2x128xf32>
    %525 = arith.addf %524, %523 : vector<2x128xf32>
    %526 = arith.divf %524, %525 : vector<2x128xf32>
    %527 = vector.extract_strided_slice %510 {offsets = [0, 256], sizes = [2, 128], strides = [1, 1]} : vector<2x384xf32> to vector<2x128xf32>
    %528 = vector.extract_strided_slice %507 {offsets = [0, 256], sizes = [2, 128], strides = [1, 1]} : vector<2x384xf32> to vector<2x128xf32>
    %529 = arith.mulf %518, %528 : vector<2x128xf32>
    %530 = arith.addf %527, %529 : vector<2x128xf32>
    %531 = math.tanh %530 : vector<2x128xf32>
    %cst_228 = arith.constant 1.000000e+00 : f32
    %532 = vector.broadcast %cst_228 : f32 to vector<2x128xf32>
    %533 = arith.subf %532, %526 : vector<2x128xf32>
    %534 = arith.mulf %533, %531 : vector<2x128xf32>
    %535 = arith.mulf %526, %500 : vector<2x128xf32>
    %536 = arith.addf %534, %535 : vector<2x128xf32>
    %537 = arith.truncf %536 : vector<2x128xf32> to vector<2x128xbf16>
    %c0_229 = arith.constant 0 : index
    %c0_230 = arith.constant 0 : index
    %538 = vector.load %arg7[%c0_229, %c0_230] : memref<128x384xbf16, #tpu.memory_space<vmem>>, vector<128x384xbf16>
    %cst_231 = arith.constant dense<0.000000e+00> : vector<2x384xf32>
    %539 = tpu.matmul %537, %538, %cst_231 {dimension_numbers = #tpu.dot_dimension_numbers<[1], [0], [0], [1], [0, 0, 1, 1], [], []>} : vector<2x128xbf16>, vector<128x384xbf16>, vector<2x384xf32> -> vector<2x384xf32>
    %c0_232 = arith.constant 0 : index
    %c0_233 = arith.constant 0 : index
    %540 = vector.load %arg9[%c0_232, %c0_233] : memref<1x384xf32, #tpu.memory_space<vmem>>, vector<1x384xf32>
    %541 = vector.broadcast %540 : vector<1x384xf32> to vector<2x384xf32>
    %542 = arith.addf %539, %541 : vector<2x384xf32>
    %543 = arith.truncf %501 : vector<2x128xf32> to vector<2x128xbf16>
    %c0_234 = arith.constant 0 : index
    %c0_235 = arith.constant 0 : index
    %544 = vector.load %arg8[%c0_234, %c0_235] : memref<128x384xbf16, #tpu.memory_space<vmem>>, vector<128x384xbf16>
    %cst_236 = arith.constant dense<0.000000e+00> : vector<2x384xf32>
    %545 = tpu.matmul %543, %544, %cst_236 {dimension_numbers = #tpu.dot_dimension_numbers<[1], [0], [0], [1], [0, 0, 1, 1], [], []>} : vector<2x128xbf16>, vector<128x384xbf16>, vector<2x384xf32> -> vector<2x384xf32>
    %c0_237 = arith.constant 0 : index
    %c0_238 = arith.constant 0 : index
    %546 = vector.load %arg10[%c0_237, %c0_238] : memref<1x384xf32, #tpu.memory_space<vmem>>, vector<1x384xf32>
    %547 = vector.broadcast %546 : vector<1x384xf32> to vector<2x384xf32>
    %548 = arith.addf %545, %547 : vector<2x384xf32>
    %549 = vector.extract_strided_slice %542 {offsets = [0, 0], sizes = [2, 128], strides = [1, 1]} : vector<2x384xf32> to vector<2x128xf32>
    %550 = vector.extract_strided_slice %548 {offsets = [0, 0], sizes = [2, 128], strides = [1, 1]} : vector<2x384xf32> to vector<2x128xf32>
    %551 = arith.addf %549, %550 : vector<2x128xf32>
    %552 = arith.negf %551 : vector<2x128xf32>
    %553 = math.exp %552 : vector<2x128xf32>
    %cst_239 = arith.constant 1.000000e+00 : f32
    %554 = vector.broadcast %cst_239 : f32 to vector<2x128xf32>
    %555 = arith.addf %554, %553 : vector<2x128xf32>
    %556 = arith.divf %554, %555 : vector<2x128xf32>
    %557 = vector.extract_strided_slice %542 {offsets = [0, 128], sizes = [2, 128], strides = [1, 1]} : vector<2x384xf32> to vector<2x128xf32>
    %558 = vector.extract_strided_slice %548 {offsets = [0, 128], sizes = [2, 128], strides = [1, 1]} : vector<2x384xf32> to vector<2x128xf32>
    %559 = arith.addf %557, %558 : vector<2x128xf32>
    %560 = arith.negf %559 : vector<2x128xf32>
    %561 = math.exp %560 : vector<2x128xf32>
    %cst_240 = arith.constant 1.000000e+00 : f32
    %562 = vector.broadcast %cst_240 : f32 to vector<2x128xf32>
    %563 = arith.addf %562, %561 : vector<2x128xf32>
    %564 = arith.divf %562, %563 : vector<2x128xf32>
    %565 = vector.extract_strided_slice %542 {offsets = [0, 256], sizes = [2, 128], strides = [1, 1]} : vector<2x384xf32> to vector<2x128xf32>
    %566 = vector.extract_strided_slice %548 {offsets = [0, 256], sizes = [2, 128], strides = [1, 1]} : vector<2x384xf32> to vector<2x128xf32>
    %567 = arith.mulf %556, %566 : vector<2x128xf32>
    %568 = arith.addf %565, %567 : vector<2x128xf32>
    %569 = math.tanh %568 : vector<2x128xf32>
    %cst_241 = arith.constant 1.000000e+00 : f32
    %570 = vector.broadcast %cst_241 : f32 to vector<2x128xf32>
    %571 = arith.subf %570, %564 : vector<2x128xf32>
    %572 = arith.mulf %571, %569 : vector<2x128xf32>
    %573 = arith.mulf %564, %501 : vector<2x128xf32>
    %574 = arith.addf %572, %573 : vector<2x128xf32>
    %c0_242 = arith.constant 0 : index
    %c0_243 = arith.constant 0 : index
    %575 = vector.load %arg18[%c0_242, %c0_243] : memref<2x128xf32, #tpu.memory_space<vmem>>, vector<2x128xf32>
    tpu.vector_store %arg18[%c0_242, %c0_243], %536 {strides = array<i32>} : memref<2x128xf32, #tpu.memory_space<vmem>>, vector<2x128xf32>,
    %c0_244 = arith.constant 0 : index
    %c0_245 = arith.constant 0 : index
    %576 = vector.load %arg19[%c0_244, %c0_245] : memref<2x128xf32, #tpu.memory_space<vmem>>, vector<2x128xf32>
    tpu.vector_store %arg19[%c0_244, %c0_245], %574 {strides = array<i32>} : memref<2x128xf32, #tpu.memory_space<vmem>>, vector<2x128xf32>,
    %577 = arith.index_cast %c6_i32 : i32 to index
    %c0_246 = arith.constant 0 : index
    %c0_247 = arith.constant 0 : index
    %578 = vector.load %arg17[%577, %c0_246, %c0_247] : memref<8x2x128xf32, #tpu.memory_space<vmem>>, vector<1x2x128xf32>
    %579 = vector.shape_cast %578 : vector<1x2x128xf32> to vector<2x128xf32>
    %580 = vector.shape_cast %574 : vector<2x128xf32> to vector<1x2x128xf32>
    tpu.vector_store %arg17[%577, %c0_246, %c0_247], %580 {strides = array<i32>} : memref<8x2x128xf32, #tpu.memory_space<vmem>>, vector<1x2x128xf32>,
    %c7_i32 = arith.constant 7 : i32
    %c0_248 = arith.constant 0 : index
    %c0_249 = arith.constant 0 : index
    %581 = vector.load %arg18[%c0_248, %c0_249] : memref<2x128xf32, #tpu.memory_space<vmem>>, vector<2x128xf32>
    %c0_250 = arith.constant 0 : index
    %c0_251 = arith.constant 0 : index
    %582 = vector.load %arg19[%c0_250, %c0_251] : memref<2x128xf32, #tpu.memory_space<vmem>>, vector<2x128xf32>
    %583 = arith.truncf %581 : vector<2x128xf32> to vector<2x128xbf16>
    %c0_252 = arith.constant 0 : index
    %c0_253 = arith.constant 0 : index
    %584 = vector.load %arg4[%c0_252, %c0_253] : memref<128x384xbf16, #tpu.memory_space<vmem>>, vector<128x384xbf16>
    %cst_254 = arith.constant dense<0.000000e+00> : vector<2x384xf32>
    %585 = tpu.matmul %583, %584, %cst_254 {dimension_numbers = #tpu.dot_dimension_numbers<[1], [0], [0], [1], [0, 0, 1, 1], [], []>} : vector<2x128xbf16>, vector<128x384xbf16>, vector<2x384xf32> -> vector<2x384xf32>
    %c0_255 = arith.constant 0 : index
    %c0_256 = arith.constant 0 : index
    %586 = vector.load %arg6[%c0_255, %c0_256] : memref<1x384xf32, #tpu.memory_space<vmem>>, vector<1x384xf32>
    %587 = vector.broadcast %586 : vector<1x384xf32> to vector<2x384xf32>
    %588 = arith.addf %585, %587 : vector<2x384xf32>
    %589 = arith.index_cast %c7_i32 : i32 to index
    %c0_257 = arith.constant 0 : index
    %c0_258 = arith.constant 0 : index
    %590 = vector.load %arg16[%589, %c0_257, %c0_258] : memref<8x2x384xf32, #tpu.memory_space<vmem>>, vector<1x2x384xf32>
    %591 = vector.shape_cast %590 : vector<1x2x384xf32> to vector<2x384xf32>
    %592 = vector.extract_strided_slice %591 {offsets = [0, 0], sizes = [2, 128], strides = [1, 1]} : vector<2x384xf32> to vector<2x128xf32>
    %593 = vector.extract_strided_slice %588 {offsets = [0, 0], sizes = [2, 128], strides = [1, 1]} : vector<2x384xf32> to vector<2x128xf32>
    %594 = arith.addf %592, %593 : vector<2x128xf32>
    %595 = arith.negf %594 : vector<2x128xf32>
    %596 = math.exp %595 : vector<2x128xf32>
    %cst_259 = arith.constant 1.000000e+00 : f32
    %597 = vector.broadcast %cst_259 : f32 to vector<2x128xf32>
    %598 = arith.addf %597, %596 : vector<2x128xf32>
    %599 = arith.divf %597, %598 : vector<2x128xf32>
    %600 = vector.extract_strided_slice %591 {offsets = [0, 128], sizes = [2, 128], strides = [1, 1]} : vector<2x384xf32> to vector<2x128xf32>
    %601 = vector.extract_strided_slice %588 {offsets = [0, 128], sizes = [2, 128], strides = [1, 1]} : vector<2x384xf32> to vector<2x128xf32>
    %602 = arith.addf %600, %601 : vector<2x128xf32>
    %603 = arith.negf %602 : vector<2x128xf32>
    %604 = math.exp %603 : vector<2x128xf32>
    %cst_260 = arith.constant 1.000000e+00 : f32
    %605 = vector.broadcast %cst_260 : f32 to vector<2x128xf32>
    %606 = arith.addf %605, %604 : vector<2x128xf32>
    %607 = arith.divf %605, %606 : vector<2x128xf32>
    %608 = vector.extract_strided_slice %591 {offsets = [0, 256], sizes = [2, 128], strides = [1, 1]} : vector<2x384xf32> to vector<2x128xf32>
    %609 = vector.extract_strided_slice %588 {offsets = [0, 256], sizes = [2, 128], strides = [1, 1]} : vector<2x384xf32> to vector<2x128xf32>
    %610 = arith.mulf %599, %609 : vector<2x128xf32>
    %611 = arith.addf %608, %610 : vector<2x128xf32>
    %612 = math.tanh %611 : vector<2x128xf32>
    %cst_261 = arith.constant 1.000000e+00 : f32
    %613 = vector.broadcast %cst_261 : f32 to vector<2x128xf32>
    %614 = arith.subf %613, %607 : vector<2x128xf32>
    %615 = arith.mulf %614, %612 : vector<2x128xf32>
    %616 = arith.mulf %607, %581 : vector<2x128xf32>
    %617 = arith.addf %615, %616 : vector<2x128xf32>
    %618 = arith.truncf %617 : vector<2x128xf32> to vector<2x128xbf16>
    %c0_262 = arith.constant 0 : index
    %c0_263 = arith.constant 0 : index
    %619 = vector.load %arg7[%c0_262, %c0_263] : memref<128x384xbf16, #tpu.memory_space<vmem>>, vector<128x384xbf16>
    %cst_264 = arith.constant dense<0.000000e+00> : vector<2x384xf32>
    %620 = tpu.matmul %618, %619, %cst_264 {dimension_numbers = #tpu.dot_dimension_numbers<[1], [0], [0], [1], [0, 0, 1, 1], [], []>} : vector<2x128xbf16>, vector<128x384xbf16>, vector<2x384xf32> -> vector<2x384xf32>
    %c0_265 = arith.constant 0 : index
    %c0_266 = arith.constant 0 : index
    %621 = vector.load %arg9[%c0_265, %c0_266] : memref<1x384xf32, #tpu.memory_space<vmem>>, vector<1x384xf32>
    %622 = vector.broadcast %621 : vector<1x384xf32> to vector<2x384xf32>
    %623 = arith.addf %620, %622 : vector<2x384xf32>
    %624 = arith.truncf %582 : vector<2x128xf32> to vector<2x128xbf16>
    %c0_267 = arith.constant 0 : index
    %c0_268 = arith.constant 0 : index
    %625 = vector.load %arg8[%c0_267, %c0_268] : memref<128x384xbf16, #tpu.memory_space<vmem>>, vector<128x384xbf16>
    %cst_269 = arith.constant dense<0.000000e+00> : vector<2x384xf32>
    %626 = tpu.matmul %624, %625, %cst_269 {dimension_numbers = #tpu.dot_dimension_numbers<[1], [0], [0], [1], [0, 0, 1, 1], [], []>} : vector<2x128xbf16>, vector<128x384xbf16>, vector<2x384xf32> -> vector<2x384xf32>
    %c0_270 = arith.constant 0 : index
    %c0_271 = arith.constant 0 : index
    %627 = vector.load %arg10[%c0_270, %c0_271] : memref<1x384xf32, #tpu.memory_space<vmem>>, vector<1x384xf32>
    %628 = vector.broadcast %627 : vector<1x384xf32> to vector<2x384xf32>
    %629 = arith.addf %626, %628 : vector<2x384xf32>
    %630 = vector.extract_strided_slice %623 {offsets = [0, 0], sizes = [2, 128], strides = [1, 1]} : vector<2x384xf32> to vector<2x128xf32>
    %631 = vector.extract_strided_slice %629 {offsets = [0, 0], sizes = [2, 128], strides = [1, 1]} : vector<2x384xf32> to vector<2x128xf32>
    %632 = arith.addf %630, %631 : vector<2x128xf32>
    %633 = arith.negf %632 : vector<2x128xf32>
    %634 = math.exp %633 : vector<2x128xf32>
    %cst_272 = arith.constant 1.000000e+00 : f32
    %635 = vector.broadcast %cst_272 : f32 to vector<2x128xf32>
    %636 = arith.addf %635, %634 : vector<2x128xf32>
    %637 = arith.divf %635, %636 : vector<2x128xf32>
    %638 = vector.extract_strided_slice %623 {offsets = [0, 128], sizes = [2, 128], strides = [1, 1]} : vector<2x384xf32> to vector<2x128xf32>
    %639 = vector.extract_strided_slice %629 {offsets = [0, 128], sizes = [2, 128], strides = [1, 1]} : vector<2x384xf32> to vector<2x128xf32>
    %640 = arith.addf %638, %639 : vector<2x128xf32>
    %641 = arith.negf %640 : vector<2x128xf32>
    %642 = math.exp %641 : vector<2x128xf32>
    %cst_273 = arith.constant 1.000000e+00 : f32
    %643 = vector.broadcast %cst_273 : f32 to vector<2x128xf32>
    %644 = arith.addf %643, %642 : vector<2x128xf32>
    %645 = arith.divf %643, %644 : vector<2x128xf32>
    %646 = vector.extract_strided_slice %623 {offsets = [0, 256], sizes = [2, 128], strides = [1, 1]} : vector<2x384xf32> to vector<2x128xf32>
    %647 = vector.extract_strided_slice %629 {offsets = [0, 256], sizes = [2, 128], strides = [1, 1]} : vector<2x384xf32> to vector<2x128xf32>
    %648 = arith.mulf %637, %647 : vector<2x128xf32>
    %649 = arith.addf %646, %648 : vector<2x128xf32>
    %650 = math.tanh %649 : vector<2x128xf32>
    %cst_274 = arith.constant 1.000000e+00 : f32
    %651 = vector.broadcast %cst_274 : f32 to vector<2x128xf32>
    %652 = arith.subf %651, %645 : vector<2x128xf32>
    %653 = arith.mulf %652, %650 : vector<2x128xf32>
    %654 = arith.mulf %645, %582 : vector<2x128xf32>
    %655 = arith.addf %653, %654 : vector<2x128xf32>
    %c0_275 = arith.constant 0 : index
    %c0_276 = arith.constant 0 : index
    %656 = vector.load %arg18[%c0_275, %c0_276] : memref<2x128xf32, #tpu.memory_space<vmem>>, vector<2x128xf32>
    tpu.vector_store %arg18[%c0_275, %c0_276], %617 {strides = array<i32>} : memref<2x128xf32, #tpu.memory_space<vmem>>, vector<2x128xf32>,
    %c0_277 = arith.constant 0 : index
    %c0_278 = arith.constant 0 : index
    %657 = vector.load %arg19[%c0_277, %c0_278] : memref<2x128xf32, #tpu.memory_space<vmem>>, vector<2x128xf32>
    tpu.vector_store %arg19[%c0_277, %c0_278], %655 {strides = array<i32>} : memref<2x128xf32, #tpu.memory_space<vmem>>, vector<2x128xf32>,
    %658 = arith.index_cast %c7_i32 : i32 to index
    %c0_279 = arith.constant 0 : index
    %c0_280 = arith.constant 0 : index
    %659 = vector.load %arg17[%658, %c0_279, %c0_280] : memref<8x2x128xf32, #tpu.memory_space<vmem>>, vector<1x2x128xf32>
    %660 = vector.shape_cast %659 : vector<1x2x128xf32> to vector<2x128xf32>
    %661 = vector.shape_cast %655 : vector<2x128xf32> to vector<1x2x128xf32>
    tpu.vector_store %arg17[%658, %c0_279, %c0_280], %661 {strides = array<i32>} : memref<8x2x128xf32, #tpu.memory_space<vmem>>, vector<1x2x128xf32>,
    %c8_i32 = arith.constant 8 : i32
    %c0_281 = arith.constant 0 : index
    %c0_282 = arith.constant 0 : index
    %c0_283 = arith.constant 0 : index
    %662 = vector.load %arg17[%c0_281, %c0_282, %c0_283] : memref<8x2x128xf32, #tpu.memory_space<vmem>>, vector<8x2x128xf32>
    %663 = vector.shape_cast %662 : vector<8x2x128xf32> to vector<16x128xf32>
    %664 = arith.truncf %663 : vector<16x128xf32> to vector<16x128xbf16>
    %c0_284 = arith.constant 0 : index
    %c0_285 = arith.constant 0 : index
    %665 = vector.load %arg11[%c0_284, %c0_285] : memref<128x128xbf16, #tpu.memory_space<vmem>>, vector<128x128xbf16>
    %cst_286 = arith.constant dense<0.000000e+00> : vector<16x128xf32>
    %666 = tpu.matmul %664, %665, %cst_286 {dimension_numbers = #tpu.dot_dimension_numbers<[1], [0], [0], [1], [0, 0, 1, 1], [], []>} : vector<16x128xbf16>, vector<128x128xbf16>, vector<16x128xf32> -> vector<16x128xf32>
    %c0_287 = arith.constant 0 : index
    %c0_288 = arith.constant 0 : index
    %667 = vector.load %arg12[%c0_287, %c0_288] : memref<1x128xf32, #tpu.memory_space<vmem>>, vector<1x128xf32>
    %668 = vector.broadcast %667 : vector<1x128xf32> to vector<16x128xf32>
    %669 = arith.addf %666, %668 : vector<16x128xf32>
    %670 = vector.shape_cast %669 : vector<16x128xf32> to vector<8x2x128xf32>
    %c0_289 = arith.constant 0 : index
    %c0_290 = arith.constant 0 : index
    %c0_291 = arith.constant 0 : index
    %671 = vector.load %arg13[%c0_289, %c0_290, %c0_291] : memref<8x2x128xf32, #tpu.memory_space<vmem>>, vector<8x2x128xf32>
    tpu.vector_store %arg13[%c0_289, %c0_290, %c0_291], %670 {strides = array<i32>} : memref<8x2x128xf32, #tpu.memory_space<vmem>>, vector<8x2x128xf32>,
    %c0_292 = arith.constant 0 : index
    %c0_293 = arith.constant 0 : index
    %672 = vector.load %arg18[%c0_292, %c0_293] : memref<2x128xf32, #tpu.memory_space<vmem>>, vector<2x128xf32>
    %c0_294 = arith.constant 0 : index
    %c0_295 = arith.constant 0 : index
    %673 = vector.load %arg14[%c0_294, %c0_295] : memref<2x128xf32, #tpu.memory_space<vmem>>, vector<2x128xf32>
    tpu.vector_store %arg14[%c0_294, %c0_295], %672 {strides = array<i32>} : memref<2x128xf32, #tpu.memory_space<vmem>>, vector<2x128xf32>,
    %c0_296 = arith.constant 0 : index
    %c0_297 = arith.constant 0 : index
    %674 = vector.load %arg19[%c0_296, %c0_297] : memref<2x128xf32, #tpu.memory_space<vmem>>, vector<2x128xf32>
    %c0_298 = arith.constant 0 : index
    %c0_299 = arith.constant 0 : index
    %675 = vector.load %arg15[%c0_298, %c0_299] : memref<2x128xf32, #tpu.memory_space<vmem>>, vector<2x128xf32>
    tpu.vector_store %arg15[%c0_298, %c0_299], %674 {strides = array<i32>} : memref<2x128xf32, #tpu.memory_space<vmem>>, vector<2x128xf32>,
    return
  }
}

</mosaic_0001>

<bundles_post_ra>
// kernel: seq2seq_forward.2
= control target key start
LH: loop header
LB: loop body
LE: loop exit
PB: predicated region body
PF: predicated region fallthrough
CT: control target
= control target key end

     0   :  { %18 = vsyncpa [#allocation6], 0  ;;  %s10898_s0 = inlined_call_operand.vmem [shape: f32[8,2,11], index: 0, kind: input, shape index: {}]   ;;  %s10899_s1 = inlined_call_operand.vmem [shape: f32[2,128], index: 1, kind: input, shape index: {}, may-alias: {1,2}]   ;;  %s10900_s2 = inlined_call_operand.vmem [shape: f32[2,128], index: 2, kind: input, shape index: {}, may-alias: {1,2}]   ;;  %s10901_s3 = inlined_call_operand.vmem [shape: bf16[11,384], index: 3, kind: input, shape index: {}]   ;;  %s10902_s4 = inlined_call_operand.vmem [shape: bf16[128,384], index: 4, kind: input, shape index: {}]   ;;  %s10903_s5 = inlined_call_operand.vmem [shape: f32[1,384], index: 5, kind: input, shape index: {}]   ;;  %s10904_s6 = inlined_call_operand.vmem [shape: f32[1,384], index: 6, kind: input, shape index: {}]   ;;  %s10905_s7 = inlined_call_operand.hbm [shape: bf16[128,384], index: 7, kind: input, shape index: {}]   ;;  %s10906_s8 = inlined_call_operand.hbm [shape: bf16[128,384], index: 8, kind: input, shape index: {}]   ;;  %s10907_s9 = inlined_call_operand.vmem [shape: f32[1,384], index: 9, kind: input, shape index: {}]   ;;  %s10908_s10 = inlined_call_operand.vmem [shape: f32[1,384], index: 10, kind: input, shape index: {}]   ;;  %s10909_s11 = inlined_call_operand.vmem [shape: f32[2,128], index: 11, kind: output, shape index: {0}]   ;;  %s10910_s12 = inlined_call_operand.vmem [shape: f32[2,128], index: 12, kind: output, shape index: {1}]  }
   0x1   :  { %19 = vsyncpa [#allocation8], 0  ;;  %s9105_s21 = smov [#allocation5]   ;;  %s9057_s25 = scalar_lea.hbm %s10905_s7, 3072 }
   0x2   :  { %s39_s22 = sshll.u32 %s9105_s21, 4  ;;  %p9058_p0 = scmp.ne.s32.totalorder %s10905_s7, %s9057_s25  ;;  %s40_s22 = int_to_ptr.vmem [resolvable:$true] %s39_s22 }
   0x3   :  { %p9061_p1 = scmp.lt.u32.totalorder %s9057_s25, %s10905_s7 }
   0x5   :  { %p9063_p2 = pnand %p9061_p1, %p9058_p0 }
   0x7   :  { %9066 = shalt.err (!%p9063_p2)
}
   0x8   :  { %s9067_s30 = scalar_lea.vmem %s40_s22, 3072  ;;  %p9072_p4 = scmp.lt.s32.totalorder %s40_s22, %s40_s22 }
   0x9   :  { %p9068_p3 = scmp.ne.s32.totalorder %s40_s22, %s9067_s30  ;;  %p9073_p5 = scmp.lt.s32.totalorder %s9067_s30, %s9067_s30 }
   0xb   :  { %p9074_p6 = por %p9073_p5, %p9072_p4 }
   0xd   :  { %p9075_p7 = pnand %p9074_p6, %p9068_p3 }
   0xf   :  { %9078 = shalt.err (!%p9075_p7)
}
  0x10   :  { %s9106_s13 = smov 192   ;;  %s9107_s14 = smov 12  }
  0x11   :  { %45 = dma.hbm_to_vmem [thread:$0]  %s10905_s7, 3072, %s40_s22, [#allocation6], %s9106_s13, %s9106_s13, %s9107_s14  }
  0x12   :  { %s9108_s17 = smov [#allocation7]   ;;  %s9079_s21 = scalar_lea.hbm %s10906_s8, 3072 }
  0x13   :  { %s51_s18 = sshll.u32 %s9108_s17, 4  ;;  %p9080_p8 = scmp.ne.s32.totalorder %s10906_s8, %s9079_s21  ;;  %s52_s18 = int_to_ptr.vmem [resolvable:$true] %s51_s18 }
  0x14   :  { %p9083_p9 = scmp.lt.u32.totalorder %s9079_s21, %s10906_s8 }
  0x16   :  { %p9085_p10 = pnand %p9083_p9, %p9080_p8 }
  0x18   :  { %9088 = shalt.err (!%p9085_p10)
}
  0x19   :  { %s9089_s27 = scalar_lea.vmem %s52_s18, 3072  ;;  %p9094_p12 = scmp.lt.s32.totalorder %s52_s18, %s52_s18 }
  0x1a   :  { %p9090_p11 = scmp.ne.s32.totalorder %s52_s18, %s9089_s27  ;;  %p9095_p13 = scmp.lt.s32.totalorder %s9089_s27, %s9089_s27 }
  0x1c   :  { %p9096_p0 = por %p9095_p13, %p9094_p12 }
  0x1e   :  { %p9097_p1 = pnand %p9096_p0, %p9090_p11 }
  0x20   :  { %9100 = shalt.err (!%p9097_p1)
}
  0x21   :  { %57 = dma.hbm_to_vmem [thread:$0]  %s10906_s8, 3072, %s52_s18, [#allocation8], %s9106_s13, %s9106_s13, %s9107_s14  }
  0x22   :  { %9101 = dma.done.wait [#allocation6], 3072  }
  0x23   :  { %9102 = vsyncadd [#allocation6], 4294964224 }
  0x24   :  { %9103 = dma.done.wait [#allocation8], 3072  }
  0x25   :  { %9104 = vsyncadd [#allocation8], 4294964224  ;;  %vm160_vm0 = vcmask 1044480   ;;  %v9109_v0 = vmov 0.0   ;;  %v90_v1 = vlaneseq  ;;  %v9110_v2 = vmov 0  }
  0x26   :  { %7837 = vmatprep.subr.bf16.mxu1 %v9109_v0  ;;  %205 = vmatprep.mubr.bf16.mxu0 %v9110_v2  ;;  %v9111_v3 = vmov 1983009808   ;;  %vm161_vm1 = vcmask 1045504   ;;  %v9112_v5 = vmov 65535   ;;  %vm9113_vm2 = vmmov 0  }
  0x27   :  { %v88_v4 = vunpack.c.l.s4 %v9111_v3  ;;  %v162_v6 = vsel %vm160_vm0, 4294967295, %v9112_v5  ;;  %7839 = vmatprep.mubr.msk.bf16.mxu1 %vm9113_vm2, %v9109_v0  ;;  %v9207_v8 = vshrl.u32 %v90_v1, 7  ;;  %v8396_v10 = vld [vmem:[%s10901_s3 + $0x4] ss:$12 sps:$4 sm:$0x3f]   ;;  %vm156_vm3 = vcmask 89088  }
  0x28   :  { %v163_v9 = vsel %vm161_vm1, %v162_v6, 0  ;;  %v8398_v11 = vld [vmem:[%s10901_s3] ss:$12 sps:$4 sm:$0x3f]   ;;  %v71_v18 = vld [vmem:[%s10898_s0 + $0x4] sm:$0x3] }
  0x29   :  { %v89_v7 = vunpack.c.0.s8 %v88_v4  ;;  %v168_v12 = vand.u32 %v8396_v10, %v163_v9  ;;  %v8399_v13 = vld [vmem:[%s10901_s3 + $0x8] ss:$12 sps:$4 sm:$0x3f]   ;;  %v165_v15 = vand.u32 %v8398_v11, %v163_v9  ;;  %v69_v16 = vld [vmem:[%s10898_s0] sm:$0x3] }
  0x2a   :  { %v70_v17 = vld [vmem:[%s10898_s0 + $0x2] sm:$0x3]  ;;  %v171_v19 = vand.u32 %v8399_v13, %v163_v9  ;;  %v72_v20 = vld [vmem:[%s10898_s0 + $0x6] sm:$0x3]  ;;  %v73_v21 = vld [vmem:[%s10898_s0 + $0x8] sm:$0x3] }
  0x2b   :  { %v9219_v14 = vsub.s32 %v89_v7, %v9207_v8  ;;  %173 = vmatprep.subr.bf16.mxu0 %v168_v12  ;;  %v74_v22 = vld [vmem:[%s10898_s0 + $0xa] sm:$0x3]  ;;  %v85_v23 = vcombine.low %v69_v16, %v70_v17  ;;  %v75_v24 = vld [vmem:[%s10898_s0 + $0xc] sm:$0x3]  ;;  %v76_v25 = vld [vmem:[%s10898_s0 + $0xe] sm:$0x3]  ;;  %v86_v26 = vcombine.low %v71_v18, %v72_v20 }
  0x2c   :  { %174 = vmatpush1.bf16.msra.mxu0 %v165_v15  ;;  %v102_v27 = vcombine.low %v73_v21, %v74_v22  ;;  %7838 = vmatpush3.bf16.msra.mxu1 %v171_v19  ;;  %v103_v29 = vcombine.low %v75_v24, %v76_v25  ;;  %v8402_v30 = vld [vmem:[%s10902_s4 + $0x4] ss:$12 sps:$4 sm:$0xff]   ;;  %v8400_v36 = vld [vmem:[%s10902_s4] ss:$12 sps:$4 sm:$0xff]   ;;  %v8405_v38 = vld [vmem:[%s10902_s4 + $0x1c] ss:$12 sps:$4 sm:$0xff]  }
  0x2d   :  { %v93_v28 = vrot.slane %v85_v23, %v9219_v14  ;;  %v100_v31 = vrot.slane %v86_v26, %v9219_v14  ;;  %7843 = vmatprep.subr.bf16.mxu1 %v9109_v0  ;;  %533 = vmatprep.subr.bf16.mxu0 %v8402_v30  ;;  %v8403_v39 = vld [vmem:[%s10902_s4 + $0x18] ss:$12 sps:$4 sm:$0xff]   ;;  %v8421_v40 = vld [vmem:[%s10902_s4 + $0x8] ss:$12 sps:$4 sm:$0xff]   ;;  %v8425_v42 = vld [vmem:[%s10902_s4 + $0x20] ss:$12 sps:$4 sm:$0xff]  }
  0x2e   :  { %v110_v32 = vrot.slane %v102_v27, %v9219_v14  ;;  %v117_v33 = vrot.slane %v103_v29, %v9219_v14  ;;  %v8408_v41 = vld [vmem:[%s10902_s4 + $0x34] ss:$12 sps:$4 sm:$0xff]   ;;  %v8406_v44 = vld [vmem:[%s10902_s4 + $0x30] ss:$12 sps:$4 sm:$0xff]   ;;  %v8411_v45 = vld [vmem:[%s10902_s4 + $0x4c] ss:$12 sps:$4 sm:$0xff]  }
  0x2f   :  { %v101_v34 = vcombine.low %v93_v28, %v100_v31  ;;  %v349_v43 = vld [vmem:[%s10899_s1] sm:$0x3]  ;;  %v8426_v46 = vld [vmem:[%s10902_s4 + $0x38] ss:$12 sps:$4 sm:$0xff]   ;;  %v8409_v47 = vld [vmem:[%s10902_s4 + $0x48] ss:$12 sps:$4 sm:$0xff]  }
  0x30   :  { %v118_v35 = vcombine.low %v110_v32, %v117_v33  ;;  %350 = vst [vmem:[#allocation3] sm:$0x3] %v349_v43  ;;  %v8414_v48 = vld [vmem:[%s10902_s4 + $0x64] ss:$12 sps:$4 sm:$0xff]   ;;  %v8412_v49 = vld [vmem:[%s10902_s4 + $0x60] ss:$12 sps:$4 sm:$0xff]  }
  0x31   :  { %v8427_v50 = vld [vmem:[%s10902_s4 + $0x50] ss:$12 sps:$4 sm:$0xff]   ;;  %v8428_v52 = vld [vmem:[%s10902_s4 + $0x68] ss:$12 sps:$4 sm:$0xff]   ;;  %v8415_v53 = vld [vmem:[%s10902_s4 + $0x78] ss:$12 sps:$4 sm:$0xff]  }
  0x32   :  { %v121_v37 = vpack.c.bf16 %v118_v35, %v101_v34  ;;  %v8417_v51 = vld [vmem:[%s10902_s4 + $0x7c] ss:$12 sps:$4 sm:$0xff]   ;;  %v8420_v54 = vld [vmem:[%s10902_s4 + $0x94] ss:$12 sps:$4 sm:$0xff]   ;;  %v8424_v57 = vld [vmem:[%s10902_s4 + $0xac] ss:$12 sps:$4 sm:$0xff]  }
  0x33   :  { %v8429_v55 = vld [vmem:[%s10902_s4 + $0x80] ss:$12 sps:$4 sm:$0xff]   ;;  %v8418_v56 = vld [vmem:[%s10902_s4 + $0x90] ss:$12 sps:$4 sm:$0xff]   ;;  %v8430_v58 = vld [vmem:[%s10902_s4 + $0x98] ss:$12 sps:$4 sm:$0xff]  }
  0x34   :  { %7009 = vmatmul.mubr.msk.bf16.vlgmr.msra.gmra.mrb[0].mxu0 %vm156_vm3, %v121_v37  ;;  %7840 = vmatmul.mubr.msk.bf16.vlgmr.msra.gmra.mrb[0].mxu1 %vm156_vm3, %v121_v37  ;;  %v8422_v59 = vld [vmem:[%s10902_s4 + $0xa8] ss:$12 sps:$4 sm:$0xff]   ;;  %v8431_v61 = vld [vmem:[%s10902_s4 + $0xb0] ss:$12 sps:$4 sm:$0xff]   ;;  %v9339_v63 = vld [vmem:[#allocation5 + $0x4] ss:$12 sps:$4 sm:$0xff]  }
  0x35   :  { %534 = vmatpush1.bf16.msra.mxu0 %v8400_v36  ;;  %565 = vmatprep.mubr.bf16.mxu0 %v9110_v2  ;;  %v9341_v1 = vld [vmem:[#allocation5] ss:$12 sps:$4 sm:$0xff]   ;;  %v8435_v3 = vld [vmem:[#allocation5 + $0x8] ss:$12 sps:$4 sm:$0xff]   ;;  %v9345_v4 = vld [vmem:[#allocation5 + $0x18] ss:$12 sps:$4 sm:$0xff]  }
  0x36   :  { %535 = vmatprep.subr.bf16.mxu0 %v8405_v38  ;;  %7859 = vmatprep.mubr.msk.bf16.mxu1 %vm9113_vm2, %v9109_v0  ;;  %v9347_v5 = vld [vmem:[#allocation5 + $0x1c] ss:$12 sps:$4 sm:$0xff]   ;;  %v8439_v6 = vld [vmem:[#allocation5 + $0x20] ss:$12 sps:$4 sm:$0xff]   ;;  %v8443_v10 = vld [vmem:[#allocation5 + $0x38] ss:$12 sps:$4 sm:$0xff]  }
  0x37   :  { %7844 = vmatpush3.bf16.msra.mxu1 %v8421_v40  ;;  %v353_v60 = vld [vmem:[#allocation3] sm:$0x3]  ;;  %v9352_v7 = vld [vmem:[#allocation5 + $0x34] ss:$12 sps:$4 sm:$0xff]   ;;  %v9359_v11 = vld [vmem:[#allocation5 + $0x4c] ss:$12 sps:$4 sm:$0xff]  }
  0x38   :  { %7845 = vmatprep.subr.bf16.mxu1 %v9109_v0  ;;  %v355_v62 = vpack.c.bf16 %v353_v60, %v353_v60  ;;  %v9355_v9 = vld [vmem:[#allocation5 + $0x30] ss:$12 sps:$4 sm:$0xff]   ;;  %v9362_v12 = vld [vmem:[#allocation5 + $0x48] ss:$12 sps:$4 sm:$0xff]   ;;  %v9369_v16 = vld [vmem:[#allocation5 + $0x60] ss:$12 sps:$4 sm:$0xff]  }
  0x39   :  { %536 = vmatpush1.bf16.msra.mxu0 %v8403_v39  ;;  %v8447_v13 = vld [vmem:[#allocation5 + $0x50] ss:$12 sps:$4 sm:$0xff]   ;;  %v8451_v17 = vld [vmem:[#allocation5 + $0x68] ss:$12 sps:$4 sm:$0xff]   ;;  %v9375_v19 = vld [vmem:[#allocation5 + $0x78] ss:$12 sps:$4 sm:$0xff]  }
  0x3a   :  { %537 = vmatprep.subr.bf16.mxu0 %v8408_v41  ;;  %v9366_v15 = vld [vmem:[#allocation5 + $0x64] ss:$12 sps:$4 sm:$0xff]   ;;  %v9372_v18 = vld [vmem:[#allocation5 + $0x7c] ss:$12 sps:$4 sm:$0xff]   ;;  %v8455_v20 = vld [vmem:[#allocation5 + $0x80] ss:$12 sps:$4 sm:$0xff]  }
  0x3b   :  { %7846 = vmatpush3.bf16.msra.mxu1 %v8425_v42  ;;  %v9379_v21 = vld [vmem:[#allocation5 + $0x94] ss:$12 sps:$4 sm:$0xff]   ;;  %v9381_v22 = vld [vmem:[#allocation5 + $0x90] ss:$12 sps:$4 sm:$0xff]   ;;  %v8459_v23 = vld [vmem:[#allocation5 + $0x98] ss:$12 sps:$4 sm:$0xff]  }
  0x3c   :  { %7847 = vmatprep.subr.bf16.mxu1 %v9109_v0  ;;  %v9383_v24 = vld [vmem:[#allocation5 + $0xac] ss:$12 sps:$4 sm:$0xff]   ;;  %v9388_v25 = vld [vmem:[#allocation5 + $0xa8] ss:$12 sps:$4 sm:$0xff]   ;;  %v8463_v26 = vld [vmem:[#allocation5 + $0xb0] ss:$12 sps:$4 sm:$0xff]  }
  0x3d   :  { %538 = vmatpush1.bf16.msra.mxu0 %v8406_v44  ;;  %v9390_v27 = vld [vmem:[#allocation7 + $0x4] ss:$12 sps:$4 sm:$0xff]   ;;  %v351_v28 = vld [vmem:[%s10900_s2] sm:$0x3]  ;;  %v9402_v29 = vsub.s32 0, %v9207_v8  ;;  %v9405_v30 = vsub.s32 1, %v9207_v8 }
  0x3e   :  { %539 = vmatprep.subr.bf16.mxu0 %v8411_v45  ;;  %352 = vst [vmem:[#allocation4] sm:$0x3] %v351_v28  ;;  %v9408_v31 = vsub.s32 2, %v9207_v8  ;;  %v126_v32 = vld [vmem:[%s10903_s5] sm:$0x7] }
  0x3f   :  { %7848 = vmatpush3.bf16.msra.mxu1 %v8426_v46  ;;  %v131_v33 = vrot.slane %v126_v32, %v9402_v29  ;;  %v135_v35 = vrot.slane %v126_v32, %v9405_v30  ;;  %v388_v28 = vld [vmem:[%s10904_s6] sm:$0x7] }
  0x40   :  { %7849 = vmatprep.subr.bf16.mxu1 %v9109_v0  ;;  %v139_v34 = vrot.slane %v126_v32, %v9408_v31  ;;  %v393_v32 = vrot.slane %v388_v28, %v9402_v29 }
  0x41   :  { %540 = vmatpush1.bf16.msra.mxu0 %v8409_v47 }
  0x42   :  { %541 = vmatprep.subr.bf16.mxu0 %v8414_v48 }
  0x43   :  { %7850 = vmatpush3.bf16.msra.mxu1 %v8427_v50 }
  0x44   :  { %7851 = vmatprep.subr.bf16.mxu1 %v9109_v0 }
  0x45   :  { %542 = vmatpush1.bf16.msra.mxu0 %v8412_v49 }
  0x46   :  { %543 = vmatprep.subr.bf16.mxu0 %v8417_v51 }
  0x47   :  { %7852 = vmatpush3.bf16.msra.mxu1 %v8428_v52 }
  0x48   :  { %7853 = vmatprep.subr.bf16.mxu1 %v9109_v0 }
  0x49   :  { %544 = vmatpush1.bf16.msra.mxu0 %v8415_v53 }
  0x4a   :  { %545 = vmatprep.subr.bf16.mxu0 %v8420_v54 }
  0x4b   :  { %7854 = vmatpush3.bf16.msra.mxu1 %v8429_v55 }
  0x4c   :  { %7855 = vmatprep.subr.bf16.mxu1 %v9109_v0 }
  0x4d   :  { %546 = vmatpush1.bf16.msra.mxu0 %v8418_v56 }
  0x4e   :  { %547 = vmatprep.subr.bf16.mxu0 %v8424_v57 }
  0x4f   :  { %7856 = vmatpush3.bf16.msra.mxu1 %v8430_v58 }
  0x50   :  { %7857 = vmatprep.subr.bf16.mxu1 %v9109_v0 }
  0x51   :  { %548 = vmatpush1.bf16.msra.mxu0 %v8422_v59 }
  0x52   :  { %819 = vmatprep.subr.bf16.mxu0 %v9339_v63 }
  0x53   :  { %7858 = vmatpush3.bf16.msra.mxu1 %v8431_v61 }
  0x54   :  { %566 = vmatmul.mubr.bf16.vlgmr.msra.gmra.mrb[4].mxu0 %v355_v62  ;;  %7863 = vmatprep.subr.bf16.mxu1 %v9109_v0 }
  0x55   :  { %851 = vmatprep.mubr.bf16.mxu0 %v9110_v2  ;;  %820 = vmatpush1.bf16.msra.mxu0 %v9341_v1 }
  0x56   :  { %7860 = vmatmul.mubr.bf16.vlgmr.msra.gmra.mrb[4].mxu1 %v355_v62  ;;  %821 = vmatprep.subr.bf16.mxu0 %v9347_v5 }
  0x57   :  { %7879 = vmatprep.mubr.msk.bf16.mxu1 %vm9113_vm2, %v9109_v0  ;;  %7864 = vmatpush3.bf16.msra.mxu1 %v8435_v3 }
  0x58   :  { %7865 = vmatprep.subr.bf16.mxu1 %v9109_v0 }
  0x59   :  { %822 = vmatpush1.bf16.msra.mxu0 %v9345_v4 }
  0x5a   :  { %823 = vmatprep.subr.bf16.mxu0 %v9352_v7 }
  0x5b   :  { %7866 = vmatpush3.bf16.msra.mxu1 %v8439_v6 }
  0x5c   :  { %7867 = vmatprep.subr.bf16.mxu1 %v9109_v0 }
  0x5d   :  { %824 = vmatpush1.bf16.msra.mxu0 %v9355_v9 }
  0x5e   :  { %825 = vmatprep.subr.bf16.mxu0 %v9359_v11 }
  0x5f   :  { %7868 = vmatpush3.bf16.msra.mxu1 %v8443_v10 }
  0x60   :  { %7869 = vmatprep.subr.bf16.mxu1 %v9109_v0 }
  0x61   :  { %826 = vmatpush1.bf16.msra.mxu0 %v9362_v12 }
  0x62   :  { %827 = vmatprep.subr.bf16.mxu0 %v9366_v15 }
  0x63   :  { %7870 = vmatpush3.bf16.msra.mxu1 %v8447_v13 }
  0x64   :  { %7871 = vmatprep.subr.bf16.mxu1 %v9109_v0 }
  0x65   :  { %828 = vmatpush1.bf16.msra.mxu0 %v9369_v16 }
  0x66   :  { %829 = vmatprep.subr.bf16.mxu0 %v9372_v18 }
  0x67   :  { %7872 = vmatpush3.bf16.msra.mxu1 %v8451_v17 }
  0x68   :  { %7873 = vmatprep.subr.bf16.mxu1 %v9109_v0 }
  0x69   :  { %830 = vmatpush1.bf16.msra.mxu0 %v9375_v19 }
  0x6a   :  { %831 = vmatprep.subr.bf16.mxu0 %v9379_v21 }
  0x6b   :  { %7874 = vmatpush3.bf16.msra.mxu1 %v8455_v20 }
  0x6c   :  { %7875 = vmatprep.subr.bf16.mxu1 %v9109_v0 }
  0x6d   :  { %832 = vmatpush1.bf16.msra.mxu0 %v9381_v22 }
  0x6e   :  { %833 = vmatprep.subr.bf16.mxu0 %v9383_v24 }
  0x6f   :  { %7876 = vmatpush3.bf16.msra.mxu1 %v8459_v23 }
  0x70   :  { %7877 = vmatprep.subr.bf16.mxu1 %v9109_v0 }
  0x71   :  { %834 = vmatpush1.bf16.msra.mxu0 %v9388_v25 }
  0x72   :  { %1078 = vmatprep.subr.bf16.mxu0 %v9390_v27 }
  0x73   :  { %7878 = vmatpush3.bf16.msra.mxu1 %v8463_v26 }
  0x74   :  { %7883 = vmatprep.subr.bf16.mxu1 %v9109_v0 }
 0x107   :  { %v207_v36 = vpop.f32.mrb[0].mxu0  ;;  %v250_v37 = vpop.f32.mrb[0].mxu1 }
 0x108   :  { %v208_v38 = vadd.f32 %v207_v36, %v131_v33  ;;  %v209_v39 = vpop.f32.mrb[1].mxu0  ;;  %v251_v40 = vadd.f32 %v250_v37, %v139_v34  ;;  %v7841_v41 = vpop.f32.mrb[1].mxu1 }
 0x109   :  { %v210_v42 = vadd.f32 %v209_v39, %v135_v35  ;;  %v211_v43 = vpop.f32.mrb[2].mxu0  ;;  %v253_v8 = vpop.f32.mrb[2].mxu1 }
 0x10a   :  { %v265_v44 = vcombine.high %v251_v40, %v251_v40  ;;  %v212_v45 = vadd.f32 %v211_v43, %v131_v33  ;;  %v213_v46 = vpop.f32.mrb[3].mxu0  ;;  %v254_v47 = vadd.f32 %v253_v8, %v139_v34  ;;  %v7842_v48 = vpop.f32.mrb[3].mxu1  ;;  %v286_v51 = vrot.slane %v251_v40, %v9219_v14 }
 0x10b   :  { %v263_v49 = vcombine.low %v208_v38, %v210_v42  ;;  %v264_v50 = vcombine.high %v208_v38, %v210_v42  ;;  %v214_v52 = vadd.f32 %v213_v46, %v135_v35 }
 0x10c   :  { %v293_v53 = vrot.slane %v265_v44, %v9219_v14  ;;  %v300_v54 = vcombine.high %v254_v47, %v254_v47  ;;  %v321_v59 = vrot.slane %v254_v47, %v9219_v14 }
 0x10d   :  { %v272_v55 = vrot.slane %v263_v49, %v9219_v14  ;;  %v279_v56 = vrot.slane %v264_v50, %v9219_v14  ;;  %v298_v57 = vcombine.low %v212_v45, %v214_v52  ;;  %v299_v58 = vcombine.high %v212_v45, %v214_v52 }
 0x10e   :  { %v328_v60 = vrot.slane %v300_v54, %v9219_v14  ;;  %v401_v50 = vrot.slane %v388_v28, %v9408_v31 }
 0x10f   :  { %v294_v61 = vcombine.low %v272_v55, %v286_v51  ;;  %v295_v62 = vcombine.high %v272_v55, %v286_v51  ;;  %v296_v3 = vcombine.low %v279_v56, %v293_v53  ;;  %v297_v6 = vcombine.high %v279_v56, %v293_v53 }
 0x110   :  { %v307_v10 = vrot.slane %v298_v57, %v9219_v14  ;;  %v314_v13 = vrot.slane %v299_v58, %v9219_v14  ;;  %v397_v14 = vrot.slane %v388_v28, %v9405_v30  ;;  %v9439_v28 = vld [vmem:[#allocation7 + $0x34] ss:$12 sps:$4 sm:$0xff]  }
 0x111   :  { %341 = vst [vmem:[#allocation2] sm:$0x3f] %v294_v61  ;;  %342 = vst [vmem:[#allocation2 + $0x6] sm:$0x3f] %v295_v62  ;;  %v9040_v62 = vld [vmem:[#allocation3] sm:$0x3] }
 0x112   :  { %343 = vst [vmem:[#allocation2 + $0xc] sm:$0x3f] %v296_v3  ;;  %344 = vst [vmem:[#allocation2 + $0x12] sm:$0x3f] %v297_v6  ;;  %v329_v17 = vcombine.low %v307_v10, %v321_v59  ;;  %v330_v20 = vcombine.high %v307_v10, %v321_v59  ;;  %v331_v23 = vcombine.low %v314_v13, %v328_v60  ;;  %v9430_v10 = vld [vmem:[#allocation7] ss:$12 sps:$4 sm:$0xff]  }
 0x113   :  { %v332_v26 = vcombine.high %v314_v13, %v328_v60  ;;  %v8467_v13 = vld [vmem:[#allocation7 + $0x8] ss:$12 sps:$4 sm:$0xff]  }
 0x114   :  { %345 = vst [vmem:[#allocation2 + $0x18] sm:$0x3f] %v329_v17  ;;  %346 = vst [vmem:[#allocation2 + $0x1e] sm:$0x3f] %v330_v20  ;;  %v9432_v20 = vld [vmem:[#allocation7 + $0x1c] ss:$12 sps:$4 sm:$0xff]  }
 0x115   :  { %347 = vst [vmem:[#allocation2 + $0x24] sm:$0x3f] %v331_v23  ;;  %348 = vst [vmem:[#allocation2 + $0x2a] sm:$0x3f] %v332_v26  ;;  %v9435_v23 = vld [vmem:[#allocation7 + $0x18] ss:$12 sps:$4 sm:$0xff]  }
 0x116   :  { %v8471_v26 = vld [vmem:[#allocation7 + $0x20] ss:$12 sps:$4 sm:$0xff]  }
 0x118   :  { %v614_v35 = vld [vmem:[#allocation2] sm:$0x3f] }
 0x119   :  { %v623_v43 = vrot.slane %v614_v35, 2  ;;  %v633_v56 = vrot.slane %v614_v35, 4 }
 0x127   :  { %v567_v33 = vpop.f32.mrb[4].mxu0 }
 0x128   :  { %v568_v34 = vadd.f32 %v567_v33, %v393_v32  ;;  %v569_v36 = vpop.f32.mrb[5].mxu0  ;;  %v9445_v32 = vld [vmem:[#allocation7 + $0x30] ss:$12 sps:$4 sm:$0xff]   ;;  %v9449_v33 = vld [vmem:[#allocation7 + $0x4c] ss:$12 sps:$4 sm:$0xff]  }
 0x129   :  { %v570_v37 = vadd.f32 %v569_v36, %v397_v14  ;;  %v571_v38 = vpop.f32.mrb[6].mxu0  ;;  %v608_v39 = vpop.f32.mrb[4].mxu1  ;;  %v8475_v14 = vld [vmem:[#allocation7 + $0x38] ss:$12 sps:$4 sm:$0xff]  }
 0x12a   :  { %v615_v40 = vadd.f32 %v614_v35, %v568_v34  ;;  %v572_v41 = vpop.f32.mrb[7].mxu0  ;;  %v7861_v42 = vpop.f32.mrb[5].mxu1  ;;  %v609_v53 = vadd.f32 %v608_v39, %v401_v50  ;;  %v9452_v34 = vld [vmem:[#allocation7 + $0x48] ss:$12 sps:$4 sm:$0xff]   ;;  %v8479_v35 = vld [vmem:[#allocation7 + $0x50] ss:$12 sps:$4 sm:$0xff]  }
 0x12b   :  { %v611_v8 = vpop.f32.mrb[6].mxu1  ;;  %v625_v46 = vadd.f32 %v623_v43, %v570_v37  ;;  %v9456_v36 = vld [vmem:[#allocation7 + $0x64] ss:$12 sps:$4 sm:$0xff]   ;;  %v9459_v37 = vld [vmem:[#allocation7 + $0x60] ss:$12 sps:$4 sm:$0xff]  }
 0x12c   :  { %v7035_v44 = vmul.f32 -1.442695, %v615_v40  ;;  %v7862_v45 = vpop.f32.mrb[7].mxu1  ;;  %v8483_v38 = vld [vmem:[#allocation7 + $0x68] ss:$12 sps:$4 sm:$0xff]  }
 0x12d   :  { %v7036_v47 = vmul.f32 -1.442695, %v625_v46  ;;  %v9463_v39 = vld [vmem:[#allocation7 + $0x7c] ss:$12 sps:$4 sm:$0xff]   ;;  %v9466_v40 = vld [vmem:[#allocation7 + $0x78] ss:$12 sps:$4 sm:$0xff]  }
 0x12e   :  { %8880 = vpow2.f32 %v7035_v44  ;;  %v8487_v41 = vld [vmem:[#allocation7 + $0x80] ss:$12 sps:$4 sm:$0xff]   ;;  %v9473_v43 = vld [vmem:[#allocation7 + $0x90] ss:$12 sps:$4 sm:$0xff]   ;;  %v8491_v8 = vld [vmem:[#allocation7 + $0x98] ss:$12 sps:$4 sm:$0xff]  }
 0x12f   :  { %8882 = vpow2.f32 %v7036_v47  ;;  %v9470_v42 = vld [vmem:[#allocation7 + $0x94] ss:$12 sps:$4 sm:$0xff]   ;;  %v9477_v44 = vld [vmem:[#allocation7 + $0xac] ss:$12 sps:$4 sm:$0xff]   ;;  %v8495_v46 = vld [vmem:[#allocation7 + $0xb0] ss:$12 sps:$4 sm:$0xff]  }
 0x130   :  { %v9480_v45 = vld [vmem:[#allocation7 + $0xa8] ss:$12 sps:$4 sm:$0xff]   ;;  %v9482_v47 = vld [vmem:[#allocation4] sm:$0x3] }
 0x131   :  { %v9041_v50 = vld [vmem:[%s10902_s4 + $0x4] ss:$12 sps:$4 sm:$0xff]  }
 0x138   :  { %v8881_v48 = vpop.eup %8880 }
 0x139   :  { %v619_v49 = vadd.f32 1.0, %v8881_v48  ;;  %v8883_v51 = vpop.eup %8882  ;;  %v900_v48 = vpack.c.bf16 %v9482_v47, %v9482_v47 }
 0x13a   :  { %v629_v52 = vadd.f32 1.0, %v8883_v51  ;;  %v9042_v51 = vld [vmem:[%s10902_s4] ss:$12 sps:$4 sm:$0xff]  }
 0x13b   :  { %8884 = vrcp.f32 %v619_v49  ;;  %v8496_v49 = vld [vmem:[%s10902_s4 + $0x8] ss:$12 sps:$4 sm:$0xff]  }
 0x13c   :  { %8886 = vrcp.f32 %v629_v52  ;;  %v8497_v52 = vld [vmem:[%s10902_s4 + $0x20] ss:$12 sps:$4 sm:$0xff]  }
 0x145   :  { %v8885_v54 = vpop.eup %8884 }
 0x146   :  { %v632_v55 = vmul.f32 %v8885_v54, %v609_v53  ;;  %v8887_v58 = vpop.eup %8886  ;;  %v9043_v53 = vld [vmem:[%s10902_s4 + $0x1c] ss:$12 sps:$4 sm:$0xff]   ;;  %v9044_v54 = vld [vmem:[%s10902_s4 + $0x18] ss:$12 sps:$4 sm:$0xff]  }
 0x147   :  { %v637_v59 = vsub.f32 1.0, %v8887_v58  ;;  %v639_v3 = vmul.f32 %v9040_v62, %v8887_v58  ;;  %v8499_v58 = vld [vmem:[%s10902_s4 + $0x50] ss:$12 sps:$4 sm:$0xff]  }
 0x148   :  { %v635_v57 = vadd.f32 %v633_v56, %v632_v55  ;;  %v8498_v55 = vld [vmem:[%s10902_s4 + $0x38] ss:$12 sps:$4 sm:$0xff]   ;;  %v9045_v56 = vld [vmem:[%s10902_s4 + $0x34] ss:$12 sps:$4 sm:$0xff]  }
 0x149   :  { %v9049_v62 = vld [vmem:[%s10902_s4 + $0x64] ss:$12 sps:$4 sm:$0xff]  }
 0x14a   :  { %8888 = vtanh.f32 %v635_v57  ;;  %v9046_v57 = vld [vmem:[%s10902_s4 + $0x30] ss:$12 sps:$4 sm:$0xff]  }
 0x154   :  { %v8889_v60 = vpop.eup %8888 }
 0x155   :  { %v638_v61 = vmul.f32 %v8889_v60, %v637_v59  ;;  %v9047_v59 = vld [vmem:[%s10902_s4 + $0x4c] ss:$12 sps:$4 sm:$0xff]   ;;  %v9048_v60 = vld [vmem:[%s10902_s4 + $0x48] ss:$12 sps:$4 sm:$0xff]  }
 0x157   :  { %v640_v6 = vadd.f32 %v639_v3, %v638_v61  ;;  %v8500_v61 = vld [vmem:[%s10902_s4 + $0x68] ss:$12 sps:$4 sm:$0xff]   ;;  %v9050_v3 = vld [vmem:[%s10902_s4 + $0x60] ss:$12 sps:$4 sm:$0xff]  }
 0x159   :  { %v641_v17 = vpack.c.bf16 %v640_v6, %v640_v6  ;;  %1180 = vst [vmem:[#allocation3] sm:$0x3] %v640_v6  ;;  %v8501_v6 = vld [vmem:[%s10902_s4 + $0x80] ss:$12 sps:$4 sm:$0xff]  }
 0x15b   :  { %852 = vmatmul.mubr.bf16.vlgmr.msra.gmra.mrb[8].mxu0 %v641_v17  ;;  %7880 = vmatmul.mubr.bf16.vlgmr.msra.gmra.mrb[8].mxu1 %v641_v17  ;;  %v9052_v17 = vld [vmem:[%s10902_s4 + $0x78] ss:$12 sps:$4 sm:$0xff]  }
 0x15c   :  { %1079 = vmatpush1.bf16.msra.mxu0 %v9430_v10  ;;  %7884 = vmatpush3.bf16.msra.mxu1 %v8467_v13  ;;  %v9051_v13 = vld [vmem:[%s10902_s4 + $0x7c] ss:$12 sps:$4 sm:$0xff]  }
 0x15d   :  { %1080 = vmatprep.subr.bf16.mxu0 %v9432_v20  ;;  %7885 = vmatprep.subr.bf16.mxu1 %v9109_v0 }
 0x15e   :  { %1110 = vmatprep.mubr.bf16.mxu0 %v9110_v2  ;;  %7899 = vmatprep.mubr.msk.bf16.mxu1 %vm9113_vm2, %v9109_v0 }
 0x160   :  { %1081 = vmatpush1.bf16.msra.mxu0 %v9435_v23  ;;  %7886 = vmatpush3.bf16.msra.mxu1 %v8471_v26  ;;  %v8502_v26 = vld [vmem:[%s10902_s4 + $0x98] ss:$12 sps:$4 sm:$0xff]  }
 0x161   :  { %1082 = vmatprep.subr.bf16.mxu0 %v9439_v28  ;;  %7887 = vmatprep.subr.bf16.mxu1 %v9109_v0 }
 0x164   :  { %1083 = vmatpush1.bf16.msra.mxu0 %v9445_v32  ;;  %7888 = vmatpush3.bf16.msra.mxu1 %v8475_v14  ;;  %v9053_v14 = vld [vmem:[%s10902_s4 + $0x94] ss:$12 sps:$4 sm:$0xff]  }
 0x165   :  { %1084 = vmatprep.subr.bf16.mxu0 %v9449_v33  ;;  %7889 = vmatprep.subr.bf16.mxu1 %v9109_v0 }
 0x168   :  { %1085 = vmatpush1.bf16.msra.mxu0 %v9452_v34  ;;  %7890 = vmatpush3.bf16.msra.mxu1 %v8479_v35  ;;  %v9054_v35 = vld [vmem:[%s10902_s4 + $0x90] ss:$12 sps:$4 sm:$0xff]  }
 0x169   :  { %1086 = vmatprep.subr.bf16.mxu0 %v9456_v36  ;;  %7891 = vmatprep.subr.bf16.mxu1 %v9109_v0 }
 0x16c   :  { %1087 = vmatpush1.bf16.msra.mxu0 %v9459_v37  ;;  %7892 = vmatpush3.bf16.msra.mxu1 %v8483_v38  ;;  %v8503_v38 = vld [vmem:[%s10902_s4 + $0xb0] ss:$12 sps:$4 sm:$0xff]  }
 0x16d   :  { %1088 = vmatprep.subr.bf16.mxu0 %v9463_v39  ;;  %7893 = vmatprep.subr.bf16.mxu1 %v9109_v0 }
 0x170   :  { %1089 = vmatpush1.bf16.msra.mxu0 %v9466_v40  ;;  %7894 = vmatpush3.bf16.msra.mxu1 %v8487_v41  ;;  %v9055_v41 = vld [vmem:[%s10902_s4 + $0xac] ss:$12 sps:$4 sm:$0xff]  }
 0x171   :  { %1090 = vmatprep.subr.bf16.mxu0 %v9470_v42  ;;  %7895 = vmatprep.subr.bf16.mxu1 %v9109_v0 }
 0x174   :  { %1091 = vmatpush1.bf16.msra.mxu0 %v9473_v43  ;;  %7896 = vmatpush3.bf16.msra.mxu1 %v8491_v8  ;;  %v9569_v8 = vld [vmem:[#allocation3] sm:$0x3] }
 0x175   :  { %1092 = vmatprep.subr.bf16.mxu0 %v9477_v44  ;;  %7897 = vmatprep.subr.bf16.mxu1 %v9109_v0 }
 0x178   :  { %1093 = vmatpush1.bf16.msra.mxu0 %v9480_v45  ;;  %7898 = vmatpush3.bf16.msra.mxu1 %v8495_v46  ;;  %v9056_v46 = vld [vmem:[%s10902_s4 + $0xa8] ss:$12 sps:$4 sm:$0xff]  }
 0x179   :  { %1362 = vmatprep.subr.bf16.mxu0 %v9041_v50  ;;  %7903 = vmatprep.subr.bf16.mxu1 %v9109_v0 }
 0x17b   :  { %1111 = vmatmul.mubr.bf16.vlgmr.msra.gmra.mrb[8].mxu0 %v900_v48  ;;  %7900 = vmatmul.mubr.bf16.vlgmr.msra.gmra.mrb[12].mxu1 %v900_v48  ;;  %v1184_v48 = vpack.c.bf16 %v9569_v8, %v9569_v8 }
 0x17c   :  { %1363 = vmatpush1.bf16.msra.mxu0 %v9042_v51  ;;  %7904 = vmatpush3.bf16.msra.mxu1 %v8496_v49 }
 0x17d   :  { %1364 = vmatprep.subr.bf16.mxu0 %v9043_v53  ;;  %7905 = vmatprep.subr.bf16.mxu1 %v9109_v0 }
 0x17e   :  { %1394 = vmatprep.mubr.bf16.mxu0 %v9110_v2  ;;  %7919 = vmatprep.mubr.msk.bf16.mxu1 %vm9113_vm2, %v9109_v0 }
 0x180   :  { %1365 = vmatpush1.bf16.msra.mxu0 %v9044_v54  ;;  %7906 = vmatpush3.bf16.msra.mxu1 %v8497_v52 }
 0x181   :  { %1366 = vmatprep.subr.bf16.mxu0 %v9045_v56  ;;  %7907 = vmatprep.subr.bf16.mxu1 %v9109_v0 }
 0x184   :  { %1367 = vmatpush1.bf16.msra.mxu0 %v9046_v57  ;;  %7908 = vmatpush3.bf16.msra.mxu1 %v8498_v55 }
 0x185   :  { %1368 = vmatprep.subr.bf16.mxu0 %v9047_v59  ;;  %7909 = vmatprep.subr.bf16.mxu1 %v9109_v0 }
 0x188   :  { %1369 = vmatpush1.bf16.msra.mxu0 %v9048_v60  ;;  %7910 = vmatpush3.bf16.msra.mxu1 %v8499_v58 }
 0x189   :  { %1370 = vmatprep.subr.bf16.mxu0 %v9049_v62  ;;  %7911 = vmatprep.subr.bf16.mxu1 %v9109_v0 }
 0x18c   :  { %1371 = vmatpush1.bf16.msra.mxu0 %v9050_v3  ;;  %7912 = vmatpush3.bf16.msra.mxu1 %v8500_v61 }
 0x18d   :  { %1372 = vmatprep.subr.bf16.mxu0 %v9051_v13  ;;  %7913 = vmatprep.subr.bf16.mxu1 %v9109_v0 }
 0x190   :  { %1373 = vmatpush1.bf16.msra.mxu0 %v9052_v17  ;;  %7914 = vmatpush3.bf16.msra.mxu1 %v8501_v6 }
 0x191   :  { %1374 = vmatprep.subr.bf16.mxu0 %v9053_v14  ;;  %7915 = vmatprep.subr.bf16.mxu1 %v9109_v0 }
 0x194   :  { %1375 = vmatpush1.bf16.msra.mxu0 %v9054_v35  ;;  %7916 = vmatpush3.bf16.msra.mxu1 %v8502_v26 }
 0x195   :  { %1376 = vmatprep.subr.bf16.mxu0 %v9055_v41  ;;  %7917 = vmatprep.subr.bf16.mxu1 %v9109_v0  ;;  %v1217_v41 = vld [vmem:[%s10904_s6] sm:$0x7] }
 0x198   :  { %1377 = vmatpush1.bf16.msra.mxu0 %v9056_v46  ;;  %7918 = vmatpush3.bf16.msra.mxu1 %v8503_v38 }
 0x199   :  { %1649 = vmatprep.subr.bf16.mxu0 %v9339_v63  ;;  %7923 = vmatprep.subr.bf16.mxu1 %v9109_v0  ;;  %v8504_v63 = vld [vmem:[#allocation5 + $0x8] ss:$12 sps:$4 sm:$0xff]  }
 0x19b   :  { %1395 = vmatmul.mubr.bf16.vlgmr.msra.gmra.mrb[12].mxu0 %v1184_v48  ;;  %7920 = vmatmul.mubr.bf16.vlgmr.msra.gmra.mrb[16].mxu1 %v1184_v48 }
 0x19c   :  { %1650 = vmatpush1.bf16.msra.mxu0 %v9341_v1  ;;  %1681 = vmatprep.mubr.bf16.mxu0 %v9110_v2  ;;  %v8505_v1 = vld [vmem:[#allocation5 + $0x20] ss:$12 sps:$4 sm:$0xff]  }
 0x19d   :  { %1651 = vmatprep.subr.bf16.mxu0 %v9347_v5  ;;  %7939 = vmatprep.mubr.msk.bf16.mxu1 %vm9113_vm2, %v9109_v0  ;;  %v8507_v5 = vld [vmem:[#allocation5 + $0x50] ss:$12 sps:$4 sm:$0xff]  }
 0x19e   :  { %7924 = vmatpush3.bf16.msra.mxu1 %v8504_v63 }
 0x19f   :  { %7925 = vmatprep.subr.bf16.mxu1 %v9109_v0 }
 0x1a0   :  { %1652 = vmatpush1.bf16.msra.mxu0 %v9345_v4  ;;  %v8506_v4 = vld [vmem:[#allocation5 + $0x38] ss:$12 sps:$4 sm:$0xff]  }
 0x1a1   :  { %1653 = vmatprep.subr.bf16.mxu0 %v9352_v7  ;;  %v8508_v7 = vld [vmem:[#allocation5 + $0x68] ss:$12 sps:$4 sm:$0xff]  }
 0x1a2   :  { %7926 = vmatpush3.bf16.msra.mxu1 %v8505_v1  ;;  %v1222_v1 = vrot.slane %v1217_v41, %v9402_v29 }
 0x1a3   :  { %7927 = vmatprep.subr.bf16.mxu1 %v9109_v0 }
 0x1a4   :  { %1654 = vmatpush1.bf16.msra.mxu0 %v9355_v9  ;;  %v8509_v9 = vld [vmem:[#allocation5 + $0x80] ss:$12 sps:$4 sm:$0xff]  }
 0x1a5   :  { %1655 = vmatprep.subr.bf16.mxu0 %v9359_v11  ;;  %v8510_v11 = vld [vmem:[#allocation5 + $0x98] ss:$12 sps:$4 sm:$0xff]  }
 0x1a6   :  { %7928 = vmatpush3.bf16.msra.mxu1 %v8506_v4  ;;  %v1226_v4 = vrot.slane %v1217_v41, %v9405_v30 }
 0x1a7   :  { %7929 = vmatprep.subr.bf16.mxu1 %v9109_v0 }
 0x1a8   :  { %1656 = vmatpush1.bf16.msra.mxu0 %v9362_v12  ;;  %v8511_v12 = vld [vmem:[#allocation5 + $0xb0] ss:$12 sps:$4 sm:$0xff]  }
 0x1a9   :  { %1657 = vmatprep.subr.bf16.mxu0 %v9366_v15 }
 0x1aa   :  { %7930 = vmatpush3.bf16.msra.mxu1 %v8507_v5 }
 0x1ab   :  { %7931 = vmatprep.subr.bf16.mxu1 %v9109_v0 }
 0x1ac   :  { %1658 = vmatpush1.bf16.msra.mxu0 %v9369_v16 }
 0x1ad   :  { %1659 = vmatprep.subr.bf16.mxu0 %v9372_v18 }
 0x1ae   :  { %7932 = vmatpush3.bf16.msra.mxu1 %v8508_v7 }
 0x1af   :  { %7933 = vmatprep.subr.bf16.mxu1 %v9109_v0 }
 0x1b0   :  { %1660 = vmatpush1.bf16.msra.mxu0 %v9375_v19 }
 0x1b1   :  { %1661 = vmatprep.subr.bf16.mxu0 %v9379_v21  ;;  %v933_v21 = vld [vmem:[%s10908_s10] sm:$0x7] }
 0x1b2   :  { %7934 = vmatpush3.bf16.msra.mxu1 %v8509_v9  ;;  %v942_v49 = vrot.slane %v933_v21, %v9405_v30  ;;  %v946_v17 = vrot.slane %v933_v21, %v9408_v31 }
 0x1b3   :  { %7935 = vmatprep.subr.bf16.mxu1 %v9109_v0 }
 0x1b4   :  { %1662 = vmatpush1.bf16.msra.mxu0 %v9381_v22  ;;  %v674_v22 = vld [vmem:[%s10907_s9] sm:$0x7] }
 0x1b5   :  { %1663 = vmatprep.subr.bf16.mxu0 %v9383_v24  ;;  %v679_v24 = vrot.slane %v674_v22, %v9402_v29  ;;  %v687_v14 = vrot.slane %v674_v22, %v9408_v31 }
 0x1b6   :  { %7936 = vmatpush3.bf16.msra.mxu1 %v8510_v11 }
 0x1b7   :  { %7937 = vmatprep.subr.bf16.mxu1 %v9109_v0 }
 0x1b8   :  { %1664 = vmatpush1.bf16.msra.mxu0 %v9388_v25  ;;  %v938_v25 = vrot.slane %v933_v21, %v9402_v29 }
 0x1b9   :  { %1908 = vmatprep.subr.bf16.mxu0 %v9390_v27  ;;  %v683_v27 = vrot.slane %v674_v22, %v9405_v30 }
 0x1ba   :  { %7938 = vmatpush3.bf16.msra.mxu1 %v8511_v12  ;;  %v8323_v50 = vadd.f32 %v938_v25, %v679_v24  ;;  %v1444_v12 = vld [vmem:[#allocation2 + $0x6] sm:$0x3f] }
 0x1bb   :  { %7943 = vmatprep.subr.bf16.mxu1 %v9109_v0  ;;  %v8325_v52 = vadd.f32 %v942_v49, %v683_v27  ;;  %v1453_v27 = vrot.slane %v1444_v12, 2 }
 0x22e   :  { %v894_v15 = vpop.f32.mrb[8].mxu1 }
 0x22f   :  { %v7881_v16 = vpop.f32.mrb[9].mxu1  ;;  %v895_v48 = vadd.f32 %v894_v15, %v687_v14 }
 0x230   :  { %v897_v18 = vpop.f32.mrb[10].mxu1 }
 0x231   :  { %v7882_v19 = vpop.f32.mrb[11].mxu1 }
 0x24e   :  { %v1112_v51 = vpop.f32.mrb[8].mxu0  ;;  %v1153_v53 = vpop.f32.mrb[12].mxu1 }
 0x24f   :  { %v8324_v54 = vadd.f32 %v8323_v50, %v1112_v51  ;;  %v1114_v55 = vpop.f32.mrb[9].mxu0  ;;  %v7901_v56 = vpop.f32.mrb[13].mxu1  ;;  %v1154_v38 = vadd.f32 %v1153_v53, %v946_v17  ;;  %v1463_v17 = vrot.slane %v1444_v12, 4 }
 0x250   :  { %v1116_v57 = vpop.f32.mrb[10].mxu0  ;;  %v1156_v58 = vpop.f32.mrb[14].mxu1  ;;  %v8326_v62 = vadd.f32 %v8325_v52, %v1114_v55 }
 0x251   :  { %v7085_v59 = vmul.f32 -1.442695, %v8324_v54  ;;  %v1117_v60 = vpop.f32.mrb[11].mxu0  ;;  %v7902_v61 = vpop.f32.mrb[15].mxu1 }
 0x252   :  { %v7086_v3 = vmul.f32 -1.442695, %v8326_v62  ;;  %v1230_v61 = vrot.slane %v1217_v41, %v9408_v31  ;;  %v8513_v41 = vld [vmem:[#allocation7 + $0x20] ss:$12 sps:$4 sm:$0xff]  }
 0x253   :  { %8890 = vpow2.f32 %v7085_v59 }
 0x254   :  { %8892 = vpow2.f32 %v7086_v3 }
 0x25d   :  { %v8891_v6 = vpop.eup %8890 }
 0x25e   :  { %v1163_v13 = vadd.f32 1.0, %v8891_v6  ;;  %v8893_v26 = vpop.eup %8892 }
 0x25f   :  { %v1170_v35 = vadd.f32 1.0, %v8893_v26 }
 0x260   :  { %8894 = vrcp.f32 %v1163_v13 }
 0x261   :  { %8896 = vrcp.f32 %v1170_v35 }
 0x26a   :  { %v8895_v46 = vpop.eup %8894 }
 0x26b   :  { %v1173_v63 = vmul.f32 %v8895_v46, %v1154_v38  ;;  %v8897_v51 = vpop.eup %8896 }
 0x26c   :  { %v1176_v52 = vsub.f32 1.0, %v8897_v51  ;;  %v1178_v55 = vmul.f32 %v8897_v51, %v9482_v47 }
 0x26d   :  { %v1174_v5 = vadd.f32 %v1173_v63, %v895_v48  ;;  %v8512_v63 = vld [vmem:[#allocation7 + $0x8] ss:$12 sps:$4 sm:$0xff]  }
 0x26e   :  { %v1396_v7 = vpop.f32.mrb[12].mxu0  ;;  %v1437_v9 = vpop.f32.mrb[16].mxu1 }
 0x26f   :  { %8898 = vtanh.f32 %v1174_v5  ;;  %v1397_v11 = vadd.f32 %v1396_v7, %v1222_v1  ;;  %v1398_v16 = vpop.f32.mrb[13].mxu0  ;;  %v7921_v18 = vpop.f32.mrb[17].mxu1  ;;  %v1438_v3 = vadd.f32 %v1437_v9, %v1230_v61  ;;  %v9707_v5 = vld [vmem:[%s10902_s4 + $0x4c] ss:$12 sps:$4 sm:$0xff]   ;;  %v9713_v7 = vld [vmem:[%s10902_s4 + $0x48] ss:$12 sps:$4 sm:$0xff]  }
 0x270   :  { %v1399_v19 = vadd.f32 %v1398_v16, %v1226_v4  ;;  %v1400_v21 = vpop.f32.mrb[14].mxu0  ;;  %v1440_v22 = vpop.f32.mrb[18].mxu1  ;;  %v8531_v4 = vld [vmem:[%s10902_s4 + $0x38] ss:$12 sps:$4 sm:$0xff]   ;;  %v8535_v9 = vld [vmem:[%s10902_s4 + $0x50] ss:$12 sps:$4 sm:$0xff]  }
 0x271   :  { %v1445_v24 = vadd.f32 %v1444_v12, %v1397_v11  ;;  %v1401_v25 = vpop.f32.mrb[15].mxu0  ;;  %v7922_v15 = vpop.f32.mrb[19].mxu1  ;;  %v9723_v11 = vld [vmem:[%s10902_s4 + $0x64] ss:$12 sps:$4 sm:$0xff]   ;;  %v9729_v12 = vld [vmem:[%s10902_s4 + $0x60] ss:$12 sps:$4 sm:$0xff]  }
 0x272   :  { %v1455_v50 = vadd.f32 %v1453_v27, %v1399_v19  ;;  %v8539_v16 = vld [vmem:[%s10902_s4 + $0x68] ss:$12 sps:$4 sm:$0xff]   ;;  %v9745_v19 = vld [vmem:[%s10902_s4 + $0x78] ss:$12 sps:$4 sm:$0xff]   ;;  %v8543_v21 = vld [vmem:[%s10902_s4 + $0x80] ss:$12 sps:$4 sm:$0xff]  }
 0x273   :  { %v7111_v49 = vmul.f32 -1.442695, %v1445_v24  ;;  %v9739_v18 = vld [vmem:[%s10902_s4 + $0x7c] ss:$12 sps:$4 sm:$0xff]   ;;  %v9755_v22 = vld [vmem:[%s10902_s4 + $0x94] ss:$12 sps:$4 sm:$0xff]  }
 0x274   :  { %v7112_v53 = vmul.f32 -1.442695, %v1455_v50  ;;  %v9761_v24 = vld [vmem:[%s10902_s4 + $0x90] ss:$12 sps:$4 sm:$0xff]   ;;  %v8547_v25 = vld [vmem:[%s10902_s4 + $0x98] ss:$12 sps:$4 sm:$0xff]  }
 0x275   :  { %8900 = vpow2.f32 %v7111_v49  ;;  %v9771_v15 = vld [vmem:[%s10902_s4 + $0xac] ss:$12 sps:$4 sm:$0xff]   ;;  %v9777_v27 = vld [vmem:[%s10902_s4 + $0xa8] ss:$12 sps:$4 sm:$0xff]   ;;  %v8551_v49 = vld [vmem:[%s10902_s4 + $0xb0] ss:$12 sps:$4 sm:$0xff]  }
 0x276   :  { %8902 = vpow2.f32 %v7112_v53  ;;  %v9795_v53 = vld [vmem:[#allocation5] ss:$12 sps:$4 sm:$0xff]  }
 0x277   :  { %v9813_v61 = vld [vmem:[#allocation5 + $0x4c] ss:$12 sps:$4 sm:$0xff]  }
 0x279   :  { %v8899_v54 = vpop.eup %8898 }
 0x27a   :  { %v1177_v56 = vmul.f32 %v8899_v54, %v1176_v52  ;;  %v9793_v52 = vld [vmem:[#allocation5 + $0x4] ss:$12 sps:$4 sm:$0xff]   ;;  %v8555_v54 = vld [vmem:[#allocation5 + $0x8] ss:$12 sps:$4 sm:$0xff]  }
 0x27c   :  { %v1179_v57 = vadd.f32 %v1178_v55, %v1177_v56  ;;  %v9799_v55 = vld [vmem:[#allocation5 + $0x1c] ss:$12 sps:$4 sm:$0xff]   ;;  %v9802_v56 = vld [vmem:[#allocation5 + $0x18] ss:$12 sps:$4 sm:$0xff]  }
 0x27e   :  { %1181 = vst [vmem:[#allocation4] sm:$0x3] %v1179_v57  ;;  %v8559_v57 = vld [vmem:[#allocation5 + $0x20] ss:$12 sps:$4 sm:$0xff]  }
 0x27f   :  { %v8901_v58 = vpop.eup %8900 }
 0x280   :  { %v1449_v59 = vadd.f32 1.0, %v8901_v58  ;;  %v8903_v60 = vpop.eup %8902  ;;  %v9806_v58 = vld [vmem:[#allocation5 + $0x34] ss:$12 sps:$4 sm:$0xff]  }
 0x281   :  { %v1459_v62 = vadd.f32 1.0, %v8903_v60  ;;  %v8563_v60 = vld [vmem:[#allocation5 + $0x38] ss:$12 sps:$4 sm:$0xff]  }
 0x282   :  { %8904 = vrcp.f32 %v1449_v59  ;;  %v9809_v59 = vld [vmem:[#allocation5 + $0x30] ss:$12 sps:$4 sm:$0xff]  }
 0x283   :  { %8906 = vrcp.f32 %v1459_v62  ;;  %v9816_v62 = vld [vmem:[#allocation5 + $0x48] ss:$12 sps:$4 sm:$0xff]  }
 0x28c   :  { %v8905_v6 = vpop.eup %8904 }
 0x28d   :  { %v1462_v13 = vmul.f32 %v8905_v6, %v1438_v3  ;;  %v8907_v14 = vpop.eup %8906  ;;  %v8567_v3 = vld [vmem:[#allocation5 + $0x50] ss:$12 sps:$4 sm:$0xff]  }
 0x28e   :  { %v1467_v47 = vsub.f32 1.0, %v8907_v14  ;;  %v1469_v46 = vmul.f32 %v8907_v14, %v9569_v8  ;;  %v8514_v8 = vld [vmem:[#allocation7 + $0x38] ss:$12 sps:$4 sm:$0xff]  }
 0x28f   :  { %v1465_v26 = vadd.f32 %v1463_v17, %v1462_v13  ;;  %v9820_v6 = vld [vmem:[#allocation5 + $0x64] ss:$12 sps:$4 sm:$0xff]   ;;  %v9823_v13 = vld [vmem:[#allocation5 + $0x60] ss:$12 sps:$4 sm:$0xff]   ;;  %v8571_v17 = vld [vmem:[#allocation5 + $0x68] ss:$12 sps:$4 sm:$0xff]  }
 0x290   :  { %v9829_v14 = vld [vmem:[#allocation5 + $0x78] ss:$12 sps:$4 sm:$0xff]  }
 0x291   :  { %8908 = vtanh.f32 %v1465_v26  ;;  %v9826_v26 = vld [vmem:[#allocation5 + $0x7c] ss:$12 sps:$4 sm:$0xff]  }
 0x29b   :  { %v8909_v35 = vpop.eup %8908 }
 0x29c   :  { %v1468_v38 = vmul.f32 %v8909_v35, %v1467_v47  ;;  %v8575_v47 = vld [vmem:[#allocation5 + $0x80] ss:$12 sps:$4 sm:$0xff]  }
 0x29d   :  { %v9833_v35 = vld [vmem:[#allocation5 + $0x94] ss:$12 sps:$4 sm:$0xff]  }
 0x29e   :  { %v1470_v48 = vadd.f32 %v1469_v46, %v1468_v38  ;;  %v9836_v38 = vld [vmem:[#allocation5 + $0x90] ss:$12 sps:$4 sm:$0xff]   ;;  %v8579_v46 = vld [vmem:[#allocation5 + $0x98] ss:$12 sps:$4 sm:$0xff]  }
 0x2a0   :  { %v1471_v1 = vpack.c.bf16 %v1470_v48, %v1470_v48  ;;  %2010 = vst [vmem:[#allocation3] sm:$0x3] %v1470_v48  ;;  %v9840_v48 = vld [vmem:[#allocation5 + $0xac] ss:$12 sps:$4 sm:$0xff]  }
 0x2a2   :  { %1682 = vmatmul.mubr.bf16.vlgmr.msra.gmra.mrb[16].mxu0 %v1471_v1  ;;  %7940 = vmatmul.mubr.bf16.vlgmr.msra.gmra.mrb[20].mxu1 %v1471_v1  ;;  %v8583_v1 = vld [vmem:[#allocation5 + $0xb0] ss:$12 sps:$4 sm:$0xff]  }
 0x2a3   :  { %1909 = vmatpush1.bf16.msra.mxu0 %v9430_v10  ;;  %7944 = vmatpush3.bf16.msra.mxu1 %v8512_v63  ;;  %v8515_v10 = vld [vmem:[#allocation7 + $0x50] ss:$12 sps:$4 sm:$0xff]   ;;  %v9843_v63 = vld [vmem:[#allocation5 + $0xa8] ss:$12 sps:$4 sm:$0xff]  }
 0x2a4   :  { %1910 = vmatprep.subr.bf16.mxu0 %v9432_v20  ;;  %7945 = vmatprep.subr.bf16.mxu1 %v9109_v0  ;;  %v8516_v20 = vld [vmem:[#allocation7 + $0x68] ss:$12 sps:$4 sm:$0xff]  }
 0x2a5   :  { %1940 = vmatprep.mubr.bf16.mxu0 %v9110_v2  ;;  %7959 = vmatprep.mubr.msk.bf16.mxu1 %vm9113_vm2, %v9109_v0 }
 0x2a7   :  { %1911 = vmatpush1.bf16.msra.mxu0 %v9435_v23  ;;  %7946 = vmatpush3.bf16.msra.mxu1 %v8513_v41  ;;  %v8517_v23 = vld [vmem:[#allocation7 + $0x80] ss:$12 sps:$4 sm:$0xff]   ;;  %v9784_v50 = vld [vmem:[#allocation3] sm:$0x3]  ;;  %v9847_v41 = vld [vmem:[#allocation7 + $0x4] ss:$12 sps:$4 sm:$0xff]  }
 0x2a8   :  { %1912 = vmatprep.subr.bf16.mxu0 %v9439_v28  ;;  %7947 = vmatprep.subr.bf16.mxu1 %v9109_v0  ;;  %v8518_v28 = vld [vmem:[#allocation7 + $0x98] ss:$12 sps:$4 sm:$0xff]   ;;  %v2014_v51 = vpack.c.bf16 %v9784_v50, %v9784_v50 }
 0x2ab   :  { %1913 = vmatpush1.bf16.msra.mxu0 %v9445_v32  ;;  %7948 = vmatpush3.bf16.msra.mxu1 %v8514_v8  ;;  %v8519_v32 = vld [vmem:[#allocation7 + $0xb0] ss:$12 sps:$4 sm:$0xff]  }
 0x2ac   :  { %1914 = vmatprep.subr.bf16.mxu0 %v9449_v33  ;;  %7949 = vmatprep.subr.bf16.mxu1 %v9109_v0  ;;  %v9652_v33 = vld [vmem:[%s10902_s4 + $0x4] ss:$12 sps:$4 sm:$0xff]  }
 0x2af   :  { %1915 = vmatpush1.bf16.msra.mxu0 %v9452_v34  ;;  %7950 = vmatpush3.bf16.msra.mxu1 %v8515_v10  ;;  %v9654_v34 = vld [vmem:[#allocation4] sm:$0x3] }
 0x2b0   :  { %1916 = vmatprep.subr.bf16.mxu0 %v9456_v36  ;;  %7951 = vmatprep.subr.bf16.mxu1 %v9109_v0  ;;  %v9660_v36 = vld [vmem:[%s10902_s4] ss:$12 sps:$4 sm:$0xff]  }
 0x2b3   :  { %1917 = vmatpush1.bf16.msra.mxu0 %v9459_v37  ;;  %7952 = vmatpush3.bf16.msra.mxu1 %v8516_v20  ;;  %v8523_v37 = vld [vmem:[%s10902_s4 + $0x8] ss:$12 sps:$4 sm:$0xff]  }
 0x2b4   :  { %1918 = vmatprep.subr.bf16.mxu0 %v9463_v39  ;;  %7953 = vmatprep.subr.bf16.mxu1 %v9109_v0  ;;  %v1730_v39 = vpack.c.bf16 %v9654_v34, %v9654_v34 }
 0x2b7   :  { %1919 = vmatpush1.bf16.msra.mxu0 %v9466_v40  ;;  %7954 = vmatpush3.bf16.msra.mxu1 %v8517_v23  ;;  %v9672_v40 = vld [vmem:[%s10902_s4 + $0x1c] ss:$12 sps:$4 sm:$0xff]  }
 0x2b8   :  { %1920 = vmatprep.subr.bf16.mxu0 %v9470_v42  ;;  %7955 = vmatprep.subr.bf16.mxu1 %v9109_v0  ;;  %v9678_v42 = vld [vmem:[%s10902_s4 + $0x18] ss:$12 sps:$4 sm:$0xff]  }
 0x2bb   :  { %1921 = vmatpush1.bf16.msra.mxu0 %v9473_v43  ;;  %7956 = vmatpush3.bf16.msra.mxu1 %v8518_v28  ;;  %v8527_v43 = vld [vmem:[%s10902_s4 + $0x20] ss:$12 sps:$4 sm:$0xff]  }
 0x2bc   :  { %1922 = vmatprep.subr.bf16.mxu0 %v9477_v44  ;;  %7957 = vmatprep.subr.bf16.mxu1 %v9109_v0  ;;  %v9688_v44 = vld [vmem:[%s10902_s4 + $0x34] ss:$12 sps:$4 sm:$0xff]  }
 0x2bd   :  { %v1763_v28 = vld [vmem:[%s10908_s10] sm:$0x7] }
 0x2bf   :  { %1923 = vmatpush1.bf16.msra.mxu0 %v9480_v45  ;;  %7958 = vmatpush3.bf16.msra.mxu1 %v8519_v32  ;;  %v9697_v45 = vld [vmem:[%s10902_s4 + $0x30] ss:$12 sps:$4 sm:$0xff]   ;;  %v1504_v32 = vld [vmem:[%s10907_s9] sm:$0x7] }
 0x2c0   :  { %2192 = vmatprep.subr.bf16.mxu0 %v9652_v33  ;;  %7963 = vmatprep.subr.bf16.mxu1 %v9109_v0 }
 0x2c2   :  { %1941 = vmatmul.mubr.bf16.vlgmr.msra.gmra.mrb[16].mxu0 %v1730_v39  ;;  %7960 = vmatmul.mubr.bf16.vlgmr.msra.gmra.mrb[24].mxu1 %v1730_v39  ;;  %v1768_v39 = vrot.slane %v1763_v28, %v9402_v29 }
 0x2c3   :  { %2193 = vmatpush1.bf16.msra.mxu0 %v9660_v36  ;;  %7964 = vmatpush3.bf16.msra.mxu1 %v8523_v37  ;;  %v1509_v37 = vrot.slane %v1504_v32, %v9402_v29 }
 0x2c4   :  { %2194 = vmatprep.subr.bf16.mxu0 %v9672_v40  ;;  %7965 = vmatprep.subr.bf16.mxu1 %v9109_v0 }
 0x2c5   :  { %2224 = vmatprep.mubr.bf16.mxu0 %v9110_v2  ;;  %7979 = vmatprep.mubr.msk.bf16.mxu1 %vm9113_vm2, %v9109_v0 }
 0x2c7   :  { %2195 = vmatpush1.bf16.msra.mxu0 %v9678_v42  ;;  %7966 = vmatpush3.bf16.msra.mxu1 %v8527_v43  ;;  %v1513_v43 = vrot.slane %v1504_v32, %v9405_v30 }
 0x2c8   :  { %2196 = vmatprep.subr.bf16.mxu0 %v9688_v44  ;;  %7967 = vmatprep.subr.bf16.mxu1 %v9109_v0 }
 0x2cb   :  { %2197 = vmatpush1.bf16.msra.mxu0 %v9697_v45  ;;  %7968 = vmatpush3.bf16.msra.mxu1 %v8531_v4  ;;  %v1772_v4 = vrot.slane %v1763_v28, %v9405_v30 }
 0x2cc   :  { %2198 = vmatprep.subr.bf16.mxu0 %v9707_v5  ;;  %7969 = vmatprep.subr.bf16.mxu1 %v9109_v0 }
 0x2cf   :  { %2199 = vmatpush1.bf16.msra.mxu0 %v9713_v7  ;;  %7970 = vmatpush3.bf16.msra.mxu1 %v8535_v9  ;;  %v8327_v9 = vadd.f32 %v1768_v39, %v1509_v37  ;;  %v1776_v37 = vrot.slane %v1763_v28, %v9408_v31  ;;  %v1517_v39 = vrot.slane %v1504_v32, %v9408_v31  ;;  %v2274_v32 = vld [vmem:[#allocation2 + $0xc] sm:$0x3f] }
 0x2d0   :  { %2200 = vmatprep.subr.bf16.mxu0 %v9723_v11  ;;  %7971 = vmatprep.subr.bf16.mxu1 %v9109_v0 }
 0x2d3   :  { %2201 = vmatpush1.bf16.msra.mxu0 %v9729_v12  ;;  %7972 = vmatpush3.bf16.msra.mxu1 %v8539_v16 }
 0x2d4   :  { %2202 = vmatprep.subr.bf16.mxu0 %v9739_v18  ;;  %7973 = vmatprep.subr.bf16.mxu1 %v9109_v0 }
 0x2d7   :  { %2203 = vmatpush1.bf16.msra.mxu0 %v9745_v19  ;;  %7974 = vmatpush3.bf16.msra.mxu1 %v8543_v21 }
 0x2d8   :  { %2204 = vmatprep.subr.bf16.mxu0 %v9755_v22  ;;  %7975 = vmatprep.subr.bf16.mxu1 %v9109_v0 }
 0x2db   :  { %2205 = vmatpush1.bf16.msra.mxu0 %v9761_v24  ;;  %7976 = vmatpush3.bf16.msra.mxu1 %v8547_v25  ;;  %v8329_v25 = vadd.f32 %v1772_v4, %v1513_v43  ;;  %v2047_v4 = vld [vmem:[%s10904_s6] sm:$0x7] }
 0x2dc   :  { %2206 = vmatprep.subr.bf16.mxu0 %v9771_v15  ;;  %7977 = vmatprep.subr.bf16.mxu1 %v9109_v0 }
 0x2df   :  { %2207 = vmatpush1.bf16.msra.mxu0 %v9777_v27  ;;  %7978 = vmatpush3.bf16.msra.mxu1 %v8551_v49 }
 0x2e0   :  { %7983 = vmatprep.subr.bf16.mxu1 %v9109_v0  ;;  %2479 = vmatprep.subr.bf16.mxu0 %v9793_v52 }
 0x2e2   :  { %2225 = vmatmul.mubr.bf16.vlgmr.msra.gmra.mrb[20].mxu0 %v2014_v51  ;;  %7980 = vmatmul.mubr.bf16.vlgmr.msra.gmra.mrb[28].mxu1 %v2014_v51 }
 0x2e3   :  { %2511 = vmatprep.mubr.bf16.mxu0 %v9110_v2  ;;  %7999 = vmatprep.mubr.msk.bf16.mxu1 %vm9113_vm2, %v9109_v0 }
 0x2e4   :  { %2480 = vmatpush1.bf16.msra.mxu0 %v9795_v53  ;;  %7984 = vmatpush3.bf16.msra.mxu1 %v8555_v54 }
 0x2e5   :  { %7985 = vmatprep.subr.bf16.mxu1 %v9109_v0  ;;  %2481 = vmatprep.subr.bf16.mxu0 %v9799_v55 }
 0x2e8   :  { %2482 = vmatpush1.bf16.msra.mxu0 %v9802_v56  ;;  %7986 = vmatpush3.bf16.msra.mxu1 %v8559_v57 }
 0x2e9   :  { %7987 = vmatprep.subr.bf16.mxu1 %v9109_v0  ;;  %2483 = vmatprep.subr.bf16.mxu0 %v9806_v58 }
 0x2ec   :  { %2484 = vmatpush1.bf16.msra.mxu0 %v9809_v59  ;;  %7988 = vmatpush3.bf16.msra.mxu1 %v8563_v60 }
 0x2ed   :  { %7989 = vmatprep.subr.bf16.mxu1 %v9109_v0  ;;  %2485 = vmatprep.subr.bf16.mxu0 %v9813_v61 }
 0x2f0   :  { %2486 = vmatpush1.bf16.msra.mxu0 %v9816_v62  ;;  %7990 = vmatpush3.bf16.msra.mxu1 %v8567_v3 }
 0x2f1   :  { %7991 = vmatprep.subr.bf16.mxu1 %v9109_v0  ;;  %2487 = vmatprep.subr.bf16.mxu0 %v9820_v6 }
 0x2f4   :  { %2488 = vmatpush1.bf16.msra.mxu0 %v9823_v13  ;;  %7992 = vmatpush3.bf16.msra.mxu1 %v8571_v17 }
 0x2f5   :  { %2489 = vmatprep.subr.bf16.mxu0 %v9826_v26  ;;  %7993 = vmatprep.subr.bf16.mxu1 %v9109_v0 }
 0x2f8   :  { %2490 = vmatpush1.bf16.msra.mxu0 %v9829_v14  ;;  %7994 = vmatpush3.bf16.msra.mxu1 %v8575_v47 }
 0x2f9   :  { %2491 = vmatprep.subr.bf16.mxu0 %v9833_v35  ;;  %7995 = vmatprep.subr.bf16.mxu1 %v9109_v0 }
 0x2fc   :  { %2492 = vmatpush1.bf16.msra.mxu0 %v9836_v38  ;;  %7996 = vmatpush3.bf16.msra.mxu1 %v8579_v46 }
 0x2fd   :  { %2493 = vmatprep.subr.bf16.mxu0 %v9840_v48  ;;  %7997 = vmatprep.subr.bf16.mxu1 %v9109_v0 }
 0x300   :  { %2494 = vmatpush1.bf16.msra.mxu0 %v9843_v63  ;;  %7998 = vmatpush3.bf16.msra.mxu1 %v8583_v1 }
 0x301   :  { %2738 = vmatprep.subr.bf16.mxu0 %v9847_v41  ;;  %8003 = vmatprep.subr.bf16.mxu1 %v9109_v0 }
 0x375   :  { %v1724_v8 = vpop.f32.mrb[20].mxu1 }
 0x376   :  { %v7941_v10 = vpop.f32.mrb[21].mxu1 }
 0x377   :  { %v1727_v20 = vpop.f32.mrb[22].mxu1 }
 0x378   :  { %v7942_v23 = vpop.f32.mrb[23].mxu1 }
 0x395   :  { %v1942_v16 = vpop.f32.mrb[16].mxu0  ;;  %v1983_v21 = vpop.f32.mrb[24].mxu1 }
 0x396   :  { %v8328_v49 = vadd.f32 %v8327_v9, %v1942_v16  ;;  %v1944_v51 = vpop.f32.mrb[17].mxu0  ;;  %v7961_v54 = vpop.f32.mrb[25].mxu1  ;;  %v1984_v9 = vadd.f32 %v1983_v21, %v1776_v37 }
 0x397   :  { %v1946_v57 = vpop.f32.mrb[18].mxu0  ;;  %v1986_v60 = vpop.f32.mrb[26].mxu1  ;;  %v8330_v46 = vadd.f32 %v8329_v25, %v1944_v51  ;;  %v2052_v51 = vrot.slane %v2047_v4, %v9402_v29  ;;  %v2056_v54 = vrot.slane %v2047_v4, %v9405_v30 }
 0x398   :  { %v7161_v3 = vmul.f32 -1.442695, %v8328_v49  ;;  %v1947_v17 = vpop.f32.mrb[19].mxu0  ;;  %v7962_v47 = vpop.f32.mrb[27].mxu1  ;;  %v1725_v49 = vadd.f32 %v1724_v8, %v1517_v39 }
 0x399   :  { %v7162_v1 = vmul.f32 -1.442695, %v8330_v46 }
 0x39a   :  { %8910 = vpow2.f32 %v7161_v3 }
 0x39b   :  { %8912 = vpow2.f32 %v7162_v1 }
 0x3a4   :  { %v8911_v10 = vpop.eup %8910 }
 0x3a5   :  { %v1993_v20 = vadd.f32 1.0, %v8911_v10  ;;  %v8913_v23 = vpop.eup %8912 }
 0x3a6   :  { %v2000_v43 = vadd.f32 1.0, %v8913_v23  ;;  %v2283_v23 = vrot.slane %v2274_v32, 2 }
 0x3a7   :  { %8914 = vrcp.f32 %v1993_v20 }
 0x3a8   :  { %8916 = vrcp.f32 %v2000_v43 }
 0x3b1   :  { %v8915_v16 = vpop.eup %8914 }
 0x3b2   :  { %v2003_v25 = vmul.f32 %v8915_v16, %v1984_v9  ;;  %v8917_v43 = vpop.eup %8916 }
 0x3b3   :  { %v2006_v9 = vsub.f32 1.0, %v8917_v43 }
 0x3b4   :  { %v2004_v57 = vadd.f32 %v2003_v25, %v1725_v49 }
 0x3b5   :  { %v2226_v60 = vpop.f32.mrb[20].mxu0  ;;  %v2267_v3 = vpop.f32.mrb[28].mxu1 }
 0x3b6   :  { %8918 = vtanh.f32 %v2004_v57  ;;  %v2227_v28 = vadd.f32 %v2226_v60, %v2052_v51  ;;  %v2228_v17 = vpop.f32.mrb[21].mxu0  ;;  %v7981_v47 = vpop.f32.mrb[29].mxu1  ;;  %v2008_v51 = vmul.f32 %v8917_v43, %v9654_v34 }
 0x3b7   :  { %v2229_v46 = vadd.f32 %v2228_v17, %v2056_v54  ;;  %v2230_v1 = vpop.f32.mrb[22].mxu0  ;;  %v2270_v10 = vpop.f32.mrb[30].mxu1  ;;  %v2060_v17 = vrot.slane %v2047_v4, %v9408_v31  ;;  %v9874_v4 = vld [vmem:[#allocation7 + $0x1c] ss:$12 sps:$4 sm:$0xff]  }
 0x3b8   :  { %v2275_v21 = vadd.f32 %v2274_v32, %v2227_v28  ;;  %v2231_v20 = vpop.f32.mrb[23].mxu0  ;;  %v7982_v8 = vpop.f32.mrb[31].mxu1 }
 0x3b9   :  { %v2285_v39 = vadd.f32 %v2283_v23, %v2229_v46  ;;  %v2268_v1 = vadd.f32 %v2267_v3, %v2060_v17  ;;  %v9877_v3 = vld [vmem:[#allocation7 + $0x18] ss:$12 sps:$4 sm:$0xff]   ;;  %v9901_v17 = vld [vmem:[#allocation7 + $0x60] ss:$12 sps:$4 sm:$0xff]  }
 0x3ba   :  { %v7187_v37 = vmul.f32 -1.442695, %v2275_v21  ;;  %v2293_v21 = vrot.slane %v2274_v32, 4  ;;  %v8591_v32 = vld [vmem:[#allocation7 + $0x20] ss:$12 sps:$4 sm:$0xff]  }
 0x3bb   :  { %v7188_v16 = vmul.f32 -1.442695, %v2285_v39 }
 0x3bc   :  { %8920 = vpow2.f32 %v7187_v37 }
 0x3bd   :  { %8922 = vpow2.f32 %v7188_v16  ;;  %v8587_v16 = vld [vmem:[#allocation7 + $0x8] ss:$12 sps:$4 sm:$0xff]  }
 0x3c0   :  { %v8919_v49 = vpop.eup %8918 }
 0x3c1   :  { %v2007_v25 = vmul.f32 %v8919_v49, %v2006_v9  ;;  %v9872_v9 = vld [vmem:[#allocation7] ss:$12 sps:$4 sm:$0xff]  }
 0x3c3   :  { %v2009_v57 = vadd.f32 %v2008_v51, %v2007_v25  ;;  %v9887_v25 = vld [vmem:[#allocation7 + $0x30] ss:$12 sps:$4 sm:$0xff]   ;;  %v8595_v51 = vld [vmem:[#allocation7 + $0x38] ss:$12 sps:$4 sm:$0xff]  }
 0x3c5   :  { %2011 = vst [vmem:[#allocation4] sm:$0x3] %v2009_v57  ;;  %v9891_v57 = vld [vmem:[#allocation7 + $0x4c] ss:$12 sps:$4 sm:$0xff]  }
 0x3c6   :  { %v8921_v54 = vpop.eup %8920 }
 0x3c7   :  { %v2279_v60 = vadd.f32 1.0, %v8921_v54  ;;  %v8923_v28 = vpop.eup %8922  ;;  %v9894_v54 = vld [vmem:[#allocation7 + $0x48] ss:$12 sps:$4 sm:$0xff]  }
 0x3c8   :  { %v2289_v47 = vadd.f32 1.0, %v8923_v28  ;;  %v9898_v28 = vld [vmem:[#allocation7 + $0x64] ss:$12 sps:$4 sm:$0xff]  }
 0x3c9   :  { %8924 = vrcp.f32 %v2279_v60  ;;  %v8599_v60 = vld [vmem:[#allocation7 + $0x50] ss:$12 sps:$4 sm:$0xff]  }
 0x3ca   :  { %8926 = vrcp.f32 %v2289_v47  ;;  %v8603_v47 = vld [vmem:[#allocation7 + $0x68] ss:$12 sps:$4 sm:$0xff]  }
 0x3d3   :  { %v8925_v46 = vpop.eup %8924 }
 0x3d4   :  { %v2292_v10 = vmul.f32 %v8925_v46, %v2268_v1  ;;  %v8927_v8 = vpop.eup %8926  ;;  %v9905_v1 = vld [vmem:[#allocation7 + $0x7c] ss:$12 sps:$4 sm:$0xff]   ;;  %v9908_v46 = vld [vmem:[#allocation7 + $0x78] ss:$12 sps:$4 sm:$0xff]  }
 0x3d5   :  { %v2297_v23 = vsub.f32 1.0, %v8927_v8  ;;  %v2299_v39 = vmul.f32 %v8927_v8, %v9784_v50  ;;  %v9881_v50 = vld [vmem:[#allocation7 + $0x34] ss:$12 sps:$4 sm:$0xff]   ;;  %v8611_v8 = vld [vmem:[#allocation7 + $0x98] ss:$12 sps:$4 sm:$0xff]  }
 0x3d6   :  { %v2295_v20 = vadd.f32 %v2293_v21, %v2292_v10  ;;  %v8607_v10 = vld [vmem:[#allocation7 + $0x80] ss:$12 sps:$4 sm:$0xff]  }
 0x3d7   :  { %v9912_v21 = vld [vmem:[#allocation7 + $0x94] ss:$12 sps:$4 sm:$0xff]  }
 0x3d8   :  { %8928 = vtanh.f32 %v2295_v20  ;;  %v9915_v20 = vld [vmem:[#allocation7 + $0x90] ss:$12 sps:$4 sm:$0xff]  }
 0x3e2   :  { %v8929_v34 = vpop.eup %8928 }
 0x3e3   :  { %v2298_v37 = vmul.f32 %v8929_v34, %v2297_v23  ;;  %v9919_v23 = vld [vmem:[#allocation7 + $0xac] ss:$12 sps:$4 sm:$0xff]   ;;  %v9922_v34 = vld [vmem:[#allocation7 + $0xa8] ss:$12 sps:$4 sm:$0xff]  }
 0x3e5   :  { %v2300_v43 = vadd.f32 %v2299_v39, %v2298_v37  ;;  %v8615_v37 = vld [vmem:[#allocation7 + $0xb0] ss:$12 sps:$4 sm:$0xff]  }
 0x3e6   :  { %v9926_v39 = vld [vmem:[#allocation4] sm:$0x3] }
 0x3e7   :  { %v2301_v49 = vpack.c.bf16 %v2300_v43, %v2300_v43  ;;  %2840 = vst [vmem:[#allocation3] sm:$0x3] %v2300_v43  ;;  %v8616_v43 = vld [vmem:[%s10902_s4 + $0x8] ss:$12 sps:$4 sm:$0xff]  }
 0x3e9   :  { %2512 = vmatmul.mubr.bf16.vlgmr.msra.gmra.mrb[24].mxu0 %v2301_v49  ;;  %8000 = vmatmul.mubr.bf16.vlgmr.msra.gmra.mrb[32].mxu1 %v2301_v49  ;;  %v8617_v49 = vld [vmem:[%s10902_s4 + $0x20] ss:$12 sps:$4 sm:$0xff]  }
 0x3ea   :  { %2739 = vmatpush1.bf16.msra.mxu0 %v9872_v9  ;;  %8004 = vmatpush3.bf16.msra.mxu1 %v8587_v16  ;;  %v2560_v16 = vpack.c.bf16 %v9926_v39, %v9926_v39 }
 0x3eb   :  { %2740 = vmatprep.subr.bf16.mxu0 %v9874_v4  ;;  %8005 = vmatprep.subr.bf16.mxu1 %v9109_v0 }
 0x3ec   :  { %2770 = vmatprep.mubr.bf16.mxu0 %v9110_v2  ;;  %8019 = vmatprep.mubr.msk.bf16.mxu1 %vm9113_vm2, %v9109_v0 }
 0x3ee   :  { %2741 = vmatpush1.bf16.msra.mxu0 %v9877_v3  ;;  %8006 = vmatpush3.bf16.msra.mxu1 %v8591_v32 }
 0x3ef   :  { %2742 = vmatprep.subr.bf16.mxu0 %v9881_v50  ;;  %8007 = vmatprep.subr.bf16.mxu1 %v9109_v0 }
 0x3f2   :  { %2743 = vmatpush1.bf16.msra.mxu0 %v9887_v25  ;;  %8008 = vmatpush3.bf16.msra.mxu1 %v8595_v51 }
 0x3f3   :  { %2744 = vmatprep.subr.bf16.mxu0 %v9891_v57  ;;  %8009 = vmatprep.subr.bf16.mxu1 %v9109_v0 }
 0x3f6   :  { %2745 = vmatpush1.bf16.msra.mxu0 %v9894_v54  ;;  %8010 = vmatpush3.bf16.msra.mxu1 %v8599_v60 }
 0x3f7   :  { %2746 = vmatprep.subr.bf16.mxu0 %v9898_v28  ;;  %8011 = vmatprep.subr.bf16.mxu1 %v9109_v0 }
 0x3fa   :  { %2747 = vmatpush1.bf16.msra.mxu0 %v9901_v17  ;;  %8012 = vmatpush3.bf16.msra.mxu1 %v8603_v47 }
 0x3fb   :  { %2748 = vmatprep.subr.bf16.mxu0 %v9905_v1  ;;  %8013 = vmatprep.subr.bf16.mxu1 %v9109_v0 }
 0x3fe   :  { %2749 = vmatpush1.bf16.msra.mxu0 %v9908_v46  ;;  %8014 = vmatpush3.bf16.msra.mxu1 %v8607_v10 }
 0x3ff   :  { %2750 = vmatprep.subr.bf16.mxu0 %v9912_v21  ;;  %8015 = vmatprep.subr.bf16.mxu1 %v9109_v0 }
 0x402   :  { %2751 = vmatpush1.bf16.msra.mxu0 %v9915_v20  ;;  %8016 = vmatpush3.bf16.msra.mxu1 %v8611_v8 }
 0x403   :  { %2752 = vmatprep.subr.bf16.mxu0 %v9919_v23  ;;  %8017 = vmatprep.subr.bf16.mxu1 %v9109_v0 }
 0x406   :  { %2753 = vmatpush1.bf16.msra.mxu0 %v9922_v34  ;;  %8018 = vmatpush3.bf16.msra.mxu1 %v8615_v37 }
 0x407   :  { %3022 = vmatprep.subr.bf16.mxu0 %v9652_v33  ;;  %8023 = vmatprep.subr.bf16.mxu1 %v9109_v0  ;;  %v8618_v33 = vld [vmem:[%s10902_s4 + $0x38] ss:$12 sps:$4 sm:$0xff]  }
 0x409   :  { %2771 = vmatmul.mubr.bf16.vlgmr.msra.gmra.mrb[24].mxu0 %v2560_v16  ;;  %8020 = vmatmul.mubr.bf16.vlgmr.msra.gmra.mrb[36].mxu1 %v2560_v16 }
 0x40a   :  { %3023 = vmatpush1.bf16.msra.mxu0 %v9660_v36  ;;  %8024 = vmatpush3.bf16.msra.mxu1 %v8616_v43  ;;  %v8619_v36 = vld [vmem:[%s10902_s4 + $0x50] ss:$12 sps:$4 sm:$0xff]  }
 0x40b   :  { %3024 = vmatprep.subr.bf16.mxu0 %v9672_v40  ;;  %8025 = vmatprep.subr.bf16.mxu1 %v9109_v0  ;;  %v8620_v40 = vld [vmem:[%s10902_s4 + $0x68] ss:$12 sps:$4 sm:$0xff]  }
 0x40c   :  { %3054 = vmatprep.mubr.bf16.mxu0 %v9110_v2  ;;  %8039 = vmatprep.mubr.msk.bf16.mxu1 %vm9113_vm2, %v9109_v0 }
 0x40e   :  { %3025 = vmatpush1.bf16.msra.mxu0 %v9678_v42  ;;  %8026 = vmatpush3.bf16.msra.mxu1 %v8617_v49  ;;  %v8621_v42 = vld [vmem:[%s10902_s4 + $0x80] ss:$12 sps:$4 sm:$0xff]  }
 0x40f   :  { %3026 = vmatprep.subr.bf16.mxu0 %v9688_v44  ;;  %8027 = vmatprep.subr.bf16.mxu1 %v9109_v0  ;;  %v8622_v44 = vld [vmem:[%s10902_s4 + $0x98] ss:$12 sps:$4 sm:$0xff]  }
 0x412   :  { %3027 = vmatpush1.bf16.msra.mxu0 %v9697_v45  ;;  %8028 = vmatpush3.bf16.msra.mxu1 %v8618_v33  ;;  %v8623_v45 = vld [vmem:[%s10902_s4 + $0xb0] ss:$12 sps:$4 sm:$0xff]  }
 0x413   :  { %3028 = vmatprep.subr.bf16.mxu0 %v9707_v5  ;;  %8029 = vmatprep.subr.bf16.mxu1 %v9109_v0  ;;  %v9981_v5 = vld [vmem:[#allocation3] sm:$0x3] }
 0x416   :  { %3029 = vmatpush1.bf16.msra.mxu0 %v9713_v7  ;;  %8030 = vmatpush3.bf16.msra.mxu1 %v8619_v36  ;;  %v2844_v7 = vpack.c.bf16 %v9981_v5, %v9981_v5 }
 0x417   :  { %3030 = vmatprep.subr.bf16.mxu0 %v9723_v11  ;;  %8031 = vmatprep.subr.bf16.mxu1 %v9109_v0  ;;  %v8624_v11 = vld [vmem:[#allocation5 + $0x8] ss:$12 sps:$4 sm:$0xff]  }
 0x41a   :  { %3031 = vmatpush1.bf16.msra.mxu0 %v9729_v12  ;;  %8032 = vmatpush3.bf16.msra.mxu1 %v8620_v40  ;;  %v8625_v12 = vld [vmem:[#allocation5 + $0x20] ss:$12 sps:$4 sm:$0xff]  }
 0x41b   :  { %3032 = vmatprep.subr.bf16.mxu0 %v9739_v18  ;;  %8033 = vmatprep.subr.bf16.mxu1 %v9109_v0  ;;  %v8626_v18 = vld [vmem:[#allocation5 + $0x38] ss:$12 sps:$4 sm:$0xff]  }
 0x41e   :  { %3033 = vmatpush1.bf16.msra.mxu0 %v9745_v19  ;;  %8034 = vmatpush3.bf16.msra.mxu1 %v8621_v42  ;;  %v8627_v19 = vld [vmem:[#allocation5 + $0x50] ss:$12 sps:$4 sm:$0xff]   ;;  %v2877_v42 = vld [vmem:[%s10904_s6] sm:$0x7] }
 0x41f   :  { %3034 = vmatprep.subr.bf16.mxu0 %v9755_v22  ;;  %8035 = vmatprep.subr.bf16.mxu1 %v9109_v0  ;;  %v8628_v22 = vld [vmem:[#allocation5 + $0x68] ss:$12 sps:$4 sm:$0xff]  }
 0x422   :  { %3035 = vmatpush1.bf16.msra.mxu0 %v9761_v24  ;;  %8036 = vmatpush3.bf16.msra.mxu1 %v8622_v44  ;;  %v8629_v24 = vld [vmem:[#allocation5 + $0x80] ss:$12 sps:$4 sm:$0xff]  }
 0x423   :  { %3036 = vmatprep.subr.bf16.mxu0 %v9771_v15  ;;  %8037 = vmatprep.subr.bf16.mxu1 %v9109_v0  ;;  %v8630_v15 = vld [vmem:[#allocation5 + $0x98] ss:$12 sps:$4 sm:$0xff]  }
 0x426   :  { %3037 = vmatpush1.bf16.msra.mxu0 %v9777_v27  ;;  %8038 = vmatpush3.bf16.msra.mxu1 %v8623_v45  ;;  %v8631_v27 = vld [vmem:[#allocation5 + $0xb0] ss:$12 sps:$4 sm:$0xff]  }
 0x427   :  { %3309 = vmatprep.subr.bf16.mxu0 %v9793_v52  ;;  %8043 = vmatprep.subr.bf16.mxu1 %v9109_v0 }
 0x429   :  { %3055 = vmatmul.mubr.bf16.vlgmr.msra.gmra.mrb[28].mxu0 %v2844_v7  ;;  %8040 = vmatmul.mubr.bf16.vlgmr.msra.gmra.mrb[40].mxu1 %v2844_v7 }
 0x42a   :  { %3310 = vmatpush1.bf16.msra.mxu0 %v9795_v53  ;;  %3341 = vmatprep.mubr.bf16.mxu0 %v9110_v2 }
 0x42b   :  { %3311 = vmatprep.subr.bf16.mxu0 %v9799_v55  ;;  %8059 = vmatprep.mubr.msk.bf16.mxu1 %vm9113_vm2, %v9109_v0 }
 0x42c   :  { %8044 = vmatpush3.bf16.msra.mxu1 %v8624_v11 }
 0x42d   :  { %8045 = vmatprep.subr.bf16.mxu1 %v9109_v0 }
 0x42e   :  { %3312 = vmatpush1.bf16.msra.mxu0 %v9802_v56 }
 0x42f   :  { %3313 = vmatprep.subr.bf16.mxu0 %v9806_v58  ;;  %v2593_v58 = vld [vmem:[%s10908_s10] sm:$0x7] }
 0x430   :  { %8046 = vmatpush3.bf16.msra.mxu1 %v8625_v12  ;;  %v2606_v33 = vrot.slane %v2593_v58, %v9408_v31  ;;  %v2882_v12 = vrot.slane %v2877_v42, %v9402_v29 }
 0x431   :  { %8047 = vmatprep.subr.bf16.mxu1 %v9109_v0 }
 0x432   :  { %3314 = vmatpush1.bf16.msra.mxu0 %v9809_v59  ;;  %v2334_v59 = vld [vmem:[%s10907_s9] sm:$0x7] }
 0x433   :  { %3315 = vmatprep.subr.bf16.mxu0 %v9813_v61  ;;  %v2339_v61 = vrot.slane %v2334_v59, %v9402_v29  ;;  %v2347_v36 = vrot.slane %v2334_v59, %v9408_v31 }
 0x434   :  { %8048 = vmatpush3.bf16.msra.mxu1 %v8626_v18  ;;  %v2886_v18 = vrot.slane %v2877_v42, %v9405_v30 }
 0x435   :  { %8049 = vmatprep.subr.bf16.mxu1 %v9109_v0 }
 0x436   :  { %3316 = vmatpush1.bf16.msra.mxu0 %v9816_v62  ;;  %v2598_v62 = vrot.slane %v2593_v58, %v9402_v29 }
 0x437   :  { %3317 = vmatprep.subr.bf16.mxu0 %v9820_v6  ;;  %v2343_v6 = vrot.slane %v2334_v59, %v9405_v30 }
 0x438   :  { %8050 = vmatpush3.bf16.msra.mxu1 %v8627_v19 }
 0x439   :  { %8051 = vmatprep.subr.bf16.mxu1 %v9109_v0 }
 0x43a   :  { %3318 = vmatpush1.bf16.msra.mxu0 %v9823_v13  ;;  %v2602_v13 = vrot.slane %v2593_v58, %v9405_v30 }
 0x43b   :  { %3319 = vmatprep.subr.bf16.mxu0 %v9826_v26  ;;  %v8331_v26 = vadd.f32 %v2598_v62, %v2339_v61 }
 0x43c   :  { %8052 = vmatpush3.bf16.msra.mxu1 %v8628_v22 }
 0x43d   :  { %8053 = vmatprep.subr.bf16.mxu1 %v9109_v0 }
 0x43e   :  { %3320 = vmatpush1.bf16.msra.mxu0 %v9829_v14 }
 0x43f   :  { %3321 = vmatprep.subr.bf16.mxu0 %v9833_v35 }
 0x440   :  { %8054 = vmatpush3.bf16.msra.mxu1 %v8629_v24 }
 0x441   :  { %8055 = vmatprep.subr.bf16.mxu1 %v9109_v0 }
 0x442   :  { %3322 = vmatpush1.bf16.msra.mxu0 %v9836_v38  ;;  %v8333_v38 = vadd.f32 %v2602_v13, %v2343_v6 }
 0x443   :  { %3323 = vmatprep.subr.bf16.mxu0 %v9840_v48 }
 0x444   :  { %8056 = vmatpush3.bf16.msra.mxu1 %v8630_v15 }
 0x445   :  { %8057 = vmatprep.subr.bf16.mxu1 %v9109_v0 }
 0x446   :  { %3324 = vmatpush1.bf16.msra.mxu0 %v9843_v63 }
 0x447   :  { %3568 = vmatprep.subr.bf16.mxu0 %v9847_v41 }
 0x448   :  { %8058 = vmatpush3.bf16.msra.mxu1 %v8631_v27  ;;  %v3104_v27 = vld [vmem:[#allocation2 + $0x12] sm:$0x3f] }
 0x449   :  { %8063 = vmatprep.subr.bf16.mxu1 %v9109_v0  ;;  %v3113_v6 = vrot.slane %v3104_v27, 2 }
 0x4bc   :  { %v2554_v52 = vpop.f32.mrb[32].mxu1 }
 0x4bd   :  { %v8001_v53 = vpop.f32.mrb[33].mxu1  ;;  %v2555_v7 = vadd.f32 %v2554_v52, %v2347_v36 }
 0x4be   :  { %v2557_v55 = vpop.f32.mrb[34].mxu1 }
 0x4bf   :  { %v8002_v56 = vpop.f32.mrb[35].mxu1 }
 0x4dc   :  { %v2772_v14 = vpop.f32.mrb[24].mxu0  ;;  %v2813_v35 = vpop.f32.mrb[36].mxu1 }
 0x4dd   :  { %v8332_v48 = vadd.f32 %v8331_v26, %v2772_v14  ;;  %v2774_v63 = vpop.f32.mrb[25].mxu0  ;;  %v8021_v41 = vpop.f32.mrb[37].mxu1  ;;  %v2814_v44 = vadd.f32 %v2813_v35, %v2606_v33 }
 0x4de   :  { %v2776_v32 = vpop.f32.mrb[26].mxu0  ;;  %v2816_v51 = vpop.f32.mrb[38].mxu1  ;;  %v8334_v8 = vadd.f32 %v8333_v38, %v2774_v63 }
 0x4df   :  { %v7237_v60 = vmul.f32 -1.442695, %v8332_v48  ;;  %v2777_v47 = vpop.f32.mrb[27].mxu0  ;;  %v8022_v10 = vpop.f32.mrb[39].mxu1 }
 0x4e0   :  { %v7238_v37 = vmul.f32 -1.442695, %v8334_v8  ;;  %v2890_v10 = vrot.slane %v2877_v42, %v9408_v31  ;;  %v8633_v42 = vld [vmem:[#allocation7 + $0x20] ss:$12 sps:$4 sm:$0xff]  }
 0x4e1   :  { %8930 = vpow2.f32 %v7237_v60 }
 0x4e2   :  { %8932 = vpow2.f32 %v7238_v37 }
 0x4eb   :  { %v8931_v43 = vpop.eup %8930 }
 0x4ec   :  { %v2823_v16 = vadd.f32 1.0, %v8931_v43  ;;  %v8933_v49 = vpop.eup %8932 }
 0x4ed   :  { %v2830_v40 = vadd.f32 1.0, %v8933_v49  ;;  %v3123_v49 = vrot.slane %v3104_v27, 4 }
 0x4ee   :  { %8934 = vrcp.f32 %v2823_v16 }
 0x4ef   :  { %8936 = vrcp.f32 %v2830_v40 }
 0x4f8   :  { %v8935_v45 = vpop.eup %8934 }
 0x4f9   :  { %v2833_v11 = vmul.f32 %v8935_v45, %v2814_v44  ;;  %v8937_v14 = vpop.eup %8936 }
 0x4fa   :  { %v2836_v35 = vsub.f32 1.0, %v8937_v14  ;;  %v2838_v41 = vmul.f32 %v8937_v14, %v9926_v39 }
 0x4fb   :  { %v2834_v19 = vadd.f32 %v2833_v11, %v2555_v7  ;;  %v8632_v11 = vld [vmem:[#allocation7 + $0x8] ss:$12 sps:$4 sm:$0xff]  }
 0x4fc   :  { %v3056_v22 = vpop.f32.mrb[28].mxu0  ;;  %v3097_v24 = vpop.f32.mrb[40].mxu1 }
 0x4fd   :  { %8938 = vtanh.f32 %v2834_v19  ;;  %v3057_v15 = vadd.f32 %v3056_v22, %v2882_v12  ;;  %v3058_v53 = vpop.f32.mrb[29].mxu0  ;;  %v8041_v55 = vpop.f32.mrb[41].mxu1  ;;  %v3098_v37 = vadd.f32 %v3097_v24, %v2890_v10  ;;  %v10117_v19 = vld [vmem:[%s10902_s4 + $0x4c] ss:$12 sps:$4 sm:$0xff]   ;;  %v10123_v22 = vld [vmem:[%s10902_s4 + $0x48] ss:$12 sps:$4 sm:$0xff]  }
 0x4fe   :  { %v3059_v56 = vadd.f32 %v3058_v53, %v2886_v18  ;;  %v3060_v58 = vpop.f32.mrb[30].mxu0  ;;  %v3100_v59 = vpop.f32.mrb[42].mxu1  ;;  %v8651_v18 = vld [vmem:[%s10902_s4 + $0x38] ss:$12 sps:$4 sm:$0xff]   ;;  %v8655_v24 = vld [vmem:[%s10902_s4 + $0x50] ss:$12 sps:$4 sm:$0xff]  }
 0x4ff   :  { %v3105_v61 = vadd.f32 %v3104_v27, %v3057_v15  ;;  %v3061_v62 = vpop.f32.mrb[31].mxu0  ;;  %v8042_v52 = vpop.f32.mrb[43].mxu1  ;;  %v10133_v15 = vld [vmem:[%s10902_s4 + $0x64] ss:$12 sps:$4 sm:$0xff]   ;;  %v10139_v27 = vld [vmem:[%s10902_s4 + $0x60] ss:$12 sps:$4 sm:$0xff]  }
 0x500   :  { %v3115_v26 = vadd.f32 %v3113_v6, %v3059_v56  ;;  %v8659_v53 = vld [vmem:[%s10902_s4 + $0x68] ss:$12 sps:$4 sm:$0xff]   ;;  %v10155_v56 = vld [vmem:[%s10902_s4 + $0x78] ss:$12 sps:$4 sm:$0xff]   ;;  %v8663_v58 = vld [vmem:[%s10902_s4 + $0x80] ss:$12 sps:$4 sm:$0xff]  }
 0x501   :  { %v7263_v13 = vmul.f32 -1.442695, %v3105_v61  ;;  %v10149_v55 = vld [vmem:[%s10902_s4 + $0x7c] ss:$12 sps:$4 sm:$0xff]   ;;  %v10165_v59 = vld [vmem:[%s10902_s4 + $0x94] ss:$12 sps:$4 sm:$0xff]  }
 0x502   :  { %v7264_v38 = vmul.f32 -1.442695, %v3115_v26  ;;  %v10171_v61 = vld [vmem:[%s10902_s4 + $0x90] ss:$12 sps:$4 sm:$0xff]   ;;  %v8667_v62 = vld [vmem:[%s10902_s4 + $0x98] ss:$12 sps:$4 sm:$0xff]  }
 0x503   :  { %8940 = vpow2.f32 %v7263_v13  ;;  %v10181_v52 = vld [vmem:[%s10902_s4 + $0xac] ss:$12 sps:$4 sm:$0xff]   ;;  %v10187_v6 = vld [vmem:[%s10902_s4 + $0xa8] ss:$12 sps:$4 sm:$0xff]   ;;  %v8671_v13 = vld [vmem:[%s10902_s4 + $0xb0] ss:$12 sps:$4 sm:$0xff]  }
 0x504   :  { %8942 = vpow2.f32 %v7264_v38  ;;  %v10205_v38 = vld [vmem:[#allocation5] ss:$12 sps:$4 sm:$0xff]  }
 0x505   :  { %v10223_v10 = vld [vmem:[#allocation5 + $0x4c] ss:$12 sps:$4 sm:$0xff]  }
 0x507   :  { %v8939_v48 = vpop.eup %8938 }
 0x508   :  { %v2837_v63 = vmul.f32 %v8939_v48, %v2836_v35  ;;  %v10203_v35 = vld [vmem:[#allocation5 + $0x4] ss:$12 sps:$4 sm:$0xff]   ;;  %v8675_v48 = vld [vmem:[#allocation5 + $0x8] ss:$12 sps:$4 sm:$0xff]  }
 0x50a   :  { %v2839_v32 = vadd.f32 %v2838_v41, %v2837_v63  ;;  %v10209_v63 = vld [vmem:[#allocation5 + $0x1c] ss:$12 sps:$4 sm:$0xff]   ;;  %v10212_v41 = vld [vmem:[#allocation5 + $0x18] ss:$12 sps:$4 sm:$0xff]  }
 0x50c   :  { %2841 = vst [vmem:[#allocation4] sm:$0x3] %v2839_v32  ;;  %v8679_v32 = vld [vmem:[#allocation5 + $0x20] ss:$12 sps:$4 sm:$0xff]  }
 0x50d   :  { %v8941_v51 = vpop.eup %8940 }
 0x50e   :  { %v3109_v60 = vadd.f32 1.0, %v8941_v51  ;;  %v8943_v47 = vpop.eup %8942  ;;  %v10216_v51 = vld [vmem:[#allocation5 + $0x34] ss:$12 sps:$4 sm:$0xff]  }
 0x50f   :  { %v3119_v8 = vadd.f32 1.0, %v8943_v47  ;;  %v8683_v47 = vld [vmem:[#allocation5 + $0x38] ss:$12 sps:$4 sm:$0xff]  }
 0x510   :  { %8944 = vrcp.f32 %v3109_v60  ;;  %v10219_v60 = vld [vmem:[#allocation5 + $0x30] ss:$12 sps:$4 sm:$0xff]  }
 0x511   :  { %8946 = vrcp.f32 %v3119_v8  ;;  %v10226_v8 = vld [vmem:[#allocation5 + $0x48] ss:$12 sps:$4 sm:$0xff]  }
 0x51a   :  { %v8945_v43 = vpop.eup %8944 }
 0x51b   :  { %v3122_v16 = vmul.f32 %v8945_v43, %v3098_v37  ;;  %v8947_v36 = vpop.eup %8946  ;;  %v8687_v37 = vld [vmem:[#allocation5 + $0x50] ss:$12 sps:$4 sm:$0xff]  }
 0x51c   :  { %v3127_v40 = vsub.f32 1.0, %v8947_v36  ;;  %v3129_v45 = vmul.f32 %v8947_v36, %v9981_v5  ;;  %v8634_v5 = vld [vmem:[#allocation7 + $0x38] ss:$12 sps:$4 sm:$0xff]  }
 0x51d   :  { %v3125_v33 = vadd.f32 %v3123_v49, %v3122_v16  ;;  %v10230_v43 = vld [vmem:[#allocation5 + $0x64] ss:$12 sps:$4 sm:$0xff]   ;;  %v10233_v16 = vld [vmem:[#allocation5 + $0x60] ss:$12 sps:$4 sm:$0xff]   ;;  %v8691_v49 = vld [vmem:[#allocation5 + $0x68] ss:$12 sps:$4 sm:$0xff]  }
 0x51e   :  { %v10239_v36 = vld [vmem:[#allocation5 + $0x78] ss:$12 sps:$4 sm:$0xff]  }
 0x51f   :  { %8948 = vtanh.f32 %v3125_v33  ;;  %v10236_v33 = vld [vmem:[#allocation5 + $0x7c] ss:$12 sps:$4 sm:$0xff]  }
 0x529   :  { %v8949_v39 = vpop.eup %8948 }
 0x52a   :  { %v3128_v44 = vmul.f32 %v8949_v39, %v3127_v40  ;;  %v8695_v40 = vld [vmem:[#allocation5 + $0x80] ss:$12 sps:$4 sm:$0xff]  }
 0x52b   :  { %v10243_v39 = vld [vmem:[#allocation5 + $0x94] ss:$12 sps:$4 sm:$0xff]  }
 0x52c   :  { %v3130_v7 = vadd.f32 %v3129_v45, %v3128_v44  ;;  %v10246_v44 = vld [vmem:[#allocation5 + $0x90] ss:$12 sps:$4 sm:$0xff]   ;;  %v8699_v45 = vld [vmem:[#allocation5 + $0x98] ss:$12 sps:$4 sm:$0xff]  }
 0x52e   :  { %v3131_v12 = vpack.c.bf16 %v3130_v7, %v3130_v7  ;;  %3670 = vst [vmem:[#allocation3] sm:$0x3] %v3130_v7  ;;  %v10250_v7 = vld [vmem:[#allocation5 + $0xac] ss:$12 sps:$4 sm:$0xff]  }
 0x530   :  { %3342 = vmatmul.mubr.bf16.vlgmr.msra.gmra.mrb[32].mxu0 %v3131_v12  ;;  %8060 = vmatmul.mubr.bf16.vlgmr.msra.gmra.mrb[44].mxu1 %v3131_v12  ;;  %v8703_v12 = vld [vmem:[#allocation5 + $0xb0] ss:$12 sps:$4 sm:$0xff]  }
 0x531   :  { %3569 = vmatpush1.bf16.msra.mxu0 %v9872_v9  ;;  %8064 = vmatpush3.bf16.msra.mxu1 %v8632_v11  ;;  %v8635_v9 = vld [vmem:[#allocation7 + $0x50] ss:$12 sps:$4 sm:$0xff]   ;;  %v10253_v11 = vld [vmem:[#allocation5 + $0xa8] ss:$12 sps:$4 sm:$0xff]  }
 0x532   :  { %3570 = vmatprep.subr.bf16.mxu0 %v9874_v4  ;;  %8065 = vmatprep.subr.bf16.mxu1 %v9109_v0  ;;  %v8636_v4 = vld [vmem:[#allocation7 + $0x68] ss:$12 sps:$4 sm:$0xff]  }
 0x533   :  { %3600 = vmatprep.mubr.bf16.mxu0 %v9110_v2  ;;  %8079 = vmatprep.mubr.msk.bf16.mxu1 %vm9113_vm2, %v9109_v0 }
 0x535   :  { %3571 = vmatpush1.bf16.msra.mxu0 %v9877_v3  ;;  %8066 = vmatpush3.bf16.msra.mxu1 %v8633_v42  ;;  %v8637_v3 = vld [vmem:[#allocation7 + $0x80] ss:$12 sps:$4 sm:$0xff]   ;;  %v10194_v26 = vld [vmem:[#allocation3] sm:$0x3]  ;;  %v10257_v42 = vld [vmem:[#allocation7 + $0x4] ss:$12 sps:$4 sm:$0xff]  }
 0x536   :  { %3572 = vmatprep.subr.bf16.mxu0 %v9881_v50  ;;  %8067 = vmatprep.subr.bf16.mxu1 %v9109_v0  ;;  %v8638_v50 = vld [vmem:[#allocation7 + $0x98] ss:$12 sps:$4 sm:$0xff]   ;;  %v3674_v14 = vpack.c.bf16 %v10194_v26, %v10194_v26 }
 0x539   :  { %3573 = vmatpush1.bf16.msra.mxu0 %v9887_v25  ;;  %8068 = vmatpush3.bf16.msra.mxu1 %v8634_v5  ;;  %v8639_v25 = vld [vmem:[#allocation7 + $0xb0] ss:$12 sps:$4 sm:$0xff]  }
 0x53a   :  { %3574 = vmatprep.subr.bf16.mxu0 %v9891_v57  ;;  %8069 = vmatprep.subr.bf16.mxu1 %v9109_v0  ;;  %v10062_v57 = vld [vmem:[%s10902_s4 + $0x4] ss:$12 sps:$4 sm:$0xff]  }
 0x53d   :  { %3575 = vmatpush1.bf16.msra.mxu0 %v9894_v54  ;;  %8070 = vmatpush3.bf16.msra.mxu1 %v8635_v9  ;;  %v10064_v54 = vld [vmem:[#allocation4] sm:$0x3] }
 0x53e   :  { %3576 = vmatprep.subr.bf16.mxu0 %v9898_v28  ;;  %8071 = vmatprep.subr.bf16.mxu1 %v9109_v0  ;;  %v10070_v28 = vld [vmem:[%s10902_s4] ss:$12 sps:$4 sm:$0xff]  }
 0x541   :  { %3577 = vmatpush1.bf16.msra.mxu0 %v9901_v17  ;;  %8072 = vmatpush3.bf16.msra.mxu1 %v8636_v4  ;;  %v8643_v17 = vld [vmem:[%s10902_s4 + $0x8] ss:$12 sps:$4 sm:$0xff]  }
 0x542   :  { %3578 = vmatprep.subr.bf16.mxu0 %v9905_v1  ;;  %8073 = vmatprep.subr.bf16.mxu1 %v9109_v0  ;;  %v3390_v1 = vpack.c.bf16 %v10064_v54, %v10064_v54 }
 0x545   :  { %3579 = vmatpush1.bf16.msra.mxu0 %v9908_v46  ;;  %8074 = vmatpush3.bf16.msra.mxu1 %v8637_v3  ;;  %v10082_v46 = vld [vmem:[%s10902_s4 + $0x1c] ss:$12 sps:$4 sm:$0xff]  }
 0x546   :  { %3580 = vmatprep.subr.bf16.mxu0 %v9912_v21  ;;  %8075 = vmatprep.subr.bf16.mxu1 %v9109_v0  ;;  %v10088_v21 = vld [vmem:[%s10902_s4 + $0x18] ss:$12 sps:$4 sm:$0xff]  }
 0x549   :  { %3581 = vmatpush1.bf16.msra.mxu0 %v9915_v20  ;;  %8076 = vmatpush3.bf16.msra.mxu1 %v8638_v50  ;;  %v8647_v20 = vld [vmem:[%s10902_s4 + $0x20] ss:$12 sps:$4 sm:$0xff]  }
 0x54a   :  { %3582 = vmatprep.subr.bf16.mxu0 %v9919_v23  ;;  %8077 = vmatprep.subr.bf16.mxu1 %v9109_v0  ;;  %v10098_v23 = vld [vmem:[%s10902_s4 + $0x34] ss:$12 sps:$4 sm:$0xff]  }
 0x54b   :  { %v3423_v50 = vld [vmem:[%s10908_s10] sm:$0x7] }
 0x54d   :  { %3583 = vmatpush1.bf16.msra.mxu0 %v9922_v34  ;;  %8078 = vmatpush3.bf16.msra.mxu1 %v8639_v25  ;;  %v10107_v34 = vld [vmem:[%s10902_s4 + $0x30] ss:$12 sps:$4 sm:$0xff]   ;;  %v3164_v25 = vld [vmem:[%s10907_s9] sm:$0x7] }
 0x54e   :  { %3852 = vmatprep.subr.bf16.mxu0 %v10062_v57  ;;  %8083 = vmatprep.subr.bf16.mxu1 %v9109_v0 }
 0x550   :  { %3601 = vmatmul.mubr.bf16.vlgmr.msra.gmra.mrb[32].mxu0 %v3390_v1  ;;  %8080 = vmatmul.mubr.bf16.vlgmr.msra.gmra.mrb[48].mxu1 %v3390_v1  ;;  %v3428_v1 = vrot.slane %v3423_v50, %v9402_v29 }
 0x551   :  { %3853 = vmatpush1.bf16.msra.mxu0 %v10070_v28  ;;  %8084 = vmatpush3.bf16.msra.mxu1 %v8643_v17  ;;  %v3169_v17 = vrot.slane %v3164_v25, %v9402_v29 }
 0x552   :  { %3854 = vmatprep.subr.bf16.mxu0 %v10082_v46  ;;  %8085 = vmatprep.subr.bf16.mxu1 %v9109_v0 }
 0x553   :  { %3884 = vmatprep.mubr.bf16.mxu0 %v9110_v2  ;;  %8099 = vmatprep.mubr.msk.bf16.mxu1 %vm9113_vm2, %v9109_v0 }
 0x555   :  { %3855 = vmatpush1.bf16.msra.mxu0 %v10088_v21  ;;  %8086 = vmatpush3.bf16.msra.mxu1 %v8647_v20  ;;  %v3173_v20 = vrot.slane %v3164_v25, %v9405_v30 }
 0x556   :  { %3856 = vmatprep.subr.bf16.mxu0 %v10098_v23  ;;  %8087 = vmatprep.subr.bf16.mxu1 %v9109_v0 }
 0x559   :  { %3857 = vmatpush1.bf16.msra.mxu0 %v10107_v34  ;;  %8088 = vmatpush3.bf16.msra.mxu1 %v8651_v18  ;;  %v3432_v18 = vrot.slane %v3423_v50, %v9405_v30 }
 0x55a   :  { %3858 = vmatprep.subr.bf16.mxu0 %v10117_v19  ;;  %8089 = vmatprep.subr.bf16.mxu1 %v9109_v0 }
 0x55d   :  { %3859 = vmatpush1.bf16.msra.mxu0 %v10123_v22  ;;  %8090 = vmatpush3.bf16.msra.mxu1 %v8655_v24  ;;  %v8335_v24 = vadd.f32 %v3428_v1, %v3169_v17  ;;  %v3436_v17 = vrot.slane %v3423_v50, %v9408_v31  ;;  %v3177_v1 = vrot.slane %v3164_v25, %v9408_v31  ;;  %v3934_v25 = vld [vmem:[#allocation2 + $0x18] sm:$0x3f] }
 0x55e   :  { %3860 = vmatprep.subr.bf16.mxu0 %v10133_v15  ;;  %8091 = vmatprep.subr.bf16.mxu1 %v9109_v0 }
 0x561   :  { %3861 = vmatpush1.bf16.msra.mxu0 %v10139_v27  ;;  %8092 = vmatpush3.bf16.msra.mxu1 %v8659_v53 }
 0x562   :  { %3862 = vmatprep.subr.bf16.mxu0 %v10149_v55  ;;  %8093 = vmatprep.subr.bf16.mxu1 %v9109_v0 }
 0x565   :  { %3863 = vmatpush1.bf16.msra.mxu0 %v10155_v56  ;;  %8094 = vmatpush3.bf16.msra.mxu1 %v8663_v58 }
 0x566   :  { %3864 = vmatprep.subr.bf16.mxu0 %v10165_v59  ;;  %8095 = vmatprep.subr.bf16.mxu1 %v9109_v0 }
 0x569   :  { %3865 = vmatpush1.bf16.msra.mxu0 %v10171_v61  ;;  %8096 = vmatpush3.bf16.msra.mxu1 %v8667_v62  ;;  %v8337_v62 = vadd.f32 %v3432_v18, %v3173_v20  ;;  %v3707_v18 = vld [vmem:[%s10904_s6] sm:$0x7] }
 0x56a   :  { %3866 = vmatprep.subr.bf16.mxu0 %v10181_v52  ;;  %8097 = vmatprep.subr.bf16.mxu1 %v9109_v0 }
 0x56d   :  { %3867 = vmatpush1.bf16.msra.mxu0 %v10187_v6  ;;  %8098 = vmatpush3.bf16.msra.mxu1 %v8671_v13 }
 0x56e   :  { %8103 = vmatprep.subr.bf16.mxu1 %v9109_v0  ;;  %4139 = vmatprep.subr.bf16.mxu0 %v10203_v35 }
 0x570   :  { %3885 = vmatmul.mubr.bf16.vlgmr.msra.gmra.mrb[36].mxu0 %v3674_v14  ;;  %8100 = vmatmul.mubr.bf16.vlgmr.msra.gmra.mrb[52].mxu1 %v3674_v14 }
 0x571   :  { %4171 = vmatprep.mubr.bf16.mxu0 %v9110_v2  ;;  %8119 = vmatprep.mubr.msk.bf16.mxu1 %vm9113_vm2, %v9109_v0 }
 0x572   :  { %4140 = vmatpush1.bf16.msra.mxu0 %v10205_v38  ;;  %8104 = vmatpush3.bf16.msra.mxu1 %v8675_v48 }
 0x573   :  { %8105 = vmatprep.subr.bf16.mxu1 %v9109_v0  ;;  %4141 = vmatprep.subr.bf16.mxu0 %v10209_v63 }
 0x576   :  { %4142 = vmatpush1.bf16.msra.mxu0 %v10212_v41  ;;  %8106 = vmatpush3.bf16.msra.mxu1 %v8679_v32 }
 0x577   :  { %8107 = vmatprep.subr.bf16.mxu1 %v9109_v0  ;;  %4143 = vmatprep.subr.bf16.mxu0 %v10216_v51 }
 0x57a   :  { %4144 = vmatpush1.bf16.msra.mxu0 %v10219_v60  ;;  %8108 = vmatpush3.bf16.msra.mxu1 %v8683_v47 }
 0x57b   :  { %8109 = vmatprep.subr.bf16.mxu1 %v9109_v0  ;;  %4145 = vmatprep.subr.bf16.mxu0 %v10223_v10 }
 0x57e   :  { %4146 = vmatpush1.bf16.msra.mxu0 %v10226_v8  ;;  %8110 = vmatpush3.bf16.msra.mxu1 %v8687_v37 }
 0x57f   :  { %8111 = vmatprep.subr.bf16.mxu1 %v9109_v0  ;;  %4147 = vmatprep.subr.bf16.mxu0 %v10230_v43 }
 0x582   :  { %4148 = vmatpush1.bf16.msra.mxu0 %v10233_v16  ;;  %8112 = vmatpush3.bf16.msra.mxu1 %v8691_v49 }
 0x583   :  { %4149 = vmatprep.subr.bf16.mxu0 %v10236_v33  ;;  %8113 = vmatprep.subr.bf16.mxu1 %v9109_v0 }
 0x586   :  { %4150 = vmatpush1.bf16.msra.mxu0 %v10239_v36  ;;  %8114 = vmatpush3.bf16.msra.mxu1 %v8695_v40 }
 0x587   :  { %4151 = vmatprep.subr.bf16.mxu0 %v10243_v39  ;;  %8115 = vmatprep.subr.bf16.mxu1 %v9109_v0 }
 0x58a   :  { %4152 = vmatpush1.bf16.msra.mxu0 %v10246_v44  ;;  %8116 = vmatpush3.bf16.msra.mxu1 %v8699_v45 }
 0x58b   :  { %4153 = vmatprep.subr.bf16.mxu0 %v10250_v7  ;;  %8117 = vmatprep.subr.bf16.mxu1 %v9109_v0 }
 0x58e   :  { %4154 = vmatpush1.bf16.msra.mxu0 %v10253_v11  ;;  %8118 = vmatpush3.bf16.msra.mxu1 %v8703_v12 }
 0x58f   :  { %4398 = vmatprep.subr.bf16.mxu0 %v10257_v42  ;;  %8123 = vmatprep.subr.bf16.mxu1 %v9109_v0 }
 0x603   :  { %v3384_v5 = vpop.f32.mrb[44].mxu1 }
 0x604   :  { %v8061_v9 = vpop.f32.mrb[45].mxu1 }
 0x605   :  { %v3387_v4 = vpop.f32.mrb[46].mxu1 }
 0x606   :  { %v8062_v3 = vpop.f32.mrb[47].mxu1 }
 0x623   :  { %v3602_v53 = vpop.f32.mrb[32].mxu0  ;;  %v3643_v58 = vpop.f32.mrb[48].mxu1 }
 0x624   :  { %v8336_v13 = vadd.f32 %v8335_v24, %v3602_v53  ;;  %v3604_v14 = vpop.f32.mrb[33].mxu0  ;;  %v8081_v48 = vpop.f32.mrb[49].mxu1  ;;  %v3644_v24 = vadd.f32 %v3643_v58, %v3436_v17 }
 0x625   :  { %v3606_v32 = vpop.f32.mrb[34].mxu0  ;;  %v3646_v47 = vpop.f32.mrb[50].mxu1  ;;  %v8338_v45 = vadd.f32 %v8337_v62, %v3604_v14  ;;  %v3712_v14 = vrot.slane %v3707_v18, %v9402_v29  ;;  %v3716_v48 = vrot.slane %v3707_v18, %v9405_v30 }
 0x626   :  { %v7313_v37 = vmul.f32 -1.442695, %v8336_v13  ;;  %v3607_v49 = vpop.f32.mrb[35].mxu0  ;;  %v8082_v40 = vpop.f32.mrb[51].mxu1  ;;  %v3385_v13 = vadd.f32 %v3384_v5, %v3177_v1 }
 0x627   :  { %v7314_v12 = vmul.f32 -1.442695, %v8338_v45 }
 0x628   :  { %8950 = vpow2.f32 %v7313_v37 }
 0x629   :  { %8952 = vpow2.f32 %v7314_v12 }
 0x632   :  { %v8951_v9 = vpop.eup %8950 }
 0x633   :  { %v3653_v4 = vadd.f32 1.0, %v8951_v9  ;;  %v8953_v3 = vpop.eup %8952 }
 0x634   :  { %v3660_v20 = vadd.f32 1.0, %v8953_v3  ;;  %v3943_v3 = vrot.slane %v3934_v25, 2 }
 0x635   :  { %8954 = vrcp.f32 %v3653_v4 }
 0x636   :  { %8956 = vrcp.f32 %v3660_v20 }
 0x63f   :  { %v8955_v53 = vpop.eup %8954 }
 0x640   :  { %v3663_v62 = vmul.f32 %v8955_v53, %v3644_v24  ;;  %v8957_v20 = vpop.eup %8956 }
 0x641   :  { %v3666_v24 = vsub.f32 1.0, %v8957_v20 }
 0x642   :  { %v3664_v32 = vadd.f32 %v3663_v62, %v3385_v13 }
 0x643   :  { %v3886_v47 = vpop.f32.mrb[36].mxu0  ;;  %v3927_v37 = vpop.f32.mrb[52].mxu1 }
 0x644   :  { %8958 = vtanh.f32 %v3664_v32  ;;  %v3887_v50 = vadd.f32 %v3886_v47, %v3712_v14  ;;  %v3888_v49 = vpop.f32.mrb[37].mxu0  ;;  %v8101_v40 = vpop.f32.mrb[53].mxu1  ;;  %v3668_v14 = vmul.f32 %v8957_v20, %v10064_v54 }
 0x645   :  { %v3889_v45 = vadd.f32 %v3888_v49, %v3716_v48  ;;  %v3890_v12 = vpop.f32.mrb[38].mxu0  ;;  %v3930_v9 = vpop.f32.mrb[54].mxu1  ;;  %v3720_v49 = vrot.slane %v3707_v18, %v9408_v31  ;;  %v10284_v18 = vld [vmem:[#allocation7 + $0x1c] ss:$12 sps:$4 sm:$0xff]  }
 0x646   :  { %v3935_v58 = vadd.f32 %v3934_v25, %v3887_v50  ;;  %v3891_v4 = vpop.f32.mrb[39].mxu0  ;;  %v8102_v5 = vpop.f32.mrb[55].mxu1 }
 0x647   :  { %v3945_v1 = vadd.f32 %v3943_v3, %v3889_v45  ;;  %v3928_v12 = vadd.f32 %v3927_v37, %v3720_v49  ;;  %v10287_v37 = vld [vmem:[#allocation7 + $0x18] ss:$12 sps:$4 sm:$0xff]   ;;  %v10311_v49 = vld [vmem:[#allocation7 + $0x60] ss:$12 sps:$4 sm:$0xff]  }
 0x648   :  { %v7339_v17 = vmul.f32 -1.442695, %v3935_v58  ;;  %v3953_v58 = vrot.slane %v3934_v25, 4  ;;  %v8711_v25 = vld [vmem:[#allocation7 + $0x20] ss:$12 sps:$4 sm:$0xff]  }
 0x649   :  { %v7340_v53 = vmul.f32 -1.442695, %v3945_v1 }
 0x64a   :  { %8960 = vpow2.f32 %v7339_v17 }
 0x64b   :  { %8962 = vpow2.f32 %v7340_v53  ;;  %v8707_v53 = vld [vmem:[#allocation7 + $0x8] ss:$12 sps:$4 sm:$0xff]  }
 0x64e   :  { %v8959_v13 = vpop.eup %8958 }
 0x64f   :  { %v3667_v62 = vmul.f32 %v8959_v13, %v3666_v24  ;;  %v10282_v24 = vld [vmem:[#allocation7] ss:$12 sps:$4 sm:$0xff]  }
 0x651   :  { %v3669_v32 = vadd.f32 %v3668_v14, %v3667_v62  ;;  %v10297_v62 = vld [vmem:[#allocation7 + $0x30] ss:$12 sps:$4 sm:$0xff]   ;;  %v8715_v14 = vld [vmem:[#allocation7 + $0x38] ss:$12 sps:$4 sm:$0xff]  }
 0x653   :  { %3671 = vst [vmem:[#allocation4] sm:$0x3] %v3669_v32  ;;  %v10301_v32 = vld [vmem:[#allocation7 + $0x4c] ss:$12 sps:$4 sm:$0xff]  }
 0x654   :  { %v8961_v48 = vpop.eup %8960 }
 0x655   :  { %v3939_v47 = vadd.f32 1.0, %v8961_v48  ;;  %v8963_v50 = vpop.eup %8962  ;;  %v10304_v48 = vld [vmem:[#allocation7 + $0x48] ss:$12 sps:$4 sm:$0xff]  }
 0x656   :  { %v3949_v40 = vadd.f32 1.0, %v8963_v50  ;;  %v10308_v50 = vld [vmem:[#allocation7 + $0x64] ss:$12 sps:$4 sm:$0xff]  }
 0x657   :  { %8964 = vrcp.f32 %v3939_v47  ;;  %v8719_v47 = vld [vmem:[#allocation7 + $0x50] ss:$12 sps:$4 sm:$0xff]  }
 0x658   :  { %8966 = vrcp.f32 %v3949_v40  ;;  %v8723_v40 = vld [vmem:[#allocation7 + $0x68] ss:$12 sps:$4 sm:$0xff]  }
 0x661   :  { %v8965_v45 = vpop.eup %8964 }
 0x662   :  { %v3952_v9 = vmul.f32 %v8965_v45, %v3928_v12  ;;  %v8967_v5 = vpop.eup %8966  ;;  %v10315_v12 = vld [vmem:[#allocation7 + $0x7c] ss:$12 sps:$4 sm:$0xff]   ;;  %v10318_v45 = vld [vmem:[#allocation7 + $0x78] ss:$12 sps:$4 sm:$0xff]  }
 0x663   :  { %v3957_v3 = vsub.f32 1.0, %v8967_v5  ;;  %v3959_v1 = vmul.f32 %v8967_v5, %v10194_v26  ;;  %v10291_v26 = vld [vmem:[#allocation7 + $0x34] ss:$12 sps:$4 sm:$0xff]   ;;  %v8731_v5 = vld [vmem:[#allocation7 + $0x98] ss:$12 sps:$4 sm:$0xff]  }
 0x664   :  { %v3955_v4 = vadd.f32 %v3953_v58, %v3952_v9  ;;  %v8727_v9 = vld [vmem:[#allocation7 + $0x80] ss:$12 sps:$4 sm:$0xff]  }
 0x665   :  { %v10322_v58 = vld [vmem:[#allocation7 + $0x94] ss:$12 sps:$4 sm:$0xff]  }
 0x666   :  { %8968 = vtanh.f32 %v3955_v4  ;;  %v10325_v4 = vld [vmem:[#allocation7 + $0x90] ss:$12 sps:$4 sm:$0xff]  }
 0x670   :  { %v8969_v54 = vpop.eup %8968 }
 0x671   :  { %v3958_v17 = vmul.f32 %v8969_v54, %v3957_v3  ;;  %v10329_v3 = vld [vmem:[#allocation7 + $0xac] ss:$12 sps:$4 sm:$0xff]   ;;  %v10332_v54 = vld [vmem:[#allocation7 + $0xa8] ss:$12 sps:$4 sm:$0xff]  }
 0x673   :  { %v3960_v20 = vadd.f32 %v3959_v1, %v3958_v17  ;;  %v8735_v17 = vld [vmem:[#allocation7 + $0xb0] ss:$12 sps:$4 sm:$0xff]  }
 0x674   :  { %v10336_v1 = vld [vmem:[#allocation4] sm:$0x3] }
 0x675   :  { %v3961_v13 = vpack.c.bf16 %v3960_v20, %v3960_v20  ;;  %4500 = vst [vmem:[#allocation3] sm:$0x3] %v3960_v20  ;;  %v8736_v20 = vld [vmem:[%s10902_s4 + $0x8] ss:$12 sps:$4 sm:$0xff]  }
 0x677   :  { %4172 = vmatmul.mubr.bf16.vlgmr.msra.gmra.mrb[40].mxu0 %v3961_v13  ;;  %8120 = vmatmul.mubr.bf16.vlgmr.msra.gmra.mrb[56].mxu1 %v3961_v13  ;;  %v8737_v13 = vld [vmem:[%s10902_s4 + $0x20] ss:$12 sps:$4 sm:$0xff]  }
 0x678   :  { %4399 = vmatpush1.bf16.msra.mxu0 %v10282_v24  ;;  %8124 = vmatpush3.bf16.msra.mxu1 %v8707_v53  ;;  %v4220_v53 = vpack.c.bf16 %v10336_v1, %v10336_v1 }
 0x679   :  { %4400 = vmatprep.subr.bf16.mxu0 %v10284_v18  ;;  %8125 = vmatprep.subr.bf16.mxu1 %v9109_v0 }
 0x67a   :  { %4430 = vmatprep.mubr.bf16.mxu0 %v9110_v2  ;;  %8139 = vmatprep.mubr.msk.bf16.mxu1 %vm9113_vm2, %v9109_v0 }
 0x67c   :  { %4401 = vmatpush1.bf16.msra.mxu0 %v10287_v37  ;;  %8126 = vmatpush3.bf16.msra.mxu1 %v8711_v25 }
 0x67d   :  { %4402 = vmatprep.subr.bf16.mxu0 %v10291_v26  ;;  %8127 = vmatprep.subr.bf16.mxu1 %v9109_v0 }
 0x680   :  { %4403 = vmatpush1.bf16.msra.mxu0 %v10297_v62  ;;  %8128 = vmatpush3.bf16.msra.mxu1 %v8715_v14 }
 0x681   :  { %4404 = vmatprep.subr.bf16.mxu0 %v10301_v32  ;;  %8129 = vmatprep.subr.bf16.mxu1 %v9109_v0 }
 0x684   :  { %4405 = vmatpush1.bf16.msra.mxu0 %v10304_v48  ;;  %8130 = vmatpush3.bf16.msra.mxu1 %v8719_v47 }
 0x685   :  { %4406 = vmatprep.subr.bf16.mxu0 %v10308_v50  ;;  %8131 = vmatprep.subr.bf16.mxu1 %v9109_v0 }
 0x688   :  { %4407 = vmatpush1.bf16.msra.mxu0 %v10311_v49  ;;  %8132 = vmatpush3.bf16.msra.mxu1 %v8723_v40 }
 0x689   :  { %4408 = vmatprep.subr.bf16.mxu0 %v10315_v12  ;;  %8133 = vmatprep.subr.bf16.mxu1 %v9109_v0 }
 0x68c   :  { %4409 = vmatpush1.bf16.msra.mxu0 %v10318_v45  ;;  %8134 = vmatpush3.bf16.msra.mxu1 %v8727_v9 }
 0x68d   :  { %4410 = vmatprep.subr.bf16.mxu0 %v10322_v58  ;;  %8135 = vmatprep.subr.bf16.mxu1 %v9109_v0 }
 0x690   :  { %4411 = vmatpush1.bf16.msra.mxu0 %v10325_v4  ;;  %8136 = vmatpush3.bf16.msra.mxu1 %v8731_v5 }
 0x691   :  { %4412 = vmatprep.subr.bf16.mxu0 %v10329_v3  ;;  %8137 = vmatprep.subr.bf16.mxu1 %v9109_v0 }
 0x694   :  { %4413 = vmatpush1.bf16.msra.mxu0 %v10332_v54  ;;  %8138 = vmatpush3.bf16.msra.mxu1 %v8735_v17 }
 0x695   :  { %4682 = vmatprep.subr.bf16.mxu0 %v10062_v57  ;;  %8143 = vmatprep.subr.bf16.mxu1 %v9109_v0  ;;  %v8738_v57 = vld [vmem:[%s10902_s4 + $0x38] ss:$12 sps:$4 sm:$0xff]  }
 0x697   :  { %4431 = vmatmul.mubr.bf16.vlgmr.msra.gmra.mrb[40].mxu0 %v4220_v53  ;;  %8140 = vmatmul.mubr.bf16.vlgmr.msra.gmra.mrb[60].mxu1 %v4220_v53 }
 0x698   :  { %4683 = vmatpush1.bf16.msra.mxu0 %v10070_v28  ;;  %8144 = vmatpush3.bf16.msra.mxu1 %v8736_v20  ;;  %v8739_v28 = vld [vmem:[%s10902_s4 + $0x50] ss:$12 sps:$4 sm:$0xff]  }
 0x699   :  { %4684 = vmatprep.subr.bf16.mxu0 %v10082_v46  ;;  %8145 = vmatprep.subr.bf16.mxu1 %v9109_v0  ;;  %v8740_v46 = vld [vmem:[%s10902_s4 + $0x68] ss:$12 sps:$4 sm:$0xff]  }
 0x69a   :  { %4714 = vmatprep.mubr.bf16.mxu0 %v9110_v2  ;;  %8159 = vmatprep.mubr.msk.bf16.mxu1 %vm9113_vm2, %v9109_v0 }
 0x69c   :  { %4685 = vmatpush1.bf16.msra.mxu0 %v10088_v21  ;;  %8146 = vmatpush3.bf16.msra.mxu1 %v8737_v13  ;;  %v8741_v21 = vld [vmem:[%s10902_s4 + $0x80] ss:$12 sps:$4 sm:$0xff]  }
 0x69d   :  { %4686 = vmatprep.subr.bf16.mxu0 %v10098_v23  ;;  %8147 = vmatprep.subr.bf16.mxu1 %v9109_v0  ;;  %v8742_v23 = vld [vmem:[%s10902_s4 + $0x98] ss:$12 sps:$4 sm:$0xff]  }
 0x6a0   :  { %4687 = vmatpush1.bf16.msra.mxu0 %v10107_v34  ;;  %8148 = vmatpush3.bf16.msra.mxu1 %v8738_v57  ;;  %v8743_v34 = vld [vmem:[%s10902_s4 + $0xb0] ss:$12 sps:$4 sm:$0xff]  }
 0x6a1   :  { %4688 = vmatprep.subr.bf16.mxu0 %v10117_v19  ;;  %8149 = vmatprep.subr.bf16.mxu1 %v9109_v0  ;;  %v10391_v19 = vld [vmem:[#allocation3] sm:$0x3] }
 0x6a4   :  { %4689 = vmatpush1.bf16.msra.mxu0 %v10123_v22  ;;  %8150 = vmatpush3.bf16.msra.mxu1 %v8739_v28  ;;  %v4504_v22 = vpack.c.bf16 %v10391_v19, %v10391_v19 }
 0x6a5   :  { %4690 = vmatprep.subr.bf16.mxu0 %v10133_v15  ;;  %8151 = vmatprep.subr.bf16.mxu1 %v9109_v0  ;;  %v8744_v15 = vld [vmem:[#allocation5 + $0x8] ss:$12 sps:$4 sm:$0xff]  }
 0x6a8   :  { %4691 = vmatpush1.bf16.msra.mxu0 %v10139_v27  ;;  %8152 = vmatpush3.bf16.msra.mxu1 %v8740_v46  ;;  %v8745_v27 = vld [vmem:[#allocation5 + $0x20] ss:$12 sps:$4 sm:$0xff]  }
 0x6a9   :  { %4692 = vmatprep.subr.bf16.mxu0 %v10149_v55  ;;  %8153 = vmatprep.subr.bf16.mxu1 %v9109_v0  ;;  %v8746_v55 = vld [vmem:[#allocation5 + $0x38] ss:$12 sps:$4 sm:$0xff]  }
 0x6ac   :  { %4693 = vmatpush1.bf16.msra.mxu0 %v10155_v56  ;;  %8154 = vmatpush3.bf16.msra.mxu1 %v8741_v21  ;;  %v8747_v56 = vld [vmem:[#allocation5 + $0x50] ss:$12 sps:$4 sm:$0xff]   ;;  %v4537_v21 = vld [vmem:[%s10904_s6] sm:$0x7] }
 0x6ad   :  { %4694 = vmatprep.subr.bf16.mxu0 %v10165_v59  ;;  %8155 = vmatprep.subr.bf16.mxu1 %v9109_v0  ;;  %v8748_v59 = vld [vmem:[#allocation5 + $0x68] ss:$12 sps:$4 sm:$0xff]  }
 0x6b0   :  { %4695 = vmatpush1.bf16.msra.mxu0 %v10171_v61  ;;  %8156 = vmatpush3.bf16.msra.mxu1 %v8742_v23  ;;  %v8749_v61 = vld [vmem:[#allocation5 + $0x80] ss:$12 sps:$4 sm:$0xff]  }
 0x6b1   :  { %4696 = vmatprep.subr.bf16.mxu0 %v10181_v52  ;;  %8157 = vmatprep.subr.bf16.mxu1 %v9109_v0  ;;  %v8750_v52 = vld [vmem:[#allocation5 + $0x98] ss:$12 sps:$4 sm:$0xff]  }
 0x6b4   :  { %4697 = vmatpush1.bf16.msra.mxu0 %v10187_v6  ;;  %8158 = vmatpush3.bf16.msra.mxu1 %v8743_v34  ;;  %v8751_v6 = vld [vmem:[#allocation5 + $0xb0] ss:$12 sps:$4 sm:$0xff]  }
 0x6b5   :  { %4969 = vmatprep.subr.bf16.mxu0 %v10203_v35  ;;  %8163 = vmatprep.subr.bf16.mxu1 %v9109_v0 }
 0x6b7   :  { %4715 = vmatmul.mubr.bf16.vlgmr.msra.gmra.mrb[44].mxu0 %v4504_v22  ;;  %8160 = vmatmul.mubr.bf16.vlgmr.msra.gmra.mrb[64].mxu1 %v4504_v22 }
 0x6b8   :  { %4970 = vmatpush1.bf16.msra.mxu0 %v10205_v38  ;;  %5001 = vmatprep.mubr.bf16.mxu0 %v9110_v2 }
 0x6b9   :  { %4971 = vmatprep.subr.bf16.mxu0 %v10209_v63  ;;  %8179 = vmatprep.mubr.msk.bf16.mxu1 %vm9113_vm2, %v9109_v0 }
 0x6ba   :  { %8164 = vmatpush3.bf16.msra.mxu1 %v8744_v15 }
 0x6bb   :  { %8165 = vmatprep.subr.bf16.mxu1 %v9109_v0 }
 0x6bc   :  { %4972 = vmatpush1.bf16.msra.mxu0 %v10212_v41 }
 0x6bd   :  { %4973 = vmatprep.subr.bf16.mxu0 %v10216_v51  ;;  %v4253_v51 = vld [vmem:[%s10908_s10] sm:$0x7] }
 0x6be   :  { %8166 = vmatpush3.bf16.msra.mxu1 %v8745_v27  ;;  %v4266_v57 = vrot.slane %v4253_v51, %v9408_v31  ;;  %v4542_v27 = vrot.slane %v4537_v21, %v9402_v29 }
 0x6bf   :  { %8167 = vmatprep.subr.bf16.mxu1 %v9109_v0 }
 0x6c0   :  { %4974 = vmatpush1.bf16.msra.mxu0 %v10219_v60  ;;  %v3994_v60 = vld [vmem:[%s10907_s9] sm:$0x7] }
 0x6c1   :  { %4975 = vmatprep.subr.bf16.mxu0 %v10223_v10  ;;  %v3999_v10 = vrot.slane %v3994_v60, %v9402_v29  ;;  %v4007_v28 = vrot.slane %v3994_v60, %v9408_v31 }
 0x6c2   :  { %8168 = vmatpush3.bf16.msra.mxu1 %v8746_v55  ;;  %v4546_v55 = vrot.slane %v4537_v21, %v9405_v30 }
 0x6c3   :  { %8169 = vmatprep.subr.bf16.mxu1 %v9109_v0 }
 0x6c4   :  { %4976 = vmatpush1.bf16.msra.mxu0 %v10226_v8  ;;  %v4258_v8 = vrot.slane %v4253_v51, %v9402_v29 }
 0x6c5   :  { %4977 = vmatprep.subr.bf16.mxu0 %v10230_v43  ;;  %v4003_v43 = vrot.slane %v3994_v60, %v9405_v30 }
 0x6c6   :  { %8170 = vmatpush3.bf16.msra.mxu1 %v8747_v56 }
 0x6c7   :  { %8171 = vmatprep.subr.bf16.mxu1 %v9109_v0 }
 0x6c8   :  { %4978 = vmatpush1.bf16.msra.mxu0 %v10233_v16  ;;  %v4262_v16 = vrot.slane %v4253_v51, %v9405_v30 }
 0x6c9   :  { %4979 = vmatprep.subr.bf16.mxu0 %v10236_v33  ;;  %v8339_v33 = vadd.f32 %v4258_v8, %v3999_v10 }
 0x6ca   :  { %8172 = vmatpush3.bf16.msra.mxu1 %v8748_v59 }
 0x6cb   :  { %8173 = vmatprep.subr.bf16.mxu1 %v9109_v0 }
 0x6cc   :  { %4980 = vmatpush1.bf16.msra.mxu0 %v10239_v36 }
 0x6cd   :  { %4981 = vmatprep.subr.bf16.mxu0 %v10243_v39 }
 0x6ce   :  { %8174 = vmatpush3.bf16.msra.mxu1 %v8749_v61 }
 0x6cf   :  { %8175 = vmatprep.subr.bf16.mxu1 %v9109_v0 }
 0x6d0   :  { %4982 = vmatpush1.bf16.msra.mxu0 %v10246_v44  ;;  %v8341_v44 = vadd.f32 %v4262_v16, %v4003_v43 }
 0x6d1   :  { %4983 = vmatprep.subr.bf16.mxu0 %v10250_v7 }
 0x6d2   :  { %8176 = vmatpush3.bf16.msra.mxu1 %v8750_v52 }
 0x6d3   :  { %8177 = vmatprep.subr.bf16.mxu1 %v9109_v0 }
 0x6d4   :  { %4984 = vmatpush1.bf16.msra.mxu0 %v10253_v11 }
 0x6d5   :  { %5228 = vmatprep.subr.bf16.mxu0 %v10257_v42 }
 0x6d6   :  { %8178 = vmatpush3.bf16.msra.mxu1 %v8751_v6  ;;  %v4764_v6 = vld [vmem:[#allocation2 + $0x1e] sm:$0x3f] }
 0x6d7   :  { %8183 = vmatprep.subr.bf16.mxu1 %v9109_v0  ;;  %v4773_v43 = vrot.slane %v4764_v6, 2 }
 0x74a   :  { %v4214_v35 = vpop.f32.mrb[56].mxu1 }
 0x74b   :  { %v8121_v38 = vpop.f32.mrb[57].mxu1  ;;  %v4215_v22 = vadd.f32 %v4214_v35, %v4007_v28 }
 0x74c   :  { %v4217_v63 = vpop.f32.mrb[58].mxu1 }
 0x74d   :  { %v8122_v41 = vpop.f32.mrb[59].mxu1 }
 0x76a   :  { %v4432_v36 = vpop.f32.mrb[40].mxu0  ;;  %v4473_v39 = vpop.f32.mrb[60].mxu1 }
 0x76b   :  { %v8340_v7 = vadd.f32 %v8339_v33, %v4432_v36  ;;  %v4434_v11 = vpop.f32.mrb[41].mxu0  ;;  %v8141_v42 = vpop.f32.mrb[61].mxu1  ;;  %v4474_v23 = vadd.f32 %v4473_v39, %v4266_v57 }
 0x76c   :  { %v4436_v25 = vpop.f32.mrb[42].mxu0  ;;  %v4476_v14 = vpop.f32.mrb[62].mxu1  ;;  %v8342_v5 = vadd.f32 %v8341_v44, %v4434_v11 }
 0x76d   :  { %v7389_v47 = vmul.f32 -1.442695, %v8340_v7  ;;  %v4437_v40 = vpop.f32.mrb[43].mxu0  ;;  %v8142_v9 = vpop.f32.mrb[63].mxu1 }
 0x76e   :  { %v7390_v17 = vmul.f32 -1.442695, %v8342_v5  ;;  %v4550_v9 = vrot.slane %v4537_v21, %v9408_v31  ;;  %v8753_v21 = vld [vmem:[#allocation7 + $0x20] ss:$12 sps:$4 sm:$0xff]  }
 0x76f   :  { %8970 = vpow2.f32 %v7389_v47 }
 0x770   :  { %8972 = vpow2.f32 %v7390_v17 }
 0x779   :  { %v8971_v20 = vpop.eup %8970 }
 0x77a   :  { %v4483_v53 = vadd.f32 1.0, %v8971_v20  ;;  %v8973_v13 = vpop.eup %8972 }
 0x77b   :  { %v4490_v46 = vadd.f32 1.0, %v8973_v13  ;;  %v4783_v13 = vrot.slane %v4764_v6, 4 }
 0x77c   :  { %8974 = vrcp.f32 %v4483_v53 }
 0x77d   :  { %8976 = vrcp.f32 %v4490_v46 }
 0x786   :  { %v8975_v34 = vpop.eup %8974 }
 0x787   :  { %v4493_v15 = vmul.f32 %v8975_v34, %v4474_v23  ;;  %v8977_v36 = vpop.eup %8976 }
 0x788   :  { %v4496_v39 = vsub.f32 1.0, %v8977_v36  ;;  %v4498_v42 = vmul.f32 %v8977_v36, %v10336_v1 }
 0x789   :  { %v4494_v56 = vadd.f32 %v4493_v15, %v4215_v22  ;;  %v8752_v15 = vld [vmem:[#allocation7 + $0x8] ss:$12 sps:$4 sm:$0xff]  }
 0x78a   :  { %v4716_v59 = vpop.f32.mrb[44].mxu0  ;;  %v4757_v61 = vpop.f32.mrb[64].mxu1 }
 0x78b   :  { %8978 = vtanh.f32 %v4494_v56  ;;  %v4717_v52 = vadd.f32 %v4716_v59, %v4542_v27  ;;  %v4718_v38 = vpop.f32.mrb[45].mxu0  ;;  %v8161_v63 = vpop.f32.mrb[65].mxu1  ;;  %v4758_v17 = vadd.f32 %v4757_v61, %v4550_v9  ;;  %v10527_v56 = vld [vmem:[%s10902_s4 + $0x4c] ss:$12 sps:$4 sm:$0xff]   ;;  %v10533_v59 = vld [vmem:[%s10902_s4 + $0x48] ss:$12 sps:$4 sm:$0xff]  }
 0x78c   :  { %v4719_v41 = vadd.f32 %v4718_v38, %v4546_v55  ;;  %v4720_v51 = vpop.f32.mrb[46].mxu0  ;;  %v4760_v60 = vpop.f32.mrb[66].mxu1  ;;  %v8771_v55 = vld [vmem:[%s10902_s4 + $0x38] ss:$12 sps:$4 sm:$0xff]   ;;  %v8775_v61 = vld [vmem:[%s10902_s4 + $0x50] ss:$12 sps:$4 sm:$0xff]  }
 0x78d   :  { %v4765_v10 = vadd.f32 %v4764_v6, %v4717_v52  ;;  %v4721_v8 = vpop.f32.mrb[47].mxu0  ;;  %v8162_v35 = vpop.f32.mrb[67].mxu1  ;;  %v10543_v52 = vld [vmem:[%s10902_s4 + $0x64] ss:$12 sps:$4 sm:$0xff]   ;;  %v10549_v6 = vld [vmem:[%s10902_s4 + $0x60] ss:$12 sps:$4 sm:$0xff]  }
 0x78e   :  { %v4775_v33 = vadd.f32 %v4773_v43, %v4719_v41  ;;  %v8779_v38 = vld [vmem:[%s10902_s4 + $0x68] ss:$12 sps:$4 sm:$0xff]   ;;  %v10565_v41 = vld [vmem:[%s10902_s4 + $0x78] ss:$12 sps:$4 sm:$0xff]   ;;  %v8783_v51 = vld [vmem:[%s10902_s4 + $0x80] ss:$12 sps:$4 sm:$0xff]  }
 0x78f   :  { %v7415_v16 = vmul.f32 -1.442695, %v4765_v10  ;;  %v10559_v63 = vld [vmem:[%s10902_s4 + $0x7c] ss:$12 sps:$4 sm:$0xff]   ;;  %v10575_v60 = vld [vmem:[%s10902_s4 + $0x94] ss:$12 sps:$4 sm:$0xff]  }
 0x790   :  { %v7416_v44 = vmul.f32 -1.442695, %v4775_v33  ;;  %v10581_v10 = vld [vmem:[%s10902_s4 + $0x90] ss:$12 sps:$4 sm:$0xff]   ;;  %v8787_v8 = vld [vmem:[%s10902_s4 + $0x98] ss:$12 sps:$4 sm:$0xff]  }
 0x791   :  { %8980 = vpow2.f32 %v7415_v16  ;;  %v10591_v35 = vld [vmem:[%s10902_s4 + $0xac] ss:$12 sps:$4 sm:$0xff]   ;;  %v10597_v43 = vld [vmem:[%s10902_s4 + $0xa8] ss:$12 sps:$4 sm:$0xff]   ;;  %v8791_v16 = vld [vmem:[%s10902_s4 + $0xb0] ss:$12 sps:$4 sm:$0xff]  }
 0x792   :  { %8982 = vpow2.f32 %v7416_v44  ;;  %v10615_v44 = vld [vmem:[#allocation5] ss:$12 sps:$4 sm:$0xff]  }
 0x793   :  { %v10633_v9 = vld [vmem:[#allocation5 + $0x4c] ss:$12 sps:$4 sm:$0xff]  }
 0x795   :  { %v8979_v7 = vpop.eup %8978 }
 0x796   :  { %v4497_v11 = vmul.f32 %v8979_v7, %v4496_v39  ;;  %v10613_v39 = vld [vmem:[#allocation5 + $0x4] ss:$12 sps:$4 sm:$0xff]   ;;  %v8795_v7 = vld [vmem:[#allocation5 + $0x8] ss:$12 sps:$4 sm:$0xff]  }
 0x798   :  { %v4499_v25 = vadd.f32 %v4498_v42, %v4497_v11  ;;  %v10619_v11 = vld [vmem:[#allocation5 + $0x1c] ss:$12 sps:$4 sm:$0xff]   ;;  %v10622_v42 = vld [vmem:[#allocation5 + $0x18] ss:$12 sps:$4 sm:$0xff]  }
 0x79a   :  { %4501 = vst [vmem:[#allocation4] sm:$0x3] %v4499_v25  ;;  %v8799_v25 = vld [vmem:[#allocation5 + $0x20] ss:$12 sps:$4 sm:$0xff]  }
 0x79b   :  { %v8981_v14 = vpop.eup %8980 }
 0x79c   :  { %v4769_v47 = vadd.f32 1.0, %v8981_v14  ;;  %v8983_v40 = vpop.eup %8982  ;;  %v10626_v14 = vld [vmem:[#allocation5 + $0x34] ss:$12 sps:$4 sm:$0xff]  }
 0x79d   :  { %v4779_v5 = vadd.f32 1.0, %v8983_v40  ;;  %v8803_v40 = vld [vmem:[#allocation5 + $0x38] ss:$12 sps:$4 sm:$0xff]  }
 0x79e   :  { %8984 = vrcp.f32 %v4769_v47  ;;  %v10629_v47 = vld [vmem:[#allocation5 + $0x30] ss:$12 sps:$4 sm:$0xff]  }
 0x79f   :  { %8986 = vrcp.f32 %v4779_v5  ;;  %v10636_v5 = vld [vmem:[#allocation5 + $0x48] ss:$12 sps:$4 sm:$0xff]  }
 0x7a8   :  { %v8985_v20 = vpop.eup %8984 }
 0x7a9   :  { %v4782_v53 = vmul.f32 %v8985_v20, %v4758_v17  ;;  %v8987_v28 = vpop.eup %8986  ;;  %v8807_v17 = vld [vmem:[#allocation5 + $0x50] ss:$12 sps:$4 sm:$0xff]  }
 0x7aa   :  { %v4787_v46 = vsub.f32 1.0, %v8987_v28  ;;  %v4789_v34 = vmul.f32 %v8987_v28, %v10391_v19  ;;  %v8754_v19 = vld [vmem:[#allocation7 + $0x38] ss:$12 sps:$4 sm:$0xff]  }
 0x7ab   :  { %v4785_v57 = vadd.f32 %v4783_v13, %v4782_v53  ;;  %v10640_v20 = vld [vmem:[#allocation5 + $0x64] ss:$12 sps:$4 sm:$0xff]   ;;  %v10643_v53 = vld [vmem:[#allocation5 + $0x60] ss:$12 sps:$4 sm:$0xff]   ;;  %v8811_v13 = vld [vmem:[#allocation5 + $0x68] ss:$12 sps:$4 sm:$0xff]  }
 0x7ac   :  { %v10649_v28 = vld [vmem:[#allocation5 + $0x78] ss:$12 sps:$4 sm:$0xff]  }
 0x7ad   :  { %8988 = vtanh.f32 %v4785_v57  ;;  %v10646_v57 = vld [vmem:[#allocation5 + $0x7c] ss:$12 sps:$4 sm:$0xff]  }
 0x7b7   :  { %v8989_v1 = vpop.eup %8988 }
 0x7b8   :  { %v4788_v23 = vmul.f32 %v8989_v1, %v4787_v46  ;;  %v8815_v46 = vld [vmem:[#allocation5 + $0x80] ss:$12 sps:$4 sm:$0xff]  }
 0x7b9   :  { %v10653_v1 = vld [vmem:[#allocation5 + $0x94] ss:$12 sps:$4 sm:$0xff]  }
 0x7ba   :  { %v4790_v22 = vadd.f32 %v4789_v34, %v4788_v23  ;;  %v10656_v23 = vld [vmem:[#allocation5 + $0x90] ss:$12 sps:$4 sm:$0xff]   ;;  %v8819_v34 = vld [vmem:[#allocation5 + $0x98] ss:$12 sps:$4 sm:$0xff]  }
 0x7bc   :  { %v4791_v27 = vpack.c.bf16 %v4790_v22, %v4790_v22  ;;  %5330 = vst [vmem:[#allocation3] sm:$0x3] %v4790_v22  ;;  %v10660_v22 = vld [vmem:[#allocation5 + $0xac] ss:$12 sps:$4 sm:$0xff]  }
 0x7be   :  { %5002 = vmatmul.mubr.bf16.vlgmr.msra.gmra.mrb[48].mxu0 %v4791_v27  ;;  %8180 = vmatmul.mubr.bf16.vlgmr.msra.gmra.mrb[68].mxu1 %v4791_v27  ;;  %v8823_v27 = vld [vmem:[#allocation5 + $0xb0] ss:$12 sps:$4 sm:$0xff]  }
 0x7bf   :  { %5229 = vmatpush1.bf16.msra.mxu0 %v10282_v24  ;;  %8184 = vmatpush3.bf16.msra.mxu1 %v8752_v15  ;;  %v8755_v24 = vld [vmem:[#allocation7 + $0x50] ss:$12 sps:$4 sm:$0xff]   ;;  %v10663_v15 = vld [vmem:[#allocation5 + $0xa8] ss:$12 sps:$4 sm:$0xff]  }
 0x7c0   :  { %5230 = vmatprep.subr.bf16.mxu0 %v10284_v18  ;;  %8185 = vmatprep.subr.bf16.mxu1 %v9109_v0  ;;  %v8756_v18 = vld [vmem:[#allocation7 + $0x68] ss:$12 sps:$4 sm:$0xff]  }
 0x7c1   :  { %5260 = vmatprep.mubr.bf16.mxu0 %v9110_v2  ;;  %8199 = vmatprep.mubr.msk.bf16.mxu1 %vm9113_vm2, %v9109_v0 }
 0x7c3   :  { %5231 = vmatpush1.bf16.msra.mxu0 %v10287_v37  ;;  %8186 = vmatpush3.bf16.msra.mxu1 %v8753_v21  ;;  %v8757_v37 = vld [vmem:[#allocation7 + $0x80] ss:$12 sps:$4 sm:$0xff]   ;;  %v10604_v33 = vld [vmem:[#allocation3] sm:$0x3]  ;;  %v10667_v21 = vld [vmem:[#allocation7 + $0x4] ss:$12 sps:$4 sm:$0xff]  }
 0x7c4   :  { %5232 = vmatprep.subr.bf16.mxu0 %v10291_v26  ;;  %8187 = vmatprep.subr.bf16.mxu1 %v9109_v0  ;;  %v8758_v26 = vld [vmem:[#allocation7 + $0x98] ss:$12 sps:$4 sm:$0xff]   ;;  %v5334_v36 = vpack.c.bf16 %v10604_v33, %v10604_v33 }
 0x7c7   :  { %5233 = vmatpush1.bf16.msra.mxu0 %v10297_v62  ;;  %8188 = vmatpush3.bf16.msra.mxu1 %v8754_v19  ;;  %v8759_v62 = vld [vmem:[#allocation7 + $0xb0] ss:$12 sps:$4 sm:$0xff]  }
 0x7c8   :  { %5234 = vmatprep.subr.bf16.mxu0 %v10301_v32  ;;  %8189 = vmatprep.subr.bf16.mxu1 %v9109_v0  ;;  %v10472_v32 = vld [vmem:[%s10902_s4 + $0x4] ss:$12 sps:$4 sm:$0xff]  }
 0x7cb   :  { %5235 = vmatpush1.bf16.msra.mxu0 %v10304_v48  ;;  %8190 = vmatpush3.bf16.msra.mxu1 %v8755_v24  ;;  %v10474_v48 = vld [vmem:[#allocation4] sm:$0x3] }
 0x7cc   :  { %5236 = vmatprep.subr.bf16.mxu0 %v10308_v50  ;;  %8191 = vmatprep.subr.bf16.mxu1 %v9109_v0  ;;  %v10480_v50 = vld [vmem:[%s10902_s4] ss:$12 sps:$4 sm:$0xff]  }
 0x7cf   :  { %5237 = vmatpush1.bf16.msra.mxu0 %v10311_v49  ;;  %8192 = vmatpush3.bf16.msra.mxu1 %v8756_v18  ;;  %v8763_v49 = vld [vmem:[%s10902_s4 + $0x8] ss:$12 sps:$4 sm:$0xff]  }
 0x7d0   :  { %5238 = vmatprep.subr.bf16.mxu0 %v10315_v12  ;;  %8193 = vmatprep.subr.bf16.mxu1 %v9109_v0  ;;  %v5050_v12 = vpack.c.bf16 %v10474_v48, %v10474_v48 }
 0x7d3   :  { %5239 = vmatpush1.bf16.msra.mxu0 %v10318_v45  ;;  %8194 = vmatpush3.bf16.msra.mxu1 %v8757_v37  ;;  %v10492_v45 = vld [vmem:[%s10902_s4 + $0x1c] ss:$12 sps:$4 sm:$0xff]  }
 0x7d4   :  { %5240 = vmatprep.subr.bf16.mxu0 %v10322_v58  ;;  %8195 = vmatprep.subr.bf16.mxu1 %v9109_v0  ;;  %v10498_v58 = vld [vmem:[%s10902_s4 + $0x18] ss:$12 sps:$4 sm:$0xff]  }
 0x7d7   :  { %5241 = vmatpush1.bf16.msra.mxu0 %v10325_v4  ;;  %8196 = vmatpush3.bf16.msra.mxu1 %v8758_v26  ;;  %v8767_v4 = vld [vmem:[%s10902_s4 + $0x20] ss:$12 sps:$4 sm:$0xff]  }
 0x7d8   :  { %5242 = vmatprep.subr.bf16.mxu0 %v10329_v3  ;;  %8197 = vmatprep.subr.bf16.mxu1 %v9109_v0  ;;  %v10508_v3 = vld [vmem:[%s10902_s4 + $0x34] ss:$12 sps:$4 sm:$0xff]  }
 0x7d9   :  { %v5083_v26 = vld [vmem:[%s10908_s10] sm:$0x7] }
 0x7db   :  { %5243 = vmatpush1.bf16.msra.mxu0 %v10332_v54  ;;  %8198 = vmatpush3.bf16.msra.mxu1 %v8759_v62  ;;  %v10517_v54 = vld [vmem:[%s10902_s4 + $0x30] ss:$12 sps:$4 sm:$0xff]   ;;  %v4824_v62 = vld [vmem:[%s10907_s9] sm:$0x7] }
 0x7dc   :  { %5512 = vmatprep.subr.bf16.mxu0 %v10472_v32  ;;  %8203 = vmatprep.subr.bf16.mxu1 %v9109_v0 }
 0x7de   :  { %5261 = vmatmul.mubr.bf16.vlgmr.msra.gmra.mrb[48].mxu0 %v5050_v12  ;;  %8200 = vmatmul.mubr.bf16.vlgmr.msra.gmra.mrb[72].mxu1 %v5050_v12  ;;  %v5088_v12 = vrot.slane %v5083_v26, %v9402_v29 }
 0x7df   :  { %5513 = vmatpush1.bf16.msra.mxu0 %v10480_v50  ;;  %8204 = vmatpush3.bf16.msra.mxu1 %v8763_v49  ;;  %v4829_v49 = vrot.slane %v4824_v62, %v9402_v29 }
 0x7e0   :  { %5514 = vmatprep.subr.bf16.mxu0 %v10492_v45  ;;  %8205 = vmatprep.subr.bf16.mxu1 %v9109_v0 }
 0x7e1   :  { %5544 = vmatprep.mubr.bf16.mxu0 %v9110_v2  ;;  %8219 = vmatprep.mubr.msk.bf16.mxu1 %vm9113_vm2, %v9109_v0 }
 0x7e3   :  { %5515 = vmatpush1.bf16.msra.mxu0 %v10498_v58  ;;  %8206 = vmatpush3.bf16.msra.mxu1 %v8767_v4  ;;  %v4833_v4 = vrot.slane %v4824_v62, %v9405_v30 }
 0x7e4   :  { %5516 = vmatprep.subr.bf16.mxu0 %v10508_v3  ;;  %8207 = vmatprep.subr.bf16.mxu1 %v9109_v0 }
 0x7e7   :  { %5517 = vmatpush1.bf16.msra.mxu0 %v10517_v54  ;;  %8208 = vmatpush3.bf16.msra.mxu1 %v8771_v55  ;;  %v5092_v55 = vrot.slane %v5083_v26, %v9405_v30 }
 0x7e8   :  { %5518 = vmatprep.subr.bf16.mxu0 %v10527_v56  ;;  %8209 = vmatprep.subr.bf16.mxu1 %v9109_v0 }
 0x7eb   :  { %5519 = vmatpush1.bf16.msra.mxu0 %v10533_v59  ;;  %8210 = vmatpush3.bf16.msra.mxu1 %v8775_v61  ;;  %v8343_v61 = vadd.f32 %v5088_v12, %v4829_v49  ;;  %v5096_v49 = vrot.slane %v5083_v26, %v9408_v31  ;;  %v4837_v12 = vrot.slane %v4824_v62, %v9408_v31  ;;  %v5594_v62 = vld [vmem:[#allocation2 + $0x24] sm:$0x3f] }
 0x7ec   :  { %5520 = vmatprep.subr.bf16.mxu0 %v10543_v52  ;;  %8211 = vmatprep.subr.bf16.mxu1 %v9109_v0 }
 0x7ef   :  { %5521 = vmatpush1.bf16.msra.mxu0 %v10549_v6  ;;  %8212 = vmatpush3.bf16.msra.mxu1 %v8779_v38 }
 0x7f0   :  { %5522 = vmatprep.subr.bf16.mxu0 %v10559_v63  ;;  %8213 = vmatprep.subr.bf16.mxu1 %v9109_v0 }
 0x7f3   :  { %5523 = vmatpush1.bf16.msra.mxu0 %v10565_v41  ;;  %8214 = vmatpush3.bf16.msra.mxu1 %v8783_v51 }
 0x7f4   :  { %5524 = vmatprep.subr.bf16.mxu0 %v10575_v60  ;;  %8215 = vmatprep.subr.bf16.mxu1 %v9109_v0 }
 0x7f7   :  { %5525 = vmatpush1.bf16.msra.mxu0 %v10581_v10  ;;  %8216 = vmatpush3.bf16.msra.mxu1 %v8787_v8  ;;  %v8345_v8 = vadd.f32 %v5092_v55, %v4833_v4  ;;  %v5367_v55 = vld [vmem:[%s10904_s6] sm:$0x7] }
 0x7f8   :  { %5526 = vmatprep.subr.bf16.mxu0 %v10591_v35  ;;  %8217 = vmatprep.subr.bf16.mxu1 %v9109_v0 }
 0x7fb   :  { %5527 = vmatpush1.bf16.msra.mxu0 %v10597_v43  ;;  %8218 = vmatpush3.bf16.msra.mxu1 %v8791_v16 }
 0x7fc   :  { %8223 = vmatprep.subr.bf16.mxu1 %v9109_v0  ;;  %5799 = vmatprep.subr.bf16.mxu0 %v10613_v39 }
 0x7fe   :  { %5545 = vmatmul.mubr.bf16.vlgmr.msra.gmra.mrb[52].mxu0 %v5334_v36  ;;  %8220 = vmatmul.mubr.bf16.vlgmr.msra.gmra.mrb[76].mxu1 %v5334_v36 }
 0x7ff   :  { %5831 = vmatprep.mubr.bf16.mxu0 %v9110_v2  ;;  %8239 = vmatprep.mubr.msk.bf16.mxu1 %vm9113_vm2, %v9109_v0 }
 0x800   :  { %5800 = vmatpush1.bf16.msra.mxu0 %v10615_v44  ;;  %8224 = vmatpush3.bf16.msra.mxu1 %v8795_v7 }
 0x801   :  { %8225 = vmatprep.subr.bf16.mxu1 %v9109_v0  ;;  %5801 = vmatprep.subr.bf16.mxu0 %v10619_v11 }
 0x804   :  { %5802 = vmatpush1.bf16.msra.mxu0 %v10622_v42  ;;  %8226 = vmatpush3.bf16.msra.mxu1 %v8799_v25 }
 0x805   :  { %8227 = vmatprep.subr.bf16.mxu1 %v9109_v0  ;;  %5803 = vmatprep.subr.bf16.mxu0 %v10626_v14 }
 0x808   :  { %5804 = vmatpush1.bf16.msra.mxu0 %v10629_v47  ;;  %8228 = vmatpush3.bf16.msra.mxu1 %v8803_v40 }
 0x809   :  { %8229 = vmatprep.subr.bf16.mxu1 %v9109_v0  ;;  %5805 = vmatprep.subr.bf16.mxu0 %v10633_v9 }
 0x80c   :  { %5806 = vmatpush1.bf16.msra.mxu0 %v10636_v5  ;;  %8230 = vmatpush3.bf16.msra.mxu1 %v8807_v17 }
 0x80d   :  { %8231 = vmatprep.subr.bf16.mxu1 %v9109_v0  ;;  %5807 = vmatprep.subr.bf16.mxu0 %v10640_v20 }
 0x810   :  { %5808 = vmatpush1.bf16.msra.mxu0 %v10643_v53  ;;  %8232 = vmatpush3.bf16.msra.mxu1 %v8811_v13 }
 0x811   :  { %5809 = vmatprep.subr.bf16.mxu0 %v10646_v57  ;;  %8233 = vmatprep.subr.bf16.mxu1 %v9109_v0 }
 0x814   :  { %5810 = vmatpush1.bf16.msra.mxu0 %v10649_v28  ;;  %8234 = vmatpush3.bf16.msra.mxu1 %v8815_v46 }
 0x815   :  { %5811 = vmatprep.subr.bf16.mxu0 %v10653_v1  ;;  %8235 = vmatprep.subr.bf16.mxu1 %v9109_v0 }
 0x818   :  { %5812 = vmatpush1.bf16.msra.mxu0 %v10656_v23  ;;  %8236 = vmatpush3.bf16.msra.mxu1 %v8819_v34 }
 0x819   :  { %5813 = vmatprep.subr.bf16.mxu0 %v10660_v22  ;;  %8237 = vmatprep.subr.bf16.mxu1 %v9109_v0 }
 0x81c   :  { %5814 = vmatpush1.bf16.msra.mxu0 %v10663_v15  ;;  %8238 = vmatpush3.bf16.msra.mxu1 %v8823_v27 }
 0x81d   :  { %6058 = vmatprep.subr.bf16.mxu0 %v10667_v21  ;;  %8243 = vmatprep.subr.bf16.mxu1 %v9109_v0 }
 0x891   :  { %v5044_v19 = vpop.f32.mrb[68].mxu1 }
 0x892   :  { %v8181_v24 = vpop.f32.mrb[69].mxu1 }
 0x893   :  { %v5047_v18 = vpop.f32.mrb[70].mxu1 }
 0x894   :  { %v8182_v37 = vpop.f32.mrb[71].mxu1 }
 0x8b1   :  { %v5262_v38 = vpop.f32.mrb[48].mxu0  ;;  %v5303_v51 = vpop.f32.mrb[72].mxu1 }
 0x8b2   :  { %v8344_v16 = vadd.f32 %v8343_v61, %v5262_v38  ;;  %v5264_v36 = vpop.f32.mrb[49].mxu0  ;;  %v8201_v7 = vpop.f32.mrb[73].mxu1  ;;  %v5304_v61 = vadd.f32 %v5303_v51, %v5096_v49 }
 0x8b3   :  { %v5266_v25 = vpop.f32.mrb[50].mxu0  ;;  %v5306_v40 = vpop.f32.mrb[74].mxu1  ;;  %v8346_v34 = vadd.f32 %v8345_v8, %v5264_v36  ;;  %v5372_v36 = vrot.slane %v5367_v55, %v9402_v29  ;;  %v5376_v7 = vrot.slane %v5367_v55, %v9405_v30 }
 0x8b4   :  { %v7465_v17 = vmul.f32 -1.442695, %v8344_v16  ;;  %v5267_v13 = vpop.f32.mrb[51].mxu0  ;;  %v8202_v46 = vpop.f32.mrb[75].mxu1  ;;  %v5045_v16 = vadd.f32 %v5044_v19, %v4837_v12 }
 0x8b5   :  { %v7466_v27 = vmul.f32 -1.442695, %v8346_v34 }
 0x8b6   :  { %8990 = vpow2.f32 %v7465_v17 }
 0x8b7   :  { %8992 = vpow2.f32 %v7466_v27 }
 0x8c0   :  { %v8991_v24 = vpop.eup %8990 }
 0x8c1   :  { %v5313_v18 = vadd.f32 1.0, %v8991_v24  ;;  %v8993_v37 = vpop.eup %8992 }
 0x8c2   :  { %v5320_v4 = vadd.f32 1.0, %v8993_v37  ;;  %v5603_v37 = vrot.slane %v5594_v62, 2 }
 0x8c3   :  { %8994 = vrcp.f32 %v5313_v18 }
 0x8c4   :  { %8996 = vrcp.f32 %v5320_v4 }
 0x8cd   :  { %v8995_v38 = vpop.eup %8994 }
 0x8ce   :  { %v5323_v8 = vmul.f32 %v8995_v38, %v5304_v61  ;;  %v8997_v4 = vpop.eup %8996 }
 0x8cf   :  { %v5326_v61 = vsub.f32 1.0, %v8997_v4 }
 0x8d0   :  { %v5324_v25 = vadd.f32 %v5323_v8, %v5045_v16 }
 0x8d1   :  { %v5546_v40 = vpop.f32.mrb[52].mxu0  ;;  %v5587_v17 = vpop.f32.mrb[76].mxu1 }
 0x8d2   :  { %8998 = vtanh.f32 %v5324_v25  ;;  %v5547_v26 = vadd.f32 %v5546_v40, %v5372_v36  ;;  %v5548_v13 = vpop.f32.mrb[53].mxu0  ;;  %v8221_v46 = vpop.f32.mrb[77].mxu1  ;;  %v5328_v36 = vmul.f32 %v8997_v4, %v10474_v48 }
 0x8d3   :  { %v5549_v34 = vadd.f32 %v5548_v13, %v5376_v7  ;;  %v5550_v27 = vpop.f32.mrb[54].mxu0  ;;  %v5590_v24 = vpop.f32.mrb[78].mxu1  ;;  %v5380_v13 = vrot.slane %v5367_v55, %v9408_v31  ;;  %v10694_v55 = vld [vmem:[#allocation7 + $0x1c] ss:$12 sps:$4 sm:$0xff]  }
 0x8d4   :  { %v5595_v51 = vadd.f32 %v5594_v62, %v5547_v26  ;;  %v5551_v18 = vpop.f32.mrb[55].mxu0  ;;  %v8222_v19 = vpop.f32.mrb[79].mxu1 }
 0x8d5   :  { %v5605_v12 = vadd.f32 %v5603_v37, %v5549_v34  ;;  %v5588_v27 = vadd.f32 %v5587_v17, %v5380_v13  ;;  %v10697_v17 = vld [vmem:[#allocation7 + $0x18] ss:$12 sps:$4 sm:$0xff]   ;;  %v10721_v13 = vld [vmem:[#allocation7 + $0x60] ss:$12 sps:$4 sm:$0xff]  }
 0x8d6   :  { %v7491_v49 = vmul.f32 -1.442695, %v5595_v51  ;;  %v5613_v51 = vrot.slane %v5594_v62, 4  ;;  %v8831_v62 = vld [vmem:[#allocation7 + $0x20] ss:$12 sps:$4 sm:$0xff]  }
 0x8d7   :  { %v7492_v38 = vmul.f32 -1.442695, %v5605_v12 }
 0x8d8   :  { %9000 = vpow2.f32 %v7491_v49 }
 0x8d9   :  { %9002 = vpow2.f32 %v7492_v38  ;;  %v8827_v38 = vld [vmem:[#allocation7 + $0x8] ss:$12 sps:$4 sm:$0xff]  }
 0x8dc   :  { %v8999_v16 = vpop.eup %8998 }
 0x8dd   :  { %v5327_v8 = vmul.f32 %v8999_v16, %v5326_v61  ;;  %v10692_v61 = vld [vmem:[#allocation7] ss:$12 sps:$4 sm:$0xff]  }
 0x8df   :  { %v5329_v25 = vadd.f32 %v5328_v36, %v5327_v8  ;;  %v10707_v8 = vld [vmem:[#allocation7 + $0x30] ss:$12 sps:$4 sm:$0xff]   ;;  %v8835_v36 = vld [vmem:[#allocation7 + $0x38] ss:$12 sps:$4 sm:$0xff]  }
 0x8e1   :  { %5331 = vst [vmem:[#allocation4] sm:$0x3] %v5329_v25  ;;  %v10711_v25 = vld [vmem:[#allocation7 + $0x4c] ss:$12 sps:$4 sm:$0xff]  }
 0x8e2   :  { %v9001_v7 = vpop.eup %9000 }
 0x8e3   :  { %v5599_v40 = vadd.f32 1.0, %v9001_v7  ;;  %v9003_v26 = vpop.eup %9002  ;;  %v10714_v7 = vld [vmem:[#allocation7 + $0x48] ss:$12 sps:$4 sm:$0xff]  }
 0x8e4   :  { %v5609_v46 = vadd.f32 1.0, %v9003_v26  ;;  %v10718_v26 = vld [vmem:[#allocation7 + $0x64] ss:$12 sps:$4 sm:$0xff]  }
 0x8e5   :  { %9004 = vrcp.f32 %v5599_v40  ;;  %v8839_v40 = vld [vmem:[#allocation7 + $0x50] ss:$12 sps:$4 sm:$0xff]  }
 0x8e6   :  { %9006 = vrcp.f32 %v5609_v46  ;;  %v8843_v46 = vld [vmem:[#allocation7 + $0x68] ss:$12 sps:$4 sm:$0xff]  }
 0x8ef   :  { %v9005_v34 = vpop.eup %9004 }
 0x8f0   :  { %v5612_v24 = vmul.f32 %v9005_v34, %v5588_v27  ;;  %v9007_v19 = vpop.eup %9006  ;;  %v10725_v27 = vld [vmem:[#allocation7 + $0x7c] ss:$12 sps:$4 sm:$0xff]   ;;  %v10728_v34 = vld [vmem:[#allocation7 + $0x78] ss:$12 sps:$4 sm:$0xff]  }
 0x8f1   :  { %v5617_v37 = vsub.f32 1.0, %v9007_v19  ;;  %v5619_v12 = vmul.f32 %v9007_v19, %v10604_v33  ;;  %v10701_v33 = vld [vmem:[#allocation7 + $0x34] ss:$12 sps:$4 sm:$0xff]   ;;  %v8851_v19 = vld [vmem:[#allocation7 + $0x98] ss:$12 sps:$4 sm:$0xff]  }
 0x8f2   :  { %v5615_v18 = vadd.f32 %v5613_v51, %v5612_v24  ;;  %v8847_v24 = vld [vmem:[#allocation7 + $0x80] ss:$12 sps:$4 sm:$0xff]  }
 0x8f3   :  { %v10732_v51 = vld [vmem:[#allocation7 + $0x94] ss:$12 sps:$4 sm:$0xff]  }
 0x8f4   :  { %9008 = vtanh.f32 %v5615_v18  ;;  %v10735_v18 = vld [vmem:[#allocation7 + $0x90] ss:$12 sps:$4 sm:$0xff]  }
 0x8fe   :  { %v9009_v48 = vpop.eup %9008 }
 0x8ff   :  { %v5618_v49 = vmul.f32 %v9009_v48, %v5617_v37  ;;  %v10739_v37 = vld [vmem:[#allocation7 + $0xac] ss:$12 sps:$4 sm:$0xff]   ;;  %v10742_v48 = vld [vmem:[#allocation7 + $0xa8] ss:$12 sps:$4 sm:$0xff]  }
 0x901   :  { %v5620_v4 = vadd.f32 %v5619_v12, %v5618_v49  ;;  %v8855_v49 = vld [vmem:[#allocation7 + $0xb0] ss:$12 sps:$4 sm:$0xff]  }
 0x902   :  { %v10746_v12 = vld [vmem:[#allocation4] sm:$0x3] }
 0x903   :  { %v5621_v16 = vpack.c.bf16 %v5620_v4, %v5620_v4  ;;  %6160 = vst [vmem:[#allocation3] sm:$0x3] %v5620_v4  ;;  %v8856_v4 = vld [vmem:[%s10902_s4 + $0x8] ss:$12 sps:$4 sm:$0xff]  }
 0x905   :  { %5832 = vmatmul.mubr.bf16.vlgmr.msra.gmra.mrb[56].mxu0 %v5621_v16  ;;  %8240 = vmatmul.mubr.bf16.vlgmr.msra.gmra.mrb[80].mxu1 %v5621_v16  ;;  %v8857_v16 = vld [vmem:[%s10902_s4 + $0x20] ss:$12 sps:$4 sm:$0xff]  }
 0x906   :  { %6059 = vmatpush1.bf16.msra.mxu0 %v10692_v61  ;;  %8244 = vmatpush3.bf16.msra.mxu1 %v8827_v38  ;;  %v5880_v38 = vpack.c.bf16 %v10746_v12, %v10746_v12 }
 0x907   :  { %6060 = vmatprep.subr.bf16.mxu0 %v10694_v55  ;;  %8245 = vmatprep.subr.bf16.mxu1 %v9109_v0 }
 0x908   :  { %6090 = vmatprep.mubr.bf16.mxu0 %v9110_v2  ;;  %8259 = vmatprep.mubr.msk.bf16.mxu1 %vm9113_vm2, %v9109_v0 }
 0x90a   :  { %6061 = vmatpush1.bf16.msra.mxu0 %v10697_v17  ;;  %8246 = vmatpush3.bf16.msra.mxu1 %v8831_v62 }
 0x90b   :  { %6062 = vmatprep.subr.bf16.mxu0 %v10701_v33  ;;  %8247 = vmatprep.subr.bf16.mxu1 %v9109_v0 }
 0x90e   :  { %6063 = vmatpush1.bf16.msra.mxu0 %v10707_v8  ;;  %8248 = vmatpush3.bf16.msra.mxu1 %v8835_v36 }
 0x90f   :  { %6064 = vmatprep.subr.bf16.mxu0 %v10711_v25  ;;  %8249 = vmatprep.subr.bf16.mxu1 %v9109_v0 }
 0x912   :  { %6065 = vmatpush1.bf16.msra.mxu0 %v10714_v7  ;;  %8250 = vmatpush3.bf16.msra.mxu1 %v8839_v40 }
 0x913   :  { %6066 = vmatprep.subr.bf16.mxu0 %v10718_v26  ;;  %8251 = vmatprep.subr.bf16.mxu1 %v9109_v0 }
 0x916   :  { %6067 = vmatpush1.bf16.msra.mxu0 %v10721_v13  ;;  %8252 = vmatpush3.bf16.msra.mxu1 %v8843_v46 }
 0x917   :  { %6068 = vmatprep.subr.bf16.mxu0 %v10725_v27  ;;  %8253 = vmatprep.subr.bf16.mxu1 %v9109_v0 }
 0x91a   :  { %6069 = vmatpush1.bf16.msra.mxu0 %v10728_v34  ;;  %8254 = vmatpush3.bf16.msra.mxu1 %v8847_v24 }
 0x91b   :  { %6070 = vmatprep.subr.bf16.mxu0 %v10732_v51  ;;  %8255 = vmatprep.subr.bf16.mxu1 %v9109_v0 }
 0x91e   :  { %6071 = vmatpush1.bf16.msra.mxu0 %v10735_v18  ;;  %8256 = vmatpush3.bf16.msra.mxu1 %v8851_v19 }
 0x91f   :  { %6072 = vmatprep.subr.bf16.mxu0 %v10739_v37  ;;  %8257 = vmatprep.subr.bf16.mxu1 %v9109_v0 }
 0x922   :  { %6073 = vmatpush1.bf16.msra.mxu0 %v10742_v48  ;;  %8258 = vmatpush3.bf16.msra.mxu1 %v8855_v49 }
 0x923   :  { %6342 = vmatprep.subr.bf16.mxu0 %v10472_v32  ;;  %8263 = vmatprep.subr.bf16.mxu1 %v9109_v0  ;;  %v8858_v32 = vld [vmem:[%s10902_s4 + $0x38] ss:$12 sps:$4 sm:$0xff]  }
 0x925   :  { %6091 = vmatmul.mubr.bf16.vlgmr.msra.gmra.mrb[56].mxu0 %v5880_v38  ;;  %8260 = vmatmul.mubr.bf16.vlgmr.msra.gmra.mrb[84].mxu1 %v5880_v38 }
 0x926   :  { %6343 = vmatpush1.bf16.msra.mxu0 %v10480_v50  ;;  %8264 = vmatpush3.bf16.msra.mxu1 %v8856_v4  ;;  %v8859_v50 = vld [vmem:[%s10902_s4 + $0x50] ss:$12 sps:$4 sm:$0xff]  }
 0x927   :  { %6344 = vmatprep.subr.bf16.mxu0 %v10492_v45  ;;  %8265 = vmatprep.subr.bf16.mxu1 %v9109_v0  ;;  %v8860_v45 = vld [vmem:[%s10902_s4 + $0x68] ss:$12 sps:$4 sm:$0xff]  }
 0x928   :  { %6374 = vmatprep.mubr.bf16.mxu0 %v9110_v2  ;;  %8279 = vmatprep.mubr.msk.bf16.mxu1 %vm9113_vm2, %v9109_v0 }
 0x92a   :  { %6345 = vmatpush1.bf16.msra.mxu0 %v10498_v58  ;;  %8266 = vmatpush3.bf16.msra.mxu1 %v8857_v16  ;;  %v8861_v58 = vld [vmem:[%s10902_s4 + $0x80] ss:$12 sps:$4 sm:$0xff]  }
 0x92b   :  { %6346 = vmatprep.subr.bf16.mxu0 %v10508_v3  ;;  %8267 = vmatprep.subr.bf16.mxu1 %v9109_v0  ;;  %v8862_v3 = vld [vmem:[%s10902_s4 + $0x98] ss:$12 sps:$4 sm:$0xff]  }
 0x92e   :  { %6347 = vmatpush1.bf16.msra.mxu0 %v10517_v54  ;;  %8268 = vmatpush3.bf16.msra.mxu1 %v8858_v32  ;;  %v8863_v54 = vld [vmem:[%s10902_s4 + $0xb0] ss:$12 sps:$4 sm:$0xff]  }
 0x92f   :  { %6348 = vmatprep.subr.bf16.mxu0 %v10527_v56  ;;  %8269 = vmatprep.subr.bf16.mxu1 %v9109_v0  ;;  %v10801_v56 = vld [vmem:[#allocation3] sm:$0x3] }
 0x932   :  { %6349 = vmatpush1.bf16.msra.mxu0 %v10533_v59  ;;  %8270 = vmatpush3.bf16.msra.mxu1 %v8859_v50  ;;  %v6164_v59 = vpack.c.bf16 %v10801_v56, %v10801_v56 }
 0x933   :  { %6350 = vmatprep.subr.bf16.mxu0 %v10543_v52  ;;  %8271 = vmatprep.subr.bf16.mxu1 %v9109_v0  ;;  %v8864_v52 = vld [vmem:[#allocation5 + $0x8] ss:$12 sps:$4 sm:$0xff]  }
 0x936   :  { %6351 = vmatpush1.bf16.msra.mxu0 %v10549_v6  ;;  %8272 = vmatpush3.bf16.msra.mxu1 %v8860_v45  ;;  %v8865_v6 = vld [vmem:[#allocation5 + $0x20] ss:$12 sps:$4 sm:$0xff]  }
 0x937   :  { %6352 = vmatprep.subr.bf16.mxu0 %v10559_v63  ;;  %8273 = vmatprep.subr.bf16.mxu1 %v9109_v0  ;;  %v8866_v63 = vld [vmem:[#allocation5 + $0x38] ss:$12 sps:$4 sm:$0xff]  }
 0x93a   :  { %6353 = vmatpush1.bf16.msra.mxu0 %v10565_v41  ;;  %8274 = vmatpush3.bf16.msra.mxu1 %v8861_v58  ;;  %v8867_v41 = vld [vmem:[#allocation5 + $0x50] ss:$12 sps:$4 sm:$0xff]   ;;  %v6197_v58 = vld [vmem:[%s10904_s6] sm:$0x7] }
 0x93b   :  { %6354 = vmatprep.subr.bf16.mxu0 %v10575_v60  ;;  %8275 = vmatprep.subr.bf16.mxu1 %v9109_v0  ;;  %v8868_v60 = vld [vmem:[#allocation5 + $0x68] ss:$12 sps:$4 sm:$0xff]  }
 0x93e   :  { %6355 = vmatpush1.bf16.msra.mxu0 %v10581_v10  ;;  %8276 = vmatpush3.bf16.msra.mxu1 %v8862_v3  ;;  %v8869_v10 = vld [vmem:[#allocation5 + $0x80] ss:$12 sps:$4 sm:$0xff]  }
 0x93f   :  { %6356 = vmatprep.subr.bf16.mxu0 %v10591_v35  ;;  %8277 = vmatprep.subr.bf16.mxu1 %v9109_v0  ;;  %v8870_v35 = vld [vmem:[#allocation5 + $0x98] ss:$12 sps:$4 sm:$0xff]  }
 0x942   :  { %6357 = vmatpush1.bf16.msra.mxu0 %v10597_v43  ;;  %8278 = vmatpush3.bf16.msra.mxu1 %v8863_v54  ;;  %v8871_v43 = vld [vmem:[#allocation5 + $0xb0] ss:$12 sps:$4 sm:$0xff]  }
 0x943   :  { %6629 = vmatprep.subr.bf16.mxu0 %v10613_v39  ;;  %8283 = vmatprep.subr.bf16.mxu1 %v9109_v0 }
 0x945   :  { %6375 = vmatmul.mubr.bf16.vlgmr.msra.gmra.mrb[60].mxu0 %v6164_v59  ;;  %8280 = vmatmul.mubr.bf16.vlgmr.msra.gmra.mrb[88].mxu1 %v6164_v59 }
 0x946   :  { %6630 = vmatpush1.bf16.msra.mxu0 %v10615_v44  ;;  %6661 = vmatprep.mubr.bf16.mxu0 %v9110_v2 }
 0x947   :  { %6631 = vmatprep.subr.bf16.mxu0 %v10619_v11  ;;  %8299 = vmatprep.mubr.msk.bf16.mxu1 %vm9113_vm2, %v9109_v0 }
 0x948   :  { %8284 = vmatpush3.bf16.msra.mxu1 %v8864_v52 }
 0x949   :  { %8285 = vmatprep.subr.bf16.mxu1 %v9109_v0 }
 0x94a   :  { %6632 = vmatpush1.bf16.msra.mxu0 %v10622_v42 }
 0x94b   :  { %6633 = vmatprep.subr.bf16.mxu0 %v10626_v14  ;;  %v5913_v14 = vld [vmem:[%s10908_s10] sm:$0x7] }
 0x94c   :  { %8286 = vmatpush3.bf16.msra.mxu1 %v8865_v6  ;;  %v5926_v32 = vrot.slane %v5913_v14, %v9408_v31  ;;  %v6202_v6 = vrot.slane %v6197_v58, %v9402_v29 }
 0x94d   :  { %8287 = vmatprep.subr.bf16.mxu1 %v9109_v0 }
 0x94e   :  { %6634 = vmatpush1.bf16.msra.mxu0 %v10629_v47  ;;  %v5654_v47 = vld [vmem:[%s10907_s9] sm:$0x7] }
 0x94f   :  { %6635 = vmatprep.subr.bf16.mxu0 %v10633_v9  ;;  %v5659_v9 = vrot.slane %v5654_v47, %v9402_v29  ;;  %v5667_v50 = vrot.slane %v5654_v47, %v9408_v31 }
 0x950   :  { %8288 = vmatpush3.bf16.msra.mxu1 %v8866_v63  ;;  %v6206_v63 = vrot.slane %v6197_v58, %v9405_v30 }
 0x951   :  { %8289 = vmatprep.subr.bf16.mxu1 %v9109_v0 }
 0x952   :  { %6636 = vmatpush1.bf16.msra.mxu0 %v10636_v5  ;;  %v5918_v5 = vrot.slane %v5913_v14, %v9402_v29 }
 0x953   :  { %6637 = vmatprep.subr.bf16.mxu0 %v10640_v20  ;;  %v5663_v20 = vrot.slane %v5654_v47, %v9405_v30 }
 0x954   :  { %8290 = vmatpush3.bf16.msra.mxu1 %v8867_v41 }
 0x955   :  { %8291 = vmatprep.subr.bf16.mxu1 %v9109_v0 }
 0x956   :  { %6638 = vmatpush1.bf16.msra.mxu0 %v10643_v53  ;;  %v5922_v53 = vrot.slane %v5913_v14, %v9405_v30 }
 0x957   :  { %6639 = vmatprep.subr.bf16.mxu0 %v10646_v57  ;;  %v8347_v57 = vadd.f32 %v5918_v5, %v5659_v9 }
 0x958   :  { %8292 = vmatpush3.bf16.msra.mxu1 %v8868_v60 }
 0x959   :  { %8293 = vmatprep.subr.bf16.mxu1 %v9109_v0 }
 0x95a   :  { %6640 = vmatpush1.bf16.msra.mxu0 %v10649_v28 }
 0x95b   :  { %6641 = vmatprep.subr.bf16.mxu0 %v10653_v1 }
 0x95c   :  { %8294 = vmatpush3.bf16.msra.mxu1 %v8869_v10 }
 0x95d   :  { %8295 = vmatprep.subr.bf16.mxu1 %v9109_v0 }
 0x95e   :  { %6642 = vmatpush1.bf16.msra.mxu0 %v10656_v23  ;;  %v8349_v23 = vadd.f32 %v5922_v53, %v5663_v20 }
 0x95f   :  { %6643 = vmatprep.subr.bf16.mxu0 %v10660_v22 }
 0x960   :  { %8296 = vmatpush3.bf16.msra.mxu1 %v8870_v35 }
 0x961   :  { %8297 = vmatprep.subr.bf16.mxu1 %v9109_v0 }
 0x962   :  { %6644 = vmatpush1.bf16.msra.mxu0 %v10663_v15 }
 0x963   :  { %6888 = vmatprep.subr.bf16.mxu0 %v10667_v21 }
 0x964   :  { %8298 = vmatpush3.bf16.msra.mxu1 %v8871_v43  ;;  %v6424_v43 = vld [vmem:[#allocation2 + $0x2a] sm:$0x3f] }
 0x965   :  { %8303 = vmatprep.subr.bf16.mxu1 %v9109_v0  ;;  %v6433_v20 = vrot.slane %v6424_v43, 2 }
 0x9d8   :  { %v5874_v39 = vpop.f32.mrb[80].mxu1 }
 0x9d9   :  { %v8241_v44 = vpop.f32.mrb[81].mxu1  ;;  %v5875_v59 = vadd.f32 %v5874_v39, %v5667_v50 }
 0x9da   :  { %v5877_v11 = vpop.f32.mrb[82].mxu1 }
 0x9db   :  { %v8242_v42 = vpop.f32.mrb[83].mxu1 }
 0x9f8   :  { %v6092_v28 = vpop.f32.mrb[56].mxu0  ;;  %v6133_v1 = vpop.f32.mrb[84].mxu1 }
 0x9f9   :  { %v8348_v22 = vadd.f32 %v8347_v57, %v6092_v28  ;;  %v6094_v15 = vpop.f32.mrb[57].mxu0  ;;  %v8261_v21 = vpop.f32.mrb[85].mxu1  ;;  %v6134_v3 = vadd.f32 %v6133_v1, %v5926_v32 }
 0x9fa   :  { %v6096_v62 = vpop.f32.mrb[58].mxu0  ;;  %v6136_v36 = vpop.f32.mrb[86].mxu1  ;;  %v8350_v19 = vadd.f32 %v8349_v23, %v6094_v15 }
 0x9fb   :  { %v7541_v40 = vmul.f32 -1.442695, %v8348_v22  ;;  %v6097_v46 = vpop.f32.mrb[59].mxu0  ;;  %v8262_v24 = vpop.f32.mrb[87].mxu1 }
 0x9fc   :  { %v7542_v49 = vmul.f32 -1.442695, %v8350_v19  ;;  %v6210_v24 = vrot.slane %v6197_v58, %v9408_v31  ;;  %v8873_v58 = vld [vmem:[#allocation7 + $0x20] ss:$12 sps:$4 sm:$0xff]  }
 0x9fd   :  { %9010 = vpow2.f32 %v7541_v40 }
 0x9fe   :  { %9012 = vpow2.f32 %v7542_v49 }
 0xa07   :  { %v9011_v4 = vpop.eup %9010 }
 0xa08   :  { %v6143_v38 = vadd.f32 1.0, %v9011_v4  ;;  %v9013_v16 = vpop.eup %9012 }
 0xa09   :  { %v6150_v45 = vadd.f32 1.0, %v9013_v16  ;;  %v6443_v16 = vrot.slane %v6424_v43, 4 }
 0xa0a   :  { %9014 = vrcp.f32 %v6143_v38 }
 0xa0b   :  { %9016 = vrcp.f32 %v6150_v45 }
 0xa14   :  { %v9015_v54 = vpop.eup %9014 }
 0xa15   :  { %v6153_v52 = vmul.f32 %v9015_v54, %v6134_v3  ;;  %v9017_v28 = vpop.eup %9016 }
 0xa16   :  { %v6156_v1 = vsub.f32 1.0, %v9017_v28  ;;  %v6158_v21 = vmul.f32 %v9017_v28, %v10746_v12 }
 0xa17   :  { %v6154_v41 = vadd.f32 %v6153_v52, %v5875_v59  ;;  %v8872_v52 = vld [vmem:[#allocation7 + $0x8] ss:$12 sps:$4 sm:$0xff]  }
 0xa18   :  { %v6376_v60 = vpop.f32.mrb[60].mxu0  ;;  %v6417_v10 = vpop.f32.mrb[88].mxu1 }
 0xa19   :  { %9018 = vtanh.f32 %v6154_v41  ;;  %v6377_v35 = vadd.f32 %v6376_v60, %v6202_v6  ;;  %v6378_v44 = vpop.f32.mrb[61].mxu0  ;;  %v8281_v11 = vpop.f32.mrb[89].mxu1  ;;  %v6418_v49 = vadd.f32 %v6417_v10, %v6210_v24 }
 0xa1a   :  { %v6379_v42 = vadd.f32 %v6378_v44, %v6206_v63  ;;  %v6380_v14 = vpop.f32.mrb[62].mxu0  ;;  %v6420_v47 = vpop.f32.mrb[90].mxu1  ;;  %v8874_v63 = vld [vmem:[#allocation7 + $0x38] ss:$12 sps:$4 sm:$0xff]  }
 0xa1b   :  { %v6425_v9 = vadd.f32 %v6424_v43, %v6377_v35  ;;  %v6381_v5 = vpop.f32.mrb[63].mxu0  ;;  %v8282_v39 = vpop.f32.mrb[91].mxu1 }
 0xa1c   :  { %v6435_v57 = vadd.f32 %v6433_v20, %v6379_v42 }
 0xa1d   :  { %v7567_v53 = vmul.f32 -1.442695, %v6425_v9 }
 0xa1e   :  { %v7568_v23 = vmul.f32 -1.442695, %v6435_v57 }
 0xa1f   :  { %9020 = vpow2.f32 %v7567_v53 }
 0xa20   :  { %9022 = vpow2.f32 %v7568_v23 }
 0xa23   :  { %v9019_v22 = vpop.eup %9018 }
 0xa24   :  { %v6157_v15 = vmul.f32 %v9019_v22, %v6156_v1 }
 0xa26   :  { %v6159_v62 = vadd.f32 %v6158_v21, %v6157_v15 }
 0xa28   :  { %6161 = vst [vmem:[#allocation4] sm:$0x3] %v6159_v62 }
 0xa29   :  { %v9021_v36 = vpop.eup %9020 }
 0xa2a   :  { %v6429_v40 = vadd.f32 1.0, %v9021_v36  ;;  %v9023_v46 = vpop.eup %9022 }
 0xa2b   :  { %v6439_v19 = vadd.f32 1.0, %v9023_v46 }
 0xa2c   :  { %9024 = vrcp.f32 %v6429_v40 }
 0xa2d   :  { %9026 = vrcp.f32 %v6439_v19 }
 0xa36   :  { %v9025_v4 = vpop.eup %9024 }
 0xa37   :  { %v6442_v38 = vmul.f32 %v9025_v4, %v6418_v49  ;;  %v9027_v50 = vpop.eup %9026 }
 0xa38   :  { %v6447_v45 = vsub.f32 1.0, %v9027_v50  ;;  %v6449_v54 = vmul.f32 %v9027_v50, %v10801_v56 }
 0xa39   :  { %v6445_v32 = vadd.f32 %v6443_v16, %v6442_v38 }
 0xa3b   :  { %9028 = vtanh.f32 %v6445_v32 }
 0xa45   :  { %v9029_v12 = vpop.eup %9028 }
 0xa46   :  { %v6448_v3 = vmul.f32 %v9029_v12, %v6447_v45 }
 0xa48   :  { %v6450_v59 = vadd.f32 %v6449_v54, %v6448_v3 }
 0xa4a   :  { %v6451_v6 = vpack.c.bf16 %v6450_v59, %v6450_v59  ;;  %6990 = vst [vmem:[#allocation3] sm:$0x3] %v6450_v59 }
 0xa4c   :  { %6662 = vmatmul.mubr.bf16.vlgmr.msra.gmra.mrb[64].mxu0 %v6451_v6  ;;  %8300 = vmatmul.mubr.bf16.vlgmr.msra.gmra.mrb[92].mxu1 %v6451_v6 }
 0xa4d   :  { %6889 = vmatpush1.bf16.msra.mxu0 %v10692_v61  ;;  %8304 = vmatpush3.bf16.msra.mxu1 %v8872_v52  ;;  %v8876_v61 = vld [vmem:[#allocation7 + $0x68] ss:$12 sps:$4 sm:$0xff]  }
 0xa4e   :  { %6890 = vmatprep.subr.bf16.mxu0 %v10694_v55  ;;  %8305 = vmatprep.subr.bf16.mxu1 %v9109_v0  ;;  %v8877_v55 = vld [vmem:[#allocation7 + $0x80] ss:$12 sps:$4 sm:$0xff]  }
 0xa4f   :  { %6920 = vmatprep.mubr.bf16.mxu0 %v9110_v2  ;;  %8319 = vmatprep.mubr.msk.bf16.mxu1 %vm9113_vm2, %v9109_v0  ;;  %v8875_v2 = vld [vmem:[#allocation7 + $0x50] ss:$12 sps:$4 sm:$0xff]  }
 0xa51   :  { %v6992_v56 = vld [vmem:[#allocation3] sm:$0x3]  ;;  %6891 = vmatpush1.bf16.msra.mxu0 %v10697_v17  ;;  %8306 = vmatpush3.bf16.msra.mxu1 %v8873_v58  ;;  %v8878_v17 = vld [vmem:[#allocation7 + $0x98] ss:$12 sps:$4 sm:$0xff]  }
 0xa52   :  { %6993 = vst [vmem:[%s10909_s11] sm:$0x3] %v6992_v56  ;;  %6892 = vmatprep.subr.bf16.mxu0 %v10701_v33  ;;  %8307 = vmatprep.subr.bf16.mxu1 %v9109_v0  ;;  %v8879_v33 = vld [vmem:[#allocation7 + $0xb0] ss:$12 sps:$4 sm:$0xff]  }
 0xa55   :  { %6893 = vmatpush1.bf16.msra.mxu0 %v10707_v8  ;;  %8308 = vmatpush3.bf16.msra.mxu1 %v8874_v63  ;;  %v6163_v8 = vld [vmem:[#allocation4] sm:$0x3] }
 0xa56   :  { %6894 = vmatprep.subr.bf16.mxu0 %v10711_v25  ;;  %8309 = vmatprep.subr.bf16.mxu1 %v9109_v0  ;;  %v6710_v25 = vpack.c.bf16 %v6163_v8, %v6163_v8 }
 0xa59   :  { %6895 = vmatpush1.bf16.msra.mxu0 %v10714_v7  ;;  %8310 = vmatpush3.bf16.msra.mxu1 %v8875_v2 }
 0xa5a   :  { %6896 = vmatprep.subr.bf16.mxu0 %v10718_v26  ;;  %8311 = vmatprep.subr.bf16.mxu1 %v9109_v0 }
 0xa5d   :  { %6897 = vmatpush1.bf16.msra.mxu0 %v10721_v13  ;;  %8312 = vmatpush3.bf16.msra.mxu1 %v8876_v61 }
 0xa5e   :  { %6898 = vmatprep.subr.bf16.mxu0 %v10725_v27  ;;  %8313 = vmatprep.subr.bf16.mxu1 %v9109_v0 }
 0xa61   :  { %6899 = vmatpush1.bf16.msra.mxu0 %v10728_v34  ;;  %8314 = vmatpush3.bf16.msra.mxu1 %v8877_v55  ;;  %v6743_v34 = vld [vmem:[%s10908_s10] sm:$0x7] }
 0xa62   :  { %6900 = vmatprep.subr.bf16.mxu0 %v10732_v51  ;;  %8315 = vmatprep.subr.bf16.mxu1 %v9109_v0  ;;  %v6484_v51 = vld [vmem:[%s10907_s9] sm:$0x7]  ;;  %v6756_v57 = vrot.slane %v6743_v34, %v9408_v31 }
 0xa63   :  { %v6497_v28 = vrot.slane %v6484_v51, %v9408_v31 }
 0xa65   :  { %6901 = vmatpush1.bf16.msra.mxu0 %v10735_v18  ;;  %8316 = vmatpush3.bf16.msra.mxu1 %v8878_v17  ;;  %v6748_v18 = vrot.slane %v6743_v34, %v9402_v29 }
 0xa66   :  { %6902 = vmatprep.subr.bf16.mxu0 %v10739_v37  ;;  %8317 = vmatprep.subr.bf16.mxu1 %v9109_v0  ;;  %v6489_v0 = vrot.slane %v6484_v51, %v9402_v29  ;;  %v6493_v37 = vrot.slane %v6484_v51, %v9405_v30 }
 0xa68   :  { %v8351_v41 = vadd.f32 %v6748_v18, %v6489_v0 }
 0xa69   :  { %6903 = vmatpush1.bf16.msra.mxu0 %v10742_v48  ;;  %8318 = vmatpush3.bf16.msra.mxu1 %v8879_v33  ;;  %v6752_v48 = vrot.slane %v6743_v34, %v9405_v30 }
 0xa6b   :  { %v8353_v35 = vadd.f32 %v6752_v48, %v6493_v37 }
 0xa6c   :  { %6921 = vmatmul.mubr.bf16.vlgmr.msra.gmra.mrb[64].mxu0 %v6710_v25  ;;  %8320 = vmatmul.mubr.bf16.vlgmr.msra.gmra.mrb[96].mxu1 %v6710_v25 }
 0xb1f   :  { %v6704_v7 = vpop.f32.mrb[92].mxu1 }
 0xb20   :  { %v8301_v26 = vpop.f32.mrb[93].mxu1  ;;  %v6705_v15 = vadd.f32 %v6704_v7, %v6497_v28 }
 0xb21   :  { %v6707_v13 = vpop.f32.mrb[94].mxu1 }
 0xb22   :  { %v8302_v27 = vpop.f32.mrb[95].mxu1 }
 0xb3f   :  { %v6922_v60 = vpop.f32.mrb[64].mxu0  ;;  %v6963_v10 = vpop.f32.mrb[96].mxu1 }
 0xb40   :  { %v8352_v43 = vadd.f32 %v8351_v41, %v6922_v60  ;;  %v6924_v44 = vpop.f32.mrb[65].mxu0  ;;  %v8321_v11 = vpop.f32.mrb[97].mxu1  ;;  %v6964_v23 = vadd.f32 %v6963_v10, %v6756_v57 }
 0xb41   :  { %v6926_v42 = vpop.f32.mrb[66].mxu0  ;;  %v6966_v14 = vpop.f32.mrb[98].mxu1  ;;  %v8354_v39 = vadd.f32 %v8353_v35, %v6924_v44 }
 0xb42   :  { %v7617_v47 = vmul.f32 -1.442695, %v8352_v43  ;;  %v6927_v9 = vpop.f32.mrb[67].mxu0  ;;  %v8322_v5 = vpop.f32.mrb[99].mxu1 }
 0xb43   :  { %v7618_v20 = vmul.f32 -1.442695, %v8354_v39 }
 0xb44   :  { %9030 = vpow2.f32 %v7617_v47 }
 0xb45   :  { %9032 = vpow2.f32 %v7618_v20 }
 0xb4e   :  { %v9031_v29 = vpop.eup %9030 }
 0xb4f   :  { %v6973_v53 = vadd.f32 1.0, %v9031_v29  ;;  %v9033_v30 = vpop.eup %9032 }
 0xb50   :  { %v6980_v1 = vadd.f32 1.0, %v9033_v30 }
 0xb51   :  { %9034 = vrcp.f32 %v6973_v53 }
 0xb52   :  { %9036 = vrcp.f32 %v6980_v1 }
 0xb5b   :  { %v9035_v22 = vpop.eup %9034 }
 0xb5c   :  { %v6983_v21 = vmul.f32 %v9035_v22, %v6964_v23  ;;  %v9037_v36 = vpop.eup %9036 }
 0xb5d   :  { %v6986_v40 = vsub.f32 1.0, %v9037_v36  ;;  %v6988_v19 = vmul.f32 %v9037_v36, %v6163_v8 }
 0xb5e   :  { %v6984_v62 = vadd.f32 %v6983_v21, %v6705_v15 }
 0xb60   :  { %9038 = vtanh.f32 %v6984_v62 }
 0xb6a   :  { %v9039_v46 = vpop.eup %9038 }
 0xb6b   :  { %v6987_v24 = vmul.f32 %v9039_v46, %v6986_v40 }
 0xb6d   :  { %v6989_v49 = vadd.f32 %v6988_v19, %v6987_v24 }
 0xb6f   :  { %6991 = vst [vmem:[#allocation4] sm:$0x3] %v6989_v49 }
 0xb76   :  { %v6994_v4 = vld [vmem:[#allocation4] sm:$0x3] }
 0xb77   :  { %6995 = vst [vmem:[%s10910_s12] sm:$0x3] %v6994_v4 }
 0xb78   :  { %7004 = vsyncpa [#allocation6], 1 }
 0xb79   :  { %7005 = vsyncpa [#allocation8], 1 }

// kernel: seq2seq_forward.3
= control target key start
LH: loop header
LB: loop body
LE: loop exit
PB: predicated region body
PF: predicated region fallthrough
CT: control target
= control target key end

     0   :  { %v12267_v2 = vmov 0   ;;  %v9578_v11 = vmov 1983009808   ;;  %v70_v13 = vlaneseq  ;;  %vm305_vm0 = vcmask 1045504   ;;  %s12251_s0 = inlined_call_operand.vmem [shape: f32[8,2,141], index: 0, kind: input, shape index: {}]   ;;  %s12252_s1 = inlined_call_operand.vmem [shape: f32[2,128], index: 1, kind: input, shape index: {}]   ;;  %s12253_s2 = inlined_call_operand.vmem [shape: f32[2,128], index: 2, kind: input, shape index: {}]   ;;  %s12254_s3 = inlined_call_operand.vmem [shape: bf16[141,384], index: 3, kind: input, shape index: {}]   ;;  %s12255_s4 = inlined_call_operand.vmem [shape: bf16[128,384], index: 4, kind: input, shape index: {}]   ;;  %s12256_s5 = inlined_call_operand.vmem [shape: f32[1,384], index: 5, kind: input, shape index: {}]   ;;  %s12257_s6 = inlined_call_operand.vmem [shape: f32[1,384], index: 6, kind: input, shape index: {}]   ;;  %s12258_s7 = inlined_call_operand.vmem [shape: bf16[128,384], index: 7, kind: input, shape index: {}]   ;;  %s12259_s8 = inlined_call_operand.vmem [shape: bf16[128,384], index: 8, kind: input, shape index: {}]   ;;  %s12260_s9 = inlined_call_operand.vmem [shape: f32[1,384], index: 9, kind: input, shape index: {}]   ;;  %s12261_s10 = inlined_call_operand.vmem [shape: f32[1,384], index: 10, kind: input, shape index: {}]   ;;  %s12262_s11 = inlined_call_operand.vmem [shape: bf16[128,128], index: 11, kind: input, shape index: {}]   ;;  %s12263_s12 = inlined_call_operand.vmem [shape: f32[1,128], index: 12, kind: input, shape index: {}]   ;;  %s12264_s13 = inlined_call_operand.hbm [shape: f32[8,2,128], index: 13, kind: output, shape index: {0}]   ;;  %s12265_s14 = inlined_call_operand.vmem [shape: f32[2,128], index: 14, kind: output, shape index: {1}]   ;;  %s12266_s15 = inlined_call_operand.vmem [shape: f32[2,128], index: 15, kind: output, shape index: {2}]  }
   0x1   :  { %v8844_v0 = vld [vmem:[%s12254_s3 + $0x4] ss:$12 sps:$4 sm:$0xff]   ;;  %v8846_v1 = vld [vmem:[%s12254_s3] ss:$12 sps:$4 sm:$0xff]   ;;  %361 = vmatprep.subr.bf16.mxu1 %v12267_v2  ;;  %v8847_v3 = vld [vmem:[%s12254_s3 + $0x8] ss:$12 sps:$4 sm:$0xff]   ;;  %v68_v12 = vunpack.c.l.s4 %v9578_v11 }
   0x2   :  { %318 = vmatprep.subr.bf16.mxu0 %v8844_v0  ;;  %v8848_v4 = vld [vmem:[%s12254_s3 + $0x1c] ss:$12 sps:$4 sm:$0xff]   ;;  %v8850_v5 = vld [vmem:[%s12254_s3 + $0x18] ss:$12 sps:$4 sm:$0xff]   ;;  %362 = vmatpush1.bf16.msra.mxu1 %v8847_v3  ;;  %v8851_v6 = vld [vmem:[%s12254_s3 + $0x20] ss:$12 sps:$4 sm:$0xff]  }
   0x3   :  { %319 = vmatpush1.bf16.msra.mxu0 %v8846_v1  ;;  %363 = vmatprep.subr.bf16.mxu1 %v12267_v2  ;;  %v8852_v7 = vld [vmem:[%s12254_s3 + $0x34] ss:$12 sps:$4 sm:$0xff]   ;;  %v8854_v8 = vld [vmem:[%s12254_s3 + $0x30] ss:$12 sps:$4 sm:$0xff]   ;;  %v8855_v9 = vld [vmem:[%s12254_s3 + $0x38] ss:$12 sps:$4 sm:$0xff]   ;;  %v69_v18 = vunpack.c.0.s8 %v68_v12 }
   0x4   :  { %320 = vmatprep.subr.bf16.mxu0 %v8848_v4  ;;  %v8856_v10 = vld [vmem:[%s12254_s3 + $0x4c] ss:$12 sps:$4 sm:$0xff]   ;;  %v8858_v14 = vld [vmem:[%s12254_s3 + $0x48] ss:$12 sps:$4 sm:$0xff]   ;;  %v8859_v15 = vld [vmem:[%s12254_s3 + $0x50] ss:$12 sps:$4 sm:$0xff]  }
   0x5   :  { %v8860_v16 = vld [vmem:[%s12254_s3 + $0x64] ss:$12 sps:$4 sm:$0xff]   ;;  %v8862_v17 = vld [vmem:[%s12254_s3 + $0x60] ss:$12 sps:$4 sm:$0xff]   ;;  %v9711_v19 = vshrl.u32 %v70_v13, 7  ;;  %vm306_vm1 = vcmask 1046528  }
   0x6   :  { %364 = vmatpush1.bf16.msra.mxu1 %v8851_v6  ;;  %v8863_v20 = vld [vmem:[%s12254_s3 + $0x68] ss:$12 sps:$4 sm:$0xff]   ;;  %v8866_v22 = vld [vmem:[%s12254_s3 + $0x78] ss:$12 sps:$4 sm:$0xff]   ;;  %v8867_v24 = vld [vmem:[%s12254_s3 + $0x80] ss:$12 sps:$4 sm:$0xff]  }
   0x7   :  { %321 = vmatpush1.bf16.msra.mxu0 %v8850_v5  ;;  %365 = vmatprep.subr.bf16.mxu1 %v12267_v2  ;;  %v8864_v21 = vld [vmem:[%s12254_s3 + $0x7c] ss:$12 sps:$4 sm:$0xff]   ;;  %v9724_v23 = vsub.s32 %v69_v18, %v9711_v19  ;;  %v9549_v25 = vld.sshfl [vmem:[%s12251_s0] sm:$0xff pattern:$0x76325410]  ;;  %v9579_v29 = vmov 65535  }
   0x8   :  { %322 = vmatprep.subr.bf16.mxu0 %v8852_v7  ;;  %v8868_v26 = vld [vmem:[%s12254_s3 + $0x94] ss:$12 sps:$4 sm:$0xff]   ;;  %v9550_v27 = vld.sshfl [vmem:[%s12251_s0 + $0x8] sm:$0xff pattern:$0x76325410]  ;;  %v307_v30 = vsel %vm305_vm0, 4294967295, %v9579_v29 }
   0x9   :  { %12273 = vst [vmem:[#allocation9_spill] sm:$0xff] %v9724_v23  ;;  %v8870_v28 = vld [vmem:[%s12254_s3 + $0x90] ss:$12 sps:$4 sm:$0xff]   ;;  %v8871_v32 = vld [vmem:[%s12254_s3 + $0x98] ss:$12 sps:$4 sm:$0xff]   ;;  %v308_v36 = vsel %vm306_vm1, %v307_v30, 0  ;;  %v82_v37 = vcombine.high %v9549_v25, %v9550_v27  ;;  %v81_v45 = vcombine.low %v9549_v25, %v9550_v27 }
   0xa   :  { %366 = vmatpush1.bf16.msra.mxu1 %v8855_v9  ;;  %v9551_v31 = vld.sshfl [vmem:[%s12251_s0 + $0x10] sm:$0xff pattern:$0x76325410]  ;;  %v8872_v33 = vld [vmem:[%s12254_s3 + $0xac] ss:$12 sps:$4 sm:$0xff]   ;;  %vm301_vm2 = vcmask 105472  }
   0xb   :  { %323 = vmatpush1.bf16.msra.mxu0 %v8854_v8  ;;  %367 = vmatprep.subr.bf16.mxu1 %v12267_v2  ;;  %v8876_v34 = vld [vmem:[%s12254_s3 + $0xc4] ss:$12 sps:$4 sm:$0x7f]   ;;  %v9552_v35 = vld.sshfl [vmem:[%s12251_s0 + $0x18] sm:$0xff pattern:$0x76325410] }
   0xc   :  { %324 = vmatprep.subr.bf16.mxu0 %v8856_v10  ;;  %v8874_v38 = vld [vmem:[%s12254_s3 + $0xa8] ss:$12 sps:$4 sm:$0xff]   ;;  %v8878_v39 = vld [vmem:[%s12254_s3 + $0xc0] ss:$12 sps:$4 sm:$0x7f]   ;;  %v313_v41 = vand.u32 %v8876_v34, %v308_v36  ;;  %v100_v43 = vcombine.high %v9551_v31, %v9552_v35  ;;  %v99_v46 = vcombine.low %v9551_v31, %v9552_v35  ;;  %v12269_v54 = vmov 0.0  }
   0xd   :  { %v8875_v40 = vld [vmem:[%s12254_s3 + $0xb0] ss:$12 sps:$4 sm:$0xff]   ;;  %v8879_v42 = vld [vmem:[%s12254_s3 + $0xc8] ss:$12 sps:$4 sm:$0x7f]   ;;  %v310_v47 = vand.u32 %v8878_v39, %v308_v36  ;;  %vm9581_vm3 = vmmov 0  }
   0xe   :  { %368 = vmatpush1.bf16.msra.mxu1 %v8859_v15  ;;  %v106_v44 = vpack.c.bf16 %v100_v43, %v82_v37  ;;  %v316_v48 = vand.u32 %v8879_v42, %v308_v36  ;;  %v8886_v49 = vld [vmem:[%s12255_s4 + $0x4] ss:$12 sps:$4 sm:$0xff]   ;;  %v105_v50 = vpack.c.bf16 %v99_v46, %v81_v45  ;;  %v8884_v51 = vld [vmem:[%s12255_s4] ss:$12 sps:$4 sm:$0xff]   ;;  %v8889_v52 = vld [vmem:[%s12255_s4 + $0x1c] ss:$12 sps:$4 sm:$0xff]  }
   0xf   :  { %325 = vmatpush1.bf16.msra.mxu0 %v8858_v14  ;;  %369 = vmatprep.subr.bf16.mxu1 %v12267_v2  ;;  %v8905_v53 = vld [vmem:[%s12255_s4 + $0x8] ss:$12 sps:$4 sm:$0xff]   ;;  %v494_v55 = vld [vmem:[%s12252_s1] sm:$0x3]  ;;  %v8887_v56 = vld [vmem:[%s12255_s4 + $0x18] ss:$12 sps:$4 sm:$0xff]  }
  0x10   :  { %326 = vmatprep.subr.bf16.mxu0 %v8860_v16  ;;  %7424 = vmatprep.mubr.msk.bf16.mxu0 %vm301_vm2, %v106_v44  ;;  %495 = vst [vmem:[#allocation4] sm:$0x3] %v494_v55  ;;  %v8892_v57 = vld [vmem:[%s12255_s4 + $0x34] ss:$12 sps:$4 sm:$0xff]   ;;  %v8890_v59 = vld [vmem:[%s12255_s4 + $0x30] ss:$12 sps:$4 sm:$0xff]  }
  0x11   :  { %7425 = vmatprep.mubr.msk.bf16.mxu1 %vm301_vm2, %v106_v44  ;;  %v8909_v58 = vld [vmem:[%s12255_s4 + $0x20] ss:$12 sps:$4 sm:$0xff]   ;;  %v8910_v61 = vld [vmem:[%s12255_s4 + $0x38] ss:$12 sps:$4 sm:$0xff]   ;;  %v8893_v62 = vld [vmem:[%s12255_s4 + $0x48] ss:$12 sps:$4 sm:$0xff]  }
  0x12   :  { %370 = vmatpush1.bf16.msra.mxu1 %v8863_v20  ;;  %v8895_v60 = vld [vmem:[%s12255_s4 + $0x4c] ss:$12 sps:$4 sm:$0xff]   ;;  %v8898_v63 = vld [vmem:[%s12255_s4 + $0x64] ss:$12 sps:$4 sm:$0xff]   ;;  %v8901_v3 = vld [vmem:[%s12255_s4 + $0x7c] ss:$12 sps:$4 sm:$0xff]  }
  0x13   :  { %327 = vmatpush1.bf16.msra.mxu0 %v8862_v17  ;;  %371 = vmatprep.subr.bf16.mxu1 %v12267_v2  ;;  %v8911_v0 = vld [vmem:[%s12255_s4 + $0x50] ss:$12 sps:$4 sm:$0xff]   ;;  %v8896_v1 = vld [vmem:[%s12255_s4 + $0x60] ss:$12 sps:$4 sm:$0xff]   ;;  %v8912_v4 = vld [vmem:[%s12255_s4 + $0x68] ss:$12 sps:$4 sm:$0xff]  }
  0x14   :  { %328 = vmatprep.subr.bf16.mxu0 %v8864_v21  ;;  %v8899_v5 = vld [vmem:[%s12255_s4 + $0x78] ss:$12 sps:$4 sm:$0xff]   ;;  %v8904_v6 = vld [vmem:[%s12255_s4 + $0x94] ss:$12 sps:$4 sm:$0xff]   ;;  %v8902_v8 = vld [vmem:[%s12255_s4 + $0x90] ss:$12 sps:$4 sm:$0xff]  }
  0x15   :  { %v8913_v7 = vld [vmem:[%s12255_s4 + $0x80] ss:$12 sps:$4 sm:$0xff]   ;;  %v8914_v10 = vld [vmem:[%s12255_s4 + $0x98] ss:$12 sps:$4 sm:$0xff]   ;;  %v8906_v11 = vld [vmem:[%s12255_s4 + $0xa8] ss:$12 sps:$4 sm:$0xff]  }
  0x16   :  { %372 = vmatpush1.bf16.msra.mxu1 %v8867_v24  ;;  %v8908_v9 = vld [vmem:[%s12255_s4 + $0xac] ss:$12 sps:$4 sm:$0xff]   ;;  %v8915_v13 = vld [vmem:[%s12255_s4 + $0xb0] ss:$12 sps:$4 sm:$0xff]   ;;  %v8919_v17 = vld [vmem:[%s12258_s7 + $0x8] ss:$12 sps:$4 sm:$0xff]  }
  0x17   :  { %329 = vmatpush1.bf16.msra.mxu0 %v8866_v22  ;;  %373 = vmatprep.subr.bf16.mxu1 %v12267_v2  ;;  %v498_v12 = vld [vmem:[#allocation4] sm:$0x3]  ;;  %v9865_v15 = vld [vmem:[%s12258_s7 + $0x4] ss:$12 sps:$4 sm:$0xff]   ;;  %v9885_v20 = vld [vmem:[%s12258_s7 + $0x1c] ss:$12 sps:$4 sm:$0xff]  }
  0x18   :  { %330 = vmatprep.subr.bf16.mxu0 %v8868_v26  ;;  %v500_v14 = vpack.c.bf16 %v498_v12, %v498_v12  ;;  %v9870_v16 = vld [vmem:[%s12258_s7] ss:$12 sps:$4 sm:$0xff]   ;;  %v9880_v18 = vld [vmem:[%s12258_s7 + $0x18] ss:$12 sps:$4 sm:$0xff]   ;;  %v9902_v24 = vld [vmem:[%s12258_s7 + $0x30] ss:$12 sps:$4 sm:$0xff]  }
  0x19   :  { %v8923_v21 = vld [vmem:[%s12258_s7 + $0x20] ss:$12 sps:$4 sm:$0xff]   ;;  %v8927_v25 = vld [vmem:[%s12258_s7 + $0x38] ss:$12 sps:$4 sm:$0xff]   ;;  %v9918_v27 = vld [vmem:[%s12258_s7 + $0x48] ss:$12 sps:$4 sm:$0xff]  }
  0x1a   :  { %374 = vmatpush1.bf16.msra.mxu1 %v8871_v32  ;;  %v9896_v22 = vld [vmem:[%s12258_s7 + $0x34] ss:$12 sps:$4 sm:$0xff]   ;;  %v9912_v26 = vld [vmem:[%s12258_s7 + $0x4c] ss:$12 sps:$4 sm:$0xff]   ;;  %v9928_v29 = vld [vmem:[%s12258_s7 + $0x64] ss:$12 sps:$4 sm:$0xff]  }
  0x1b   :  { %331 = vmatpush1.bf16.msra.mxu0 %v8870_v28  ;;  %375 = vmatprep.subr.bf16.mxu1 %v12267_v2  ;;  %v8931_v28 = vld [vmem:[%s12258_s7 + $0x50] ss:$12 sps:$4 sm:$0xff]   ;;  %v9934_v30 = vld [vmem:[%s12258_s7 + $0x60] ss:$12 sps:$4 sm:$0xff]   ;;  %v8935_v31 = vld [vmem:[%s12258_s7 + $0x68] ss:$12 sps:$4 sm:$0xff]  }
  0x1c   :  { %332 = vmatprep.subr.bf16.mxu0 %v8872_v33  ;;  %v9943_v32 = vld [vmem:[%s12258_s7 + $0x7c] ss:$12 sps:$4 sm:$0xff]   ;;  %v9949_v33 = vld [vmem:[%s12258_s7 + $0x78] ss:$12 sps:$4 sm:$0xff]   ;;  %v8939_v34 = vld [vmem:[%s12258_s7 + $0x80] ss:$12 sps:$4 sm:$0xff]  }
  0x1d   :  { %v9959_v35 = vld [vmem:[%s12258_s7 + $0x94] ss:$12 sps:$4 sm:$0xff]   ;;  %v9964_v36 = vld [vmem:[%s12258_s7 + $0x90] ss:$12 sps:$4 sm:$0xff]   ;;  %v8943_v37 = vld [vmem:[%s12258_s7 + $0x98] ss:$12 sps:$4 sm:$0xff]  }
  0x1e   :  { %376 = vmatpush1.bf16.msra.mxu1 %v8875_v40  ;;  %v9980_v39 = vld [vmem:[%s12258_s7 + $0xa8] ss:$12 sps:$4 sm:$0xff]   ;;  %v8947_v40 = vld [vmem:[%s12258_s7 + $0xb0] ss:$12 sps:$4 sm:$0xff]   ;;  %v496_v42 = vld [vmem:[%s12253_s2] sm:$0x3] }
  0x1f   :  { %333 = vmatpush1.bf16.msra.mxu0 %v8874_v38  ;;  %377 = vmatprep.subr.bf16.mxu1 %v12267_v2  ;;  %v9972_v38 = vld [vmem:[%s12258_s7 + $0xac] ss:$12 sps:$4 sm:$0xff]   ;;  %497 = vst [vmem:[#allocation5] sm:$0x3] %v496_v42  ;;  %v10000_v43 = vsub.s32 0, %v9711_v19  ;;  %v10003_v44 = vsub.s32 1, %v9711_v19 }
  0x20   :  { %334 = vmatprep.subr.bf16.mxu0 %v313_v41  ;;  %v9988_v41 = vld [vmem:[%s12259_s8 + $0x4] ss:$12 sps:$4 sm:$0xff]   ;;  %v10006_v45 = vsub.s32 2, %v9711_v19  ;;  %v143_v46 = vld [vmem:[%s12256_s5] sm:$0x7] }
  0x22   :  { %378 = vmatpush1.bf16.msra.mxu1 %v316_v48  ;;  %v152_v48 = vrot.slane %v143_v46, %v10003_v44 }
  0x23   :  { %335 = vmatpush1.bf16.msra.mxu0 %v310_v47  ;;  %8272 = vmatprep.subr.bf16.mxu1 %v12269_v54  ;;  %v148_v47 = vrot.slane %v143_v46, %v10000_v43 }
  0x24   :  { %678 = vmatprep.subr.bf16.mxu0 %v8886_v49  ;;  %v156_v49 = vrot.slane %v143_v46, %v10006_v45 }
  0x25   :  { %394 = vmatmul.mubr.bf16.vlgmr.msra.gmra.mrb[0].mxu1 %v105_v50 }
  0x26   :  { %351 = vmatmul.mubr.bf16.vlgmr.msra.gmra.mrb[0].mxu0 %v105_v50  ;;  %8273 = vmatpush3.bf16.msra.mxu1 %v8905_v53 }
  0x27   :  { %679 = vmatpush1.bf16.msra.mxu0 %v8884_v51  ;;  %8274 = vmatprep.subr.bf16.mxu1 %v12269_v54 }
  0x28   :  { %680 = vmatprep.subr.bf16.mxu0 %v8889_v52  ;;  %710 = vmatprep.mubr.bf16.mxu0 %v12267_v2 }
  0x29   :  { %8288 = vmatprep.mubr.msk.bf16.mxu1 %vm9581_vm3, %v12269_v54 }
  0x2a   :  { %8275 = vmatpush3.bf16.msra.mxu1 %v8909_v58 }
  0x2b   :  { %681 = vmatpush1.bf16.msra.mxu0 %v8887_v56  ;;  %8276 = vmatprep.subr.bf16.mxu1 %v12269_v54 }
  0x2c   :  { %682 = vmatprep.subr.bf16.mxu0 %v8892_v57 }
  0x2e   :  { %8277 = vmatpush3.bf16.msra.mxu1 %v8910_v61 }
  0x2f   :  { %683 = vmatpush1.bf16.msra.mxu0 %v8890_v59  ;;  %8278 = vmatprep.subr.bf16.mxu1 %v12269_v54 }
  0x30   :  { %684 = vmatprep.subr.bf16.mxu0 %v8895_v60 }
  0x32   :  { %8279 = vmatpush3.bf16.msra.mxu1 %v8911_v0 }
  0x33   :  { %685 = vmatpush1.bf16.msra.mxu0 %v8893_v62  ;;  %8280 = vmatprep.subr.bf16.mxu1 %v12269_v54 }
  0x34   :  { %686 = vmatprep.subr.bf16.mxu0 %v8898_v63 }
  0x36   :  { %8281 = vmatpush3.bf16.msra.mxu1 %v8912_v4 }
  0x37   :  { %687 = vmatpush1.bf16.msra.mxu0 %v8896_v1  ;;  %8282 = vmatprep.subr.bf16.mxu1 %v12269_v54 }
  0x38   :  { %688 = vmatprep.subr.bf16.mxu0 %v8901_v3 }
  0x3a   :  { %8283 = vmatpush3.bf16.msra.mxu1 %v8913_v7 }
  0x3b   :  { %689 = vmatpush1.bf16.msra.mxu0 %v8899_v5  ;;  %8284 = vmatprep.subr.bf16.mxu1 %v12269_v54 }
  0x3c   :  { %690 = vmatprep.subr.bf16.mxu0 %v8904_v6 }
  0x3e   :  { %8285 = vmatpush3.bf16.msra.mxu1 %v8914_v10 }
  0x3f   :  { %691 = vmatpush1.bf16.msra.mxu0 %v8902_v8  ;;  %8286 = vmatprep.subr.bf16.mxu1 %v12269_v54 }
  0x40   :  { %692 = vmatprep.subr.bf16.mxu0 %v8908_v9 }
  0x42   :  { %8287 = vmatpush3.bf16.msra.mxu1 %v8915_v13 }
  0x43   :  { %693 = vmatpush1.bf16.msra.mxu0 %v8906_v11  ;;  %8292 = vmatprep.subr.bf16.mxu1 %v12269_v54 }
  0x44   :  { %964 = vmatprep.subr.bf16.mxu0 %v9865_v15 }
  0x45   :  { %8289 = vmatmul.mubr.bf16.vlgmr.msra.gmra.mrb[4].mxu1 %v500_v14 }
  0x46   :  { %711 = vmatmul.mubr.bf16.vlgmr.msra.gmra.mrb[4].mxu0 %v500_v14  ;;  %8308 = vmatprep.mubr.msk.bf16.mxu1 %vm9581_vm3, %v12269_v54 }
  0x47   :  { %996 = vmatprep.mubr.bf16.mxu0 %v12267_v2  ;;  %965 = vmatpush1.bf16.msra.mxu0 %v9870_v16 }
  0x48   :  { %8293 = vmatpush3.bf16.msra.mxu1 %v8919_v17  ;;  %966 = vmatprep.subr.bf16.mxu0 %v9885_v20 }
  0x49   :  { %8294 = vmatprep.subr.bf16.mxu1 %v12269_v54 }
  0x4b   :  { %967 = vmatpush1.bf16.msra.mxu0 %v9880_v18 }
  0x4c   :  { %8295 = vmatpush3.bf16.msra.mxu1 %v8923_v21  ;;  %968 = vmatprep.subr.bf16.mxu0 %v9896_v22 }
  0x4d   :  { %8296 = vmatprep.subr.bf16.mxu1 %v12269_v54 }
  0x4f   :  { %969 = vmatpush1.bf16.msra.mxu0 %v9902_v24 }
  0x50   :  { %8297 = vmatpush3.bf16.msra.mxu1 %v8927_v25  ;;  %970 = vmatprep.subr.bf16.mxu0 %v9912_v26 }
  0x51   :  { %8298 = vmatprep.subr.bf16.mxu1 %v12269_v54 }
  0x53   :  { %971 = vmatpush1.bf16.msra.mxu0 %v9918_v27 }
  0x54   :  { %8299 = vmatpush3.bf16.msra.mxu1 %v8931_v28  ;;  %972 = vmatprep.subr.bf16.mxu0 %v9928_v29 }
  0x55   :  { %8300 = vmatprep.subr.bf16.mxu1 %v12269_v54 }
  0x57   :  { %973 = vmatpush1.bf16.msra.mxu0 %v9934_v30 }
  0x58   :  { %8301 = vmatpush3.bf16.msra.mxu1 %v8935_v31  ;;  %974 = vmatprep.subr.bf16.mxu0 %v9943_v32 }
  0x59   :  { %8302 = vmatprep.subr.bf16.mxu1 %v12269_v54 }
  0x5b   :  { %975 = vmatpush1.bf16.msra.mxu0 %v9949_v33 }
  0x5c   :  { %8303 = vmatpush3.bf16.msra.mxu1 %v8939_v34  ;;  %976 = vmatprep.subr.bf16.mxu0 %v9959_v35 }
  0x5d   :  { %8304 = vmatprep.subr.bf16.mxu1 %v12269_v54 }
  0x5f   :  { %977 = vmatpush1.bf16.msra.mxu0 %v9964_v36 }
  0x60   :  { %8305 = vmatpush3.bf16.msra.mxu1 %v8943_v37  ;;  %978 = vmatprep.subr.bf16.mxu0 %v9972_v38 }
  0x61   :  { %8306 = vmatprep.subr.bf16.mxu1 %v12269_v54 }
  0x63   :  { %979 = vmatpush1.bf16.msra.mxu0 %v9980_v39 }
  0x64   :  { %8307 = vmatpush3.bf16.msra.mxu1 %v8947_v40  ;;  %1223 = vmatprep.subr.bf16.mxu0 %v9988_v41 }
  0x65   :  { %8312 = vmatprep.subr.bf16.mxu1 %v12269_v54 }
  0xf8   :  { %v395_v53 = vpop.f32.mrb[0].mxu1 }
  0xf9   :  { %v352_v50 = vpop.f32.mrb[0].mxu0 }
  0xfa   :  { %v353_v51 = vadd.f32 %v352_v50, %v148_v47  ;;  %v354_v52 = vpop.f32.mrb[1].mxu0 }
  0xfb   :  { %21 = vsyncpa [#allocation7], 0  ;;  %v355_v55 = vadd.f32 %v354_v52, %v152_v48  ;;  %v396_v56 = vadd.f32 %v395_v53, %v156_v49  ;;  %v356_v57 = vpop.f32.mrb[2].mxu0  ;;  %v397_v19 = vpop.f32.mrb[1].mxu1  ;;  %v533_v42 = vld [vmem:[%s12257_s6] sm:$0x7] }
  0xfc   :  { %v357_v58 = vadd.f32 %v356_v57, %v148_v47  ;;  %v358_v59 = vpop.f32.mrb[3].mxu0  ;;  %v398_v60 = vpop.f32.mrb[2].mxu1  ;;  %v538_v46 = vrot.slane %v533_v42, %v10000_v43  ;;  %v542_v47 = vrot.slane %v533_v42, %v10003_v44 }
  0xfd   :  { %v408_v61 = vcombine.low %v353_v51, %v355_v55  ;;  %v409_v62 = vcombine.high %v353_v51, %v355_v55  ;;  %v410_v63 = vcombine.high %v396_v56, %v396_v56  ;;  %v431_v0 = vrot.slane %v396_v56, %v9724_v23  ;;  %v400_v1 = vpop.f32.mrb[3].mxu1 }
  0xfe   :  { %v359_v3 = vadd.f32 %v358_v59, %v152_v48  ;;  %v399_v4 = vadd.f32 %v398_v60, %v156_v49 }
  0xff   :  { %v417_v5 = vrot.slane %v408_v61, %v9724_v23  ;;  %v424_v6 = vrot.slane %v409_v62, %v9724_v23  ;;  %v438_v7 = vrot.slane %v410_v63, %v9724_v23 }
 0x100   :  { %v443_v8 = vcombine.low %v357_v58, %v359_v3  ;;  %v444_v9 = vcombine.high %v357_v58, %v359_v3  ;;  %v445_v10 = vcombine.high %v399_v4, %v399_v4  ;;  %v466_v11 = vrot.slane %v399_v4, %v9724_v23 }
 0x101   :  { %v439_v12 = vcombine.low %v417_v5, %v431_v0  ;;  %v440_v13 = vcombine.high %v417_v5, %v431_v0  ;;  %v441_v14 = vcombine.low %v424_v6, %v438_v7  ;;  %v442_v17 = vcombine.high %v424_v6, %v438_v7 }
 0x102   :  { %v452_v21 = vrot.slane %v443_v8, %v9724_v23  ;;  %v459_v25 = vrot.slane %v444_v9, %v9724_v23  ;;  %v473_v28 = vrot.slane %v445_v10, %v9724_v23  ;;  %v546_v3 = vrot.slane %v533_v42, %v10006_v45  ;;  %v8955_v42 = vld [vmem:[%s12259_s8 + $0x20] ss:$12 sps:$4 sm:$0xff]  }
 0x103   :  { %486 = vst [vmem:[#allocation2] sm:$0x3f] %v439_v12  ;;  %487 = vst [vmem:[#allocation2 + $0x6] sm:$0x3f] %v440_v13 }
 0x104   :  { %488 = vst [vmem:[#allocation2 + $0xc] sm:$0x3f] %v441_v14  ;;  %489 = vst [vmem:[#allocation2 + $0x12] sm:$0x3f] %v442_v17  ;;  %v474_v31 = vcombine.low %v452_v21, %v466_v11  ;;  %v475_v34 = vcombine.high %v452_v21, %v466_v11  ;;  %v476_v37 = vcombine.low %v459_v25, %v473_v28  ;;  %v9532_v17 = vld [vmem:[#allocation4] sm:$0x3] }
 0x105   :  { %v477_v40 = vcombine.high %v459_v25, %v473_v28  ;;  %v10031_v28 = vld [vmem:[%s12259_s8] ss:$12 sps:$4 sm:$0xff]  }
 0x106   :  { %490 = vst [vmem:[#allocation2 + $0x18] sm:$0x3f] %v474_v31  ;;  %491 = vst [vmem:[#allocation2 + $0x1e] sm:$0x3f] %v475_v34  ;;  %v8951_v31 = vld [vmem:[%s12259_s8 + $0x8] ss:$12 sps:$4 sm:$0xff]  }
 0x107   :  { %492 = vst [vmem:[#allocation2 + $0x24] sm:$0x3f] %v476_v37  ;;  %493 = vst [vmem:[#allocation2 + $0x2a] sm:$0x3f] %v477_v40  ;;  %v10039_v37 = vld [vmem:[%s12259_s8 + $0x1c] ss:$12 sps:$4 sm:$0xff]  }
 0x108   :  { %v10045_v40 = vld [vmem:[%s12259_s8 + $0x18] ss:$12 sps:$4 sm:$0xff]  }
 0x10a   :  { %v759_v50 = vld [vmem:[#allocation2] sm:$0x3f] }
 0x10b   :  { %v768_v59 = vrot.slane %v759_v50, 2  ;;  %v778_v9 = vrot.slane %v759_v50, 4 }
 0x118   :  { %v753_v52 = vpop.f32.mrb[4].mxu1 }
 0x119   :  { %v712_v48 = vpop.f32.mrb[4].mxu0  ;;  %v8290_v56 = vpop.f32.mrb[5].mxu1  ;;  %v754_v6 = vadd.f32 %v753_v52, %v546_v3  ;;  %v10090_v52 = vld [vmem:[%s12259_s8 + $0x64] ss:$12 sps:$4 sm:$0xff]   ;;  %v8980_v3 = vld [vmem:[%s12255_s4 + $0x8] ss:$12 sps:$4 sm:$0xff]  }
 0x11a   :  { %v713_v49 = vadd.f32 %v712_v48, %v538_v46  ;;  %v714_v51 = vpop.f32.mrb[5].mxu0  ;;  %v756_v58 = vpop.f32.mrb[6].mxu1  ;;  %v10055_v46 = vld [vmem:[%s12259_s8 + $0x34] ss:$12 sps:$4 sm:$0xff]   ;;  %v8959_v48 = vld [vmem:[%s12259_s8 + $0x38] ss:$12 sps:$4 sm:$0xff]  }
 0x11b   :  { %v715_v53 = vadd.f32 %v714_v51, %v542_v47  ;;  %v716_v55 = vpop.f32.mrb[6].mxu0  ;;  %v8291_v60 = vpop.f32.mrb[7].mxu1  ;;  %v10064_v47 = vld [vmem:[%s12259_s8 + $0x30] ss:$12 sps:$4 sm:$0xff]   ;;  %v10122_v58 = vld [vmem:[%s12259_s8 + $0x94] ss:$12 sps:$4 sm:$0xff]  }
 0x11c   :  { %v760_v57 = vadd.f32 %v759_v50, %v713_v49  ;;  %v717_v19 = vpop.f32.mrb[7].mxu0  ;;  %v10074_v49 = vld [vmem:[%s12259_s8 + $0x4c] ss:$12 sps:$4 sm:$0xff]   ;;  %v10080_v50 = vld [vmem:[%s12259_s8 + $0x48] ss:$12 sps:$4 sm:$0xff]  }
 0x11d   :  { %v770_v62 = vadd.f32 %v768_v59, %v715_v53  ;;  %v8963_v51 = vld [vmem:[%s12259_s8 + $0x50] ss:$12 sps:$4 sm:$0xff]   ;;  %v10096_v53 = vld [vmem:[%s12259_s8 + $0x60] ss:$12 sps:$4 sm:$0xff]   ;;  %v8967_v55 = vld [vmem:[%s12259_s8 + $0x68] ss:$12 sps:$4 sm:$0xff]  }
 0x11e   :  { %v7450_v61 = vmul.f32 -1.442695, %v760_v57  ;;  %v10106_v56 = vld [vmem:[%s12259_s8 + $0x7c] ss:$12 sps:$4 sm:$0xff]   ;;  %v10112_v57 = vld [vmem:[%s12259_s8 + $0x78] ss:$12 sps:$4 sm:$0xff]  }
 0x11f   :  { %v7451_v63 = vmul.f32 -1.442695, %v770_v62  ;;  %v8971_v19 = vld [vmem:[%s12259_s8 + $0x80] ss:$12 sps:$4 sm:$0xff]   ;;  %v10128_v59 = vld [vmem:[%s12259_s8 + $0x90] ss:$12 sps:$4 sm:$0xff]  }
 0x120   :  { %9372 = vpow2.f32 %v7450_v61  ;;  %v8975_v60 = vld [vmem:[%s12259_s8 + $0x98] ss:$12 sps:$4 sm:$0xff]   ;;  %v10144_v62 = vld [vmem:[%s12259_s8 + $0xa8] ss:$12 sps:$4 sm:$0xff]  }
 0x121   :  { %9374 = vpow2.f32 %v7451_v63  ;;  %v10138_v61 = vld [vmem:[%s12259_s8 + $0xac] ss:$12 sps:$4 sm:$0xff]   ;;  %v8979_v63 = vld [vmem:[%s12259_s8 + $0xb0] ss:$12 sps:$4 sm:$0xff]  }
 0x12a   :  { %v9373_v0 = vpop.eup %9372 }
 0x12b   :  { %v764_v1 = vadd.f32 1.0, %v9373_v0  ;;  %v9375_v4 = vpop.eup %9374  ;;  %v10149_v0 = vld [vmem:[#allocation5] sm:$0x3] }
 0x12c   :  { %v774_v5 = vadd.f32 1.0, %v9375_v4  ;;  %v9533_v4 = vld [vmem:[%s12255_s4 + $0x4] ss:$12 sps:$4 sm:$0xff]  }
 0x12d   :  { %9376 = vrcp.f32 %v764_v1  ;;  %v1045_v1 = vpack.c.bf16 %v10149_v0, %v10149_v0 }
 0x12e   :  { %9378 = vrcp.f32 %v774_v5  ;;  %v9534_v5 = vld [vmem:[%s12255_s4] ss:$12 sps:$4 sm:$0xff]  }
 0x137   :  { %v9377_v7 = vpop.eup %9376 }
 0x138   :  { %v777_v8 = vmul.f32 %v9377_v7, %v754_v6  ;;  %v9379_v11 = vpop.eup %9378  ;;  %v8981_v6 = vld [vmem:[%s12255_s4 + $0x20] ss:$12 sps:$4 sm:$0xff]   ;;  %v9535_v7 = vld [vmem:[%s12255_s4 + $0x1c] ss:$12 sps:$4 sm:$0xff]  }
 0x139   :  { %v782_v12 = vsub.f32 1.0, %v9379_v11  ;;  %v784_v21 = vmul.f32 %v9532_v17, %v9379_v11  ;;  %v9538_v11 = vld [vmem:[%s12255_s4 + $0x30] ss:$12 sps:$4 sm:$0xff]   ;;  %v8984_v17 = vld [vmem:[%s12255_s4 + $0x68] ss:$12 sps:$4 sm:$0xff]  }
 0x13a   :  { %v780_v10 = vadd.f32 %v778_v9, %v777_v8  ;;  %v9536_v8 = vld [vmem:[%s12255_s4 + $0x18] ss:$12 sps:$4 sm:$0xff]  }
 0x13b   :  { %v8982_v9 = vld [vmem:[%s12255_s4 + $0x38] ss:$12 sps:$4 sm:$0xff]  }
 0x13c   :  { %9380 = vtanh.f32 %v780_v10  ;;  %v9537_v10 = vld [vmem:[%s12255_s4 + $0x34] ss:$12 sps:$4 sm:$0xff]  }
 0x146   :  { %v9381_v13 = vpop.eup %9380 }
 0x147   :  { %v783_v14 = vmul.f32 %v9381_v13, %v782_v12  ;;  %v8983_v12 = vld [vmem:[%s12255_s4 + $0x50] ss:$12 sps:$4 sm:$0xff]   ;;  %v9539_v13 = vld [vmem:[%s12255_s4 + $0x4c] ss:$12 sps:$4 sm:$0xff]  }
 0x149   :  { %v785_v25 = vadd.f32 %v784_v21, %v783_v14  ;;  %v9540_v14 = vld [vmem:[%s12255_s4 + $0x48] ss:$12 sps:$4 sm:$0xff]   ;;  %v9541_v21 = vld [vmem:[%s12255_s4 + $0x64] ss:$12 sps:$4 sm:$0xff]  }
 0x14b   :  { %v786_v34 = vpack.c.bf16 %v785_v25, %v785_v25  ;;  %1325 = vst [vmem:[#allocation4] sm:$0x3] %v785_v25  ;;  %v9542_v25 = vld [vmem:[%s12255_s4 + $0x60] ss:$12 sps:$4 sm:$0xff]  }
 0x14d   :  { %997 = vmatmul.mubr.bf16.vlgmr.msra.gmra.mrb[8].mxu0 %v786_v34  ;;  %8309 = vmatmul.mubr.bf16.vlgmr.msra.gmra.mrb[8].mxu1 %v786_v34  ;;  %v9543_v34 = vld [vmem:[%s12255_s4 + $0x7c] ss:$12 sps:$4 sm:$0xff]  }
 0x14e   :  { %1224 = vmatpush1.bf16.msra.mxu0 %v10031_v28  ;;  %8313 = vmatpush3.bf16.msra.mxu1 %v8951_v31  ;;  %v8985_v31 = vld [vmem:[%s12255_s4 + $0x80] ss:$12 sps:$4 sm:$0xff]  }
 0x14f   :  { %1225 = vmatprep.subr.bf16.mxu0 %v10039_v37  ;;  %8314 = vmatprep.subr.bf16.mxu1 %v12269_v54 }
 0x150   :  { %1255 = vmatprep.mubr.bf16.mxu0 %v12267_v2  ;;  %8328 = vmatprep.mubr.msk.bf16.mxu1 %vm9581_vm3, %v12269_v54 }
 0x152   :  { %1226 = vmatpush1.bf16.msra.mxu0 %v10045_v40  ;;  %8315 = vmatpush3.bf16.msra.mxu1 %v8955_v42  ;;  %v9544_v42 = vld [vmem:[%s12255_s4 + $0x78] ss:$12 sps:$4 sm:$0xff]  }
 0x153   :  { %1227 = vmatprep.subr.bf16.mxu0 %v10055_v46  ;;  %8316 = vmatprep.subr.bf16.mxu1 %v12269_v54 }
 0x156   :  { %1228 = vmatpush1.bf16.msra.mxu0 %v10064_v47  ;;  %8317 = vmatpush3.bf16.msra.mxu1 %v8959_v48  ;;  %v8986_v48 = vld [vmem:[%s12255_s4 + $0x98] ss:$12 sps:$4 sm:$0xff]  }
 0x157   :  { %1229 = vmatprep.subr.bf16.mxu0 %v10074_v49  ;;  %8318 = vmatprep.subr.bf16.mxu1 %v12269_v54 }
 0x15a   :  { %1230 = vmatpush1.bf16.msra.mxu0 %v10080_v50  ;;  %8319 = vmatpush3.bf16.msra.mxu1 %v8963_v51  ;;  %v9545_v51 = vld [vmem:[%s12255_s4 + $0x94] ss:$12 sps:$4 sm:$0xff]  }
 0x15b   :  { %1231 = vmatprep.subr.bf16.mxu0 %v10090_v52  ;;  %8320 = vmatprep.subr.bf16.mxu1 %v12269_v54 }
 0x15e   :  { %1232 = vmatpush1.bf16.msra.mxu0 %v10096_v53  ;;  %8321 = vmatpush3.bf16.msra.mxu1 %v8967_v55  ;;  %v9546_v55 = vld [vmem:[%s12255_s4 + $0x90] ss:$12 sps:$4 sm:$0xff]  }
 0x15f   :  { %1233 = vmatprep.subr.bf16.mxu0 %v10106_v56  ;;  %8322 = vmatprep.subr.bf16.mxu1 %v12269_v54 }
 0x162   :  { %1234 = vmatpush1.bf16.msra.mxu0 %v10112_v57  ;;  %8323 = vmatpush3.bf16.msra.mxu1 %v8971_v19  ;;  %v8987_v19 = vld [vmem:[%s12255_s4 + $0xb0] ss:$12 sps:$4 sm:$0xff]  }
 0x163   :  { %1235 = vmatprep.subr.bf16.mxu0 %v10122_v58  ;;  %8324 = vmatprep.subr.bf16.mxu1 %v12269_v54 }
 0x166   :  { %1236 = vmatpush1.bf16.msra.mxu0 %v10128_v59  ;;  %8325 = vmatpush3.bf16.msra.mxu1 %v8975_v60  ;;  %v9547_v60 = vld [vmem:[%s12255_s4 + $0xac] ss:$12 sps:$4 sm:$0xff]  }
 0x167   :  { %1237 = vmatprep.subr.bf16.mxu0 %v10138_v61  ;;  %8326 = vmatprep.subr.bf16.mxu1 %v12269_v54 }
 0x16a   :  { %1238 = vmatpush1.bf16.msra.mxu0 %v10144_v62  ;;  %8327 = vmatpush3.bf16.msra.mxu1 %v8979_v63  ;;  %v10236_v63 = vld [vmem:[#allocation4] sm:$0x3] }
 0x16b   :  { %1508 = vmatprep.subr.bf16.mxu0 %v9533_v4  ;;  %8332 = vmatprep.subr.bf16.mxu1 %v12269_v54 }
 0x16d   :  { %1256 = vmatmul.mubr.bf16.vlgmr.msra.gmra.mrb[8].mxu0 %v1045_v1  ;;  %8329 = vmatmul.mubr.bf16.vlgmr.msra.gmra.mrb[12].mxu1 %v1045_v1  ;;  %v9548_v1 = vld [vmem:[%s12255_s4 + $0xa8] ss:$12 sps:$4 sm:$0xff]  }
 0x16e   :  { %1509 = vmatpush1.bf16.msra.mxu0 %v9534_v5  ;;  %8333 = vmatpush3.bf16.msra.mxu1 %v8980_v3  ;;  %v1330_v3 = vpack.c.bf16 %v10236_v63, %v10236_v63 }
 0x16f   :  { %1510 = vmatprep.subr.bf16.mxu0 %v9535_v7  ;;  %8334 = vmatprep.subr.bf16.mxu1 %v12269_v54 }
 0x170   :  { %1540 = vmatprep.mubr.bf16.mxu0 %v12267_v2  ;;  %8348 = vmatprep.mubr.msk.bf16.mxu1 %vm9581_vm3, %v12269_v54 }
 0x172   :  { %1511 = vmatpush1.bf16.msra.mxu0 %v9536_v8  ;;  %8335 = vmatpush3.bf16.msra.mxu1 %v8981_v6 }
 0x173   :  { %1512 = vmatprep.subr.bf16.mxu0 %v9537_v10  ;;  %8336 = vmatprep.subr.bf16.mxu1 %v12269_v54 }
 0x176   :  { %1513 = vmatpush1.bf16.msra.mxu0 %v9538_v11  ;;  %8337 = vmatpush3.bf16.msra.mxu1 %v8982_v9 }
 0x177   :  { %1514 = vmatprep.subr.bf16.mxu0 %v9539_v13  ;;  %8338 = vmatprep.subr.bf16.mxu1 %v12269_v54 }
 0x17a   :  { %1515 = vmatpush1.bf16.msra.mxu0 %v9540_v14  ;;  %8339 = vmatpush3.bf16.msra.mxu1 %v8983_v12 }
 0x17b   :  { %1516 = vmatprep.subr.bf16.mxu0 %v9541_v21  ;;  %8340 = vmatprep.subr.bf16.mxu1 %v12269_v54 }
 0x17e   :  { %1517 = vmatpush1.bf16.msra.mxu0 %v9542_v25  ;;  %8341 = vmatpush3.bf16.msra.mxu1 %v8984_v17 }
 0x17f   :  { %1518 = vmatprep.subr.bf16.mxu0 %v9543_v34  ;;  %8342 = vmatprep.subr.bf16.mxu1 %v12269_v54 }
 0x182   :  { %1519 = vmatpush1.bf16.msra.mxu0 %v9544_v42  ;;  %8343 = vmatpush3.bf16.msra.mxu1 %v8985_v31 }
 0x183   :  { %1520 = vmatprep.subr.bf16.mxu0 %v9545_v51  ;;  %8344 = vmatprep.subr.bf16.mxu1 %v12269_v54 }
 0x186   :  { %1521 = vmatpush1.bf16.msra.mxu0 %v9546_v55  ;;  %8345 = vmatpush3.bf16.msra.mxu1 %v8986_v48 }
 0x187   :  { %1522 = vmatprep.subr.bf16.mxu0 %v9547_v60  ;;  %8346 = vmatprep.subr.bf16.mxu1 %v12269_v54 }
 0x18a   :  { %1523 = vmatpush1.bf16.msra.mxu0 %v9548_v1  ;;  %8347 = vmatpush3.bf16.msra.mxu1 %v8987_v19  ;;  %v1363_v1 = vld [vmem:[%s12257_s6] sm:$0x7] }
 0x18b   :  { %1795 = vmatprep.subr.bf16.mxu0 %v9865_v15  ;;  %8352 = vmatprep.subr.bf16.mxu1 %v12269_v54  ;;  %v8988_v15 = vld [vmem:[%s12258_s7 + $0x8] ss:$12 sps:$4 sm:$0xff]  }
 0x18d   :  { %1541 = vmatmul.mubr.bf16.vlgmr.msra.gmra.mrb[12].mxu0 %v1330_v3  ;;  %8349 = vmatmul.mubr.bf16.vlgmr.msra.gmra.mrb[16].mxu1 %v1330_v3 }
 0x18e   :  { %1796 = vmatpush1.bf16.msra.mxu0 %v9870_v16  ;;  %1827 = vmatprep.mubr.bf16.mxu0 %v12267_v2  ;;  %v8989_v16 = vld [vmem:[%s12258_s7 + $0x20] ss:$12 sps:$4 sm:$0xff]  }
 0x18f   :  { %1797 = vmatprep.subr.bf16.mxu0 %v9885_v20  ;;  %8368 = vmatprep.mubr.msk.bf16.mxu1 %vm9581_vm3, %v12269_v54  ;;  %v8991_v20 = vld [vmem:[%s12258_s7 + $0x50] ss:$12 sps:$4 sm:$0xff]  }
 0x190   :  { %8353 = vmatpush3.bf16.msra.mxu1 %v8988_v15 }
 0x191   :  { %8354 = vmatprep.subr.bf16.mxu1 %v12269_v54 }
 0x192   :  { %1798 = vmatpush1.bf16.msra.mxu0 %v9880_v18  ;;  %v8990_v18 = vld [vmem:[%s12258_s7 + $0x38] ss:$12 sps:$4 sm:$0xff]  }
 0x193   :  { %1799 = vmatprep.subr.bf16.mxu0 %v9896_v22  ;;  %v8992_v22 = vld [vmem:[%s12258_s7 + $0x68] ss:$12 sps:$4 sm:$0xff]  }
 0x194   :  { %8355 = vmatpush3.bf16.msra.mxu1 %v8989_v16 }
 0x195   :  { %8356 = vmatprep.subr.bf16.mxu1 %v12269_v54 }
 0x196   :  { %1800 = vmatpush1.bf16.msra.mxu0 %v9902_v24  ;;  %v8993_v24 = vld [vmem:[%s12258_s7 + $0x80] ss:$12 sps:$4 sm:$0xff]  }
 0x197   :  { %1801 = vmatprep.subr.bf16.mxu0 %v9912_v26  ;;  %v8994_v26 = vld [vmem:[%s12258_s7 + $0x98] ss:$12 sps:$4 sm:$0xff]  }
 0x198   :  { %8357 = vmatpush3.bf16.msra.mxu1 %v8990_v18  ;;  %v1368_v18 = vrot.slane %v1363_v1, %v10000_v43 }
 0x199   :  { %8358 = vmatprep.subr.bf16.mxu1 %v12269_v54 }
 0x19a   :  { %1802 = vmatpush1.bf16.msra.mxu0 %v9918_v27  ;;  %v8995_v27 = vld [vmem:[%s12258_s7 + $0xb0] ss:$12 sps:$4 sm:$0xff]  }
 0x19b   :  { %1803 = vmatprep.subr.bf16.mxu0 %v9928_v29 }
 0x19c   :  { %8359 = vmatpush3.bf16.msra.mxu1 %v8991_v20  ;;  %v1372_v20 = vrot.slane %v1363_v1, %v10003_v44 }
 0x19d   :  { %8360 = vmatprep.subr.bf16.mxu1 %v12269_v54 }
 0x19e   :  { %1804 = vmatpush1.bf16.msra.mxu0 %v9934_v30 }
 0x19f   :  { %1805 = vmatprep.subr.bf16.mxu0 %v9943_v32 }
 0x1a0   :  { %8361 = vmatpush3.bf16.msra.mxu1 %v8992_v22 }
 0x1a1   :  { %8362 = vmatprep.subr.bf16.mxu1 %v12269_v54 }
 0x1a2   :  { %1806 = vmatpush1.bf16.msra.mxu0 %v9949_v33 }
 0x1a3   :  { %1807 = vmatprep.subr.bf16.mxu0 %v9959_v35  ;;  %v1078_v35 = vld [vmem:[%s12261_s10] sm:$0x7] }
 0x1a4   :  { %8363 = vmatpush3.bf16.msra.mxu1 %v8993_v24  ;;  %v1087_v4 = vrot.slane %v1078_v35, %v10003_v44  ;;  %v1091_v48 = vrot.slane %v1078_v35, %v10006_v45 }
 0x1a5   :  { %8364 = vmatprep.subr.bf16.mxu1 %v12269_v54 }
 0x1a6   :  { %1808 = vmatpush1.bf16.msra.mxu0 %v9964_v36  ;;  %v819_v36 = vld [vmem:[%s12260_s9] sm:$0x7] }
 0x1a7   :  { %1809 = vmatprep.subr.bf16.mxu0 %v9972_v38  ;;  %v824_v38 = vrot.slane %v819_v36, %v10000_v43  ;;  %v832_v55 = vrot.slane %v819_v36, %v10006_v45 }
 0x1a8   :  { %8365 = vmatpush3.bf16.msra.mxu1 %v8994_v26 }
 0x1a9   :  { %8366 = vmatprep.subr.bf16.mxu1 %v12269_v54 }
 0x1aa   :  { %1810 = vmatpush1.bf16.msra.mxu0 %v9980_v39  ;;  %v1083_v39 = vrot.slane %v1078_v35, %v10000_v43 }
 0x1ab   :  { %2054 = vmatprep.subr.bf16.mxu0 %v9988_v41  ;;  %v828_v41 = vrot.slane %v819_v36, %v10003_v44 }
 0x1ac   :  { %8367 = vmatpush3.bf16.msra.mxu1 %v8995_v27  ;;  %v8772_v5 = vadd.f32 %v1083_v39, %v824_v38 }
 0x1ad   :  { %8372 = vmatprep.subr.bf16.mxu1 %v12269_v54  ;;  %v8774_v7 = vadd.f32 %v1087_v4, %v828_v41 }
 0x220   :  { %v1039_v29 = vpop.f32.mrb[8].mxu1 }
 0x221   :  { %v8310_v30 = vpop.f32.mrb[9].mxu1  ;;  %v1040_v15 = vadd.f32 %v1039_v29, %v832_v55 }
 0x222   :  { %v1042_v32 = vpop.f32.mrb[10].mxu1  ;;  %v1590_v30 = vld [vmem:[#allocation2 + $0x6] sm:$0x3f] }
 0x223   :  { %v8311_v33 = vpop.f32.mrb[11].mxu1  ;;  %v1599_v4 = vrot.slane %v1590_v30, 2 }
 0x240   :  { %v1257_v6 = vpop.f32.mrb[8].mxu0  ;;  %v1298_v8 = vpop.f32.mrb[12].mxu1 }
 0x241   :  { %v8773_v9 = vadd.f32 %v8772_v5, %v1257_v6  ;;  %v1259_v10 = vpop.f32.mrb[9].mxu0  ;;  %v8330_v11 = vpop.f32.mrb[13].mxu1  ;;  %v1299_v60 = vadd.f32 %v1298_v8, %v1091_v48 }
 0x242   :  { %v1261_v12 = vpop.f32.mrb[10].mxu0  ;;  %v1301_v13 = vpop.f32.mrb[14].mxu1  ;;  %v8775_v25 = vadd.f32 %v8774_v7, %v1259_v10 }
 0x243   :  { %v7500_v14 = vmul.f32 -1.442695, %v8773_v9  ;;  %v1262_v17 = vpop.f32.mrb[11].mxu0  ;;  %v8331_v21 = vpop.f32.mrb[15].mxu1 }
 0x244   :  { %v7501_v31 = vmul.f32 -1.442695, %v8775_v25  ;;  %v1376_v25 = vrot.slane %v1363_v1, %v10006_v45 }
 0x245   :  { %9382 = vpow2.f32 %v7500_v14 }
 0x246   :  { %9384 = vpow2.f32 %v7501_v31 }
 0x24f   :  { %v9383_v34 = vpop.eup %9382 }
 0x250   :  { %v1308_v42 = vadd.f32 1.0, %v9383_v34  ;;  %v9385_v51 = vpop.eup %9384 }
 0x251   :  { %v1315_v19 = vadd.f32 1.0, %v9385_v51  ;;  %v1609_v51 = vrot.slane %v1590_v30, 4 }
 0x252   :  { %9386 = vrcp.f32 %v1308_v42 }
 0x253   :  { %9388 = vrcp.f32 %v1315_v19 }
 0x25c   :  { %v9387_v3 = vpop.eup %9386 }
 0x25d   :  { %v1318_v16 = vmul.f32 %v9387_v3, %v1299_v60  ;;  %v9389_v7 = vpop.eup %9388 }
 0x25e   :  { %v1321_v8 = vsub.f32 1.0, %v9389_v7  ;;  %v1323_v11 = vmul.f32 %v9389_v7, %v10149_v0 }
 0x25f   :  { %v1319_v22 = vadd.f32 %v1318_v16, %v1040_v15 }
 0x260   :  { %v1542_v24 = vpop.f32.mrb[12].mxu0  ;;  %v1583_v26 = vpop.f32.mrb[16].mxu1 }
 0x261   :  { %9390 = vtanh.f32 %v1319_v22  ;;  %v1543_v27 = vadd.f32 %v1542_v24, %v1368_v18  ;;  %v1544_v32 = vpop.f32.mrb[13].mxu0  ;;  %v8350_v33 = vpop.f32.mrb[17].mxu1  ;;  %v1584_v34 = vadd.f32 %v1583_v26, %v1376_v25  ;;  %v8996_v18 = vld [vmem:[%s12259_s8 + $0x8] ss:$12 sps:$4 sm:$0xff]   ;;  %v9015_v22 = vld [vmem:[%s12255_s4 + $0x38] ss:$12 sps:$4 sm:$0xff]  }
 0x262   :  { %v1545_v35 = vadd.f32 %v1544_v32, %v1372_v20  ;;  %v1546_v36 = vpop.f32.mrb[14].mxu0  ;;  %v1586_v38 = vpop.f32.mrb[18].mxu1  ;;  %v8997_v20 = vld [vmem:[%s12259_s8 + $0x20] ss:$12 sps:$4 sm:$0xff]   ;;  %v10428_v26 = vld [vmem:[%s12255_s4 + $0x48] ss:$12 sps:$4 sm:$0xff]  }
 0x263   :  { %v1591_v39 = vadd.f32 %v1590_v30, %v1543_v27  ;;  %v1547_v41 = vpop.f32.mrb[15].mxu0  ;;  %v8351_v29 = vpop.f32.mrb[19].mxu1  ;;  %v10422_v24 = vld [vmem:[%s12255_s4 + $0x4c] ss:$12 sps:$4 sm:$0xff]   ;;  %v9019_v27 = vld [vmem:[%s12255_s4 + $0x50] ss:$12 sps:$4 sm:$0xff]  }
 0x264   :  { %v1601_v6 = vadd.f32 %v1599_v4, %v1545_v35  ;;  %v10438_v30 = vld [vmem:[%s12255_s4 + $0x64] ss:$12 sps:$4 sm:$0xff]   ;;  %v10444_v32 = vld [vmem:[%s12255_s4 + $0x60] ss:$12 sps:$4 sm:$0xff]   ;;  %v9023_v33 = vld [vmem:[%s12255_s4 + $0x68] ss:$12 sps:$4 sm:$0xff]  }
 0x265   :  { %v7526_v5 = vmul.f32 -1.442695, %v1591_v39  ;;  %v10454_v35 = vld [vmem:[%s12255_s4 + $0x7c] ss:$12 sps:$4 sm:$0xff]   ;;  %v10460_v36 = vld [vmem:[%s12255_s4 + $0x78] ss:$12 sps:$4 sm:$0xff]  }
 0x266   :  { %v7527_v9 = vmul.f32 -1.442695, %v1601_v6  ;;  %v9027_v38 = vld [vmem:[%s12255_s4 + $0x80] ss:$12 sps:$4 sm:$0xff]   ;;  %v10476_v41 = vld [vmem:[%s12255_s4 + $0x90] ss:$12 sps:$4 sm:$0xff]  }
 0x267   :  { %9392 = vpow2.f32 %v7526_v5  ;;  %v10470_v39 = vld [vmem:[%s12255_s4 + $0x94] ss:$12 sps:$4 sm:$0xff]   ;;  %v9031_v29 = vld [vmem:[%s12255_s4 + $0x98] ss:$12 sps:$4 sm:$0xff]   ;;  %v9035_v6 = vld [vmem:[%s12255_s4 + $0xb0] ss:$12 sps:$4 sm:$0xff]  }
 0x268   :  { %9394 = vpow2.f32 %v7527_v9  ;;  %v10486_v4 = vld [vmem:[%s12255_s4 + $0xac] ss:$12 sps:$4 sm:$0xff]   ;;  %v10492_v5 = vld [vmem:[%s12255_s4 + $0xa8] ss:$12 sps:$4 sm:$0xff]   ;;  %v10511_v9 = vld [vmem:[%s12258_s7 + $0x4] ss:$12 sps:$4 sm:$0xff]  }
 0x269   :  { %v9047_v25 = vld [vmem:[%s12258_s7 + $0x38] ss:$12 sps:$4 sm:$0xff]  }
 0x26b   :  { %v9391_v10 = vpop.eup %9390 }
 0x26c   :  { %v1322_v12 = vmul.f32 %v9391_v10, %v1321_v8  ;;  %v10516_v10 = vld [vmem:[%s12258_s7] ss:$12 sps:$4 sm:$0xff]  }
 0x26e   :  { %v1324_v13 = vadd.f32 %v1323_v11, %v1322_v12  ;;  %v9039_v11 = vld [vmem:[%s12258_s7 + $0x8] ss:$12 sps:$4 sm:$0xff]  }
 0x26f   :  { %v10526_v12 = vld [vmem:[%s12258_s7 + $0x1c] ss:$12 sps:$4 sm:$0xff]  }
 0x270   :  { %1326 = vst [vmem:[#allocation5] sm:$0x3] %v1324_v13  ;;  %1327 = vst [vmem:[#allocation3] sm:$0x3] %v1324_v13  ;;  %v10532_v13 = vld [vmem:[%s12258_s7 + $0x18] ss:$12 sps:$4 sm:$0xff]  }
 0x271   :  { %v9393_v14 = vpop.eup %9392 }
 0x272   :  { %v1595_v17 = vadd.f32 1.0, %v9393_v14  ;;  %v9395_v21 = vpop.eup %9394  ;;  %v9043_v14 = vld [vmem:[%s12258_s7 + $0x20] ss:$12 sps:$4 sm:$0xff]  }
 0x273   :  { %v1605_v31 = vadd.f32 1.0, %v9395_v21  ;;  %v10548_v21 = vld [vmem:[%s12258_s7 + $0x30] ss:$12 sps:$4 sm:$0xff]  }
 0x274   :  { %9396 = vrcp.f32 %v1595_v17  ;;  %v10542_v17 = vld [vmem:[%s12258_s7 + $0x34] ss:$12 sps:$4 sm:$0xff]  }
 0x275   :  { %9398 = vrcp.f32 %v1605_v31  ;;  %v10558_v31 = vld [vmem:[%s12258_s7 + $0x4c] ss:$12 sps:$4 sm:$0xff]  }
 0x27e   :  { %v9397_v42 = vpop.eup %9396 }
 0x27f   :  { %v1608_v48 = vmul.f32 %v9397_v42, %v1584_v34  ;;  %v9399_v0 = vpop.eup %9398  ;;  %v10564_v34 = vld [vmem:[%s12258_s7 + $0x48] ss:$12 sps:$4 sm:$0xff]   ;;  %v9051_v42 = vld [vmem:[%s12258_s7 + $0x50] ss:$12 sps:$4 sm:$0xff]  }
 0x280   :  { %v1613_v19 = vsub.f32 1.0, %v9399_v0  ;;  %v1615_v15 = vmul.f32 %v9399_v0, %v10236_v63  ;;  %v10412_v63 = vld [vmem:[%s12255_s4 + $0x30] ss:$12 sps:$4 sm:$0xff]  }
 0x281   :  { %v1611_v55 = vadd.f32 %v1609_v51, %v1608_v48  ;;  %v10574_v48 = vld [vmem:[%s12258_s7 + $0x64] ss:$12 sps:$4 sm:$0xff]   ;;  %v10580_v51 = vld [vmem:[%s12258_s7 + $0x60] ss:$12 sps:$4 sm:$0xff]   ;;  %v10589_v0 = vld [vmem:[%s12258_s7 + $0x7c] ss:$12 sps:$4 sm:$0xff]  }
 0x283   :  { %9400 = vtanh.f32 %v1611_v55  ;;  %v9055_v55 = vld [vmem:[%s12258_s7 + $0x68] ss:$12 sps:$4 sm:$0xff]  }
 0x28d   :  { %v9401_v60 = vpop.eup %9400 }
 0x28e   :  { %v1614_v3 = vmul.f32 %v9401_v60, %v1613_v19  ;;  %v10595_v19 = vld [vmem:[%s12258_s7 + $0x78] ss:$12 sps:$4 sm:$0xff]   ;;  %v9059_v60 = vld [vmem:[%s12258_s7 + $0x80] ss:$12 sps:$4 sm:$0xff]  }
 0x290   :  { %v1616_v16 = vadd.f32 %v1615_v15, %v1614_v3  ;;  %v10605_v3 = vld [vmem:[%s12258_s7 + $0x94] ss:$12 sps:$4 sm:$0xff]   ;;  %v10611_v15 = vld [vmem:[%s12258_s7 + $0x90] ss:$12 sps:$4 sm:$0xff]  }
 0x292   :  { %v1617_v1 = vpack.c.bf16 %v1616_v16, %v1616_v16  ;;  %2156 = vst [vmem:[#allocation4] sm:$0x3] %v1616_v16  ;;  %v9063_v16 = vld [vmem:[%s12258_s7 + $0x98] ss:$12 sps:$4 sm:$0xff]  }
 0x294   :  { %1828 = vmatmul.mubr.bf16.vlgmr.msra.gmra.mrb[16].mxu0 %v1617_v1  ;;  %8369 = vmatmul.mubr.bf16.vlgmr.msra.gmra.mrb[20].mxu1 %v1617_v1  ;;  %v10627_v1 = vld [vmem:[%s12258_s7 + $0xa8] ss:$12 sps:$4 sm:$0xff]  }
 0x295   :  { %2055 = vmatpush1.bf16.msra.mxu0 %v10031_v28  ;;  %8373 = vmatpush3.bf16.msra.mxu1 %v8996_v18  ;;  %v8998_v28 = vld [vmem:[%s12259_s8 + $0x38] ss:$12 sps:$4 sm:$0xff]  }
 0x296   :  { %2056 = vmatprep.subr.bf16.mxu0 %v10039_v37  ;;  %8374 = vmatprep.subr.bf16.mxu1 %v12269_v54  ;;  %v8999_v37 = vld [vmem:[%s12259_s8 + $0x50] ss:$12 sps:$4 sm:$0xff]   ;;  %v10621_v18 = vld [vmem:[%s12258_s7 + $0xac] ss:$12 sps:$4 sm:$0xff]  }
 0x297   :  { %2086 = vmatprep.mubr.bf16.mxu0 %v12267_v2  ;;  %8388 = vmatprep.mubr.msk.bf16.mxu1 %vm9581_vm3, %v12269_v54 }
 0x299   :  { %2057 = vmatpush1.bf16.msra.mxu0 %v10045_v40  ;;  %8375 = vmatpush3.bf16.msra.mxu1 %v8997_v20  ;;  %v9000_v40 = vld [vmem:[%s12259_s8 + $0x68] ss:$12 sps:$4 sm:$0xff]   ;;  %v10499_v7 = vld [vmem:[#allocation4] sm:$0x3]  ;;  %v9067_v20 = vld [vmem:[%s12258_s7 + $0xb0] ss:$12 sps:$4 sm:$0xff]  }
 0x29a   :  { %2058 = vmatprep.subr.bf16.mxu0 %v10055_v46  ;;  %8376 = vmatprep.subr.bf16.mxu1 %v12269_v54  ;;  %v9001_v46 = vld [vmem:[%s12259_s8 + $0x80] ss:$12 sps:$4 sm:$0xff]   ;;  %v2162_v8 = vpack.c.bf16 %v10499_v7, %v10499_v7 }
 0x29d   :  { %2059 = vmatpush1.bf16.msra.mxu0 %v10064_v47  ;;  %8377 = vmatpush3.bf16.msra.mxu1 %v8998_v28  ;;  %v9002_v47 = vld [vmem:[%s12259_s8 + $0x98] ss:$12 sps:$4 sm:$0xff]  }
 0x29e   :  { %2060 = vmatprep.subr.bf16.mxu0 %v10074_v49  ;;  %8378 = vmatprep.subr.bf16.mxu1 %v12269_v54  ;;  %v9003_v49 = vld [vmem:[%s12259_s8 + $0xb0] ss:$12 sps:$4 sm:$0xff]  }
 0x29f   :  { %v10637_v28 = vld [vmem:[%s12259_s8 + $0x4] ss:$12 sps:$4 sm:$0xff]  }
 0x2a1   :  { %2061 = vmatpush1.bf16.msra.mxu0 %v10080_v50  ;;  %8379 = vmatpush3.bf16.msra.mxu1 %v8999_v37  ;;  %v10367_v50 = vld [vmem:[%s12255_s4 + $0x4] ss:$12 sps:$4 sm:$0xff]  }
 0x2a2   :  { %2062 = vmatprep.subr.bf16.mxu0 %v10090_v52  ;;  %8380 = vmatprep.subr.bf16.mxu1 %v12269_v54  ;;  %v10369_v52 = vld [vmem:[#allocation5] sm:$0x3] }
 0x2a5   :  { %2063 = vmatpush1.bf16.msra.mxu0 %v10096_v53  ;;  %8381 = vmatpush3.bf16.msra.mxu1 %v9000_v40  ;;  %v10375_v53 = vld [vmem:[%s12255_s4] ss:$12 sps:$4 sm:$0xff]  }
 0x2a6   :  { %2064 = vmatprep.subr.bf16.mxu0 %v10106_v56  ;;  %8382 = vmatprep.subr.bf16.mxu1 %v12269_v54  ;;  %v9007_v56 = vld [vmem:[%s12255_s4 + $0x8] ss:$12 sps:$4 sm:$0xff]  }
 0x2a9   :  { %2065 = vmatpush1.bf16.msra.mxu0 %v10112_v57  ;;  %8383 = vmatpush3.bf16.msra.mxu1 %v9001_v46  ;;  %v1876_v57 = vpack.c.bf16 %v10369_v52, %v10369_v52 }
 0x2aa   :  { %2066 = vmatprep.subr.bf16.mxu0 %v10122_v58  ;;  %8384 = vmatprep.subr.bf16.mxu1 %v12269_v54  ;;  %v10387_v58 = vld [vmem:[%s12255_s4 + $0x1c] ss:$12 sps:$4 sm:$0xff]  }
 0x2ad   :  { %2067 = vmatpush1.bf16.msra.mxu0 %v10128_v59  ;;  %8385 = vmatpush3.bf16.msra.mxu1 %v9002_v47  ;;  %v10393_v59 = vld [vmem:[%s12255_s4 + $0x18] ss:$12 sps:$4 sm:$0xff]  }
 0x2ae   :  { %2068 = vmatprep.subr.bf16.mxu0 %v10138_v61  ;;  %8386 = vmatprep.subr.bf16.mxu1 %v12269_v54  ;;  %v9011_v61 = vld [vmem:[%s12255_s4 + $0x20] ss:$12 sps:$4 sm:$0xff]  }
 0x2b1   :  { %2069 = vmatpush1.bf16.msra.mxu0 %v10144_v62  ;;  %8387 = vmatpush3.bf16.msra.mxu1 %v9003_v49  ;;  %v10403_v62 = vld [vmem:[%s12255_s4 + $0x34] ss:$12 sps:$4 sm:$0xff]  }
 0x2b2   :  { %2340 = vmatprep.subr.bf16.mxu0 %v10367_v50  ;;  %8392 = vmatprep.subr.bf16.mxu1 %v12269_v54  ;;  %v1909_v49 = vld [vmem:[%s12261_s10] sm:$0x7] }
 0x2b4   :  { %2087 = vmatmul.mubr.bf16.vlgmr.msra.gmra.mrb[16].mxu0 %v1876_v57  ;;  %8389 = vmatmul.mubr.bf16.vlgmr.msra.gmra.mrb[24].mxu1 %v1876_v57 }
 0x2b5   :  { %2341 = vmatpush1.bf16.msra.mxu0 %v10375_v53  ;;  %8393 = vmatpush3.bf16.msra.mxu1 %v9007_v56  ;;  %v1650_v56 = vld [vmem:[%s12260_s9] sm:$0x7] }
 0x2b6   :  { %2342 = vmatprep.subr.bf16.mxu0 %v10387_v58  ;;  %8394 = vmatprep.subr.bf16.mxu1 %v12269_v54  ;;  %v1655_v57 = vrot.slane %v1650_v56, %v10000_v43 }
 0x2b7   :  { %2372 = vmatprep.mubr.bf16.mxu0 %v12267_v2  ;;  %8408 = vmatprep.mubr.msk.bf16.mxu1 %vm9581_vm3, %v12269_v54 }
 0x2b9   :  { %2343 = vmatpush1.bf16.msra.mxu0 %v10393_v59  ;;  %8395 = vmatpush3.bf16.msra.mxu1 %v9011_v61  ;;  %v1914_v61 = vrot.slane %v1909_v49, %v10000_v43 }
 0x2ba   :  { %2344 = vmatprep.subr.bf16.mxu0 %v10403_v62  ;;  %8396 = vmatprep.subr.bf16.mxu1 %v12269_v54 }
 0x2bd   :  { %2345 = vmatpush1.bf16.msra.mxu0 %v10412_v63  ;;  %8397 = vmatpush3.bf16.msra.mxu1 %v9015_v22  ;;  %v1659_v22 = vrot.slane %v1650_v56, %v10003_v44 }
 0x2be   :  { %2346 = vmatprep.subr.bf16.mxu0 %v10422_v24  ;;  %8398 = vmatprep.subr.bf16.mxu1 %v12269_v54 }
 0x2c1   :  { %2347 = vmatpush1.bf16.msra.mxu0 %v10428_v26  ;;  %8399 = vmatpush3.bf16.msra.mxu1 %v9019_v27  ;;  %v1918_v27 = vrot.slane %v1909_v49, %v10003_v44 }
 0x2c2   :  { %2348 = vmatprep.subr.bf16.mxu0 %v10438_v30  ;;  %8400 = vmatprep.subr.bf16.mxu1 %v12269_v54 }
 0x2c5   :  { %2349 = vmatpush1.bf16.msra.mxu0 %v10444_v32  ;;  %8401 = vmatpush3.bf16.msra.mxu1 %v9023_v33  ;;  %v8776_v33 = vadd.f32 %v1914_v61, %v1655_v57  ;;  %v1922_v57 = vrot.slane %v1909_v49, %v10006_v45  ;;  %v1663_v61 = vrot.slane %v1650_v56, %v10006_v45  ;;  %v2422_v56 = vld [vmem:[#allocation2 + $0xc] sm:$0x3f] }
 0x2c6   :  { %2350 = vmatprep.subr.bf16.mxu0 %v10454_v35  ;;  %8402 = vmatprep.subr.bf16.mxu1 %v12269_v54 }
 0x2c9   :  { %2351 = vmatpush1.bf16.msra.mxu0 %v10460_v36  ;;  %8403 = vmatpush3.bf16.msra.mxu1 %v9027_v38 }
 0x2ca   :  { %2352 = vmatprep.subr.bf16.mxu0 %v10470_v39  ;;  %8404 = vmatprep.subr.bf16.mxu1 %v12269_v54 }
 0x2cd   :  { %2353 = vmatpush1.bf16.msra.mxu0 %v10476_v41  ;;  %8405 = vmatpush3.bf16.msra.mxu1 %v9031_v29 }
 0x2ce   :  { %2354 = vmatprep.subr.bf16.mxu0 %v10486_v4  ;;  %8406 = vmatprep.subr.bf16.mxu1 %v12269_v54 }
 0x2d1   :  { %2355 = vmatpush1.bf16.msra.mxu0 %v10492_v5  ;;  %8407 = vmatpush3.bf16.msra.mxu1 %v9035_v6  ;;  %v8778_v6 = vadd.f32 %v1918_v27, %v1659_v22  ;;  %v2195_v27 = vld [vmem:[%s12257_s6] sm:$0x7] }
 0x2d2   :  { %8412 = vmatprep.subr.bf16.mxu1 %v12269_v54  ;;  %2627 = vmatprep.subr.bf16.mxu0 %v10511_v9 }
 0x2d4   :  { %2373 = vmatmul.mubr.bf16.vlgmr.msra.gmra.mrb[20].mxu0 %v2162_v8  ;;  %8409 = vmatmul.mubr.bf16.vlgmr.msra.gmra.mrb[28].mxu1 %v2162_v8 }
 0x2d5   :  { %2659 = vmatprep.mubr.bf16.mxu0 %v12267_v2  ;;  %8428 = vmatprep.mubr.msk.bf16.mxu1 %vm9581_vm3, %v12269_v54 }
 0x2d6   :  { %2628 = vmatpush1.bf16.msra.mxu0 %v10516_v10  ;;  %8413 = vmatpush3.bf16.msra.mxu1 %v9039_v11 }
 0x2d7   :  { %8414 = vmatprep.subr.bf16.mxu1 %v12269_v54  ;;  %2629 = vmatprep.subr.bf16.mxu0 %v10526_v12 }
 0x2da   :  { %2630 = vmatpush1.bf16.msra.mxu0 %v10532_v13  ;;  %8415 = vmatpush3.bf16.msra.mxu1 %v9043_v14 }
 0x2db   :  { %8416 = vmatprep.subr.bf16.mxu1 %v12269_v54  ;;  %2631 = vmatprep.subr.bf16.mxu0 %v10542_v17 }
 0x2de   :  { %2632 = vmatpush1.bf16.msra.mxu0 %v10548_v21  ;;  %8417 = vmatpush3.bf16.msra.mxu1 %v9047_v25 }
 0x2df   :  { %8418 = vmatprep.subr.bf16.mxu1 %v12269_v54  ;;  %2633 = vmatprep.subr.bf16.mxu0 %v10558_v31 }
 0x2e2   :  { %2634 = vmatpush1.bf16.msra.mxu0 %v10564_v34  ;;  %8419 = vmatpush3.bf16.msra.mxu1 %v9051_v42 }
 0x2e3   :  { %8420 = vmatprep.subr.bf16.mxu1 %v12269_v54  ;;  %2635 = vmatprep.subr.bf16.mxu0 %v10574_v48 }
 0x2e6   :  { %2636 = vmatpush1.bf16.msra.mxu0 %v10580_v51  ;;  %8421 = vmatpush3.bf16.msra.mxu1 %v9055_v55 }
 0x2e7   :  { %2637 = vmatprep.subr.bf16.mxu0 %v10589_v0  ;;  %8422 = vmatprep.subr.bf16.mxu1 %v12269_v54 }
 0x2ea   :  { %2638 = vmatpush1.bf16.msra.mxu0 %v10595_v19  ;;  %8423 = vmatpush3.bf16.msra.mxu1 %v9059_v60 }
 0x2eb   :  { %2639 = vmatprep.subr.bf16.mxu0 %v10605_v3  ;;  %8424 = vmatprep.subr.bf16.mxu1 %v12269_v54 }
 0x2ee   :  { %2640 = vmatpush1.bf16.msra.mxu0 %v10611_v15  ;;  %8425 = vmatpush3.bf16.msra.mxu1 %v9063_v16 }
 0x2ef   :  { %2641 = vmatprep.subr.bf16.mxu0 %v10621_v18  ;;  %8426 = vmatprep.subr.bf16.mxu1 %v12269_v54 }
 0x2f2   :  { %2642 = vmatpush1.bf16.msra.mxu0 %v10627_v1  ;;  %8427 = vmatpush3.bf16.msra.mxu1 %v9067_v20 }
 0x2f3   :  { %2886 = vmatprep.subr.bf16.mxu0 %v10637_v28  ;;  %8432 = vmatprep.subr.bf16.mxu1 %v12269_v54 }
 0x367   :  { %v1870_v37 = vpop.f32.mrb[20].mxu1 }
 0x368   :  { %v8370_v40 = vpop.f32.mrb[21].mxu1 }
 0x369   :  { %v1873_v46 = vpop.f32.mrb[22].mxu1 }
 0x36a   :  { %v8371_v47 = vpop.f32.mrb[23].mxu1 }
 0x387   :  { %v2088_v38 = vpop.f32.mrb[16].mxu0  ;;  %v2129_v29 = vpop.f32.mrb[24].mxu1 }
 0x388   :  { %v8777_v8 = vadd.f32 %v8776_v33, %v2088_v38  ;;  %v2090_v11 = vpop.f32.mrb[17].mxu0  ;;  %v8390_v14 = vpop.f32.mrb[25].mxu1  ;;  %v2130_v33 = vadd.f32 %v2129_v29, %v1922_v57 }
 0x389   :  { %v2092_v25 = vpop.f32.mrb[18].mxu0  ;;  %v2132_v42 = vpop.f32.mrb[26].mxu1  ;;  %v8779_v20 = vadd.f32 %v8778_v6, %v2090_v11  ;;  %v2200_v11 = vrot.slane %v2195_v27, %v10000_v43  ;;  %v2204_v14 = vrot.slane %v2195_v27, %v10003_v44 }
 0x38a   :  { %v7576_v55 = vmul.f32 -1.442695, %v8777_v8  ;;  %v2093_v60 = vpop.f32.mrb[19].mxu0  ;;  %v8391_v16 = vpop.f32.mrb[27].mxu1  ;;  %v1871_v8 = vadd.f32 %v1870_v37, %v1663_v61 }
 0x38b   :  { %v7577_v40 = vmul.f32 -1.442695, %v8779_v20 }
 0x38c   :  { %9402 = vpow2.f32 %v7576_v55 }
 0x38d   :  { %9404 = vpow2.f32 %v7577_v40 }
 0x396   :  { %v9403_v46 = vpop.eup %9402 }
 0x397   :  { %v2139_v47 = vadd.f32 1.0, %v9403_v46  ;;  %v9405_v2 = vpop.eup %9404 }
 0x398   :  { %v2146_v22 = vadd.f32 1.0, %v9405_v2 }
 0x399   :  { %9406 = vrcp.f32 %v2139_v47  ;;  %v2431_v47 = vrot.slane %v2422_v56, 2 }
 0x39a   :  { %9408 = vrcp.f32 %v2146_v22 }
 0x3a3   :  { %v9407_v38 = vpop.eup %9406 }
 0x3a4   :  { %v2149_v6 = vmul.f32 %v9407_v38, %v2130_v33  ;;  %v9409_v22 = vpop.eup %9408 }
 0x3a5   :  { %v2152_v33 = vsub.f32 1.0, %v9409_v22 }
 0x3a6   :  { %v2150_v25 = vadd.f32 %v2149_v6, %v1871_v8 }
 0x3a7   :  { %v2374_v42 = vpop.f32.mrb[20].mxu0  ;;  %v2415_v55 = vpop.f32.mrb[28].mxu1 }
 0x3a8   :  { %9410 = vtanh.f32 %v2150_v25  ;;  %v2375_v49 = vadd.f32 %v2374_v42, %v2200_v11  ;;  %v2376_v2 = vpop.f32.mrb[21].mxu0  ;;  %v8410_v60 = vpop.f32.mrb[29].mxu1  ;;  %v2154_v11 = vmul.f32 %v9409_v22, %v10369_v52 }
 0x3a9   :  { %v2377_v16 = vadd.f32 %v2376_v2, %v2204_v14  ;;  %v2378_v20 = vpop.f32.mrb[22].mxu0  ;;  %v2418_v40 = vpop.f32.mrb[30].mxu1  ;;  %v2208_v2 = vrot.slane %v2195_v27, %v10006_v45  ;;  %v9071_v27 = vld [vmem:[%s12259_s8 + $0x8] ss:$12 sps:$4 sm:$0xff]  }
 0x3aa   :  { %v2423_v29 = vadd.f32 %v2422_v56, %v2375_v49  ;;  %v2379_v46 = vpop.f32.mrb[23].mxu0  ;;  %v8411_v37 = vpop.f32.mrb[31].mxu1 }
 0x3ab   :  { %v2433_v61 = vadd.f32 %v2431_v47, %v2377_v16  ;;  %v2416_v16 = vadd.f32 %v2415_v55, %v2208_v2  ;;  %v10724_v2 = vld [vmem:[%s12259_s8 + $0x64] ss:$12 sps:$4 sm:$0xff]  }
 0x3ac   :  { %v7602_v57 = vmul.f32 -1.442695, %v2423_v29  ;;  %v2441_v29 = vrot.slane %v2422_v56, 4  ;;  %v10673_v56 = vld [vmem:[%s12259_s8 + $0x1c] ss:$12 sps:$4 sm:$0xff]  }
 0x3ad   :  { %v7603_v38 = vmul.f32 -1.442695, %v2433_v61 }
 0x3ae   :  { %9412 = vpow2.f32 %v7602_v57 }
 0x3af   :  { %9414 = vpow2.f32 %v7603_v38  ;;  %v9075_v38 = vld [vmem:[%s12259_s8 + $0x20] ss:$12 sps:$4 sm:$0xff]  }
 0x3b2   :  { %v9411_v8 = vpop.eup %9410 }
 0x3b3   :  { %v2153_v6 = vmul.f32 %v9411_v8, %v2152_v33  ;;  %v10665_v33 = vld [vmem:[%s12259_s8] ss:$12 sps:$4 sm:$0xff]  }
 0x3b4   :  { %v10689_v8 = vld [vmem:[%s12259_s8 + $0x34] ss:$12 sps:$4 sm:$0xff]  }
 0x3b5   :  { %v2155_v25 = vadd.f32 %v2154_v11, %v2153_v6  ;;  %v12274_v6 = vmov 0   ;;  %v10698_v11 = vld [vmem:[%s12259_s8 + $0x30] ss:$12 sps:$4 sm:$0xff]  }
 0x3b7   :  { %2157 = vst [vmem:[#allocation5] sm:$0x3] %v2155_v25  ;;  %2159 = vst [vmem:[#allocation3 + $0x2] sm:$0x3] %v2155_v25  ;;  %v9079_v25 = vld [vmem:[%s12259_s8 + $0x38] ss:$12 sps:$4 sm:$0xff]  }
 0x3b8   :  { %v9413_v14 = vpop.eup %9412 }
 0x3b9   :  { %v2427_v42 = vadd.f32 1.0, %v9413_v14  ;;  %v9415_v49 = vpop.eup %9414  ;;  %v10708_v14 = vld [vmem:[%s12259_s8 + $0x4c] ss:$12 sps:$4 sm:$0xff]  }
 0x3ba   :  { %v2437_v60 = vadd.f32 1.0, %v9415_v49  ;;  %v9083_v49 = vld [vmem:[%s12259_s8 + $0x50] ss:$12 sps:$4 sm:$0xff]  }
 0x3bb   :  { %9416 = vrcp.f32 %v2427_v42  ;;  %v10714_v42 = vld [vmem:[%s12259_s8 + $0x48] ss:$12 sps:$4 sm:$0xff]  }
 0x3bc   :  { %9418 = vrcp.f32 %v2437_v60  ;;  %v10730_v60 = vld [vmem:[%s12259_s8 + $0x60] ss:$12 sps:$4 sm:$0xff]  }
 0x3c5   :  { %v9417_v20 = vpop.eup %9416 }
 0x3c6   :  { %v2440_v40 = vmul.f32 %v9417_v20, %v2416_v16  ;;  %v9419_v37 = vpop.eup %9418  ;;  %v9087_v16 = vld [vmem:[%s12259_s8 + $0x68] ss:$12 sps:$4 sm:$0xff]  }
 0x3c7   :  { %v2445_v52 = vsub.f32 1.0, %v9419_v37  ;;  %v2447_v61 = vmul.f32 %v9419_v37, %v10499_v7  ;;  %v10679_v7 = vld [vmem:[%s12259_s8 + $0x18] ss:$12 sps:$4 sm:$0xff]   ;;  %v10740_v20 = vld [vmem:[%s12259_s8 + $0x7c] ss:$12 sps:$4 sm:$0xff]  }
 0x3c8   :  { %v2443_v46 = vadd.f32 %v2441_v29, %v2440_v40  ;;  %v10746_v40 = vld [vmem:[%s12259_s8 + $0x78] ss:$12 sps:$4 sm:$0xff]   ;;  %v9091_v29 = vld [vmem:[%s12259_s8 + $0x80] ss:$12 sps:$4 sm:$0xff]   ;;  %v10762_v37 = vld [vmem:[%s12259_s8 + $0x90] ss:$12 sps:$4 sm:$0xff]  }
 0x3ca   :  { %9420 = vtanh.f32 %v2443_v46  ;;  %v10756_v46 = vld [vmem:[%s12259_s8 + $0x94] ss:$12 sps:$4 sm:$0xff]  }
 0x3d4   :  { %v9421_v47 = vpop.eup %9420 }
 0x3d5   :  { %v2446_v57 = vmul.f32 %v9421_v47, %v2445_v52  ;;  %v9095_v52 = vld [vmem:[%s12259_s8 + $0x98] ss:$12 sps:$4 sm:$0xff]  }
 0x3d6   :  { %v10772_v47 = vld [vmem:[%s12259_s8 + $0xac] ss:$12 sps:$4 sm:$0xff]  }
 0x3d7   :  { %v2448_v22 = vadd.f32 %v2447_v61, %v2446_v57  ;;  %v10778_v57 = vld [vmem:[%s12259_s8 + $0xa8] ss:$12 sps:$4 sm:$0xff]   ;;  %v9099_v61 = vld [vmem:[%s12259_s8 + $0xb0] ss:$12 sps:$4 sm:$0xff]  }
 0x3d9   :  { %v2449_v55 = vpack.c.bf16 %v2448_v22, %v2448_v22  ;;  %2988 = vst [vmem:[#allocation4] sm:$0x3] %v2448_v22  ;;  %v10785_v22 = vld [vmem:[#allocation5] sm:$0x3] }
 0x3db   :  { %2660 = vmatmul.mubr.bf16.vlgmr.msra.gmra.mrb[24].mxu0 %v2449_v55  ;;  %8429 = vmatmul.mubr.bf16.vlgmr.msra.gmra.mrb[32].mxu1 %v2449_v55  ;;  %v2708_v55 = vpack.c.bf16 %v10785_v22, %v10785_v22 }
 0x3dc   :  { %2887 = vmatpush1.bf16.msra.mxu0 %v10665_v33  ;;  %8433 = vmatpush3.bf16.msra.mxu1 %v9071_v27  ;;  %v9100_v27 = vld [vmem:[%s12255_s4 + $0x8] ss:$12 sps:$4 sm:$0xff]  }
 0x3dd   :  { %2888 = vmatprep.subr.bf16.mxu0 %v10673_v56  ;;  %8434 = vmatprep.subr.bf16.mxu1 %v12269_v54 }
 0x3de   :  { %2918 = vmatprep.mubr.bf16.mxu0 %v12274_v6  ;;  %8448 = vmatprep.mubr.msk.bf16.mxu1 %vm9581_vm3, %v12269_v54 }
 0x3e0   :  { %2889 = vmatpush1.bf16.msra.mxu0 %v10679_v7  ;;  %8435 = vmatpush3.bf16.msra.mxu1 %v9075_v38  ;;  %v9101_v38 = vld [vmem:[%s12255_s4 + $0x20] ss:$12 sps:$4 sm:$0xff]  }
 0x3e1   :  { %2890 = vmatprep.subr.bf16.mxu0 %v10689_v8  ;;  %8436 = vmatprep.subr.bf16.mxu1 %v12269_v54 }
 0x3e4   :  { %2891 = vmatpush1.bf16.msra.mxu0 %v10698_v11  ;;  %8437 = vmatpush3.bf16.msra.mxu1 %v9079_v25 }
 0x3e5   :  { %2892 = vmatprep.subr.bf16.mxu0 %v10708_v14  ;;  %8438 = vmatprep.subr.bf16.mxu1 %v12269_v54 }
 0x3e8   :  { %2893 = vmatpush1.bf16.msra.mxu0 %v10714_v42  ;;  %8439 = vmatpush3.bf16.msra.mxu1 %v9083_v49 }
 0x3e9   :  { %2894 = vmatprep.subr.bf16.mxu0 %v10724_v2  ;;  %8440 = vmatprep.subr.bf16.mxu1 %v12269_v54 }
 0x3ec   :  { %2895 = vmatpush1.bf16.msra.mxu0 %v10730_v60  ;;  %8441 = vmatpush3.bf16.msra.mxu1 %v9087_v16 }
 0x3ed   :  { %2896 = vmatprep.subr.bf16.mxu0 %v10740_v20  ;;  %8442 = vmatprep.subr.bf16.mxu1 %v12269_v54 }
 0x3f0   :  { %2897 = vmatpush1.bf16.msra.mxu0 %v10746_v40  ;;  %8443 = vmatpush3.bf16.msra.mxu1 %v9091_v29 }
 0x3f1   :  { %2898 = vmatprep.subr.bf16.mxu0 %v10756_v46  ;;  %8444 = vmatprep.subr.bf16.mxu1 %v12269_v54 }
 0x3f4   :  { %2899 = vmatpush1.bf16.msra.mxu0 %v10762_v37  ;;  %8445 = vmatpush3.bf16.msra.mxu1 %v9095_v52 }
 0x3f5   :  { %2900 = vmatprep.subr.bf16.mxu0 %v10772_v47  ;;  %8446 = vmatprep.subr.bf16.mxu1 %v12269_v54 }
 0x3f8   :  { %2901 = vmatpush1.bf16.msra.mxu0 %v10778_v57  ;;  %8447 = vmatpush3.bf16.msra.mxu1 %v9099_v61 }
 0x3f9   :  { %3172 = vmatprep.subr.bf16.mxu0 %v10367_v50  ;;  %8452 = vmatprep.subr.bf16.mxu1 %v12269_v54  ;;  %v9102_v50 = vld [vmem:[%s12255_s4 + $0x38] ss:$12 sps:$4 sm:$0xff]  }
 0x3fb   :  { %2919 = vmatmul.mubr.bf16.vlgmr.msra.gmra.mrb[24].mxu0 %v2708_v55  ;;  %8449 = vmatmul.mubr.bf16.vlgmr.msra.gmra.mrb[36].mxu1 %v2708_v55 }
 0x3fc   :  { %3173 = vmatpush1.bf16.msra.mxu0 %v10375_v53  ;;  %8453 = vmatpush3.bf16.msra.mxu1 %v9100_v27  ;;  %v9103_v53 = vld [vmem:[%s12255_s4 + $0x50] ss:$12 sps:$4 sm:$0xff]  }
 0x3fd   :  { %3174 = vmatprep.subr.bf16.mxu0 %v10387_v58  ;;  %8454 = vmatprep.subr.bf16.mxu1 %v12269_v54  ;;  %v9104_v58 = vld [vmem:[%s12255_s4 + $0x68] ss:$12 sps:$4 sm:$0xff]  }
 0x3fe   :  { %3204 = vmatprep.mubr.bf16.mxu0 %v12274_v6  ;;  %8468 = vmatprep.mubr.msk.bf16.mxu1 %vm9581_vm3, %v12269_v54 }
 0x400   :  { %3175 = vmatpush1.bf16.msra.mxu0 %v10393_v59  ;;  %8455 = vmatpush3.bf16.msra.mxu1 %v9101_v38  ;;  %v9105_v59 = vld [vmem:[%s12255_s4 + $0x80] ss:$12 sps:$4 sm:$0xff]  }
 0x401   :  { %3176 = vmatprep.subr.bf16.mxu0 %v10403_v62  ;;  %8456 = vmatprep.subr.bf16.mxu1 %v12269_v54  ;;  %v9106_v62 = vld [vmem:[%s12255_s4 + $0x98] ss:$12 sps:$4 sm:$0xff]  }
 0x404   :  { %3177 = vmatpush1.bf16.msra.mxu0 %v10412_v63  ;;  %8457 = vmatpush3.bf16.msra.mxu1 %v9102_v50  ;;  %v9107_v63 = vld [vmem:[%s12255_s4 + $0xb0] ss:$12 sps:$4 sm:$0xff]  }
 0x405   :  { %3178 = vmatprep.subr.bf16.mxu0 %v10422_v24  ;;  %8458 = vmatprep.subr.bf16.mxu1 %v12269_v54  ;;  %v10840_v24 = vld [vmem:[#allocation4] sm:$0x3] }
 0x408   :  { %3179 = vmatpush1.bf16.msra.mxu0 %v10428_v26  ;;  %8459 = vmatpush3.bf16.msra.mxu1 %v9103_v53  ;;  %v2994_v26 = vpack.c.bf16 %v10840_v24, %v10840_v24 }
 0x409   :  { %3180 = vmatprep.subr.bf16.mxu0 %v10438_v30  ;;  %8460 = vmatprep.subr.bf16.mxu1 %v12269_v54  ;;  %v9108_v30 = vld [vmem:[%s12258_s7 + $0x8] ss:$12 sps:$4 sm:$0xff]  }
 0x40c   :  { %3181 = vmatpush1.bf16.msra.mxu0 %v10444_v32  ;;  %8461 = vmatpush3.bf16.msra.mxu1 %v9104_v58  ;;  %v9109_v32 = vld [vmem:[%s12258_s7 + $0x20] ss:$12 sps:$4 sm:$0xff]  }
 0x40d   :  { %3182 = vmatprep.subr.bf16.mxu0 %v10454_v35  ;;  %8462 = vmatprep.subr.bf16.mxu1 %v12269_v54  ;;  %v9110_v35 = vld [vmem:[%s12258_s7 + $0x38] ss:$12 sps:$4 sm:$0xff]  }
 0x410   :  { %3183 = vmatpush1.bf16.msra.mxu0 %v10460_v36  ;;  %8463 = vmatpush3.bf16.msra.mxu1 %v9105_v59  ;;  %v9111_v36 = vld [vmem:[%s12258_s7 + $0x50] ss:$12 sps:$4 sm:$0xff]  }
 0x411   :  { %3184 = vmatprep.subr.bf16.mxu0 %v10470_v39  ;;  %8464 = vmatprep.subr.bf16.mxu1 %v12269_v54  ;;  %v9112_v39 = vld [vmem:[%s12258_s7 + $0x68] ss:$12 sps:$4 sm:$0xff]  }
 0x414   :  { %3185 = vmatpush1.bf16.msra.mxu0 %v10476_v41  ;;  %8465 = vmatpush3.bf16.msra.mxu1 %v9106_v62  ;;  %v9113_v41 = vld [vmem:[%s12258_s7 + $0x80] ss:$12 sps:$4 sm:$0xff]  }
 0x415   :  { %3186 = vmatprep.subr.bf16.mxu0 %v10486_v4  ;;  %8466 = vmatprep.subr.bf16.mxu1 %v12269_v54  ;;  %v9114_v4 = vld [vmem:[%s12258_s7 + $0x98] ss:$12 sps:$4 sm:$0xff]   ;;  %v3027_v62 = vld [vmem:[%s12257_s6] sm:$0x7] }
 0x418   :  { %3187 = vmatpush1.bf16.msra.mxu0 %v10492_v5  ;;  %8467 = vmatpush3.bf16.msra.mxu1 %v9107_v63  ;;  %v9115_v5 = vld [vmem:[%s12258_s7 + $0xb0] ss:$12 sps:$4 sm:$0xff]  }
 0x419   :  { %3459 = vmatprep.subr.bf16.mxu0 %v10511_v9  ;;  %8472 = vmatprep.subr.bf16.mxu1 %v12269_v54 }
 0x41b   :  { %3205 = vmatmul.mubr.bf16.vlgmr.msra.gmra.mrb[28].mxu0 %v2994_v26  ;;  %8469 = vmatmul.mubr.bf16.vlgmr.msra.gmra.mrb[40].mxu1 %v2994_v26 }
 0x41c   :  { %3460 = vmatpush1.bf16.msra.mxu0 %v10516_v10  ;;  %3491 = vmatprep.mubr.bf16.mxu0 %v12274_v6 }
 0x41d   :  { %3461 = vmatprep.subr.bf16.mxu0 %v10526_v12  ;;  %8488 = vmatprep.mubr.msk.bf16.mxu1 %vm9581_vm3, %v12269_v54 }
 0x41e   :  { %8473 = vmatpush3.bf16.msra.mxu1 %v9108_v30 }
 0x41f   :  { %8474 = vmatprep.subr.bf16.mxu1 %v12269_v54 }
 0x420   :  { %3462 = vmatpush1.bf16.msra.mxu0 %v10532_v13 }
 0x421   :  { %3463 = vmatprep.subr.bf16.mxu0 %v10542_v17  ;;  %v2741_v17 = vld [vmem:[%s12261_s10] sm:$0x7] }
 0x422   :  { %8475 = vmatpush3.bf16.msra.mxu1 %v9109_v32  ;;  %v2754_v53 = vrot.slane %v2741_v17, %v10006_v45 }
 0x423   :  { %8476 = vmatprep.subr.bf16.mxu1 %v12269_v54 }
 0x424   :  { %3464 = vmatpush1.bf16.msra.mxu0 %v10548_v21  ;;  %v2482_v21 = vld [vmem:[%s12260_s9] sm:$0x7] }
 0x425   :  { %3465 = vmatprep.subr.bf16.mxu0 %v10558_v31  ;;  %v2487_v31 = vrot.slane %v2482_v21, %v10000_v43  ;;  %v2495_v58 = vrot.slane %v2482_v21, %v10006_v45 }
 0x426   :  { %8477 = vmatpush3.bf16.msra.mxu1 %v9110_v35  ;;  %v3032_v35 = vrot.slane %v3027_v62, %v10000_v43 }
 0x427   :  { %8478 = vmatprep.subr.bf16.mxu1 %v12269_v54 }
 0x428   :  { %3466 = vmatpush1.bf16.msra.mxu0 %v10564_v34  ;;  %v2746_v34 = vrot.slane %v2741_v17, %v10000_v43 }
 0x429   :  { %3467 = vmatprep.subr.bf16.mxu0 %v10574_v48  ;;  %v2491_v48 = vrot.slane %v2482_v21, %v10003_v44 }
 0x42a   :  { %8479 = vmatpush3.bf16.msra.mxu1 %v9111_v36  ;;  %v3036_v36 = vrot.slane %v3027_v62, %v10003_v44 }
 0x42b   :  { %8480 = vmatprep.subr.bf16.mxu1 %v12269_v54 }
 0x42c   :  { %3468 = vmatpush1.bf16.msra.mxu0 %v10580_v51  ;;  %v2750_v51 = vrot.slane %v2741_v17, %v10003_v44 }
 0x42d   :  { %3469 = vmatprep.subr.bf16.mxu0 %v10589_v0  ;;  %v8780_v0 = vadd.f32 %v2746_v34, %v2487_v31 }
 0x42e   :  { %8481 = vmatpush3.bf16.msra.mxu1 %v9112_v39 }
 0x42f   :  { %8482 = vmatprep.subr.bf16.mxu1 %v12269_v54 }
 0x430   :  { %3470 = vmatpush1.bf16.msra.mxu0 %v10595_v19 }
 0x431   :  { %3471 = vmatprep.subr.bf16.mxu0 %v10605_v3 }
 0x432   :  { %8483 = vmatpush3.bf16.msra.mxu1 %v9113_v41 }
 0x433   :  { %8484 = vmatprep.subr.bf16.mxu1 %v12269_v54 }
 0x434   :  { %3472 = vmatpush1.bf16.msra.mxu0 %v10611_v15  ;;  %v8782_v15 = vadd.f32 %v2750_v51, %v2491_v48 }
 0x435   :  { %3473 = vmatprep.subr.bf16.mxu0 %v10621_v18 }
 0x436   :  { %8485 = vmatpush3.bf16.msra.mxu1 %v9114_v4 }
 0x437   :  { %8486 = vmatprep.subr.bf16.mxu1 %v12269_v54 }
 0x438   :  { %3474 = vmatpush1.bf16.msra.mxu0 %v10627_v1 }
 0x439   :  { %3718 = vmatprep.subr.bf16.mxu0 %v10637_v28 }
 0x43a   :  { %8487 = vmatpush3.bf16.msra.mxu1 %v9115_v5 }
 0x43b   :  { %8492 = vmatprep.subr.bf16.mxu1 %v12269_v54 }
 0x4ae   :  { %v2702_v9 = vpop.f32.mrb[32].mxu1 }
 0x4af   :  { %v8430_v10 = vpop.f32.mrb[33].mxu1  ;;  %v2703_v30 = vadd.f32 %v2702_v9, %v2495_v58 }
 0x4b0   :  { %v2705_v12 = vpop.f32.mrb[34].mxu1  ;;  %v3254_v10 = vld [vmem:[#allocation2 + $0x12] sm:$0x3f] }
 0x4b1   :  { %v8431_v13 = vpop.f32.mrb[35].mxu1  ;;  %v3263_v51 = vrot.slane %v3254_v10, 2 }
 0x4ce   :  { %v2920_v19 = vpop.f32.mrb[24].mxu0  ;;  %v2961_v3 = vpop.f32.mrb[36].mxu1 }
 0x4cf   :  { %v8781_v18 = vadd.f32 %v8780_v0, %v2920_v19  ;;  %v2922_v1 = vpop.f32.mrb[25].mxu0  ;;  %v8450_v28 = vpop.f32.mrb[37].mxu1  ;;  %v2962_v63 = vadd.f32 %v2961_v3, %v2754_v53  ;;  %v3273_v53 = vrot.slane %v3254_v10, 4 }
 0x4d0   :  { %v2924_v25 = vpop.f32.mrb[26].mxu0  ;;  %v2964_v49 = vpop.f32.mrb[38].mxu1  ;;  %v8783_v61 = vadd.f32 %v8782_v15, %v2922_v1 }
 0x4d1   :  { %v7652_v16 = vmul.f32 -1.442695, %v8781_v18  ;;  %v2925_v29 = vpop.f32.mrb[27].mxu0  ;;  %v8451_v52 = vpop.f32.mrb[39].mxu1 }
 0x4d2   :  { %v7653_v27 = vmul.f32 -1.442695, %v8783_v61  ;;  %v3040_v61 = vrot.slane %v3027_v62, %v10006_v45 }
 0x4d3   :  { %9422 = vpow2.f32 %v7652_v16 }
 0x4d4   :  { %9424 = vpow2.f32 %v7653_v27 }
 0x4dd   :  { %v9423_v55 = vpop.eup %9422 }
 0x4de   :  { %v2971_v38 = vadd.f32 1.0, %v9423_v55  ;;  %v9425_v50 = vpop.eup %9424 }
 0x4df   :  { %v2978_v59 = vadd.f32 1.0, %v9425_v50 }
 0x4e0   :  { %9426 = vrcp.f32 %v2971_v38 }
 0x4e1   :  { %9428 = vrcp.f32 %v2978_v59 }
 0x4ea   :  { %v9427_v26 = vpop.eup %9426 }
 0x4eb   :  { %v2981_v32 = vmul.f32 %v9427_v26, %v2962_v63  ;;  %v9429_v3 = vpop.eup %9428 }
 0x4ec   :  { %v2984_v15 = vsub.f32 1.0, %v9429_v3  ;;  %v2986_v25 = vmul.f32 %v9429_v3, %v10785_v22 }
 0x4ed   :  { %v2982_v39 = vadd.f32 %v2981_v32, %v2703_v30 }
 0x4ee   :  { %v3206_v41 = vpop.f32.mrb[28].mxu0  ;;  %v3247_v4 = vpop.f32.mrb[40].mxu1 }
 0x4ef   :  { %9430 = vtanh.f32 %v2982_v39  ;;  %v3207_v5 = vadd.f32 %v3206_v41, %v3032_v35  ;;  %v3208_v12 = vpop.f32.mrb[29].mxu0  ;;  %v8470_v13 = vpop.f32.mrb[41].mxu1  ;;  %v3248_v55 = vadd.f32 %v3247_v4, %v3040_v61  ;;  %v9116_v35 = vld [vmem:[%s12259_s8 + $0x8] ss:$12 sps:$4 sm:$0xff]   ;;  %v9135_v39 = vld [vmem:[%s12255_s4 + $0x38] ss:$12 sps:$4 sm:$0xff]  }
 0x4f0   :  { %v3209_v17 = vadd.f32 %v3208_v12, %v3036_v36  ;;  %v3210_v21 = vpop.f32.mrb[30].mxu0  ;;  %v3250_v31 = vpop.f32.mrb[42].mxu1  ;;  %v9117_v36 = vld [vmem:[%s12259_s8 + $0x20] ss:$12 sps:$4 sm:$0xff]   ;;  %v11030_v4 = vld [vmem:[%s12255_s4 + $0x48] ss:$12 sps:$4 sm:$0xff]  }
 0x4f1   :  { %v3255_v34 = vadd.f32 %v3254_v10, %v3207_v5  ;;  %v3211_v48 = vpop.f32.mrb[31].mxu0  ;;  %v8471_v9 = vpop.f32.mrb[43].mxu1  ;;  %v11024_v41 = vld [vmem:[%s12255_s4 + $0x4c] ss:$12 sps:$4 sm:$0xff]   ;;  %v9139_v5 = vld [vmem:[%s12255_s4 + $0x50] ss:$12 sps:$4 sm:$0xff]  }
 0x4f2   :  { %v3265_v19 = vadd.f32 %v3263_v51, %v3209_v17  ;;  %v11040_v10 = vld [vmem:[%s12255_s4 + $0x64] ss:$12 sps:$4 sm:$0xff]   ;;  %v11046_v12 = vld [vmem:[%s12255_s4 + $0x60] ss:$12 sps:$4 sm:$0xff]   ;;  %v9143_v13 = vld [vmem:[%s12255_s4 + $0x68] ss:$12 sps:$4 sm:$0xff]  }
 0x4f3   :  { %v7678_v0 = vmul.f32 -1.442695, %v3255_v34  ;;  %v11056_v17 = vld [vmem:[%s12255_s4 + $0x7c] ss:$12 sps:$4 sm:$0xff]   ;;  %v11062_v21 = vld [vmem:[%s12255_s4 + $0x78] ss:$12 sps:$4 sm:$0xff]  }
 0x4f4   :  { %v7679_v18 = vmul.f32 -1.442695, %v3265_v19  ;;  %v9147_v31 = vld [vmem:[%s12255_s4 + $0x80] ss:$12 sps:$4 sm:$0xff]   ;;  %v11078_v48 = vld [vmem:[%s12255_s4 + $0x90] ss:$12 sps:$4 sm:$0xff]  }
 0x4f5   :  { %9432 = vpow2.f32 %v7678_v0  ;;  %v11072_v34 = vld [vmem:[%s12255_s4 + $0x94] ss:$12 sps:$4 sm:$0xff]   ;;  %v9151_v9 = vld [vmem:[%s12255_s4 + $0x98] ss:$12 sps:$4 sm:$0xff]   ;;  %v9155_v19 = vld [vmem:[%s12255_s4 + $0xb0] ss:$12 sps:$4 sm:$0xff]  }
 0x4f6   :  { %9434 = vpow2.f32 %v7679_v18  ;;  %v11088_v51 = vld [vmem:[%s12255_s4 + $0xac] ss:$12 sps:$4 sm:$0xff]   ;;  %v11094_v0 = vld [vmem:[%s12255_s4 + $0xa8] ss:$12 sps:$4 sm:$0xff]   ;;  %v11113_v18 = vld [vmem:[%s12258_s7 + $0x4] ss:$12 sps:$4 sm:$0xff]  }
 0x4f7   :  { %v9167_v61 = vld [vmem:[%s12258_s7 + $0x38] ss:$12 sps:$4 sm:$0xff]  }
 0x4f9   :  { %v9431_v1 = vpop.eup %9430 }
 0x4fa   :  { %v2985_v28 = vmul.f32 %v9431_v1, %v2984_v15  ;;  %v11118_v1 = vld [vmem:[%s12258_s7] ss:$12 sps:$4 sm:$0xff]  }
 0x4fc   :  { %v2987_v49 = vadd.f32 %v2986_v25, %v2985_v28  ;;  %v9159_v28 = vld [vmem:[%s12258_s7 + $0x8] ss:$12 sps:$4 sm:$0xff]  }
 0x4fd   :  { %v11128_v25 = vld [vmem:[%s12258_s7 + $0x1c] ss:$12 sps:$4 sm:$0xff]  }
 0x4fe   :  { %2989 = vst [vmem:[#allocation5] sm:$0x3] %v2987_v49  ;;  %2991 = vst [vmem:[#allocation3 + $0x4] sm:$0x3] %v2987_v49  ;;  %v11134_v49 = vld [vmem:[%s12258_s7 + $0x18] ss:$12 sps:$4 sm:$0xff]  }
 0x4ff   :  { %v9433_v16 = vpop.eup %9432 }
 0x500   :  { %v3259_v29 = vadd.f32 1.0, %v9433_v16  ;;  %v9435_v52 = vpop.eup %9434  ;;  %v9163_v16 = vld [vmem:[%s12258_s7 + $0x20] ss:$12 sps:$4 sm:$0xff]  }
 0x501   :  { %v3269_v27 = vadd.f32 1.0, %v9435_v52  ;;  %v11150_v52 = vld [vmem:[%s12258_s7 + $0x30] ss:$12 sps:$4 sm:$0xff]  }
 0x502   :  { %9436 = vrcp.f32 %v3259_v29  ;;  %v11144_v29 = vld [vmem:[%s12258_s7 + $0x34] ss:$12 sps:$4 sm:$0xff]  }
 0x503   :  { %9438 = vrcp.f32 %v3269_v27  ;;  %v11160_v27 = vld [vmem:[%s12258_s7 + $0x4c] ss:$12 sps:$4 sm:$0xff]  }
 0x50c   :  { %v9437_v38 = vpop.eup %9436 }
 0x50d   :  { %v3272_v50 = vmul.f32 %v9437_v38, %v3248_v55  ;;  %v9439_v59 = vpop.eup %9438  ;;  %v11166_v55 = vld [vmem:[%s12258_s7 + $0x48] ss:$12 sps:$4 sm:$0xff]   ;;  %v9171_v38 = vld [vmem:[%s12258_s7 + $0x50] ss:$12 sps:$4 sm:$0xff]  }
 0x50e   :  { %v3277_v22 = vsub.f32 1.0, %v9439_v59  ;;  %v3279_v30 = vmul.f32 %v9439_v59, %v10840_v24  ;;  %v11014_v24 = vld [vmem:[%s12255_s4 + $0x30] ss:$12 sps:$4 sm:$0xff]  }
 0x50f   :  { %v3275_v58 = vadd.f32 %v3273_v53, %v3272_v50  ;;  %v11176_v50 = vld [vmem:[%s12258_s7 + $0x64] ss:$12 sps:$4 sm:$0xff]   ;;  %v11182_v53 = vld [vmem:[%s12258_s7 + $0x60] ss:$12 sps:$4 sm:$0xff]   ;;  %v11191_v59 = vld [vmem:[%s12258_s7 + $0x7c] ss:$12 sps:$4 sm:$0xff]  }
 0x511   :  { %9440 = vtanh.f32 %v3275_v58  ;;  %v9175_v58 = vld [vmem:[%s12258_s7 + $0x68] ss:$12 sps:$4 sm:$0xff]  }
 0x51b   :  { %v9441_v63 = vpop.eup %9440 }
 0x51c   :  { %v3278_v26 = vmul.f32 %v9441_v63, %v3277_v22  ;;  %v11197_v22 = vld [vmem:[%s12258_s7 + $0x78] ss:$12 sps:$4 sm:$0xff]   ;;  %v9179_v63 = vld [vmem:[%s12258_s7 + $0x80] ss:$12 sps:$4 sm:$0xff]  }
 0x51e   :  { %v3280_v32 = vadd.f32 %v3279_v30, %v3278_v26  ;;  %v11207_v26 = vld [vmem:[%s12258_s7 + $0x94] ss:$12 sps:$4 sm:$0xff]   ;;  %v11213_v30 = vld [vmem:[%s12258_s7 + $0x90] ss:$12 sps:$4 sm:$0xff]  }
 0x520   :  { %v3281_v62 = vpack.c.bf16 %v3280_v32, %v3280_v32  ;;  %3820 = vst [vmem:[#allocation4] sm:$0x3] %v3280_v32  ;;  %v9183_v32 = vld [vmem:[%s12258_s7 + $0x98] ss:$12 sps:$4 sm:$0xff]  }
 0x522   :  { %3492 = vmatmul.mubr.bf16.vlgmr.msra.gmra.mrb[32].mxu0 %v3281_v62  ;;  %8489 = vmatmul.mubr.bf16.vlgmr.msra.gmra.mrb[44].mxu1 %v3281_v62  ;;  %v11229_v62 = vld [vmem:[%s12258_s7 + $0xa8] ss:$12 sps:$4 sm:$0xff]  }
 0x523   :  { %3719 = vmatpush1.bf16.msra.mxu0 %v10665_v33  ;;  %8493 = vmatpush3.bf16.msra.mxu1 %v9116_v35  ;;  %v9118_v33 = vld [vmem:[%s12259_s8 + $0x38] ss:$12 sps:$4 sm:$0xff]  }
 0x524   :  { %3720 = vmatprep.subr.bf16.mxu0 %v10673_v56  ;;  %8494 = vmatprep.subr.bf16.mxu1 %v12269_v54  ;;  %v9119_v56 = vld [vmem:[%s12259_s8 + $0x50] ss:$12 sps:$4 sm:$0xff]   ;;  %v11223_v35 = vld [vmem:[%s12258_s7 + $0xac] ss:$12 sps:$4 sm:$0xff]  }
 0x525   :  { %3750 = vmatprep.mubr.bf16.mxu0 %v12274_v6  ;;  %8508 = vmatprep.mubr.msk.bf16.mxu1 %vm9581_vm3, %v12269_v54 }
 0x527   :  { %3721 = vmatpush1.bf16.msra.mxu0 %v10679_v7  ;;  %8495 = vmatpush3.bf16.msra.mxu1 %v9117_v36  ;;  %v9120_v7 = vld [vmem:[%s12259_s8 + $0x68] ss:$12 sps:$4 sm:$0xff]   ;;  %v11101_v3 = vld [vmem:[#allocation4] sm:$0x3]  ;;  %v9187_v36 = vld [vmem:[%s12258_s7 + $0xb0] ss:$12 sps:$4 sm:$0xff]  }
 0x528   :  { %3722 = vmatprep.subr.bf16.mxu0 %v10689_v8  ;;  %8496 = vmatprep.subr.bf16.mxu1 %v12269_v54  ;;  %v9121_v8 = vld [vmem:[%s12259_s8 + $0x80] ss:$12 sps:$4 sm:$0xff]   ;;  %v3826_v15 = vpack.c.bf16 %v11101_v3, %v11101_v3 }
 0x52b   :  { %3723 = vmatpush1.bf16.msra.mxu0 %v10698_v11  ;;  %8497 = vmatpush3.bf16.msra.mxu1 %v9118_v33  ;;  %v9122_v11 = vld [vmem:[%s12259_s8 + $0x98] ss:$12 sps:$4 sm:$0xff]  }
 0x52c   :  { %3724 = vmatprep.subr.bf16.mxu0 %v10708_v14  ;;  %8498 = vmatprep.subr.bf16.mxu1 %v12269_v54  ;;  %v9123_v14 = vld [vmem:[%s12259_s8 + $0xb0] ss:$12 sps:$4 sm:$0xff]  }
 0x52d   :  { %v11239_v33 = vld [vmem:[%s12259_s8 + $0x4] ss:$12 sps:$4 sm:$0xff]  }
 0x52f   :  { %3725 = vmatpush1.bf16.msra.mxu0 %v10714_v42  ;;  %8499 = vmatpush3.bf16.msra.mxu1 %v9119_v56  ;;  %v10969_v42 = vld [vmem:[%s12255_s4 + $0x4] ss:$12 sps:$4 sm:$0xff]  }
 0x530   :  { %3726 = vmatprep.subr.bf16.mxu0 %v10724_v2  ;;  %8500 = vmatprep.subr.bf16.mxu1 %v12269_v54  ;;  %v10971_v2 = vld [vmem:[#allocation5] sm:$0x3] }
 0x533   :  { %3727 = vmatpush1.bf16.msra.mxu0 %v10730_v60  ;;  %8501 = vmatpush3.bf16.msra.mxu1 %v9120_v7  ;;  %v10977_v60 = vld [vmem:[%s12255_s4] ss:$12 sps:$4 sm:$0xff]  }
 0x534   :  { %3728 = vmatprep.subr.bf16.mxu0 %v10740_v20  ;;  %8502 = vmatprep.subr.bf16.mxu1 %v12269_v54  ;;  %v9127_v20 = vld [vmem:[%s12255_s4 + $0x8] ss:$12 sps:$4 sm:$0xff]  }
 0x537   :  { %3729 = vmatpush1.bf16.msra.mxu0 %v10746_v40  ;;  %8503 = vmatpush3.bf16.msra.mxu1 %v9121_v8  ;;  %v3540_v40 = vpack.c.bf16 %v10971_v2, %v10971_v2 }
 0x538   :  { %3730 = vmatprep.subr.bf16.mxu0 %v10756_v46  ;;  %8504 = vmatprep.subr.bf16.mxu1 %v12269_v54  ;;  %v10989_v46 = vld [vmem:[%s12255_s4 + $0x1c] ss:$12 sps:$4 sm:$0xff]  }
 0x53b   :  { %3731 = vmatpush1.bf16.msra.mxu0 %v10762_v37  ;;  %8505 = vmatpush3.bf16.msra.mxu1 %v9122_v11  ;;  %v10995_v37 = vld [vmem:[%s12255_s4 + $0x18] ss:$12 sps:$4 sm:$0xff]  }
 0x53c   :  { %3732 = vmatprep.subr.bf16.mxu0 %v10772_v47  ;;  %8506 = vmatprep.subr.bf16.mxu1 %v12269_v54  ;;  %v9131_v47 = vld [vmem:[%s12255_s4 + $0x20] ss:$12 sps:$4 sm:$0xff]  }
 0x53f   :  { %3733 = vmatpush1.bf16.msra.mxu0 %v10778_v57  ;;  %8507 = vmatpush3.bf16.msra.mxu1 %v9123_v14  ;;  %v11005_v57 = vld [vmem:[%s12255_s4 + $0x34] ss:$12 sps:$4 sm:$0xff]  }
 0x540   :  { %4004 = vmatprep.subr.bf16.mxu0 %v10969_v42  ;;  %8512 = vmatprep.subr.bf16.mxu1 %v12269_v54  ;;  %v3573_v14 = vld [vmem:[%s12261_s10] sm:$0x7] }
 0x542   :  { %3751 = vmatmul.mubr.bf16.vlgmr.msra.gmra.mrb[32].mxu0 %v3540_v40  ;;  %8509 = vmatmul.mubr.bf16.vlgmr.msra.gmra.mrb[48].mxu1 %v3540_v40 }
 0x543   :  { %4005 = vmatpush1.bf16.msra.mxu0 %v10977_v60  ;;  %8513 = vmatpush3.bf16.msra.mxu1 %v9127_v20  ;;  %v3314_v20 = vld [vmem:[%s12260_s9] sm:$0x7] }
 0x544   :  { %4006 = vmatprep.subr.bf16.mxu0 %v10989_v46  ;;  %8514 = vmatprep.subr.bf16.mxu1 %v12269_v54  ;;  %v3319_v40 = vrot.slane %v3314_v20, %v10000_v43 }
 0x545   :  { %4036 = vmatprep.mubr.bf16.mxu0 %v12274_v6  ;;  %8528 = vmatprep.mubr.msk.bf16.mxu1 %vm9581_vm3, %v12269_v54 }
 0x547   :  { %4007 = vmatpush1.bf16.msra.mxu0 %v10995_v37  ;;  %8515 = vmatpush3.bf16.msra.mxu1 %v9131_v47  ;;  %v3578_v47 = vrot.slane %v3573_v14, %v10000_v43 }
 0x548   :  { %4008 = vmatprep.subr.bf16.mxu0 %v11005_v57  ;;  %8516 = vmatprep.subr.bf16.mxu1 %v12269_v54 }
 0x54b   :  { %4009 = vmatpush1.bf16.msra.mxu0 %v11014_v24  ;;  %8517 = vmatpush3.bf16.msra.mxu1 %v9135_v39  ;;  %v3323_v39 = vrot.slane %v3314_v20, %v10003_v44 }
 0x54c   :  { %4010 = vmatprep.subr.bf16.mxu0 %v11024_v41  ;;  %8518 = vmatprep.subr.bf16.mxu1 %v12269_v54 }
 0x54f   :  { %4011 = vmatpush1.bf16.msra.mxu0 %v11030_v4  ;;  %8519 = vmatpush3.bf16.msra.mxu1 %v9139_v5  ;;  %v3582_v5 = vrot.slane %v3573_v14, %v10003_v44 }
 0x550   :  { %4012 = vmatprep.subr.bf16.mxu0 %v11040_v10  ;;  %8520 = vmatprep.subr.bf16.mxu1 %v12269_v54 }
 0x553   :  { %4013 = vmatpush1.bf16.msra.mxu0 %v11046_v12  ;;  %8521 = vmatpush3.bf16.msra.mxu1 %v9143_v13  ;;  %v8784_v13 = vadd.f32 %v3578_v47, %v3319_v40  ;;  %v3586_v40 = vrot.slane %v3573_v14, %v10006_v45  ;;  %v3327_v47 = vrot.slane %v3314_v20, %v10006_v45  ;;  %v4086_v20 = vld [vmem:[#allocation2 + $0x18] sm:$0x3f] }
 0x554   :  { %4014 = vmatprep.subr.bf16.mxu0 %v11056_v17  ;;  %8522 = vmatprep.subr.bf16.mxu1 %v12269_v54 }
 0x557   :  { %4015 = vmatpush1.bf16.msra.mxu0 %v11062_v21  ;;  %8523 = vmatpush3.bf16.msra.mxu1 %v9147_v31 }
 0x558   :  { %4016 = vmatprep.subr.bf16.mxu0 %v11072_v34  ;;  %8524 = vmatprep.subr.bf16.mxu1 %v12269_v54 }
 0x55b   :  { %4017 = vmatpush1.bf16.msra.mxu0 %v11078_v48  ;;  %8525 = vmatpush3.bf16.msra.mxu1 %v9151_v9 }
 0x55c   :  { %4018 = vmatprep.subr.bf16.mxu0 %v11088_v51  ;;  %8526 = vmatprep.subr.bf16.mxu1 %v12269_v54 }
 0x55f   :  { %4019 = vmatpush1.bf16.msra.mxu0 %v11094_v0  ;;  %8527 = vmatpush3.bf16.msra.mxu1 %v9155_v19  ;;  %v8786_v19 = vadd.f32 %v3582_v5, %v3323_v39  ;;  %v3859_v5 = vld [vmem:[%s12257_s6] sm:$0x7] }
 0x560   :  { %8532 = vmatprep.subr.bf16.mxu1 %v12269_v54  ;;  %4291 = vmatprep.subr.bf16.mxu0 %v11113_v18 }
 0x562   :  { %4037 = vmatmul.mubr.bf16.vlgmr.msra.gmra.mrb[36].mxu0 %v3826_v15  ;;  %8529 = vmatmul.mubr.bf16.vlgmr.msra.gmra.mrb[52].mxu1 %v3826_v15 }
 0x563   :  { %4323 = vmatprep.mubr.bf16.mxu0 %v12274_v6  ;;  %8548 = vmatprep.mubr.msk.bf16.mxu1 %vm9581_vm3, %v12269_v54 }
 0x564   :  { %4292 = vmatpush1.bf16.msra.mxu0 %v11118_v1  ;;  %8533 = vmatpush3.bf16.msra.mxu1 %v9159_v28 }
 0x565   :  { %8534 = vmatprep.subr.bf16.mxu1 %v12269_v54  ;;  %4293 = vmatprep.subr.bf16.mxu0 %v11128_v25 }
 0x568   :  { %4294 = vmatpush1.bf16.msra.mxu0 %v11134_v49  ;;  %8535 = vmatpush3.bf16.msra.mxu1 %v9163_v16 }
 0x569   :  { %8536 = vmatprep.subr.bf16.mxu1 %v12269_v54  ;;  %4295 = vmatprep.subr.bf16.mxu0 %v11144_v29 }
 0x56c   :  { %4296 = vmatpush1.bf16.msra.mxu0 %v11150_v52  ;;  %8537 = vmatpush3.bf16.msra.mxu1 %v9167_v61 }
 0x56d   :  { %8538 = vmatprep.subr.bf16.mxu1 %v12269_v54  ;;  %4297 = vmatprep.subr.bf16.mxu0 %v11160_v27 }
 0x570   :  { %4298 = vmatpush1.bf16.msra.mxu0 %v11166_v55  ;;  %8539 = vmatpush3.bf16.msra.mxu1 %v9171_v38 }
 0x571   :  { %8540 = vmatprep.subr.bf16.mxu1 %v12269_v54  ;;  %4299 = vmatprep.subr.bf16.mxu0 %v11176_v50 }
 0x574   :  { %4300 = vmatpush1.bf16.msra.mxu0 %v11182_v53  ;;  %8541 = vmatpush3.bf16.msra.mxu1 %v9175_v58 }
 0x575   :  { %4301 = vmatprep.subr.bf16.mxu0 %v11191_v59  ;;  %8542 = vmatprep.subr.bf16.mxu1 %v12269_v54 }
 0x578   :  { %4302 = vmatpush1.bf16.msra.mxu0 %v11197_v22  ;;  %8543 = vmatpush3.bf16.msra.mxu1 %v9179_v63 }
 0x579   :  { %4303 = vmatprep.subr.bf16.mxu0 %v11207_v26  ;;  %8544 = vmatprep.subr.bf16.mxu1 %v12269_v54 }
 0x57c   :  { %4304 = vmatpush1.bf16.msra.mxu0 %v11213_v30  ;;  %8545 = vmatpush3.bf16.msra.mxu1 %v9183_v32 }
 0x57d   :  { %4305 = vmatprep.subr.bf16.mxu0 %v11223_v35  ;;  %8546 = vmatprep.subr.bf16.mxu1 %v12269_v54 }
 0x580   :  { %4306 = vmatpush1.bf16.msra.mxu0 %v11229_v62  ;;  %8547 = vmatpush3.bf16.msra.mxu1 %v9187_v36 }
 0x581   :  { %4550 = vmatprep.subr.bf16.mxu0 %v11239_v33  ;;  %8552 = vmatprep.subr.bf16.mxu1 %v12269_v54 }
 0x5f5   :  { %v3534_v56 = vpop.f32.mrb[44].mxu1 }
 0x5f6   :  { %v8490_v7 = vpop.f32.mrb[45].mxu1 }
 0x5f7   :  { %v3537_v8 = vpop.f32.mrb[46].mxu1 }
 0x5f8   :  { %v8491_v11 = vpop.f32.mrb[47].mxu1 }
 0x615   :  { %v3752_v31 = vpop.f32.mrb[32].mxu0  ;;  %v3793_v9 = vpop.f32.mrb[48].mxu1 }
 0x616   :  { %v8785_v15 = vadd.f32 %v8784_v13, %v3752_v31  ;;  %v3754_v28 = vpop.f32.mrb[33].mxu0  ;;  %v8510_v16 = vpop.f32.mrb[49].mxu1  ;;  %v3794_v13 = vadd.f32 %v3793_v9, %v3586_v40 }
 0x617   :  { %v3756_v61 = vpop.f32.mrb[34].mxu0  ;;  %v3796_v38 = vpop.f32.mrb[50].mxu1  ;;  %v8787_v36 = vadd.f32 %v8786_v19, %v3754_v28  ;;  %v3864_v28 = vrot.slane %v3859_v5, %v10000_v43  ;;  %v3868_v16 = vrot.slane %v3859_v5, %v10003_v44 }
 0x618   :  { %v7728_v58 = vmul.f32 -1.442695, %v8785_v15  ;;  %v3757_v63 = vpop.f32.mrb[35].mxu0  ;;  %v8511_v32 = vpop.f32.mrb[51].mxu1  ;;  %v3535_v15 = vadd.f32 %v3534_v56, %v3327_v47 }
 0x619   :  { %v7729_v7 = vmul.f32 -1.442695, %v8787_v36 }
 0x61a   :  { %9442 = vpow2.f32 %v7728_v58 }
 0x61b   :  { %9444 = vpow2.f32 %v7729_v7 }
 0x624   :  { %v9443_v8 = vpop.eup %9442 }
 0x625   :  { %v3803_v11 = vadd.f32 1.0, %v9443_v8  ;;  %v9445_v54 = vpop.eup %9444 }
 0x626   :  { %v3810_v39 = vadd.f32 1.0, %v9445_v54 }
 0x627   :  { %9446 = vrcp.f32 %v3803_v11  ;;  %v4095_v11 = vrot.slane %v4086_v20, 2 }
 0x628   :  { %9448 = vrcp.f32 %v3810_v39 }
 0x631   :  { %v9447_v31 = vpop.eup %9446 }
 0x632   :  { %v3813_v19 = vmul.f32 %v9447_v31, %v3794_v13  ;;  %v9449_v39 = vpop.eup %9448 }
 0x633   :  { %v3816_v13 = vsub.f32 1.0, %v9449_v39 }
 0x634   :  { %v3814_v61 = vadd.f32 %v3813_v19, %v3535_v15 }
 0x635   :  { %v4038_v38 = vpop.f32.mrb[36].mxu0  ;;  %v4079_v58 = vpop.f32.mrb[52].mxu1 }
 0x636   :  { %9450 = vtanh.f32 %v3814_v61  ;;  %v4039_v14 = vadd.f32 %v4038_v38, %v3864_v28  ;;  %v4040_v54 = vpop.f32.mrb[37].mxu0  ;;  %v8530_v63 = vpop.f32.mrb[53].mxu1  ;;  %v3818_v28 = vmul.f32 %v9449_v39, %v10971_v2 }
 0x637   :  { %v4041_v32 = vadd.f32 %v4040_v54, %v3868_v16  ;;  %v4042_v36 = vpop.f32.mrb[38].mxu0  ;;  %v4082_v7 = vpop.f32.mrb[54].mxu1  ;;  %v3872_v54 = vrot.slane %v3859_v5, %v10006_v45  ;;  %v9191_v5 = vld [vmem:[%s12259_s8 + $0x8] ss:$12 sps:$4 sm:$0xff]  }
 0x638   :  { %v4087_v9 = vadd.f32 %v4086_v20, %v4039_v14  ;;  %v4043_v8 = vpop.f32.mrb[39].mxu0  ;;  %v8531_v56 = vpop.f32.mrb[55].mxu1 }
 0x639   :  { %v4097_v47 = vadd.f32 %v4095_v11, %v4041_v32  ;;  %v4080_v32 = vadd.f32 %v4079_v58, %v3872_v54  ;;  %v11326_v54 = vld [vmem:[%s12259_s8 + $0x64] ss:$12 sps:$4 sm:$0xff]  }
 0x63a   :  { %v7754_v40 = vmul.f32 -1.442695, %v4087_v9  ;;  %v4105_v9 = vrot.slane %v4086_v20, 4  ;;  %v11275_v20 = vld [vmem:[%s12259_s8 + $0x1c] ss:$12 sps:$4 sm:$0xff]  }
 0x63b   :  { %v7755_v31 = vmul.f32 -1.442695, %v4097_v47 }
 0x63c   :  { %9452 = vpow2.f32 %v7754_v40 }
 0x63d   :  { %9454 = vpow2.f32 %v7755_v31  ;;  %v9195_v31 = vld [vmem:[%s12259_s8 + $0x20] ss:$12 sps:$4 sm:$0xff]  }
 0x640   :  { %v9451_v15 = vpop.eup %9450 }
 0x641   :  { %v3817_v19 = vmul.f32 %v9451_v15, %v3816_v13  ;;  %v11267_v13 = vld [vmem:[%s12259_s8] ss:$12 sps:$4 sm:$0xff]   ;;  %v12275_v15 = vmov 0.0  }
 0x643   :  { %v3819_v61 = vadd.f32 %v3818_v28, %v3817_v19  ;;  %v11291_v19 = vld [vmem:[%s12259_s8 + $0x34] ss:$12 sps:$4 sm:$0xff]   ;;  %v11300_v28 = vld [vmem:[%s12259_s8 + $0x30] ss:$12 sps:$4 sm:$0xff]  }
 0x645   :  { %3821 = vst [vmem:[#allocation5] sm:$0x3] %v3819_v61  ;;  %3823 = vst [vmem:[#allocation3 + $0x6] sm:$0x3] %v3819_v61  ;;  %v9199_v61 = vld [vmem:[%s12259_s8 + $0x38] ss:$12 sps:$4 sm:$0xff]  }
 0x646   :  { %v9453_v16 = vpop.eup %9452 }
 0x647   :  { %v4091_v38 = vadd.f32 1.0, %v9453_v16  ;;  %v9455_v14 = vpop.eup %9454  ;;  %v11310_v16 = vld [vmem:[%s12259_s8 + $0x4c] ss:$12 sps:$4 sm:$0xff]  }
 0x648   :  { %v4101_v63 = vadd.f32 1.0, %v9455_v14  ;;  %v9203_v14 = vld [vmem:[%s12259_s8 + $0x50] ss:$12 sps:$4 sm:$0xff]  }
 0x649   :  { %9456 = vrcp.f32 %v4091_v38  ;;  %v11316_v38 = vld [vmem:[%s12259_s8 + $0x48] ss:$12 sps:$4 sm:$0xff]  }
 0x64a   :  { %9458 = vrcp.f32 %v4101_v63  ;;  %v11332_v63 = vld [vmem:[%s12259_s8 + $0x60] ss:$12 sps:$4 sm:$0xff]  }
 0x653   :  { %v9457_v36 = vpop.eup %9456 }
 0x654   :  { %v4104_v7 = vmul.f32 %v9457_v36, %v4080_v32  ;;  %v9459_v56 = vpop.eup %9458  ;;  %v9207_v32 = vld [vmem:[%s12259_s8 + $0x68] ss:$12 sps:$4 sm:$0xff]  }
 0x655   :  { %v4109_v2 = vsub.f32 1.0, %v9459_v56  ;;  %v4111_v47 = vmul.f32 %v9459_v56, %v11101_v3  ;;  %v11281_v3 = vld [vmem:[%s12259_s8 + $0x18] ss:$12 sps:$4 sm:$0xff]   ;;  %v11342_v36 = vld [vmem:[%s12259_s8 + $0x7c] ss:$12 sps:$4 sm:$0xff]  }
 0x656   :  { %v4107_v8 = vadd.f32 %v4105_v9, %v4104_v7  ;;  %v11348_v7 = vld [vmem:[%s12259_s8 + $0x78] ss:$12 sps:$4 sm:$0xff]   ;;  %v9211_v9 = vld [vmem:[%s12259_s8 + $0x80] ss:$12 sps:$4 sm:$0xff]   ;;  %v11364_v56 = vld [vmem:[%s12259_s8 + $0x90] ss:$12 sps:$4 sm:$0xff]  }
 0x658   :  { %9460 = vtanh.f32 %v4107_v8  ;;  %v11358_v8 = vld [vmem:[%s12259_s8 + $0x94] ss:$12 sps:$4 sm:$0xff]  }
 0x662   :  { %v9461_v11 = vpop.eup %9460 }
 0x663   :  { %v4110_v40 = vmul.f32 %v9461_v11, %v4109_v2  ;;  %v9215_v2 = vld [vmem:[%s12259_s8 + $0x98] ss:$12 sps:$4 sm:$0xff]  }
 0x664   :  { %v11374_v11 = vld [vmem:[%s12259_s8 + $0xac] ss:$12 sps:$4 sm:$0xff]  }
 0x665   :  { %v4112_v39 = vadd.f32 %v4111_v47, %v4110_v40  ;;  %v11380_v40 = vld [vmem:[%s12259_s8 + $0xa8] ss:$12 sps:$4 sm:$0xff]   ;;  %v9219_v47 = vld [vmem:[%s12259_s8 + $0xb0] ss:$12 sps:$4 sm:$0xff]  }
 0x667   :  { %v4113_v58 = vpack.c.bf16 %v4112_v39, %v4112_v39  ;;  %4652 = vst [vmem:[#allocation4] sm:$0x3] %v4112_v39  ;;  %v11387_v39 = vld [vmem:[#allocation5] sm:$0x3] }
 0x669   :  { %4324 = vmatmul.mubr.bf16.vlgmr.msra.gmra.mrb[40].mxu0 %v4113_v58  ;;  %8549 = vmatmul.mubr.bf16.vlgmr.msra.gmra.mrb[56].mxu1 %v4113_v58  ;;  %v4372_v58 = vpack.c.bf16 %v11387_v39, %v11387_v39 }
 0x66a   :  { %4551 = vmatpush1.bf16.msra.mxu0 %v11267_v13  ;;  %8553 = vmatpush3.bf16.msra.mxu1 %v9191_v5  ;;  %v9220_v5 = vld [vmem:[%s12255_s4 + $0x8] ss:$12 sps:$4 sm:$0xff]  }
 0x66b   :  { %4552 = vmatprep.subr.bf16.mxu0 %v11275_v20  ;;  %8554 = vmatprep.subr.bf16.mxu1 %v12275_v15 }
 0x66c   :  { %4582 = vmatprep.mubr.bf16.mxu0 %v12274_v6  ;;  %8568 = vmatprep.mubr.msk.bf16.mxu1 %vm9581_vm3, %v12275_v15 }
 0x66e   :  { %4553 = vmatpush1.bf16.msra.mxu0 %v11281_v3  ;;  %8555 = vmatpush3.bf16.msra.mxu1 %v9195_v31  ;;  %v9221_v31 = vld [vmem:[%s12255_s4 + $0x20] ss:$12 sps:$4 sm:$0xff]  }
 0x66f   :  { %4554 = vmatprep.subr.bf16.mxu0 %v11291_v19  ;;  %8556 = vmatprep.subr.bf16.mxu1 %v12275_v15 }
 0x672   :  { %4555 = vmatpush1.bf16.msra.mxu0 %v11300_v28  ;;  %8557 = vmatpush3.bf16.msra.mxu1 %v9199_v61 }
 0x673   :  { %4556 = vmatprep.subr.bf16.mxu0 %v11310_v16  ;;  %8558 = vmatprep.subr.bf16.mxu1 %v12275_v15 }
 0x676   :  { %4557 = vmatpush1.bf16.msra.mxu0 %v11316_v38  ;;  %8559 = vmatpush3.bf16.msra.mxu1 %v9203_v14 }
 0x677   :  { %4558 = vmatprep.subr.bf16.mxu0 %v11326_v54  ;;  %8560 = vmatprep.subr.bf16.mxu1 %v12275_v15 }
 0x67a   :  { %4559 = vmatpush1.bf16.msra.mxu0 %v11332_v63  ;;  %8561 = vmatpush3.bf16.msra.mxu1 %v9207_v32 }
 0x67b   :  { %4560 = vmatprep.subr.bf16.mxu0 %v11342_v36  ;;  %8562 = vmatprep.subr.bf16.mxu1 %v12275_v15 }
 0x67e   :  { %4561 = vmatpush1.bf16.msra.mxu0 %v11348_v7  ;;  %8563 = vmatpush3.bf16.msra.mxu1 %v9211_v9 }
 0x67f   :  { %4562 = vmatprep.subr.bf16.mxu0 %v11358_v8  ;;  %8564 = vmatprep.subr.bf16.mxu1 %v12275_v15 }
 0x682   :  { %4563 = vmatpush1.bf16.msra.mxu0 %v11364_v56  ;;  %8565 = vmatpush3.bf16.msra.mxu1 %v9215_v2 }
 0x683   :  { %4564 = vmatprep.subr.bf16.mxu0 %v11374_v11  ;;  %8566 = vmatprep.subr.bf16.mxu1 %v12275_v15 }
 0x686   :  { %4565 = vmatpush1.bf16.msra.mxu0 %v11380_v40  ;;  %8567 = vmatpush3.bf16.msra.mxu1 %v9219_v47 }
 0x687   :  { %4836 = vmatprep.subr.bf16.mxu0 %v10969_v42  ;;  %8572 = vmatprep.subr.bf16.mxu1 %v12275_v15  ;;  %v9222_v42 = vld [vmem:[%s12255_s4 + $0x38] ss:$12 sps:$4 sm:$0xff]  }
 0x689   :  { %4583 = vmatmul.mubr.bf16.vlgmr.msra.gmra.mrb[40].mxu0 %v4372_v58  ;;  %8569 = vmatmul.mubr.bf16.vlgmr.msra.gmra.mrb[60].mxu1 %v4372_v58 }
 0x68a   :  { %4837 = vmatpush1.bf16.msra.mxu0 %v10977_v60  ;;  %8573 = vmatpush3.bf16.msra.mxu1 %v9220_v5  ;;  %v9223_v60 = vld [vmem:[%s12255_s4 + $0x50] ss:$12 sps:$4 sm:$0xff]  }
 0x68b   :  { %4838 = vmatprep.subr.bf16.mxu0 %v10989_v46  ;;  %8574 = vmatprep.subr.bf16.mxu1 %v12275_v15  ;;  %v9224_v46 = vld [vmem:[%s12255_s4 + $0x68] ss:$12 sps:$4 sm:$0xff]  }
 0x68c   :  { %4868 = vmatprep.mubr.bf16.mxu0 %v12274_v6  ;;  %8588 = vmatprep.mubr.msk.bf16.mxu1 %vm9581_vm3, %v12275_v15 }
 0x68e   :  { %4839 = vmatpush1.bf16.msra.mxu0 %v10995_v37  ;;  %8575 = vmatpush3.bf16.msra.mxu1 %v9221_v31  ;;  %v9225_v37 = vld [vmem:[%s12255_s4 + $0x80] ss:$12 sps:$4 sm:$0xff]  }
 0x68f   :  { %4840 = vmatprep.subr.bf16.mxu0 %v11005_v57  ;;  %8576 = vmatprep.subr.bf16.mxu1 %v12275_v15  ;;  %v9226_v57 = vld [vmem:[%s12255_s4 + $0x98] ss:$12 sps:$4 sm:$0xff]  }
 0x692   :  { %4841 = vmatpush1.bf16.msra.mxu0 %v11014_v24  ;;  %8577 = vmatpush3.bf16.msra.mxu1 %v9222_v42  ;;  %v9227_v24 = vld [vmem:[%s12255_s4 + $0xb0] ss:$12 sps:$4 sm:$0xff]  }
 0x693   :  { %4842 = vmatprep.subr.bf16.mxu0 %v11024_v41  ;;  %8578 = vmatprep.subr.bf16.mxu1 %v12275_v15  ;;  %v11442_v41 = vld [vmem:[#allocation4] sm:$0x3] }
 0x696   :  { %4843 = vmatpush1.bf16.msra.mxu0 %v11030_v4  ;;  %8579 = vmatpush3.bf16.msra.mxu1 %v9223_v60  ;;  %v4658_v4 = vpack.c.bf16 %v11442_v41, %v11442_v41 }
 0x697   :  { %4844 = vmatprep.subr.bf16.mxu0 %v11040_v10  ;;  %8580 = vmatprep.subr.bf16.mxu1 %v12275_v15  ;;  %v9228_v10 = vld [vmem:[%s12258_s7 + $0x8] ss:$12 sps:$4 sm:$0xff]  }
 0x69a   :  { %4845 = vmatpush1.bf16.msra.mxu0 %v11046_v12  ;;  %8581 = vmatpush3.bf16.msra.mxu1 %v9224_v46  ;;  %v9229_v12 = vld [vmem:[%s12258_s7 + $0x20] ss:$12 sps:$4 sm:$0xff]  }
 0x69b   :  { %4846 = vmatprep.subr.bf16.mxu0 %v11056_v17  ;;  %8582 = vmatprep.subr.bf16.mxu1 %v12275_v15  ;;  %v9230_v17 = vld [vmem:[%s12258_s7 + $0x38] ss:$12 sps:$4 sm:$0xff]  }
 0x69e   :  { %4847 = vmatpush1.bf16.msra.mxu0 %v11062_v21  ;;  %8583 = vmatpush3.bf16.msra.mxu1 %v9225_v37  ;;  %v9231_v21 = vld [vmem:[%s12258_s7 + $0x50] ss:$12 sps:$4 sm:$0xff]  }
 0x69f   :  { %4848 = vmatprep.subr.bf16.mxu0 %v11072_v34  ;;  %8584 = vmatprep.subr.bf16.mxu1 %v12275_v15  ;;  %v9232_v34 = vld [vmem:[%s12258_s7 + $0x68] ss:$12 sps:$4 sm:$0xff]  }
 0x6a2   :  { %4849 = vmatpush1.bf16.msra.mxu0 %v11078_v48  ;;  %8585 = vmatpush3.bf16.msra.mxu1 %v9226_v57  ;;  %v9233_v48 = vld [vmem:[%s12258_s7 + $0x80] ss:$12 sps:$4 sm:$0xff]  }
 0x6a3   :  { %4850 = vmatprep.subr.bf16.mxu0 %v11088_v51  ;;  %8586 = vmatprep.subr.bf16.mxu1 %v12275_v15  ;;  %v9234_v51 = vld [vmem:[%s12258_s7 + $0x98] ss:$12 sps:$4 sm:$0xff]   ;;  %v4691_v57 = vld [vmem:[%s12257_s6] sm:$0x7] }
 0x6a6   :  { %4851 = vmatpush1.bf16.msra.mxu0 %v11094_v0  ;;  %8587 = vmatpush3.bf16.msra.mxu1 %v9227_v24  ;;  %v9235_v0 = vld [vmem:[%s12258_s7 + $0xb0] ss:$12 sps:$4 sm:$0xff]  }
 0x6a7   :  { %5123 = vmatprep.subr.bf16.mxu0 %v11113_v18  ;;  %8592 = vmatprep.subr.bf16.mxu1 %v12275_v15 }
 0x6a9   :  { %4869 = vmatmul.mubr.bf16.vlgmr.msra.gmra.mrb[44].mxu0 %v4658_v4  ;;  %8589 = vmatmul.mubr.bf16.vlgmr.msra.gmra.mrb[64].mxu1 %v4658_v4 }
 0x6aa   :  { %5124 = vmatpush1.bf16.msra.mxu0 %v11118_v1  ;;  %5155 = vmatprep.mubr.bf16.mxu0 %v12274_v6 }
 0x6ab   :  { %5125 = vmatprep.subr.bf16.mxu0 %v11128_v25  ;;  %8608 = vmatprep.mubr.msk.bf16.mxu1 %vm9581_vm3, %v12275_v15 }
 0x6ac   :  { %8593 = vmatpush3.bf16.msra.mxu1 %v9228_v10 }
 0x6ad   :  { %8594 = vmatprep.subr.bf16.mxu1 %v12275_v15 }
 0x6ae   :  { %5126 = vmatpush1.bf16.msra.mxu0 %v11134_v49 }
 0x6af   :  { %5127 = vmatprep.subr.bf16.mxu0 %v11144_v29  ;;  %v4405_v29 = vld [vmem:[%s12261_s10] sm:$0x7] }
 0x6b0   :  { %8595 = vmatpush3.bf16.msra.mxu1 %v9229_v12  ;;  %v4418_v60 = vrot.slane %v4405_v29, %v10006_v45 }
 0x6b1   :  { %8596 = vmatprep.subr.bf16.mxu1 %v12275_v15 }
 0x6b2   :  { %5128 = vmatpush1.bf16.msra.mxu0 %v11150_v52  ;;  %v4146_v52 = vld [vmem:[%s12260_s9] sm:$0x7] }
 0x6b3   :  { %5129 = vmatprep.subr.bf16.mxu0 %v11160_v27  ;;  %v4151_v27 = vrot.slane %v4146_v52, %v10000_v43  ;;  %v4159_v46 = vrot.slane %v4146_v52, %v10006_v45 }
 0x6b4   :  { %8597 = vmatpush3.bf16.msra.mxu1 %v9230_v17  ;;  %v4696_v17 = vrot.slane %v4691_v57, %v10000_v43 }
 0x6b5   :  { %8598 = vmatprep.subr.bf16.mxu1 %v12275_v15 }
 0x6b6   :  { %5130 = vmatpush1.bf16.msra.mxu0 %v11166_v55  ;;  %v4410_v55 = vrot.slane %v4405_v29, %v10000_v43 }
 0x6b7   :  { %5131 = vmatprep.subr.bf16.mxu0 %v11176_v50  ;;  %v4155_v50 = vrot.slane %v4146_v52, %v10003_v44 }
 0x6b8   :  { %8599 = vmatpush3.bf16.msra.mxu1 %v9231_v21  ;;  %v4700_v21 = vrot.slane %v4691_v57, %v10003_v44 }
 0x6b9   :  { %8600 = vmatprep.subr.bf16.mxu1 %v12275_v15 }
 0x6ba   :  { %5132 = vmatpush1.bf16.msra.mxu0 %v11182_v53  ;;  %v4414_v53 = vrot.slane %v4405_v29, %v10003_v44 }
 0x6bb   :  { %5133 = vmatprep.subr.bf16.mxu0 %v11191_v59  ;;  %v8788_v59 = vadd.f32 %v4410_v55, %v4151_v27 }
 0x6bc   :  { %8601 = vmatpush3.bf16.msra.mxu1 %v9232_v34 }
 0x6bd   :  { %8602 = vmatprep.subr.bf16.mxu1 %v12275_v15 }
 0x6be   :  { %5134 = vmatpush1.bf16.msra.mxu0 %v11197_v22 }
 0x6bf   :  { %5135 = vmatprep.subr.bf16.mxu0 %v11207_v26 }
 0x6c0   :  { %8603 = vmatpush3.bf16.msra.mxu1 %v9233_v48 }
 0x6c1   :  { %8604 = vmatprep.subr.bf16.mxu1 %v12275_v15 }
 0x6c2   :  { %5136 = vmatpush1.bf16.msra.mxu0 %v11213_v30  ;;  %v8790_v30 = vadd.f32 %v4414_v53, %v4155_v50 }
 0x6c3   :  { %5137 = vmatprep.subr.bf16.mxu0 %v11223_v35 }
 0x6c4   :  { %8605 = vmatpush3.bf16.msra.mxu1 %v9234_v51 }
 0x6c5   :  { %8606 = vmatprep.subr.bf16.mxu1 %v12275_v15 }
 0x6c6   :  { %5138 = vmatpush1.bf16.msra.mxu0 %v11229_v62 }
 0x6c7   :  { %5382 = vmatprep.subr.bf16.mxu0 %v11239_v33 }
 0x6c8   :  { %8607 = vmatpush3.bf16.msra.mxu1 %v9235_v0 }
 0x6c9   :  { %8612 = vmatprep.subr.bf16.mxu1 %v12275_v15 }
 0x73c   :  { %v4366_v18 = vpop.f32.mrb[56].mxu1 }
 0x73d   :  { %v8550_v1 = vpop.f32.mrb[57].mxu1  ;;  %v4367_v10 = vadd.f32 %v4366_v18, %v4159_v46 }
 0x73e   :  { %v4369_v25 = vpop.f32.mrb[58].mxu1  ;;  %v4918_v1 = vld [vmem:[#allocation2 + $0x1e] sm:$0x3f] }
 0x73f   :  { %v8551_v49 = vpop.f32.mrb[59].mxu1  ;;  %v4927_v53 = vrot.slane %v4918_v1, 2 }
 0x75c   :  { %v4584_v22 = vpop.f32.mrb[40].mxu0  ;;  %v4625_v26 = vpop.f32.mrb[60].mxu1 }
 0x75d   :  { %v8789_v35 = vadd.f32 %v8788_v59, %v4584_v22  ;;  %v4586_v62 = vpop.f32.mrb[41].mxu0  ;;  %v8570_v33 = vpop.f32.mrb[61].mxu1  ;;  %v4626_v24 = vadd.f32 %v4625_v26, %v4418_v60  ;;  %v4937_v60 = vrot.slane %v4918_v1, 4 }
 0x75e   :  { %v4588_v61 = vpop.f32.mrb[42].mxu0  ;;  %v4628_v14 = vpop.f32.mrb[62].mxu1  ;;  %v8791_v47 = vadd.f32 %v8790_v30, %v4586_v62 }
 0x75f   :  { %v7804_v32 = vmul.f32 -1.442695, %v8789_v35  ;;  %v4589_v9 = vpop.f32.mrb[43].mxu0  ;;  %v8571_v2 = vpop.f32.mrb[63].mxu1 }
 0x760   :  { %v7805_v5 = vmul.f32 -1.442695, %v8791_v47  ;;  %v4704_v47 = vrot.slane %v4691_v57, %v10006_v45 }
 0x761   :  { %9462 = vpow2.f32 %v7804_v32 }
 0x762   :  { %9464 = vpow2.f32 %v7805_v5 }
 0x76b   :  { %v9463_v58 = vpop.eup %9462 }
 0x76c   :  { %v4635_v31 = vadd.f32 1.0, %v9463_v58  ;;  %v9465_v42 = vpop.eup %9464 }
 0x76d   :  { %v4642_v37 = vadd.f32 1.0, %v9465_v42 }
 0x76e   :  { %9466 = vrcp.f32 %v4635_v31 }
 0x76f   :  { %9468 = vrcp.f32 %v4642_v37 }
 0x778   :  { %v9467_v4 = vpop.eup %9466 }
 0x779   :  { %v4645_v12 = vmul.f32 %v9467_v4, %v4626_v24  ;;  %v9469_v26 = vpop.eup %9468 }
 0x77a   :  { %v4648_v30 = vsub.f32 1.0, %v9469_v26  ;;  %v4650_v61 = vmul.f32 %v9469_v26, %v11387_v39 }
 0x77b   :  { %v4646_v34 = vadd.f32 %v4645_v12, %v4367_v10 }
 0x77c   :  { %v4870_v48 = vpop.f32.mrb[44].mxu0  ;;  %v4911_v51 = vpop.f32.mrb[64].mxu1 }
 0x77d   :  { %9470 = vtanh.f32 %v4646_v34  ;;  %v4871_v0 = vadd.f32 %v4870_v48, %v4696_v17  ;;  %v4872_v25 = vpop.f32.mrb[45].mxu0  ;;  %v8590_v49 = vpop.f32.mrb[65].mxu1  ;;  %v4912_v58 = vadd.f32 %v4911_v51, %v4704_v47  ;;  %v9236_v17 = vld [vmem:[%s12259_s8 + $0x8] ss:$12 sps:$4 sm:$0xff]   ;;  %v9255_v34 = vld [vmem:[%s12255_s4 + $0x38] ss:$12 sps:$4 sm:$0xff]  }
 0x77e   :  { %v4873_v29 = vadd.f32 %v4872_v25, %v4700_v21  ;;  %v4874_v52 = vpop.f32.mrb[46].mxu0  ;;  %v4914_v27 = vpop.f32.mrb[66].mxu1  ;;  %v9237_v21 = vld [vmem:[%s12259_s8 + $0x20] ss:$12 sps:$4 sm:$0xff]   ;;  %v11632_v51 = vld [vmem:[%s12255_s4 + $0x48] ss:$12 sps:$4 sm:$0xff]  }
 0x77f   :  { %v4919_v55 = vadd.f32 %v4918_v1, %v4871_v0  ;;  %v4875_v50 = vpop.f32.mrb[47].mxu0  ;;  %v8591_v18 = vpop.f32.mrb[67].mxu1  ;;  %v11626_v48 = vld [vmem:[%s12255_s4 + $0x4c] ss:$12 sps:$4 sm:$0xff]   ;;  %v9259_v0 = vld [vmem:[%s12255_s4 + $0x50] ss:$12 sps:$4 sm:$0xff]  }
 0x780   :  { %v4929_v22 = vadd.f32 %v4927_v53, %v4873_v29  ;;  %v11642_v1 = vld [vmem:[%s12255_s4 + $0x64] ss:$12 sps:$4 sm:$0xff]   ;;  %v11648_v25 = vld [vmem:[%s12255_s4 + $0x60] ss:$12 sps:$4 sm:$0xff]   ;;  %v9263_v49 = vld [vmem:[%s12255_s4 + $0x68] ss:$12 sps:$4 sm:$0xff]  }
 0x781   :  { %v7830_v59 = vmul.f32 -1.442695, %v4919_v55  ;;  %v11658_v29 = vld [vmem:[%s12255_s4 + $0x7c] ss:$12 sps:$4 sm:$0xff]   ;;  %v11664_v52 = vld [vmem:[%s12255_s4 + $0x78] ss:$12 sps:$4 sm:$0xff]  }
 0x782   :  { %v7831_v35 = vmul.f32 -1.442695, %v4929_v22  ;;  %v9267_v27 = vld [vmem:[%s12255_s4 + $0x80] ss:$12 sps:$4 sm:$0xff]   ;;  %v11680_v50 = vld [vmem:[%s12255_s4 + $0x90] ss:$12 sps:$4 sm:$0xff]  }
 0x783   :  { %9472 = vpow2.f32 %v7830_v59  ;;  %v11674_v55 = vld [vmem:[%s12255_s4 + $0x94] ss:$12 sps:$4 sm:$0xff]   ;;  %v9271_v18 = vld [vmem:[%s12255_s4 + $0x98] ss:$12 sps:$4 sm:$0xff]   ;;  %v9275_v22 = vld [vmem:[%s12255_s4 + $0xb0] ss:$12 sps:$4 sm:$0xff]  }
 0x784   :  { %9474 = vpow2.f32 %v7831_v35  ;;  %v11690_v53 = vld [vmem:[%s12255_s4 + $0xac] ss:$12 sps:$4 sm:$0xff]   ;;  %v11696_v59 = vld [vmem:[%s12255_s4 + $0xa8] ss:$12 sps:$4 sm:$0xff]   ;;  %v11715_v35 = vld [vmem:[%s12258_s7 + $0x4] ss:$12 sps:$4 sm:$0xff]  }
 0x785   :  { %v9287_v47 = vld [vmem:[%s12258_s7 + $0x38] ss:$12 sps:$4 sm:$0xff]  }
 0x787   :  { %v9471_v62 = vpop.eup %9470 }
 0x788   :  { %v4649_v33 = vmul.f32 %v9471_v62, %v4648_v30  ;;  %v11720_v62 = vld [vmem:[%s12258_s7] ss:$12 sps:$4 sm:$0xff]  }
 0x78a   :  { %v4651_v14 = vadd.f32 %v4650_v61, %v4649_v33  ;;  %v9279_v33 = vld [vmem:[%s12258_s7 + $0x8] ss:$12 sps:$4 sm:$0xff]  }
 0x78b   :  { %v11730_v61 = vld [vmem:[%s12258_s7 + $0x1c] ss:$12 sps:$4 sm:$0xff]  }
 0x78c   :  { %4653 = vst [vmem:[#allocation5] sm:$0x3] %v4651_v14  ;;  %4655 = vst [vmem:[#allocation3 + $0x8] sm:$0x3] %v4651_v14  ;;  %v11736_v14 = vld [vmem:[%s12258_s7 + $0x18] ss:$12 sps:$4 sm:$0xff]  }
 0x78d   :  { %v9473_v32 = vpop.eup %9472 }
 0x78e   :  { %v4923_v9 = vadd.f32 1.0, %v9473_v32  ;;  %v9475_v2 = vpop.eup %9474  ;;  %v9283_v32 = vld [vmem:[%s12258_s7 + $0x20] ss:$12 sps:$4 sm:$0xff]  }
 0x78f   :  { %v4933_v5 = vadd.f32 1.0, %v9475_v2  ;;  %v11752_v2 = vld [vmem:[%s12258_s7 + $0x30] ss:$12 sps:$4 sm:$0xff]  }
 0x790   :  { %9476 = vrcp.f32 %v4923_v9  ;;  %v11746_v9 = vld [vmem:[%s12258_s7 + $0x34] ss:$12 sps:$4 sm:$0xff]  }
 0x791   :  { %9478 = vrcp.f32 %v4933_v5  ;;  %v11762_v5 = vld [vmem:[%s12258_s7 + $0x4c] ss:$12 sps:$4 sm:$0xff]  }
 0x79a   :  { %v9477_v31 = vpop.eup %9476 }
 0x79b   :  { %v4936_v42 = vmul.f32 %v9477_v31, %v4912_v58  ;;  %v9479_v37 = vpop.eup %9478  ;;  %v11768_v58 = vld [vmem:[%s12258_s7 + $0x48] ss:$12 sps:$4 sm:$0xff]   ;;  %v9291_v31 = vld [vmem:[%s12258_s7 + $0x50] ss:$12 sps:$4 sm:$0xff]  }
 0x79c   :  { %v4941_v39 = vsub.f32 1.0, %v9479_v37  ;;  %v4943_v10 = vmul.f32 %v9479_v37, %v11442_v41  ;;  %v11616_v41 = vld [vmem:[%s12255_s4 + $0x30] ss:$12 sps:$4 sm:$0xff]  }
 0x79d   :  { %v4939_v46 = vadd.f32 %v4937_v60, %v4936_v42  ;;  %v11778_v42 = vld [vmem:[%s12258_s7 + $0x64] ss:$12 sps:$4 sm:$0xff]   ;;  %v11784_v60 = vld [vmem:[%s12258_s7 + $0x60] ss:$12 sps:$4 sm:$0xff]   ;;  %v11793_v37 = vld [vmem:[%s12258_s7 + $0x7c] ss:$12 sps:$4 sm:$0xff]  }
 0x79f   :  { %9480 = vtanh.f32 %v4939_v46  ;;  %v9295_v46 = vld [vmem:[%s12258_s7 + $0x68] ss:$12 sps:$4 sm:$0xff]  }
 0x7a9   :  { %v9481_v24 = vpop.eup %9480 }
 0x7aa   :  { %v4942_v4 = vmul.f32 %v9481_v24, %v4941_v39  ;;  %v11799_v39 = vld [vmem:[%s12258_s7 + $0x78] ss:$12 sps:$4 sm:$0xff]   ;;  %v9299_v24 = vld [vmem:[%s12258_s7 + $0x80] ss:$12 sps:$4 sm:$0xff]  }
 0x7ac   :  { %v4944_v12 = vadd.f32 %v4943_v10, %v4942_v4  ;;  %v11809_v4 = vld [vmem:[%s12258_s7 + $0x94] ss:$12 sps:$4 sm:$0xff]   ;;  %v11815_v10 = vld [vmem:[%s12258_s7 + $0x90] ss:$12 sps:$4 sm:$0xff]  }
 0x7ae   :  { %v4945_v57 = vpack.c.bf16 %v4944_v12, %v4944_v12  ;;  %5484 = vst [vmem:[#allocation4] sm:$0x3] %v4944_v12  ;;  %v9303_v12 = vld [vmem:[%s12258_s7 + $0x98] ss:$12 sps:$4 sm:$0xff]  }
 0x7b0   :  { %5156 = vmatmul.mubr.bf16.vlgmr.msra.gmra.mrb[48].mxu0 %v4945_v57  ;;  %8609 = vmatmul.mubr.bf16.vlgmr.msra.gmra.mrb[68].mxu1 %v4945_v57  ;;  %v11831_v57 = vld [vmem:[%s12258_s7 + $0xa8] ss:$12 sps:$4 sm:$0xff]  }
 0x7b1   :  { %5383 = vmatpush1.bf16.msra.mxu0 %v11267_v13  ;;  %8613 = vmatpush3.bf16.msra.mxu1 %v9236_v17  ;;  %v9238_v13 = vld [vmem:[%s12259_s8 + $0x38] ss:$12 sps:$4 sm:$0xff]  }
 0x7b2   :  { %5384 = vmatprep.subr.bf16.mxu0 %v11275_v20  ;;  %8614 = vmatprep.subr.bf16.mxu1 %v12275_v15  ;;  %v9239_v20 = vld [vmem:[%s12259_s8 + $0x50] ss:$12 sps:$4 sm:$0xff]   ;;  %v11825_v17 = vld [vmem:[%s12258_s7 + $0xac] ss:$12 sps:$4 sm:$0xff]  }
 0x7b3   :  { %5414 = vmatprep.mubr.bf16.mxu0 %v12274_v6  ;;  %8628 = vmatprep.mubr.msk.bf16.mxu1 %vm9581_vm3, %v12275_v15 }
 0x7b5   :  { %5385 = vmatpush1.bf16.msra.mxu0 %v11281_v3  ;;  %8615 = vmatpush3.bf16.msra.mxu1 %v9237_v21  ;;  %v9240_v3 = vld [vmem:[%s12259_s8 + $0x68] ss:$12 sps:$4 sm:$0xff]   ;;  %v11703_v26 = vld [vmem:[#allocation4] sm:$0x3]  ;;  %v9307_v21 = vld [vmem:[%s12258_s7 + $0xb0] ss:$12 sps:$4 sm:$0xff]  }
 0x7b6   :  { %5386 = vmatprep.subr.bf16.mxu0 %v11291_v19  ;;  %8616 = vmatprep.subr.bf16.mxu1 %v12275_v15  ;;  %v9241_v19 = vld [vmem:[%s12259_s8 + $0x80] ss:$12 sps:$4 sm:$0xff]   ;;  %v5490_v30 = vpack.c.bf16 %v11703_v26, %v11703_v26 }
 0x7b9   :  { %5387 = vmatpush1.bf16.msra.mxu0 %v11300_v28  ;;  %8617 = vmatpush3.bf16.msra.mxu1 %v9238_v13  ;;  %v9242_v28 = vld [vmem:[%s12259_s8 + $0x98] ss:$12 sps:$4 sm:$0xff]  }
 0x7ba   :  { %5388 = vmatprep.subr.bf16.mxu0 %v11310_v16  ;;  %8618 = vmatprep.subr.bf16.mxu1 %v12275_v15  ;;  %v9243_v16 = vld [vmem:[%s12259_s8 + $0xb0] ss:$12 sps:$4 sm:$0xff]  }
 0x7bb   :  { %v11841_v13 = vld [vmem:[%s12259_s8 + $0x4] ss:$12 sps:$4 sm:$0xff]  }
 0x7bd   :  { %5389 = vmatpush1.bf16.msra.mxu0 %v11316_v38  ;;  %8619 = vmatpush3.bf16.msra.mxu1 %v9239_v20  ;;  %v11571_v38 = vld [vmem:[%s12255_s4 + $0x4] ss:$12 sps:$4 sm:$0xff]  }
 0x7be   :  { %5390 = vmatprep.subr.bf16.mxu0 %v11326_v54  ;;  %8620 = vmatprep.subr.bf16.mxu1 %v12275_v15  ;;  %v11573_v54 = vld [vmem:[#allocation5] sm:$0x3] }
 0x7c1   :  { %5391 = vmatpush1.bf16.msra.mxu0 %v11332_v63  ;;  %8621 = vmatpush3.bf16.msra.mxu1 %v9240_v3  ;;  %v11579_v63 = vld [vmem:[%s12255_s4] ss:$12 sps:$4 sm:$0xff]  }
 0x7c2   :  { %5392 = vmatprep.subr.bf16.mxu0 %v11342_v36  ;;  %8622 = vmatprep.subr.bf16.mxu1 %v12275_v15  ;;  %v9247_v36 = vld [vmem:[%s12255_s4 + $0x8] ss:$12 sps:$4 sm:$0xff]  }
 0x7c5   :  { %5393 = vmatpush1.bf16.msra.mxu0 %v11348_v7  ;;  %8623 = vmatpush3.bf16.msra.mxu1 %v9241_v19  ;;  %v5204_v7 = vpack.c.bf16 %v11573_v54, %v11573_v54 }
 0x7c6   :  { %5394 = vmatprep.subr.bf16.mxu0 %v11358_v8  ;;  %8624 = vmatprep.subr.bf16.mxu1 %v12275_v15  ;;  %v11591_v8 = vld [vmem:[%s12255_s4 + $0x1c] ss:$12 sps:$4 sm:$0xff]  }
 0x7c9   :  { %5395 = vmatpush1.bf16.msra.mxu0 %v11364_v56  ;;  %8625 = vmatpush3.bf16.msra.mxu1 %v9242_v28  ;;  %v11597_v56 = vld [vmem:[%s12255_s4 + $0x18] ss:$12 sps:$4 sm:$0xff]  }
 0x7ca   :  { %5396 = vmatprep.subr.bf16.mxu0 %v11374_v11  ;;  %8626 = vmatprep.subr.bf16.mxu1 %v12275_v15  ;;  %v9251_v11 = vld [vmem:[%s12255_s4 + $0x20] ss:$12 sps:$4 sm:$0xff]  }
 0x7cd   :  { %5397 = vmatpush1.bf16.msra.mxu0 %v11380_v40  ;;  %8627 = vmatpush3.bf16.msra.mxu1 %v9243_v16  ;;  %v11607_v40 = vld [vmem:[%s12255_s4 + $0x34] ss:$12 sps:$4 sm:$0xff]  }
 0x7ce   :  { %5668 = vmatprep.subr.bf16.mxu0 %v11571_v38  ;;  %8632 = vmatprep.subr.bf16.mxu1 %v12275_v15  ;;  %v5237_v16 = vld [vmem:[%s12261_s10] sm:$0x7] }
 0x7d0   :  { %5415 = vmatmul.mubr.bf16.vlgmr.msra.gmra.mrb[48].mxu0 %v5204_v7  ;;  %8629 = vmatmul.mubr.bf16.vlgmr.msra.gmra.mrb[72].mxu1 %v5204_v7 }
 0x7d1   :  { %5669 = vmatpush1.bf16.msra.mxu0 %v11579_v63  ;;  %8633 = vmatpush3.bf16.msra.mxu1 %v9247_v36  ;;  %v4978_v36 = vld [vmem:[%s12260_s9] sm:$0x7] }
 0x7d2   :  { %5670 = vmatprep.subr.bf16.mxu0 %v11591_v8  ;;  %8634 = vmatprep.subr.bf16.mxu1 %v12275_v15  ;;  %v4983_v7 = vrot.slane %v4978_v36, %v10000_v43 }
 0x7d3   :  { %5700 = vmatprep.mubr.bf16.mxu0 %v12274_v6  ;;  %8648 = vmatprep.mubr.msk.bf16.mxu1 %vm9581_vm3, %v12275_v15 }
 0x7d5   :  { %5671 = vmatpush1.bf16.msra.mxu0 %v11597_v56  ;;  %8635 = vmatpush3.bf16.msra.mxu1 %v9251_v11  ;;  %v5242_v11 = vrot.slane %v5237_v16, %v10000_v43 }
 0x7d6   :  { %5672 = vmatprep.subr.bf16.mxu0 %v11607_v40  ;;  %8636 = vmatprep.subr.bf16.mxu1 %v12275_v15 }
 0x7d9   :  { %5673 = vmatpush1.bf16.msra.mxu0 %v11616_v41  ;;  %8637 = vmatpush3.bf16.msra.mxu1 %v9255_v34  ;;  %v4987_v34 = vrot.slane %v4978_v36, %v10003_v44 }
 0x7da   :  { %5674 = vmatprep.subr.bf16.mxu0 %v11626_v48  ;;  %8638 = vmatprep.subr.bf16.mxu1 %v12275_v15 }
 0x7dd   :  { %5675 = vmatpush1.bf16.msra.mxu0 %v11632_v51  ;;  %8639 = vmatpush3.bf16.msra.mxu1 %v9259_v0  ;;  %v5246_v0 = vrot.slane %v5237_v16, %v10003_v44 }
 0x7de   :  { %5676 = vmatprep.subr.bf16.mxu0 %v11642_v1  ;;  %8640 = vmatprep.subr.bf16.mxu1 %v12275_v15 }
 0x7e1   :  { %5677 = vmatpush1.bf16.msra.mxu0 %v11648_v25  ;;  %8641 = vmatpush3.bf16.msra.mxu1 %v9263_v49  ;;  %v8792_v49 = vadd.f32 %v5242_v11, %v4983_v7  ;;  %v5250_v7 = vrot.slane %v5237_v16, %v10006_v45  ;;  %v4991_v11 = vrot.slane %v4978_v36, %v10006_v45  ;;  %v5750_v36 = vld [vmem:[#allocation2 + $0x24] sm:$0x3f] }
 0x7e2   :  { %5678 = vmatprep.subr.bf16.mxu0 %v11658_v29  ;;  %8642 = vmatprep.subr.bf16.mxu1 %v12275_v15 }
 0x7e5   :  { %5679 = vmatpush1.bf16.msra.mxu0 %v11664_v52  ;;  %8643 = vmatpush3.bf16.msra.mxu1 %v9267_v27 }
 0x7e6   :  { %5680 = vmatprep.subr.bf16.mxu0 %v11674_v55  ;;  %8644 = vmatprep.subr.bf16.mxu1 %v12275_v15 }
 0x7e9   :  { %5681 = vmatpush1.bf16.msra.mxu0 %v11680_v50  ;;  %8645 = vmatpush3.bf16.msra.mxu1 %v9271_v18 }
 0x7ea   :  { %5682 = vmatprep.subr.bf16.mxu0 %v11690_v53  ;;  %8646 = vmatprep.subr.bf16.mxu1 %v12275_v15 }
 0x7ed   :  { %5683 = vmatpush1.bf16.msra.mxu0 %v11696_v59  ;;  %8647 = vmatpush3.bf16.msra.mxu1 %v9275_v22  ;;  %v8794_v22 = vadd.f32 %v5246_v0, %v4987_v34  ;;  %v5523_v0 = vld [vmem:[%s12257_s6] sm:$0x7] }
 0x7ee   :  { %8652 = vmatprep.subr.bf16.mxu1 %v12275_v15  ;;  %5955 = vmatprep.subr.bf16.mxu0 %v11715_v35 }
 0x7f0   :  { %5701 = vmatmul.mubr.bf16.vlgmr.msra.gmra.mrb[52].mxu0 %v5490_v30  ;;  %8649 = vmatmul.mubr.bf16.vlgmr.msra.gmra.mrb[76].mxu1 %v5490_v30 }
 0x7f1   :  { %5987 = vmatprep.mubr.bf16.mxu0 %v12274_v6  ;;  %8668 = vmatprep.mubr.msk.bf16.mxu1 %vm9581_vm3, %v12275_v15 }
 0x7f2   :  { %5956 = vmatpush1.bf16.msra.mxu0 %v11720_v62  ;;  %8653 = vmatpush3.bf16.msra.mxu1 %v9279_v33 }
 0x7f3   :  { %8654 = vmatprep.subr.bf16.mxu1 %v12275_v15  ;;  %5957 = vmatprep.subr.bf16.mxu0 %v11730_v61 }
 0x7f6   :  { %5958 = vmatpush1.bf16.msra.mxu0 %v11736_v14  ;;  %8655 = vmatpush3.bf16.msra.mxu1 %v9283_v32 }
 0x7f7   :  { %8656 = vmatprep.subr.bf16.mxu1 %v12275_v15  ;;  %5959 = vmatprep.subr.bf16.mxu0 %v11746_v9 }
 0x7fa   :  { %5960 = vmatpush1.bf16.msra.mxu0 %v11752_v2  ;;  %8657 = vmatpush3.bf16.msra.mxu1 %v9287_v47 }
 0x7fb   :  { %8658 = vmatprep.subr.bf16.mxu1 %v12275_v15  ;;  %5961 = vmatprep.subr.bf16.mxu0 %v11762_v5 }
 0x7fe   :  { %5962 = vmatpush1.bf16.msra.mxu0 %v11768_v58  ;;  %8659 = vmatpush3.bf16.msra.mxu1 %v9291_v31 }
 0x7ff   :  { %8660 = vmatprep.subr.bf16.mxu1 %v12275_v15  ;;  %5963 = vmatprep.subr.bf16.mxu0 %v11778_v42 }
 0x802   :  { %5964 = vmatpush1.bf16.msra.mxu0 %v11784_v60  ;;  %8661 = vmatpush3.bf16.msra.mxu1 %v9295_v46 }
 0x803   :  { %5965 = vmatprep.subr.bf16.mxu0 %v11793_v37  ;;  %8662 = vmatprep.subr.bf16.mxu1 %v12275_v15 }
 0x806   :  { %5966 = vmatpush1.bf16.msra.mxu0 %v11799_v39  ;;  %8663 = vmatpush3.bf16.msra.mxu1 %v9299_v24 }
 0x807   :  { %5967 = vmatprep.subr.bf16.mxu0 %v11809_v4  ;;  %8664 = vmatprep.subr.bf16.mxu1 %v12275_v15 }
 0x80a   :  { %5968 = vmatpush1.bf16.msra.mxu0 %v11815_v10  ;;  %8665 = vmatpush3.bf16.msra.mxu1 %v9303_v12 }
 0x80b   :  { %5969 = vmatprep.subr.bf16.mxu0 %v11825_v17  ;;  %8666 = vmatprep.subr.bf16.mxu1 %v12275_v15 }
 0x80e   :  { %5970 = vmatpush1.bf16.msra.mxu0 %v11831_v57  ;;  %8667 = vmatpush3.bf16.msra.mxu1 %v9307_v21 }
 0x80f   :  { %6214 = vmatprep.subr.bf16.mxu0 %v11841_v13  ;;  %8672 = vmatprep.subr.bf16.mxu1 %v12275_v15 }
 0x883   :  { %v5198_v20 = vpop.f32.mrb[68].mxu1 }
 0x884   :  { %v8610_v3 = vpop.f32.mrb[69].mxu1 }
 0x885   :  { %v5201_v19 = vpop.f32.mrb[70].mxu1 }
 0x886   :  { %v8611_v28 = vpop.f32.mrb[71].mxu1 }
 0x8a3   :  { %v5416_v27 = vpop.f32.mrb[48].mxu0  ;;  %v5457_v18 = vpop.f32.mrb[72].mxu1 }
 0x8a4   :  { %v8793_v30 = vadd.f32 %v8792_v49, %v5416_v27  ;;  %v5418_v33 = vpop.f32.mrb[49].mxu0  ;;  %v8630_v32 = vpop.f32.mrb[73].mxu1  ;;  %v5458_v49 = vadd.f32 %v5457_v18, %v5250_v7 }
 0x8a5   :  { %v5420_v47 = vpop.f32.mrb[50].mxu0  ;;  %v5460_v31 = vpop.f32.mrb[74].mxu1  ;;  %v8795_v21 = vadd.f32 %v8794_v22, %v5418_v33  ;;  %v5528_v33 = vrot.slane %v5523_v0, %v10000_v43  ;;  %v5532_v32 = vrot.slane %v5523_v0, %v10003_v44 }
 0x8a6   :  { %v7880_v46 = vmul.f32 -1.442695, %v8793_v30  ;;  %v5421_v24 = vpop.f32.mrb[51].mxu0  ;;  %v8631_v12 = vpop.f32.mrb[75].mxu1  ;;  %v5199_v30 = vadd.f32 %v5198_v20, %v4991_v11 }
 0x8a7   :  { %v7881_v3 = vmul.f32 -1.442695, %v8795_v21 }
 0x8a8   :  { %9482 = vpow2.f32 %v7880_v46 }
 0x8a9   :  { %9484 = vpow2.f32 %v7881_v3 }
 0x8b2   :  { %v9483_v19 = vpop.eup %9482 }
 0x8b3   :  { %v5467_v28 = vadd.f32 1.0, %v9483_v19  ;;  %v9485_v23 = vpop.eup %9484 }
 0x8b4   :  { %v5474_v34 = vadd.f32 1.0, %v9485_v23 }
 0x8b5   :  { %9486 = vrcp.f32 %v5467_v28  ;;  %v5759_v28 = vrot.slane %v5750_v36, 2 }
 0x8b6   :  { %9488 = vrcp.f32 %v5474_v34 }
 0x8bf   :  { %v9487_v27 = vpop.eup %9486 }
 0x8c0   :  { %v5477_v22 = vmul.f32 %v9487_v27, %v5458_v49  ;;  %v9489_v34 = vpop.eup %9488 }
 0x8c1   :  { %v5480_v49 = vsub.f32 1.0, %v9489_v34 }
 0x8c2   :  { %v5478_v47 = vadd.f32 %v5477_v22, %v5199_v30 }
 0x8c3   :  { %v5702_v31 = vpop.f32.mrb[52].mxu0  ;;  %v5743_v46 = vpop.f32.mrb[76].mxu1 }
 0x8c4   :  { %9490 = vtanh.f32 %v5478_v47  ;;  %v5703_v16 = vadd.f32 %v5702_v31, %v5528_v33  ;;  %v5704_v23 = vpop.f32.mrb[53].mxu0  ;;  %v8650_v24 = vpop.f32.mrb[77].mxu1  ;;  %v5482_v33 = vmul.f32 %v9489_v34, %v11573_v54 }
 0x8c5   :  { %v5705_v12 = vadd.f32 %v5704_v23, %v5532_v32  ;;  %v5706_v21 = vpop.f32.mrb[54].mxu0  ;;  %v5746_v3 = vpop.f32.mrb[78].mxu1  ;;  %v5536_v23 = vrot.slane %v5523_v0, %v10006_v45  ;;  %v9311_v0 = vld [vmem:[%s12259_s8 + $0x8] ss:$12 sps:$4 sm:$0xff]  }
 0x8c6   :  { %v5751_v18 = vadd.f32 %v5750_v36, %v5703_v16  ;;  %v5707_v19 = vpop.f32.mrb[55].mxu0  ;;  %v8651_v20 = vpop.f32.mrb[79].mxu1 }
 0x8c7   :  { %v5761_v11 = vadd.f32 %v5759_v28, %v5705_v12  ;;  %v5744_v12 = vadd.f32 %v5743_v46, %v5536_v23  ;;  %v11934_v23 = vld [vmem:[%s12259_s8 + $0x60] ss:$12 sps:$4 sm:$0xff]  }
 0x8c8   :  { %v7906_v7 = vmul.f32 -1.442695, %v5751_v18  ;;  %v5769_v18 = vrot.slane %v5750_v36, 4  ;;  %v11877_v36 = vld [vmem:[%s12259_s8 + $0x1c] ss:$12 sps:$4 sm:$0xff]  }
 0x8c9   :  { %v7907_v27 = vmul.f32 -1.442695, %v5761_v11 }
 0x8ca   :  { %9492 = vpow2.f32 %v7906_v7 }
 0x8cb   :  { %9494 = vpow2.f32 %v7907_v27  ;;  %v9315_v27 = vld [vmem:[%s12259_s8 + $0x20] ss:$12 sps:$4 sm:$0xff]  }
 0x8ce   :  { %v9491_v30 = vpop.eup %9490 }
 0x8cf   :  { %v5481_v22 = vmul.f32 %v9491_v30, %v5480_v49  ;;  %v11869_v49 = vld [vmem:[%s12259_s8] ss:$12 sps:$4 sm:$0xff]  }
 0x8d0   :  { %v11893_v30 = vld [vmem:[%s12259_s8 + $0x34] ss:$12 sps:$4 sm:$0xff]  }
 0x8d1   :  { %v5483_v47 = vadd.f32 %v5482_v33, %v5481_v22  ;;  %v11902_v22 = vld [vmem:[%s12259_s8 + $0x30] ss:$12 sps:$4 sm:$0xff]   ;;  %v9319_v33 = vld [vmem:[%s12259_s8 + $0x38] ss:$12 sps:$4 sm:$0xff]  }
 0x8d3   :  { %5487 = vst [vmem:[#allocation3 + $0xa] sm:$0x3] %v5483_v47  ;;  %5485 = vst [vmem:[#allocation5] sm:$0x3] %v5483_v47  ;;  %v11912_v47 = vld [vmem:[%s12259_s8 + $0x4c] ss:$12 sps:$4 sm:$0xff]  }
 0x8d4   :  { %v9493_v32 = vpop.eup %9492 }
 0x8d5   :  { %v5755_v31 = vadd.f32 1.0, %v9493_v32  ;;  %v9495_v16 = vpop.eup %9494  ;;  %v11918_v32 = vld [vmem:[%s12259_s8 + $0x48] ss:$12 sps:$4 sm:$0xff]  }
 0x8d6   :  { %v5765_v24 = vadd.f32 1.0, %v9495_v16  ;;  %v11928_v16 = vld [vmem:[%s12259_s8 + $0x64] ss:$12 sps:$4 sm:$0xff]  }
 0x8d7   :  { %9496 = vrcp.f32 %v5755_v31  ;;  %v9323_v31 = vld [vmem:[%s12259_s8 + $0x50] ss:$12 sps:$4 sm:$0xff]  }
 0x8d8   :  { %9498 = vrcp.f32 %v5765_v24  ;;  %v9327_v24 = vld [vmem:[%s12259_s8 + $0x68] ss:$12 sps:$4 sm:$0xff]  }
 0x8e1   :  { %v9497_v21 = vpop.eup %9496 }
 0x8e2   :  { %v5768_v3 = vmul.f32 %v9497_v21, %v5744_v12  ;;  %v9499_v20 = vpop.eup %9498  ;;  %v11944_v12 = vld [vmem:[%s12259_s8 + $0x7c] ss:$12 sps:$4 sm:$0xff]   ;;  %v11950_v21 = vld [vmem:[%s12259_s8 + $0x78] ss:$12 sps:$4 sm:$0xff]  }
 0x8e3   :  { %v5773_v54 = vsub.f32 1.0, %v9499_v20  ;;  %v5775_v11 = vmul.f32 %v9499_v20, %v11703_v26  ;;  %v11883_v26 = vld [vmem:[%s12259_s8 + $0x18] ss:$12 sps:$4 sm:$0xff]  }
 0x8e4   :  { %v5771_v19 = vadd.f32 %v5769_v18, %v5768_v3  ;;  %v9331_v3 = vld [vmem:[%s12259_s8 + $0x80] ss:$12 sps:$4 sm:$0xff]   ;;  %v9335_v20 = vld [vmem:[%s12259_s8 + $0x98] ss:$12 sps:$4 sm:$0xff]  }
 0x8e5   :  { %v11960_v18 = vld [vmem:[%s12259_s8 + $0x94] ss:$12 sps:$4 sm:$0xff]  }
 0x8e6   :  { %9500 = vtanh.f32 %v5771_v19  ;;  %v11966_v19 = vld [vmem:[%s12259_s8 + $0x90] ss:$12 sps:$4 sm:$0xff]  }
 0x8f0   :  { %v9501_v28 = vpop.eup %9500 }
 0x8f1   :  { %v5774_v7 = vmul.f32 %v9501_v28, %v5773_v54  ;;  %v11976_v54 = vld [vmem:[%s12259_s8 + $0xac] ss:$12 sps:$4 sm:$0xff]   ;;  %v11982_v28 = vld [vmem:[%s12259_s8 + $0xa8] ss:$12 sps:$4 sm:$0xff]  }
 0x8f3   :  { %v5776_v34 = vadd.f32 %v5775_v11, %v5774_v7  ;;  %v9339_v7 = vld [vmem:[%s12259_s8 + $0xb0] ss:$12 sps:$4 sm:$0xff]   ;;  %v11989_v11 = vld [vmem:[#allocation5] sm:$0x3] }
 0x8f5   :  { %v5777_v46 = vpack.c.bf16 %v5776_v34, %v5776_v34  ;;  %6316 = vst [vmem:[#allocation4] sm:$0x3] %v5776_v34  ;;  %v9340_v34 = vld [vmem:[%s12255_s4 + $0x8] ss:$12 sps:$4 sm:$0xff]  }
 0x8f7   :  { %5988 = vmatmul.mubr.bf16.vlgmr.msra.gmra.mrb[56].mxu0 %v5777_v46  ;;  %8669 = vmatmul.mubr.bf16.vlgmr.msra.gmra.mrb[80].mxu1 %v5777_v46  ;;  %v9341_v46 = vld [vmem:[%s12255_s4 + $0x20] ss:$12 sps:$4 sm:$0xff]  }
 0x8f8   :  { %6215 = vmatpush1.bf16.msra.mxu0 %v11869_v49  ;;  %8673 = vmatpush3.bf16.msra.mxu1 %v9311_v0  ;;  %v6036_v0 = vpack.c.bf16 %v11989_v11, %v11989_v11 }
 0x8f9   :  { %6216 = vmatprep.subr.bf16.mxu0 %v11877_v36  ;;  %8674 = vmatprep.subr.bf16.mxu1 %v12275_v15 }
 0x8fa   :  { %6246 = vmatprep.mubr.bf16.mxu0 %v12274_v6  ;;  %8688 = vmatprep.mubr.msk.bf16.mxu1 %vm9581_vm3, %v12275_v15 }
 0x8fc   :  { %6217 = vmatpush1.bf16.msra.mxu0 %v11883_v26  ;;  %8675 = vmatpush3.bf16.msra.mxu1 %v9315_v27 }
 0x8fd   :  { %6218 = vmatprep.subr.bf16.mxu0 %v11893_v30  ;;  %8676 = vmatprep.subr.bf16.mxu1 %v12275_v15 }
 0x900   :  { %6219 = vmatpush1.bf16.msra.mxu0 %v11902_v22  ;;  %8677 = vmatpush3.bf16.msra.mxu1 %v9319_v33 }
 0x901   :  { %6220 = vmatprep.subr.bf16.mxu0 %v11912_v47  ;;  %8678 = vmatprep.subr.bf16.mxu1 %v12275_v15 }
 0x904   :  { %6221 = vmatpush1.bf16.msra.mxu0 %v11918_v32  ;;  %8679 = vmatpush3.bf16.msra.mxu1 %v9323_v31 }
 0x905   :  { %6222 = vmatprep.subr.bf16.mxu0 %v11928_v16  ;;  %8680 = vmatprep.subr.bf16.mxu1 %v12275_v15 }
 0x908   :  { %6223 = vmatpush1.bf16.msra.mxu0 %v11934_v23  ;;  %8681 = vmatpush3.bf16.msra.mxu1 %v9327_v24 }
 0x909   :  { %6224 = vmatprep.subr.bf16.mxu0 %v11944_v12  ;;  %8682 = vmatprep.subr.bf16.mxu1 %v12275_v15 }
 0x90c   :  { %6225 = vmatpush1.bf16.msra.mxu0 %v11950_v21  ;;  %8683 = vmatpush3.bf16.msra.mxu1 %v9331_v3 }
 0x90d   :  { %6226 = vmatprep.subr.bf16.mxu0 %v11960_v18  ;;  %8684 = vmatprep.subr.bf16.mxu1 %v12275_v15 }
 0x910   :  { %6227 = vmatpush1.bf16.msra.mxu0 %v11966_v19  ;;  %8685 = vmatpush3.bf16.msra.mxu1 %v9335_v20 }
 0x911   :  { %6228 = vmatprep.subr.bf16.mxu0 %v11976_v54  ;;  %8686 = vmatprep.subr.bf16.mxu1 %v12275_v15 }
 0x914   :  { %6229 = vmatpush1.bf16.msra.mxu0 %v11982_v28  ;;  %8687 = vmatpush3.bf16.msra.mxu1 %v9339_v7 }
 0x915   :  { %6500 = vmatprep.subr.bf16.mxu0 %v11571_v38  ;;  %8692 = vmatprep.subr.bf16.mxu1 %v12275_v15  ;;  %v9342_v38 = vld [vmem:[%s12255_s4 + $0x38] ss:$12 sps:$4 sm:$0xff]  }
 0x917   :  { %6247 = vmatmul.mubr.bf16.vlgmr.msra.gmra.mrb[56].mxu0 %v6036_v0  ;;  %8689 = vmatmul.mubr.bf16.vlgmr.msra.gmra.mrb[84].mxu1 %v6036_v0 }
 0x918   :  { %6501 = vmatpush1.bf16.msra.mxu0 %v11579_v63  ;;  %8693 = vmatpush3.bf16.msra.mxu1 %v9340_v34  ;;  %v9343_v63 = vld [vmem:[%s12255_s4 + $0x50] ss:$12 sps:$4 sm:$0xff]  }
 0x919   :  { %6502 = vmatprep.subr.bf16.mxu0 %v11591_v8  ;;  %8694 = vmatprep.subr.bf16.mxu1 %v12275_v15  ;;  %v9344_v8 = vld [vmem:[%s12255_s4 + $0x68] ss:$12 sps:$4 sm:$0xff]  }
 0x91a   :  { %6532 = vmatprep.mubr.bf16.mxu0 %v12274_v6  ;;  %8708 = vmatprep.mubr.msk.bf16.mxu1 %vm9581_vm3, %v12275_v15 }
 0x91c   :  { %6503 = vmatpush1.bf16.msra.mxu0 %v11597_v56  ;;  %8695 = vmatpush3.bf16.msra.mxu1 %v9341_v46  ;;  %v9345_v56 = vld [vmem:[%s12255_s4 + $0x80] ss:$12 sps:$4 sm:$0xff]  }
 0x91d   :  { %6504 = vmatprep.subr.bf16.mxu0 %v11607_v40  ;;  %8696 = vmatprep.subr.bf16.mxu1 %v12275_v15  ;;  %v9346_v40 = vld [vmem:[%s12255_s4 + $0x98] ss:$12 sps:$4 sm:$0xff]  }
 0x920   :  { %6505 = vmatpush1.bf16.msra.mxu0 %v11616_v41  ;;  %8697 = vmatpush3.bf16.msra.mxu1 %v9342_v38  ;;  %v9347_v41 = vld [vmem:[%s12255_s4 + $0xb0] ss:$12 sps:$4 sm:$0xff]  }
 0x921   :  { %6506 = vmatprep.subr.bf16.mxu0 %v11626_v48  ;;  %8698 = vmatprep.subr.bf16.mxu1 %v12275_v15  ;;  %v12044_v48 = vld [vmem:[#allocation4] sm:$0x3] }
 0x924   :  { %6507 = vmatpush1.bf16.msra.mxu0 %v11632_v51  ;;  %8699 = vmatpush3.bf16.msra.mxu1 %v9343_v63  ;;  %v6322_v51 = vpack.c.bf16 %v12044_v48, %v12044_v48 }
 0x925   :  { %6508 = vmatprep.subr.bf16.mxu0 %v11642_v1  ;;  %8700 = vmatprep.subr.bf16.mxu1 %v12275_v15  ;;  %v9348_v1 = vld [vmem:[%s12258_s7 + $0x8] ss:$12 sps:$4 sm:$0xff]  }
 0x928   :  { %6509 = vmatpush1.bf16.msra.mxu0 %v11648_v25  ;;  %8701 = vmatpush3.bf16.msra.mxu1 %v9344_v8  ;;  %v9349_v25 = vld [vmem:[%s12258_s7 + $0x20] ss:$12 sps:$4 sm:$0xff]  }
 0x929   :  { %6510 = vmatprep.subr.bf16.mxu0 %v11658_v29  ;;  %8702 = vmatprep.subr.bf16.mxu1 %v12275_v15  ;;  %v9350_v29 = vld [vmem:[%s12258_s7 + $0x38] ss:$12 sps:$4 sm:$0xff]  }
 0x92c   :  { %6511 = vmatpush1.bf16.msra.mxu0 %v11664_v52  ;;  %8703 = vmatpush3.bf16.msra.mxu1 %v9345_v56  ;;  %v9351_v52 = vld [vmem:[%s12258_s7 + $0x50] ss:$12 sps:$4 sm:$0xff]   ;;  %v6355_v56 = vld [vmem:[%s12257_s6] sm:$0x7] }
 0x92d   :  { %6512 = vmatprep.subr.bf16.mxu0 %v11674_v55  ;;  %8704 = vmatprep.subr.bf16.mxu1 %v12275_v15  ;;  %v9352_v55 = vld [vmem:[%s12258_s7 + $0x68] ss:$12 sps:$4 sm:$0xff]  }
 0x930   :  { %6513 = vmatpush1.bf16.msra.mxu0 %v11680_v50  ;;  %8705 = vmatpush3.bf16.msra.mxu1 %v9346_v40  ;;  %v9353_v50 = vld [vmem:[%s12258_s7 + $0x80] ss:$12 sps:$4 sm:$0xff]  }
 0x931   :  { %6514 = vmatprep.subr.bf16.mxu0 %v11690_v53  ;;  %8706 = vmatprep.subr.bf16.mxu1 %v12275_v15  ;;  %v9354_v53 = vld [vmem:[%s12258_s7 + $0x98] ss:$12 sps:$4 sm:$0xff]  }
 0x934   :  { %6515 = vmatpush1.bf16.msra.mxu0 %v11696_v59  ;;  %8707 = vmatpush3.bf16.msra.mxu1 %v9347_v41  ;;  %v9355_v59 = vld [vmem:[%s12258_s7 + $0xb0] ss:$12 sps:$4 sm:$0xff]  }
 0x935   :  { %6787 = vmatprep.subr.bf16.mxu0 %v11715_v35  ;;  %8712 = vmatprep.subr.bf16.mxu1 %v12275_v15 }
 0x937   :  { %6533 = vmatmul.mubr.bf16.vlgmr.msra.gmra.mrb[60].mxu0 %v6322_v51  ;;  %8709 = vmatmul.mubr.bf16.vlgmr.msra.gmra.mrb[88].mxu1 %v6322_v51 }
 0x938   :  { %6788 = vmatpush1.bf16.msra.mxu0 %v11720_v62  ;;  %6819 = vmatprep.mubr.bf16.mxu0 %v12274_v6 }
 0x939   :  { %6789 = vmatprep.subr.bf16.mxu0 %v11730_v61  ;;  %8728 = vmatprep.mubr.msk.bf16.mxu1 %vm9581_vm3, %v12275_v15 }
 0x93a   :  { %8713 = vmatpush3.bf16.msra.mxu1 %v9348_v1 }
 0x93b   :  { %8714 = vmatprep.subr.bf16.mxu1 %v12275_v15 }
 0x93c   :  { %6790 = vmatpush1.bf16.msra.mxu0 %v11736_v14 }
 0x93d   :  { %6791 = vmatprep.subr.bf16.mxu0 %v11746_v9  ;;  %v6069_v9 = vld [vmem:[%s12261_s10] sm:$0x7] }
 0x93e   :  { %8715 = vmatpush3.bf16.msra.mxu1 %v9349_v25  ;;  %v6082_v38 = vrot.slane %v6069_v9, %v10006_v45  ;;  %v6360_v25 = vrot.slane %v6355_v56, %v10000_v43 }
 0x93f   :  { %8716 = vmatprep.subr.bf16.mxu1 %v12275_v15 }
 0x940   :  { %6792 = vmatpush1.bf16.msra.mxu0 %v11752_v2  ;;  %v5810_v2 = vld [vmem:[%s12260_s9] sm:$0x7] }
 0x941   :  { %6793 = vmatprep.subr.bf16.mxu0 %v11762_v5  ;;  %v5815_v5 = vrot.slane %v5810_v2, %v10000_v43  ;;  %v5823_v63 = vrot.slane %v5810_v2, %v10006_v45 }
 0x942   :  { %8717 = vmatpush3.bf16.msra.mxu1 %v9350_v29  ;;  %v6364_v29 = vrot.slane %v6355_v56, %v10003_v44 }
 0x943   :  { %8718 = vmatprep.subr.bf16.mxu1 %v12275_v15 }
 0x944   :  { %6794 = vmatpush1.bf16.msra.mxu0 %v11768_v58  ;;  %v6074_v58 = vrot.slane %v6069_v9, %v10000_v43 }
 0x945   :  { %6795 = vmatprep.subr.bf16.mxu0 %v11778_v42  ;;  %v5819_v42 = vrot.slane %v5810_v2, %v10003_v44 }
 0x946   :  { %8719 = vmatpush3.bf16.msra.mxu1 %v9351_v52 }
 0x947   :  { %8720 = vmatprep.subr.bf16.mxu1 %v12275_v15 }
 0x948   :  { %6796 = vmatpush1.bf16.msra.mxu0 %v11784_v60  ;;  %v6078_v60 = vrot.slane %v6069_v9, %v10003_v44 }
 0x949   :  { %6797 = vmatprep.subr.bf16.mxu0 %v11793_v37  ;;  %v8796_v37 = vadd.f32 %v6074_v58, %v5815_v5 }
 0x94a   :  { %8721 = vmatpush3.bf16.msra.mxu1 %v9352_v55 }
 0x94b   :  { %8722 = vmatprep.subr.bf16.mxu1 %v12275_v15 }
 0x94c   :  { %6798 = vmatpush1.bf16.msra.mxu0 %v11799_v39 }
 0x94d   :  { %6799 = vmatprep.subr.bf16.mxu0 %v11809_v4 }
 0x94e   :  { %8723 = vmatpush3.bf16.msra.mxu1 %v9353_v50 }
 0x94f   :  { %8724 = vmatprep.subr.bf16.mxu1 %v12275_v15 }
 0x950   :  { %6800 = vmatpush1.bf16.msra.mxu0 %v11815_v10  ;;  %v8798_v10 = vadd.f32 %v6078_v60, %v5819_v42 }
 0x951   :  { %6801 = vmatprep.subr.bf16.mxu0 %v11825_v17 }
 0x952   :  { %8725 = vmatpush3.bf16.msra.mxu1 %v9354_v53 }
 0x953   :  { %8726 = vmatprep.subr.bf16.mxu1 %v12275_v15 }
 0x954   :  { %6802 = vmatpush1.bf16.msra.mxu0 %v11831_v57 }
 0x955   :  { %7046 = vmatprep.subr.bf16.mxu0 %v11841_v13 }
 0x956   :  { %8727 = vmatpush3.bf16.msra.mxu1 %v9355_v59  ;;  %v6582_v59 = vld [vmem:[#allocation2 + $0x2a] sm:$0x3f] }
 0x957   :  { %8732 = vmatprep.subr.bf16.mxu1 %v12275_v15  ;;  %v6591_v42 = vrot.slane %v6582_v59, 2 }
 0x9ca   :  { %v6030_v35 = vpop.f32.mrb[80].mxu1 }
 0x9cb   :  { %v8670_v62 = vpop.f32.mrb[81].mxu1  ;;  %v6031_v51 = vadd.f32 %v6030_v35, %v5823_v63 }
 0x9cc   :  { %v6033_v61 = vpop.f32.mrb[82].mxu1 }
 0x9cd   :  { %v8671_v14 = vpop.f32.mrb[83].mxu1 }
 0x9ea   :  { %v6248_v39 = vpop.f32.mrb[56].mxu0  ;;  %v6289_v4 = vpop.f32.mrb[84].mxu1 }
 0x9eb   :  { %v8797_v17 = vadd.f32 %v8796_v37, %v6248_v39  ;;  %v6250_v57 = vpop.f32.mrb[57].mxu0  ;;  %v8690_v13 = vpop.f32.mrb[85].mxu1  ;;  %v6290_v40 = vadd.f32 %v6289_v4, %v6082_v38 }
 0x9ec   :  { %v6252_v27 = vpop.f32.mrb[58].mxu0  ;;  %v6292_v33 = vpop.f32.mrb[86].mxu1  ;;  %v8799_v20 = vadd.f32 %v8798_v10, %v6250_v57 }
 0x9ed   :  { %v7956_v31 = vmul.f32 -1.442695, %v8797_v17  ;;  %v6253_v24 = vpop.f32.mrb[59].mxu0  ;;  %v8691_v3 = vpop.f32.mrb[87].mxu1 }
 0x9ee   :  { %v7957_v7 = vmul.f32 -1.442695, %v8799_v20  ;;  %v6368_v3 = vrot.slane %v6355_v56, %v10006_v45 }
 0x9ef   :  { %9502 = vpow2.f32 %v7956_v31 }
 0x9f0   :  { %9504 = vpow2.f32 %v7957_v7 }
 0x9f9   :  { %v9503_v34 = vpop.eup %9502 }
 0x9fa   :  { %v6299_v0 = vadd.f32 1.0, %v9503_v34  ;;  %v9505_v46 = vpop.eup %9504 }
 0x9fb   :  { %v6306_v8 = vadd.f32 1.0, %v9505_v46  ;;  %v6601_v46 = vrot.slane %v6582_v59, 4 }
 0x9fc   :  { %9506 = vrcp.f32 %v6299_v0 }
 0x9fd   :  { %9508 = vrcp.f32 %v6306_v8 }
 0xa06   :  { %v9507_v41 = vpop.eup %9506 }
 0xa07   :  { %v6309_v1 = vmul.f32 %v9507_v41, %v6290_v40  ;;  %v9509_v39 = vpop.eup %9508 }
 0xa08   :  { %v6312_v4 = vsub.f32 1.0, %v9509_v39  ;;  %v6314_v13 = vmul.f32 %v9509_v39, %v11989_v11 }
 0xa09   :  { %v6310_v52 = vadd.f32 %v6309_v1, %v6031_v51  ;;  %v9356_v1 = vld [vmem:[%s12259_s8 + $0x8] ss:$12 sps:$4 sm:$0xff]  }
 0xa0a   :  { %v6534_v55 = vpop.f32.mrb[60].mxu0  ;;  %v6575_v50 = vpop.f32.mrb[88].mxu1 }
 0xa0b   :  { %9510 = vtanh.f32 %v6310_v52  ;;  %v6535_v53 = vadd.f32 %v6534_v55, %v6360_v25  ;;  %v6536_v62 = vpop.f32.mrb[61].mxu0  ;;  %v8710_v61 = vpop.f32.mrb[89].mxu1  ;;  %v6576_v7 = vadd.f32 %v6575_v50, %v6368_v3  ;;  %v9357_v25 = vld [vmem:[%s12259_s8 + $0x20] ss:$12 sps:$4 sm:$0xff]  }
 0xa0c   :  { %v6537_v14 = vadd.f32 %v6536_v62, %v6364_v29  ;;  %v6538_v9 = vpop.f32.mrb[62].mxu0  ;;  %v6578_v2 = vpop.f32.mrb[90].mxu1 }
 0xa0d   :  { %v6583_v5 = vadd.f32 %v6582_v59, %v6535_v53  ;;  %v6539_v58 = vpop.f32.mrb[63].mxu0  ;;  %v8711_v35 = vpop.f32.mrb[91].mxu1  ;;  %v6901_v53 = vld [vmem:[%s12261_s10] sm:$0x7] }
 0xa0e   :  { %v6593_v37 = vadd.f32 %v6591_v42, %v6537_v14  ;;  %v6642_v59 = vld [vmem:[%s12260_s9] sm:$0x7]  ;;  %v6906_v61 = vrot.slane %v6901_v53, %v10000_v43 }
 0xa0f   :  { %v7982_v60 = vmul.f32 -1.442695, %v6583_v5  ;;  %v6647_v62 = vrot.slane %v6642_v59, %v10000_v43  ;;  %v6651_v14 = vrot.slane %v6642_v59, %v10003_v44 }
 0xa10   :  { %v7983_v10 = vmul.f32 -1.442695, %v6593_v37 }
 0xa11   :  { %9512 = vpow2.f32 %v7982_v60  ;;  %v8800_v9 = vadd.f32 %v6906_v61, %v6647_v62 }
 0xa12   :  { %9514 = vpow2.f32 %v7983_v10 }
 0xa15   :  { %v9511_v17 = vpop.eup %9510 }
 0xa16   :  { %v6313_v57 = vmul.f32 %v9511_v17, %v6312_v4 }
 0xa18   :  { %v6315_v27 = vadd.f32 %v6314_v13, %v6313_v57 }
 0xa1a   :  { %6319 = vst [vmem:[#allocation3 + $0xc] sm:$0x3] %v6315_v27  ;;  %6317 = vst [vmem:[#allocation5] sm:$0x3] %v6315_v27 }
 0xa1b   :  { %v9513_v33 = vpop.eup %9512 }
 0xa1c   :  { %v6587_v31 = vadd.f32 1.0, %v9513_v33  ;;  %v9515_v24 = vpop.eup %9514  ;;  %v6914_v33 = vrot.slane %v6901_v53, %v10006_v45 }
 0xa1d   :  { %v6597_v20 = vadd.f32 1.0, %v9515_v24 }
 0xa1e   :  { %9516 = vrcp.f32 %v6587_v31  ;;  %v6655_v31 = vrot.slane %v6642_v59, %v10006_v45  ;;  %v7154_v45 = vld [vmem:[#allocation3 + $0x4] sm:$0x3] }
 0xa1f   :  { %9518 = vrcp.f32 %v6597_v20 }
 0xa28   :  { %v9517_v34 = vpop.eup %9516 }
 0xa29   :  { %v6600_v0 = vmul.f32 %v9517_v34, %v6576_v7  ;;  %v9519_v63 = vpop.eup %9518 }
 0xa2a   :  { %v6605_v11 = vsub.f32 1.0, %v9519_v63  ;;  %v6607_v41 = vmul.f32 %v9519_v63, %v12044_v48 }
 0xa2b   :  { %v6603_v38 = vadd.f32 %v6601_v46, %v6600_v0 }
 0xa2d   :  { %9520 = vtanh.f32 %v6603_v38 }
 0xa37   :  { %v9521_v8 = vpop.eup %9520 }
 0xa38   :  { %v6606_v40 = vmul.f32 %v9521_v8, %v6605_v11 }
 0xa3a   :  { %v6608_v51 = vadd.f32 %v6607_v41, %v6606_v40  ;;  %v7155_v41 = vld [vmem:[#allocation3 + $0x6] sm:$0x3] }
 0xa3c   :  { %v6609_v56 = vpack.c.bf16 %v6608_v51, %v6608_v51  ;;  %7148 = vst [vmem:[#allocation4] sm:$0x3] %v6608_v51  ;;  %v7153_v51 = vld [vmem:[#allocation3 + $0x2] sm:$0x3] }
 0xa3e   :  { %6820 = vmatmul.mubr.bf16.vlgmr.msra.gmra.mrb[64].mxu0 %v6609_v56  ;;  %8729 = vmatmul.mubr.bf16.vlgmr.msra.gmra.mrb[92].mxu1 %v6609_v56  ;;  %v7169_v56 = vcombine.low %v7154_v45, %v7155_v41 }
 0xa3f   :  { %7047 = vmatpush1.bf16.msra.mxu0 %v11869_v49  ;;  %8733 = vmatpush3.bf16.msra.mxu1 %v9356_v1  ;;  %v9358_v49 = vld [vmem:[%s12259_s8 + $0x38] ss:$12 sps:$4 sm:$0xff]  }
 0xa40   :  { %7048 = vmatprep.subr.bf16.mxu0 %v11877_v36  ;;  %8734 = vmatprep.subr.bf16.mxu1 %v12275_v15  ;;  %v9360_v36 = vld [vmem:[%s12259_s8 + $0x68] ss:$12 sps:$4 sm:$0xff]   ;;  %v7157_v1 = vld [vmem:[#allocation3 + $0xa] sm:$0x3] }
 0xa41   :  { %7078 = vmatprep.mubr.bf16.mxu0 %v12274_v6  ;;  %8748 = vmatprep.mubr.msk.bf16.mxu1 %vm9581_vm3, %v12275_v15  ;;  %v9359_v6 = vld [vmem:[%s12259_s8 + $0x50] ss:$12 sps:$4 sm:$0xff]  }
 0xa43   :  { %v7369_v48 = vld [vmem:[#allocation4] sm:$0x3]  ;;  %7049 = vmatpush1.bf16.msra.mxu0 %v11883_v26  ;;  %8735 = vmatpush3.bf16.msra.mxu1 %v9357_v25  ;;  %v7152_v25 = vld [vmem:[#allocation3] sm:$0x3] }
 0xa44   :  { %7370 = vst [vmem:[%s12265_s14] sm:$0x3] %v7369_v48  ;;  %7050 = vmatprep.subr.bf16.mxu0 %v11893_v30  ;;  %8736 = vmatprep.subr.bf16.mxu1 %v12275_v15  ;;  %v9361_v26 = vld [vmem:[%s12259_s8 + $0x80] ss:$12 sps:$4 sm:$0xff]   ;;  %v9362_v30 = vld [vmem:[%s12259_s8 + $0x98] ss:$12 sps:$4 sm:$0xff]  }
 0xa45   :  { %v7156_v48 = vld [vmem:[#allocation3 + $0x8] sm:$0x3] }
 0xa47   :  { %7051 = vmatpush1.bf16.msra.mxu0 %v11902_v22  ;;  %8737 = vmatpush3.bf16.msra.mxu1 %v9358_v49  ;;  %v9363_v22 = vld [vmem:[%s12259_s8 + $0xb0] ss:$12 sps:$4 sm:$0xff]   ;;  %v7168_v49 = vcombine.low %v7152_v25, %v7153_v51 }
 0xa48   :  { %7052 = vmatprep.subr.bf16.mxu0 %v11912_v47  ;;  %8738 = vmatprep.subr.bf16.mxu1 %v12275_v15  ;;  %v12173_v47 = vld [vmem:[#allocation5] sm:$0x3] }
 0xa4b   :  { %7053 = vmatpush1.bf16.msra.mxu0 %v11918_v32  ;;  %8739 = vmatpush3.bf16.msra.mxu1 %v9359_v6  ;;  %v6868_v32 = vpack.c.bf16 %v12173_v47, %v12173_v47  ;;  %v7185_v6 = vcombine.low %v7156_v48, %v7157_v1 }
 0xa4c   :  { %7054 = vmatprep.subr.bf16.mxu0 %v11928_v16  ;;  %8740 = vmatprep.subr.bf16.mxu1 %v12275_v15  ;;  %v9364_v16 = vld [vmem:[%s12262_s11] sm:$0xff]  }
 0xa4f   :  { %7055 = vmatpush1.bf16.msra.mxu0 %v11934_v23  ;;  %8741 = vmatpush3.bf16.msra.mxu1 %v9360_v36  ;;  %v9365_v23 = vld [vmem:[%s12262_s11 + $0x8] sm:$0xff]  }
 0xa50   :  { %7056 = vmatprep.subr.bf16.mxu0 %v11944_v12  ;;  %8742 = vmatprep.subr.bf16.mxu1 %v12275_v15  ;;  %v9366_v12 = vld [vmem:[%s12262_s11 + $0x10] sm:$0xff]  }
 0xa53   :  { %7057 = vmatpush1.bf16.msra.mxu0 %v11950_v21  ;;  %8743 = vmatpush3.bf16.msra.mxu1 %v9361_v26  ;;  %v9367_v21 = vld [vmem:[%s12262_s11 + $0x18] sm:$0xff]  }
 0xa54   :  { %7058 = vmatprep.subr.bf16.mxu0 %v11960_v18  ;;  %8744 = vmatprep.subr.bf16.mxu1 %v12275_v15  ;;  %v9368_v18 = vld [vmem:[%s12262_s11 + $0x20] sm:$0xff]   ;;  %v7158_v26 = vld [vmem:[#allocation3 + $0xc] sm:$0x3] }
 0xa57   :  { %7059 = vmatpush1.bf16.msra.mxu0 %v11966_v19  ;;  %8745 = vmatpush3.bf16.msra.mxu1 %v9362_v30  ;;  %v9369_v19 = vld [vmem:[%s12262_s11 + $0x28] sm:$0xff]  }
 0xa58   :  { %7060 = vmatprep.subr.bf16.mxu0 %v11976_v54  ;;  %8746 = vmatprep.subr.bf16.mxu1 %v12275_v15  ;;  %v9370_v54 = vld [vmem:[%s12262_s11 + $0x30] sm:$0xff]  }
 0xa5b   :  { %7061 = vmatpush1.bf16.msra.mxu0 %v11982_v28  ;;  %8747 = vmatpush3.bf16.msra.mxu1 %v9363_v22  ;;  %v9371_v28 = vld [vmem:[%s12262_s11 + $0x38] sm:$0xff]  }
 0xa5c   :  { %8752 = vmatprep.subr.bf16.mxu0 %v12275_v15  ;;  %v12276_v22 = vld [vmem:[#allocation9_spill] sm:$0xff] }
 0xa5e   :  { %7079 = vmatmul.mubr.bf16.vlgmr.msra.gmra.mrb[64].mxu0 %v6868_v32  ;;  %8749 = vmatmul.mubr.bf16.vlgmr.msra.gmra.mrb[96].mxu1 %v6868_v32 }
 0xa5f   :  { %8768 = vmatprep.mubr.msk.bf16.mxu0 %vm9581_vm3, %v12275_v15  ;;  %8753 = vmatpush3.bf16.msra.mxu0 %v9364_v16  ;;  %v7176_v16 = vrot.slane %v7168_v49, %v12276_v22 }
 0xa60   :  { %8754 = vmatprep.subr.bf16.mxu0 %v12275_v15 }
 0xa63   :  { %8755 = vmatpush3.bf16.msra.mxu0 %v9365_v23  ;;  %v7193_v23 = vrot.slane %v7185_v6, %v12276_v22 }
 0xa64   :  { %8756 = vmatprep.subr.bf16.mxu0 %v12275_v15 }
 0xa67   :  { %8757 = vmatpush3.bf16.msra.mxu0 %v9366_v12 }
 0xa68   :  { %8758 = vmatprep.subr.bf16.mxu0 %v12275_v15 }
 0xa6b   :  { %8759 = vmatpush3.bf16.msra.mxu0 %v9367_v21 }
 0xa6c   :  { %8760 = vmatprep.subr.bf16.mxu0 %v12275_v15 }
 0xa6f   :  { %8761 = vmatpush3.bf16.msra.mxu0 %v9368_v18 }
 0xa70   :  { %8762 = vmatprep.subr.bf16.mxu0 %v12275_v15 }
 0xa73   :  { %8763 = vmatpush3.bf16.msra.mxu0 %v9369_v19 }
 0xa74   :  { %8764 = vmatprep.subr.bf16.mxu0 %v12275_v15 }
 0xa77   :  { %8765 = vmatpush3.bf16.msra.mxu0 %v9370_v54  ;;  %v8034_v54 = vld [vmem:[%s12263_s12] ss:$0 sm:$0xff] }
 0xa78   :  { %8766 = vmatprep.subr.bf16.mxu0 %v12275_v15  ;;  %v6910_v15 = vrot.slane %v6901_v53, %v10003_v44 }
 0xa7a   :  { %v8802_v58 = vadd.f32 %v6910_v15, %v6651_v14 }
 0xa7b   :  { %8767 = vmatpush3.bf16.msra.mxu0 %v9371_v28 }
 0xb11   :  { %v6862_v29 = vpop.f32.mrb[92].mxu1 }
 0xb12   :  { %v8730_v52 = vpop.f32.mrb[93].mxu1  ;;  %v6863_v7 = vadd.f32 %v6862_v29, %v6655_v31 }
 0xb13   :  { %v6865_v55 = vpop.f32.mrb[94].mxu1 }
 0xb14   :  { %v8731_v50 = vpop.f32.mrb[95].mxu1 }
 0xb31   :  { %v7080_v2 = vpop.f32.mrb[64].mxu0  ;;  %v7121_v5 = vpop.f32.mrb[96].mxu1 }
 0xb32   :  { %v8801_v35 = vadd.f32 %v8800_v9, %v7080_v2  ;;  %v7082_v42 = vpop.f32.mrb[65].mxu0  ;;  %v8750_v60 = vpop.f32.mrb[97].mxu1  ;;  %v7122_v3 = vadd.f32 %v7121_v5, %v6914_v33 }
 0xb33   :  { %v7084_v37 = vpop.f32.mrb[66].mxu0  ;;  %v7124_v39 = vpop.f32.mrb[98].mxu1  ;;  %v8803_v57 = vadd.f32 %v8802_v58, %v7082_v42 }
 0xb34   :  { %v8032_v4 = vmul.f32 -1.442695, %v8801_v35  ;;  %v7085_v10 = vpop.f32.mrb[67].mxu0  ;;  %v8751_v17 = vpop.f32.mrb[99].mxu1 }
 0xb35   :  { %v8033_v13 = vmul.f32 -1.442695, %v8803_v57 }
 0xb36   :  { %9522 = vpow2.f32 %v8032_v4 }
 0xb37   :  { %9524 = vpow2.f32 %v8033_v13 }
 0xb40   :  { %v9523_v43 = vpop.eup %9522 }
 0xb41   :  { %v7131_v27 = vadd.f32 1.0, %v9523_v43  ;;  %v9525_v44 = vpop.eup %9524 }
 0xb42   :  { %v7138_v24 = vadd.f32 1.0, %v9525_v44 }
 0xb43   :  { %9526 = vrcp.f32 %v7131_v27 }
 0xb44   :  { %9528 = vrcp.f32 %v7138_v24 }
 0xb4d   :  { %v9527_v20 = vpop.eup %9526 }
 0xb4e   :  { %v7141_v34 = vmul.f32 %v9527_v20, %v7122_v3  ;;  %v9529_v46 = vpop.eup %9528 }
 0xb4f   :  { %v7144_v38 = vsub.f32 1.0, %v9529_v46  ;;  %v7146_v8 = vmul.f32 %v9529_v46, %v12173_v47  ;;  %v7183_v47 = vrot.slane %v7169_v56, %v12276_v22 }
 0xb50   :  { %v7142_v0 = vadd.f32 %v7141_v34, %v6863_v7 }
 0xb51   :  { %v7184_v21 = vcombine.low %v7176_v16, %v7183_v47 }
 0xb52   :  { %9530 = vtanh.f32 %v7142_v0 }
 0xb5c   :  { %v9531_v63 = vpop.eup %9530 }
 0xb5d   :  { %v7145_v11 = vmul.f32 %v9531_v63, %v7144_v38 }
 0xb5f   :  { %v7147_v40 = vadd.f32 %v7146_v8, %v7145_v11 }
 0xb61   :  { %7149 = vst [vmem:[#allocation5] sm:$0x3] %v7147_v40  ;;  %7151 = vst [vmem:[#allocation3 + $0xe] sm:$0x3] %v7147_v40 }
 0xb68   :  { %v7371_v36 = vld [vmem:[#allocation5] sm:$0x3]  ;;  %v7159_v30 = vld [vmem:[#allocation3 + $0xe] sm:$0x3] }
 0xb69   :  { %7372 = vst [vmem:[%s12266_s15] sm:$0x3] %v7371_v36  ;;  %v7186_v32 = vcombine.low %v7158_v26, %v7159_v30  ;;  %s9582_s15 = smov [#allocation6]  }
 0xb6a   :  { %s7378_s12 = sshll.u32 %s9582_s15, 4  ;;  %s7379_s12 = int_to_ptr.vmem [resolvable:$true] %s7378_s12 }
 0xb6b   :  { %v7200_v12 = vrot.slane %v7186_v32, %v12276_v22  ;;  %s9553_s16 = scalar_lea.vmem %s7379_s12, 256  ;;  %p9558_p1 = scmp.lt.s32.totalorder %s7379_s12, %s7379_s12 }
 0xb6c   :  { %p9554_p0 = scmp.ne.s32.totalorder %s7379_s12, %s9553_s16  ;;  %p9559_p2 = scmp.lt.s32.totalorder %s9553_s16, %s9553_s16 }
 0xb6d   :  { %v7201_v18 = vcombine.low %v7193_v23, %v7200_v12 }
 0xb6e   :  { %p9560_p3 = por %p9559_p2, %p9558_p1 }
 0xb6f   :  { %v7204_v19 = vpack.c.bf16 %v7201_v18, %v7184_v21 }
 0xb70   :  { %p9561_p4 = pnand %p9560_p3, %p9554_p0 }
 0xb71   :  { %8769 = vmatmul.mubr.bf16.vlgmr.msra.gmra.mrb[68].mxu0 %v7204_v19 }
 0xc44   :  { %v7310_v28 = vpop.f32.mrb[68].mxu0 }
 0xc45   :  { %v7311_v29 = vadd.f32 %v8034_v54, %v7310_v28  ;;  %v8770_v52 = vpop.f32.mrb[69].mxu0 }
 0xc46   :  { %v7313_v55 = vpop.f32.mrb[70].mxu0 }
 0xc47   :  { %v7319_v50 = vcombine.high %v7311_v29, %v7311_v29  ;;  %v7326_v53 = vrot.slane %v7311_v29, %v12276_v22  ;;  %8043 = vst.sshfl [vmem:[#allocation6] sm:$0x3 pattern:$0x76325410] %v7311_v29  ;;  %v7314_v59 = vadd.f32 %v8034_v54, %v7313_v55  ;;  %v8771_v62 = vpop.f32.mrb[71].mxu0 }
 0xc49   :  { %v7333_v61 = vrot.slane %v7319_v50, %v12276_v22  ;;  %v7334_v14 = vcombine.high %v7326_v53, %v7326_v53  ;;  %8044 = vst.sshfl [vmem:[#allocation6 + $0x4] sm:$0x3 pattern:$0x76325410] %v7319_v50  ;;  %v7336_v15 = vcombine.high %v7314_v59, %v7314_v59  ;;  %v7343_v9 = vrot.slane %v7314_v59, %v12276_v22 }
 0xc4a   :  { %8045 = vst.sshfl [vmem:[#allocation6 + $0x8] sm:$0x3 pattern:$0x76325410] %v7314_v59 }
 0xc4b   :  { %v7335_v2 = vcombine.high %v7333_v61, %v7333_v61  ;;  %7362 = vst [vmem:[#allocation6 + $0x2] sm:$0x3] %v7334_v14  ;;  %v7350_v5 = vrot.slane %v7336_v15, %v12276_v22  ;;  %v7351_v58 = vcombine.high %v7343_v9, %v7343_v9  ;;  %8046 = vst.sshfl [vmem:[#allocation6 + $0xc] sm:$0x3 pattern:$0x76325410] %v7336_v15 }
 0xc4d   :  { %7364 = vst [vmem:[#allocation6 + $0x6] sm:$0x3] %v7335_v2  ;;  %v7352_v35 = vcombine.high %v7350_v5, %v7350_v5  ;;  %7366 = vst [vmem:[#allocation6 + $0xa] sm:$0x3] %v7351_v58 }
 0xc4f   :  { %7368 = vst [vmem:[#allocation6 + $0xe] sm:$0x3] %v7352_v35 }
 0xc50   :  { %9564 = shalt.err (!%p9561_p4)
}
 0xc51   :  { %s9565_s17 = scalar_lea.hbm %s12264_s13, 256 }
 0xc52   :  { %p9566_p5 = scmp.ne.s32.totalorder %s12264_s13, %s9565_s17  ;;  %p9569_p6 = scmp.lt.u32.totalorder %s9565_s17, %s12264_s13 }
 0xc54   :  { %p9571_p7 = pnand %p9569_p6, %p9566_p5 }
 0xc56   :  { %9574 = shalt.err (!%p9571_p7)
}
 0xc57   :  { %s9583_s19 = smov 32   ;;  %s9584_s7 = smov 2  }
 0xc58   :  { %7384 = dma.vmem_to_hbm [thread:$0]  %s7379_s12, 256, %s12264_s13, [#allocation7], %s9583_s19, %s9583_s19, %s9584_s7  }
 0xc59   :  { %9575 = dma.done.wait [#allocation7], 256  }
 0xc5a   :  { %9576 = vsyncadd [#allocation7], 4294967040 }
 0xc5b   :  { %7396 = vsyncpa [#allocation7], 1 }

</bundles_post_ra>
